<compile_context>
chip_gen: v6e
topology: v6e:2x2x1
jax: 0.10.0
libtpu: 0.0.40
codegen_flags: <defaults>
</compile_context>

<pallas_src>
import math
from functools import partial

import numpy as np
import jax
import jax.numpy as jnp
from jax.experimental import pallas as pl
from jax.experimental.pallas import tpu as pltpu


# ----------------------------------------------------------------------------
# small in-kernel helper
# ----------------------------------------------------------------------------
def _layer_norm(z, g, b, eps=1e-5):
    mu = jnp.mean(z, axis=-1, keepdims=True)
    var = jnp.mean(jnp.square(z - mu), axis=-1, keepdims=True)
    return (z - mu) * jax.lax.rsqrt(var + eps) * g + b


# ----------------------------------------------------------------------------
# parameters (generated directly in the kernel's packed layouts)
# ----------------------------------------------------------------------------
def init_params(key, cfg):
    E = cfg['embed_dim']
    H = cfg['trans_hidden_dim']
    O = cfg['trans_output_dim']
    GH = cfg['gru_hidden_dim']
    nh = cfg['trans_n_heads']
    dh = E // nh
    NL = cfg['trans_n_layers']
    NG = cfg['gru_num_layers']
    V = cfg['vocab_size']
    SENT = cfg['sent_len']
    scale = 1.0 / math.sqrt(dh)

    keys = iter(jax.random.split(key, 256))

    def rnd(shape, s=0.1):
        return (s * jax.random.normal(next(keys), shape)).astype(jnp.float32)

    p = {}
    emb = rnd((V, E))
    p['embed'] = emb.at[cfg['pad_idx']].set(0.0)               # padding_idx row is zero

    # sinusoidal positional encoding buffer, stored as (SENT, 1, E)
    pos = np.arange(SENT, dtype=np.float32)[:, None]
    div = np.exp(np.arange(0, E, 2, dtype=np.float32) * (-np.log(10000.0) / E))
    pe = np.zeros((SENT, E), np.float32)
    pe[:, 0::2] = np.sin(pos * div)
    pe[:, 1::2] = np.cos(pos * div)
    p['pe'] = jnp.asarray(pe)[:, None, :]

    # transformer layers: packed QKV (Q pre-scaled by 1/sqrt(dh)), dense out-proj.
    wq = rnd((NL, E, E)) * scale
    wk = rnd((NL, E, E))
    wv = rnd((NL, E, E))
    bq = rnd((NL, 1, E)) * scale
    bk = rnd((NL, 1, E))
    bv = rnd((NL, 1, E))
    p['wqkv'] = jnp.concatenate([wq, wk, wv], axis=-1)         # (NL, E, 3E)
    p['bqkv'] = jnp.concatenate([bq, bk, bv], axis=-1)         # (NL, 1, 3E)
    p['wo'] = rnd((NL, E, E))
    p['bo'] = rnd((NL, 1, E))
    p['g1'] = jnp.ones((NL, 1, E), jnp.float32)
    p['be1'] = jnp.zeros((NL, 1, E), jnp.float32)
    p['w1'] = rnd((NL, E, H))
    p['b1'] = rnd((NL, 1, H))
    p['w2'] = rnd((NL, H, E))
    p['b2'] = rnd((NL, 1, E))
    p['g2'] = jnp.ones((NL, 1, E), jnp.float32)
    p['be2'] = jnp.zeros((NL, 1, E), jnp.float32)

    p['fc_t_w'] = rnd((E, O))                                  # TransformerNet.fc
    p['fc_t_b'] = rnd((1, O))

    # bidirectional GRU; gate columns packed [fwd (r,z,n) | bwd (r,z,n)] = 6*GH.
    # The recurrent weight is block-diagonal so ONE matmul per step serves both
    # directions (the zero blocks are free on the MXU at this size).
    for k in range(NG):
        in_dim = O if k == 0 else 2 * GH
        p[f'gru{k}_wi'] = jnp.concatenate(
            [rnd((in_dim, 3 * GH)), rnd((in_dim, 3 * GH))], axis=-1)       # (in, 6GH)
        p[f'gru{k}_bi'] = jnp.concatenate(
            [rnd((1, 3 * GH)), rnd((1, 3 * GH))], axis=-1)                 # (1, 6GH)
        whf = rnd((GH, 3 * GH))
        whb = rnd((GH, 3 * GH))
        wh = jnp.zeros((2 * GH, 6 * GH), jnp.float32)
        wh = wh.at[:GH, :3 * GH].set(whf)
        wh = wh.at[GH:, 3 * GH:].set(whb)
        p[f'gru{k}_wh'] = wh                                               # block-diagonal
        p[f'gru{k}_bh'] = jnp.concatenate(
            [rnd((1, 3 * GH)), rnd((1, 3 * GH))], axis=-1)

    # attention-pooling head: fc (2GH, 2GH) and context vector cv
    p['fc_w'] = rnd((2 * GH, 2 * GH))
    p['fc_b'] = rnd((1, 2 * GH))
    p['cv'] = (0.05 * jax.random.normal(next(keys), (1, 2 * GH))).astype(jnp.float32)
    return p


def _param_order(cfg):
    names = ['embed', 'pe', 'wqkv', 'bqkv', 'wo', 'bo',
             'g1', 'be1', 'w1', 'b1', 'w2', 'b2', 'g2', 'be2',
             'fc_t_w', 'fc_t_b']
    for k in range(cfg['gru_num_layers']):
        names += [f'gru{k}_wi', f'gru{k}_bi', f'gru{k}_wh', f'gru{k}_bh']
    names += ['fc_w', 'fc_b', 'cv']
    return names


# ----------------------------------------------------------------------------
# fused forward pass: one pallas_call, everything VMEM resident, no grid
# ----------------------------------------------------------------------------
def forward(docs, params, cfg):
    B, DOC, SENT = docs.shape
    E = cfg['embed_dim']
    GH = cfg['gru_hidden_dim']
    nh = cfg['trans_n_heads']
    dh = E // nh
    NL = cfg['trans_n_layers']
    NG = cfg['gru_num_layers']
    V = cfg['vocab_size']
    L = B * DOC
    G3 = 3 * GH
    pnames = _param_order(cfg)

    # bf16 matmul operands only where the VPU/MXU have native bf16 paths (v6e/v7x);
    # v5e and older keep f32 (review item).  Accumulation is always f32.
    try:
        kind = jax.devices()[0].device_kind.lower()
    except Exception:
        kind = ''
    use_bf16 = ('v6' in kind) or ('v7' in kind)

    def kernel(*refs):
        tok_ref = refs[0]
        pr = dict(zip(pnames, refs[1:1 + len(pnames)]))
        o_ref = refs[1 + len(pnames)]
        f32 = jnp.float32

        def cast(a):
            return a.astype(jnp.bfloat16) if use_bf16 else a

        def mm2(a, w):                                  # (M,K)@(K,N) -> f32
            return jnp.dot(cast(a), cast(w), preferred_element_type=f32)

        def mm3(a, w):                                  # (S,L,K)@(K,N) -> f32
            return jnp.einsum('slk,kn->sln', cast(a), cast(w),
                              preferred_element_type=f32)

        # ---- embedding (one-hot matmul; pad row of the table is zero) + pos enc ----
        tok = tok_ref[...]                                          # (SENT, L, 1) int32
        iota = jax.lax.broadcasted_iota(jnp.int32, (SENT, L, V), 2)
        onehot = (iota == tok).astype(f32)                          # (SENT, L, V)
        x = jnp.einsum('slv,ve->sle', onehot, pr['embed'][...],
                       preferred_element_type=f32)                  # (SENT, L, E)
        x = x + pr['pe'][...]                                       # PE along SENT; dropout = id

        # ---- transformer encoder layers (post-norm, ReLU FFN, no padding mask) ----
        # Layout (SENT, L, E): SENT is the batch axis, L = B*DOC the sequence axis,
        # exactly matching the reference's batch_first=False encoder fed (B*DOC,SENT,E).
        for l in range(NL):
            qkv = mm3(x, pr['wqkv'][l]) + pr['bqkv'][l]             # (SENT, L, 3E)
            q = qkv[:, :, :E]
            k = qkv[:, :, E:2 * E]
            v = qkv[:, :, 2 * E:]
            # fold heads into the batch axis -> ONE batched einsum for all heads
            qh = jnp.concatenate([q[:, :, h * dh:(h + 1) * dh] for h in range(nh)], axis=0)
            kh = jnp.concatenate([k[:, :, h * dh:(h + 1) * dh] for h in range(nh)], axis=0)
            vh = jnp.concatenate([v[:, :, h * dh:(h + 1) * dh] for h in range(nh)], axis=0)
            s = jnp.einsum('bld,bmd->blm', qh, kh,
                           preferred_element_type=f32)              # (nh*SENT, L, L)
            s = s - jnp.max(s, axis=-1, keepdims=True)
            es = jnp.exp(s)
            p_att = es / jnp.sum(es, axis=-1, keepdims=True)        # exact softmax
            ctx_h = jnp.einsum('blm,bmd->bld', p_att, vh,
                               preferred_element_type=f32)          # (nh*SENT, L, dh)
            ctx = jnp.concatenate([ctx_h[h * SENT:(h + 1) * SENT] for h in range(nh)],
                                  axis=-1)                          # (SENT, L, E)
            attn = mm3(ctx, pr['wo'][l]) + pr['bo'][l]              # dense (E,E) out-proj
            x = _layer_norm(x + attn, pr['g1'][l], pr['be1'][l])
            ff = jnp.maximum(mm3(x, pr['w1'][l]) + pr['b1'][l], 0.0)
            ff = mm3(ff, pr['w2'][l]) + pr['b2'][l]
            x = _layer_norm(x + ff, pr['g2'][l], pr['be2'][l])

        # ---- mean over the SENT axis, then TransformerNet.fc ----
        pooled = jnp.mean(x, axis=0)                                # (L, E)
        seq = mm2(pooled, pr['fc_t_w'][...]) + pr['fc_t_b'][...]    # (L, O), doc-major rows

        # ---- bidirectional multi-layer GRU over the document axis ----
        # Input projections for both directions are hoisted into one matmul per layer;
        # the recurrence does one block-diagonal matmul per step for fwd+bwd.
        # (2-row slices are kept instead of a (DOC,B,.) reshape: they are hoisted off
        # the serial path, cost ~nothing at B=2, and avoid a riskier sublane-split
        # relayout in Mosaic.)
        layer_in = seq
        rows = None
        for g in range(NG):
            gi_all = mm2(layer_in, pr[f'gru{g}_wi'][...]) + pr[f'gru{g}_bi'][...]  # (L, 6GH)
            gi_rows = [gi_all[t * B:(t + 1) * B, :] for t in range(DOC)]
            wh = pr[f'gru{g}_wh'][...]
            bh = pr[f'gru{g}_bh'][...]
            h = jnp.zeros((B, 2 * GH), f32)
            fwd_out = [None] * DOC
            bwd_out = [None] * DOC
            for i in range(DOC):
                j = DOC - 1 - i
                gh = jnp.dot(h, wh, preferred_element_type=f32) + bh   # (B, 6GH), f32 serial path
                # forward direction consumes doc position i
                gif = gi_rows[i][:, :G3]
                ghf = gh[:, :G3]
                rf = jax.nn.sigmoid(gif[:, :GH] + ghf[:, :GH])
                zf = jax.nn.sigmoid(gif[:, GH:2 * GH] + ghf[:, GH:2 * GH])
                nf = jnp.tanh(gif[:, 2 * GH:] + rf * ghf[:, 2 * GH:])
                hf = (1.0 - zf) * nf + zf * h[:, :GH]
                # backward direction consumes doc position j
                gib = gi_rows[j][:, G3:]
                ghb = gh[:, G3:]
                rb = jax.nn.sigmoid(gib[:, :GH] + ghb[:, :GH])
                zb = jax.nn.sigmoid(gib[:, GH:2 * GH] + ghb[:, GH:2 * GH])
                nb = jnp.tanh(gib[:, 2 * GH:] + rb * ghb[:, 2 * GH:])
                hb = (1.0 - zb) * nb + zb * h[:, GH:]
                h = jnp.concatenate([hf, hb], axis=-1)
                fwd_out[i] = hf
                bwd_out[j] = hb
            rows = [jnp.concatenate([fwd_out[t], bwd_out[t]], axis=-1) for t in range(DOC)]
            layer_in = jnp.concatenate(rows, axis=0)                # (L, 2GH), doc-major

        out_all = layer_in                                          # (L, 2GH)

        # ---- attention pooling over the document axis (vectorized) ----
        u = jnp.tanh(mm2(out_all, pr['fc_w'][...]) + pr['fc_b'][...])     # (L, 2GH)
        ip = jnp.sum(u * pr['cv'][...], axis=-1, keepdims=True)           # (L, 1)
        ip_bd = jnp.concatenate([ip[t * B:(t + 1) * B, :] for t in range(DOC)],
                                axis=1)                                    # (B, DOC)
        ip_bd = ip_bd - jnp.max(ip_bd, axis=-1, keepdims=True)
        ew = jnp.exp(ip_bd)
        att = ew / jnp.sum(ew, axis=-1, keepdims=True)                     # exact softmax
        out = jnp.zeros((B, 2 * GH), f32)
        for t in range(DOC):
            out = out + att[:, t:t + 1] * rows[t]
        o_ref[...] = out                                                   # (B, 2GH)

    vmem = pl.BlockSpec(memory_space=pltpu.MemorySpace.VMEM)
    # doc-major token layout: L-row index = t*B + b (deletes the old permutation matmul)
    tok_sl = jnp.transpose(docs, (2, 1, 0)).reshape(SENT, L)[:, :, None].astype(jnp.int32)
    inputs = [tok_sl] + [params[n] for n in pnames]
    return pl.pallas_call(
        kernel,
        out_shape=jax.ShapeDtypeStruct((B, 2 * GH), jnp.float32),
        in_specs=[vmem] * len(inputs),
        out_specs=vmem,
    )(*inputs)


# ----------------------------------------------------------------------------
# main
# ----------------------------------------------------------------------------
if __name__ == "__main__":
    cfg = dict(
        vocab_size=50, embed_dim=32, trans_hidden_dim=64, trans_output_dim=16,
        trans_n_heads=4, trans_n_layers=2, trans_dropout=0.1, pad_idx=0,
        sent_len=8, gru_hidden_dim=16, gru_num_layers=2, gru_dropout=0.1,
    )
    key = jax.random.PRNGKey(0)
    k_param, k_docs = jax.random.split(key)
    params = init_params(k_param, cfg)

    B, DOC, SENT = 2, 4, 8
    docs = jax.random.randint(k_docs, (B, DOC, SENT), 0,
                              cfg['vocab_size']).astype(jnp.int32)

    fwd_fn = jax.jit(partial(forward, cfg=cfg))
    out = jax.block_until_ready(fwd_fn(docs, params))
    assert out.shape == (B, 2 * cfg['gru_hidden_dim'])
    assert bool(jnp.all(jnp.isfinite(out)))
    print("KERNEL_OK")
</pallas_src>

<mosaic_0001>
module attributes {stable_mosaic.version = 11 : i64} {
  func.func @kernel(%arg0: memref<8x8x1xi32, #tpu.memory_space<vmem>>, %arg1: memref<50x32xf32, #tpu.memory_space<vmem>>, %arg2: memref<8x1x32xf32, #tpu.memory_space<vmem>>, %arg3: memref<2x32x96xf32, #tpu.memory_space<vmem>>, %arg4: memref<2x1x96xf32, #tpu.memory_space<vmem>>, %arg5: memref<2x32x32xf32, #tpu.memory_space<vmem>>, %arg6: memref<2x1x32xf32, #tpu.memory_space<vmem>>, %arg7: memref<2x1x32xf32, #tpu.memory_space<vmem>>, %arg8: memref<2x1x32xf32, #tpu.memory_space<vmem>>, %arg9: memref<2x32x64xf32, #tpu.memory_space<vmem>>, %arg10: memref<2x1x64xf32, #tpu.memory_space<vmem>>, %arg11: memref<2x64x32xf32, #tpu.memory_space<vmem>>, %arg12: memref<2x1x32xf32, #tpu.memory_space<vmem>>, %arg13: memref<2x1x32xf32, #tpu.memory_space<vmem>>, %arg14: memref<2x1x32xf32, #tpu.memory_space<vmem>>, %arg15: memref<32x16xf32, #tpu.memory_space<vmem>>, %arg16: memref<1x16xf32, #tpu.memory_space<vmem>>, %arg17: memref<16x96xf32, #tpu.memory_space<vmem>>, %arg18: memref<1x96xf32, #tpu.memory_space<vmem>>, %arg19: memref<32x96xf32, #tpu.memory_space<vmem>>, %arg20: memref<1x96xf32, #tpu.memory_space<vmem>>, %arg21: memref<32x96xf32, #tpu.memory_space<vmem>>, %arg22: memref<1x96xf32, #tpu.memory_space<vmem>>, %arg23: memref<32x96xf32, #tpu.memory_space<vmem>>, %arg24: memref<1x96xf32, #tpu.memory_space<vmem>>, %arg25: memref<32x32xf32, #tpu.memory_space<vmem>>, %arg26: memref<1x32xf32, #tpu.memory_space<vmem>>, %arg27: memref<1x32xf32, #tpu.memory_space<vmem>>, %arg28: memref<2x32xf32, #tpu.memory_space<vmem>>) attributes {dimension_semantics = [], scalar_prefetch = 0 : i64, scratch_operands = 0 : i64, tpu.core_type = #tpu.core_type<tc>} {
    %c0 = arith.constant 0 : index
    %c0_0 = arith.constant 0 : index
    %c0_1 = arith.constant 0 : index
    %0 = vector.load %arg0[%c0, %c0_0, %c0_1] : memref<8x8x1xi32, #tpu.memory_space<vmem>>, vector<8x8x1xi32>
    %1 = tpu.iota {dimensions = array<i32: 2>} : vector<8x8x50xi32>
    %2 = vector.broadcast %0 : vector<8x8x1xi32> to vector<8x8x50xi32>
    %3 = arith.cmpi eq, %1, %2 : vector<8x8x50xi32>
    %4 = arith.extui %3 : vector<8x8x50xi1> to vector<8x8x50xi32>
    %5 = arith.sitofp %4 : vector<8x8x50xi32> to vector<8x8x50xf32>
    %c0_2 = arith.constant 0 : index
    %c0_3 = arith.constant 0 : index
    %6 = vector.load %arg1[%c0_2, %c0_3] : memref<50x32xf32, #tpu.memory_space<vmem>>, vector<50x32xf32>
    "tpu.trace_start"() <{level = 10 : i32, message = "slv,ve->sle"}> : () -> ()
    %cst = arith.constant dense<0.000000e+00> : vector<8x8x32xf32>
    %7 = tpu.matmul %5, %6, %cst {dimension_numbers = #tpu.dot_dimension_numbers<[2], [0], [0, 1], [1], [0, 0, 0, 1, 1, 1], [], []>} : vector<8x8x50xf32>, vector<50x32xf32>, vector<8x8x32xf32> -> vector<8x8x32xf32>
    "tpu.trace_stop"() : () -> ()
    %c0_4 = arith.constant 0 : index
    %c0_5 = arith.constant 0 : index
    %c0_6 = arith.constant 0 : index
    %8 = vector.load %arg2[%c0_4, %c0_5, %c0_6] : memref<8x1x32xf32, #tpu.memory_space<vmem>>, vector<8x1x32xf32>
    %9 = vector.broadcast %8 : vector<8x1x32xf32> to vector<8x8x32xf32>
    %10 = arith.addf %7, %9 : vector<8x8x32xf32>
    %c0_7 = arith.constant 0 : index
    %c0_8 = arith.constant 0 : index
    %c0_9 = arith.constant 0 : index
    %11 = vector.load %arg3[%c0_7, %c0_8, %c0_9] : memref<2x32x96xf32, #tpu.memory_space<vmem>>, vector<1x32x96xf32>
    %12 = vector.shape_cast %11 : vector<1x32x96xf32> to vector<32x96xf32>
    "tpu.trace_start"() <{level = 10 : i32, message = "slk,kn->sln"}> : () -> ()
    %cst_10 = arith.constant dense<0.000000e+00> : vector<8x8x96xf32>
    %13 = tpu.matmul %10, %12, %cst_10 {dimension_numbers = #tpu.dot_dimension_numbers<[2], [0], [0, 1], [1], [0, 0, 0, 1, 1, 1], [], []>} : vector<8x8x32xf32>, vector<32x96xf32>, vector<8x8x96xf32> -> vector<8x8x96xf32>
    "tpu.trace_stop"() : () -> ()
    %c0_11 = arith.constant 0 : index
    %c0_12 = arith.constant 0 : index
    %c0_13 = arith.constant 0 : index
    %14 = vector.load %arg4[%c0_11, %c0_12, %c0_13] : memref<2x1x96xf32, #tpu.memory_space<vmem>>, vector<1x1x96xf32>
    %15 = vector.shape_cast %14 : vector<1x1x96xf32> to vector<1x96xf32>
    %16 = vector.shape_cast %15 : vector<1x96xf32> to vector<1x1x96xf32>
    %17 = vector.broadcast %16 : vector<1x1x96xf32> to vector<8x8x96xf32>
    %18 = arith.addf %13, %17 : vector<8x8x96xf32>
    %19 = vector.extract_strided_slice %18 {offsets = [0, 0, 0], sizes = [8, 8, 32], strides = [1, 1, 1]} : vector<8x8x96xf32> to vector<8x8x32xf32>
    %20 = vector.extract_strided_slice %18 {offsets = [0, 0, 32], sizes = [8, 8, 32], strides = [1, 1, 1]} : vector<8x8x96xf32> to vector<8x8x32xf32>
    %21 = vector.extract_strided_slice %18 {offsets = [0, 0, 64], sizes = [8, 8, 32], strides = [1, 1, 1]} : vector<8x8x96xf32> to vector<8x8x32xf32>
    %22 = vector.extract_strided_slice %19 {offsets = [0, 0, 0], sizes = [8, 8, 8], strides = [1, 1, 1]} : vector<8x8x32xf32> to vector<8x8x8xf32>
    %23 = vector.extract_strided_slice %19 {offsets = [0, 0, 8], sizes = [8, 8, 8], strides = [1, 1, 1]} : vector<8x8x32xf32> to vector<8x8x8xf32>
    %24 = vector.extract_strided_slice %19 {offsets = [0, 0, 16], sizes = [8, 8, 8], strides = [1, 1, 1]} : vector<8x8x32xf32> to vector<8x8x8xf32>
    %25 = vector.extract_strided_slice %19 {offsets = [0, 0, 24], sizes = [8, 8, 8], strides = [1, 1, 1]} : vector<8x8x32xf32> to vector<8x8x8xf32>
    %26 = tpu.concatenate %22, %23, %24, %25 in 0 : vector<8x8x8xf32>, vector<8x8x8xf32>, vector<8x8x8xf32>, vector<8x8x8xf32> -> vector<32x8x8xf32>
    %27 = vector.extract_strided_slice %20 {offsets = [0, 0, 0], sizes = [8, 8, 8], strides = [1, 1, 1]} : vector<8x8x32xf32> to vector<8x8x8xf32>
    %28 = vector.extract_strided_slice %20 {offsets = [0, 0, 8], sizes = [8, 8, 8], strides = [1, 1, 1]} : vector<8x8x32xf32> to vector<8x8x8xf32>
    %29 = vector.extract_strided_slice %20 {offsets = [0, 0, 16], sizes = [8, 8, 8], strides = [1, 1, 1]} : vector<8x8x32xf32> to vector<8x8x8xf32>
    %30 = vector.extract_strided_slice %20 {offsets = [0, 0, 24], sizes = [8, 8, 8], strides = [1, 1, 1]} : vector<8x8x32xf32> to vector<8x8x8xf32>
    %31 = tpu.concatenate %27, %28, %29, %30 in 0 : vector<8x8x8xf32>, vector<8x8x8xf32>, vector<8x8x8xf32>, vector<8x8x8xf32> -> vector<32x8x8xf32>
    %32 = vector.extract_strided_slice %21 {offsets = [0, 0, 0], sizes = [8, 8, 8], strides = [1, 1, 1]} : vector<8x8x32xf32> to vector<8x8x8xf32>
    %33 = vector.extract_strided_slice %21 {offsets = [0, 0, 8], sizes = [8, 8, 8], strides = [1, 1, 1]} : vector<8x8x32xf32> to vector<8x8x8xf32>
    %34 = vector.extract_strided_slice %21 {offsets = [0, 0, 16], sizes = [8, 8, 8], strides = [1, 1, 1]} : vector<8x8x32xf32> to vector<8x8x8xf32>
    %35 = vector.extract_strided_slice %21 {offsets = [0, 0, 24], sizes = [8, 8, 8], strides = [1, 1, 1]} : vector<8x8x32xf32> to vector<8x8x8xf32>
    %36 = tpu.concatenate %32, %33, %34, %35 in 0 : vector<8x8x8xf32>, vector<8x8x8xf32>, vector<8x8x8xf32>, vector<8x8x8xf32> -> vector<32x8x8xf32>
    "tpu.trace_start"() <{level = 10 : i32, message = "bld,bmd->blm"}> : () -> ()
    %cst_14 = arith.constant dense<0.000000e+00> : vector<32x8x8xf32>
    %37 = tpu.matmul %26, %31, %cst_14 {dimension_numbers = #tpu.dot_dimension_numbers<[2], [2], [1], [1], [0, 0, 0, 1, 1, 1], [0], [0]>} : vector<32x8x8xf32>, vector<32x8x8xf32>, vector<32x8x8xf32> -> vector<32x8x8xf32>
    "tpu.trace_stop"() : () -> ()
    %cst_15 = arith.constant dense<0xFF800000> : vector<32x8xf32>
    %38 = vector.multi_reduction <maximumf>, %37, %cst_15 [2] : vector<32x8x8xf32> to vector<32x8xf32>
    %39 = vector.shape_cast %38 : vector<32x8xf32> to vector<32x8x1xf32>
    %40 = vector.broadcast %39 : vector<32x8x1xf32> to vector<32x8x8xf32>
    %41 = arith.subf %37, %40 : vector<32x8x8xf32>
    %42 = math.exp %41 : vector<32x8x8xf32>
    %cst_16 = arith.constant dense<0.000000e+00> : vector<32x8xf32>
    %43 = vector.multi_reduction <add>, %42, %cst_16 [2] : vector<32x8x8xf32> to vector<32x8xf32>
    %44 = vector.shape_cast %43 : vector<32x8xf32> to vector<32x8x1xf32>
    %45 = vector.broadcast %44 : vector<32x8x1xf32> to vector<32x8x8xf32>
    %46 = arith.divf %42, %45 : vector<32x8x8xf32>
    "tpu.trace_start"() <{level = 10 : i32, message = "blm,bmd->bld"}> : () -> ()
    %cst_17 = arith.constant dense<0.000000e+00> : vector<32x8x8xf32>
    %47 = tpu.matmul %46, %36, %cst_17 {dimension_numbers = #tpu.dot_dimension_numbers<[2], [1], [1], [2], [0, 0, 0, 1, 1, 2], [0], [0]>} : vector<32x8x8xf32>, vector<32x8x8xf32>, vector<32x8x8xf32> -> vector<32x8x8xf32>
    "tpu.trace_stop"() : () -> ()
    %48 = vector.extract_strided_slice %47 {offsets = [0, 0, 0], sizes = [8, 8, 8], strides = [1, 1, 1]} : vector<32x8x8xf32> to vector<8x8x8xf32>
    %49 = vector.extract_strided_slice %47 {offsets = [8, 0, 0], sizes = [8, 8, 8], strides = [1, 1, 1]} : vector<32x8x8xf32> to vector<8x8x8xf32>
    %50 = vector.extract_strided_slice %47 {offsets = [16, 0, 0], sizes = [8, 8, 8], strides = [1, 1, 1]} : vector<32x8x8xf32> to vector<8x8x8xf32>
    %51 = vector.extract_strided_slice %47 {offsets = [24, 0, 0], sizes = [8, 8, 8], strides = [1, 1, 1]} : vector<32x8x8xf32> to vector<8x8x8xf32>
    %52 = tpu.concatenate %48, %49, %50, %51 in 2 : vector<8x8x8xf32>, vector<8x8x8xf32>, vector<8x8x8xf32>, vector<8x8x8xf32> -> vector<8x8x32xf32>
    %c0_18 = arith.constant 0 : index
    %c0_19 = arith.constant 0 : index
    %c0_20 = arith.constant 0 : index
    %53 = vector.load %arg5[%c0_18, %c0_19, %c0_20] : memref<2x32x32xf32, #tpu.memory_space<vmem>>, vector<1x32x32xf32>
    %54 = vector.shape_cast %53 : vector<1x32x32xf32> to vector<32x32xf32>
    "tpu.trace_start"() <{level = 10 : i32, message = "slk,kn->sln"}> : () -> ()
    %cst_21 = arith.constant dense<0.000000e+00> : vector<8x8x32xf32>
    %55 = tpu.matmul %52, %54, %cst_21 {dimension_numbers = #tpu.dot_dimension_numbers<[2], [0], [0, 1], [1], [0, 0, 0, 1, 1, 1], [], []>} : vector<8x8x32xf32>, vector<32x32xf32>, vector<8x8x32xf32> -> vector<8x8x32xf32>
    "tpu.trace_stop"() : () -> ()
    %c0_22 = arith.constant 0 : index
    %c0_23 = arith.constant 0 : index
    %c0_24 = arith.constant 0 : index
    %56 = vector.load %arg6[%c0_22, %c0_23, %c0_24] : memref<2x1x32xf32, #tpu.memory_space<vmem>>, vector<1x1x32xf32>
    %57 = vector.shape_cast %56 : vector<1x1x32xf32> to vector<1x32xf32>
    %58 = vector.shape_cast %57 : vector<1x32xf32> to vector<1x1x32xf32>
    %59 = vector.broadcast %58 : vector<1x1x32xf32> to vector<8x8x32xf32>
    %60 = arith.addf %55, %59 : vector<8x8x32xf32>
    %61 = arith.addf %10, %60 : vector<8x8x32xf32>
    %c0_25 = arith.constant 0 : index
    %c0_26 = arith.constant 0 : index
    %c0_27 = arith.constant 0 : index
    %62 = vector.load %arg7[%c0_25, %c0_26, %c0_27] : memref<2x1x32xf32, #tpu.memory_space<vmem>>, vector<1x1x32xf32>
    %63 = vector.shape_cast %62 : vector<1x1x32xf32> to vector<1x32xf32>
    %c0_28 = arith.constant 0 : index
    %c0_29 = arith.constant 0 : index
    %c0_30 = arith.constant 0 : index
    %64 = vector.load %arg8[%c0_28, %c0_29, %c0_30] : memref<2x1x32xf32, #tpu.memory_space<vmem>>, vector<1x1x32xf32>
    %65 = vector.shape_cast %64 : vector<1x1x32xf32> to vector<1x32xf32>
    %cst_31 = arith.constant dense<0.000000e+00> : vector<8x8xf32>
    %66 = vector.multi_reduction <add>, %61, %cst_31 [2] : vector<8x8x32xf32> to vector<8x8xf32>
    %67 = vector.shape_cast %66 : vector<8x8xf32> to vector<8x8x1xf32>
    %cst_32 = arith.constant 3.200000e+01 : f32
    %68 = vector.broadcast %cst_32 : f32 to vector<8x8x1xf32>
    %69 = arith.divf %67, %68 : vector<8x8x1xf32>
    %70 = vector.broadcast %69 : vector<8x8x1xf32> to vector<8x8x32xf32>
    %71 = arith.subf %61, %70 : vector<8x8x32xf32>
    %72 = arith.mulf %71, %71 : vector<8x8x32xf32>
    %cst_33 = arith.constant dense<0.000000e+00> : vector<8x8xf32>
    %73 = vector.multi_reduction <add>, %72, %cst_33 [2] : vector<8x8x32xf32> to vector<8x8xf32>
    %74 = vector.shape_cast %73 : vector<8x8xf32> to vector<8x8x1xf32>
    %cst_34 = arith.constant 3.200000e+01 : f32
    %75 = vector.broadcast %cst_34 : f32 to vector<8x8x1xf32>
    %76 = arith.divf %74, %75 : vector<8x8x1xf32>
    %77 = vector.broadcast %69 : vector<8x8x1xf32> to vector<8x8x32xf32>
    %78 = arith.subf %61, %77 : vector<8x8x32xf32>
    %cst_35 = arith.constant 9.99999974E-6 : f32
    %79 = vector.broadcast %cst_35 : f32 to vector<8x8x1xf32>
    %80 = arith.addf %76, %79 : vector<8x8x1xf32>
    %81 = math.rsqrt %80 : vector<8x8x1xf32>
    %82 = vector.broadcast %81 : vector<8x8x1xf32> to vector<8x8x32xf32>
    %83 = arith.mulf %78, %82 : vector<8x8x32xf32>
    %84 = vector.shape_cast %63 : vector<1x32xf32> to vector<1x1x32xf32>
    %85 = vector.broadcast %84 : vector<1x1x32xf32> to vector<8x8x32xf32>
    %86 = arith.mulf %83, %85 : vector<8x8x32xf32>
    %87 = vector.shape_cast %65 : vector<1x32xf32> to vector<1x1x32xf32>
    %88 = vector.broadcast %87 : vector<1x1x32xf32> to vector<8x8x32xf32>
    %89 = arith.addf %86, %88 : vector<8x8x32xf32>
    %c0_36 = arith.constant 0 : index
    %c0_37 = arith.constant 0 : index
    %c0_38 = arith.constant 0 : index
    %90 = vector.load %arg9[%c0_36, %c0_37, %c0_38] : memref<2x32x64xf32, #tpu.memory_space<vmem>>, vector<1x32x64xf32>
    %91 = vector.shape_cast %90 : vector<1x32x64xf32> to vector<32x64xf32>
    "tpu.trace_start"() <{level = 10 : i32, message = "slk,kn->sln"}> : () -> ()
    %cst_39 = arith.constant dense<0.000000e+00> : vector<8x8x64xf32>
    %92 = tpu.matmul %89, %91, %cst_39 {dimension_numbers = #tpu.dot_dimension_numbers<[2], [0], [0, 1], [1], [0, 0, 0, 1, 1, 1], [], []>} : vector<8x8x32xf32>, vector<32x64xf32>, vector<8x8x64xf32> -> vector<8x8x64xf32>
    "tpu.trace_stop"() : () -> ()
    %c0_40 = arith.constant 0 : index
    %c0_41 = arith.constant 0 : index
    %c0_42 = arith.constant 0 : index
    %93 = vector.load %arg10[%c0_40, %c0_41, %c0_42] : memref<2x1x64xf32, #tpu.memory_space<vmem>>, vector<1x1x64xf32>
    %94 = vector.shape_cast %93 : vector<1x1x64xf32> to vector<1x64xf32>
    %95 = vector.shape_cast %94 : vector<1x64xf32> to vector<1x1x64xf32>
    %96 = vector.broadcast %95 : vector<1x1x64xf32> to vector<8x8x64xf32>
    %97 = arith.addf %92, %96 : vector<8x8x64xf32>
    %cst_43 = arith.constant 0.000000e+00 : f32
    %98 = vector.broadcast %cst_43 : f32 to vector<8x8x64xf32>
    %99 = arith.maximumf %97, %98 : vector<8x8x64xf32>
    %c0_44 = arith.constant 0 : index
    %c0_45 = arith.constant 0 : index
    %c0_46 = arith.constant 0 : index
    %100 = vector.load %arg11[%c0_44, %c0_45, %c0_46] : memref<2x64x32xf32, #tpu.memory_space<vmem>>, vector<1x64x32xf32>
    %101 = vector.shape_cast %100 : vector<1x64x32xf32> to vector<64x32xf32>
    "tpu.trace_start"() <{level = 10 : i32, message = "slk,kn->sln"}> : () -> ()
    %cst_47 = arith.constant dense<0.000000e+00> : vector<8x8x32xf32>
    %102 = tpu.matmul %99, %101, %cst_47 {dimension_numbers = #tpu.dot_dimension_numbers<[2], [0], [0, 1], [1], [0, 0, 0, 1, 1, 1], [], []>} : vector<8x8x64xf32>, vector<64x32xf32>, vector<8x8x32xf32> -> vector<8x8x32xf32>
    "tpu.trace_stop"() : () -> ()
    %c0_48 = arith.constant 0 : index
    %c0_49 = arith.constant 0 : index
    %c0_50 = arith.constant 0 : index
    %103 = vector.load %arg12[%c0_48, %c0_49, %c0_50] : memref<2x1x32xf32, #tpu.memory_space<vmem>>, vector<1x1x32xf32>
    %104 = vector.shape_cast %103 : vector<1x1x32xf32> to vector<1x32xf32>
    %105 = vector.shape_cast %104 : vector<1x32xf32> to vector<1x1x32xf32>
    %106 = vector.broadcast %105 : vector<1x1x32xf32> to vector<8x8x32xf32>
    %107 = arith.addf %102, %106 : vector<8x8x32xf32>
    %108 = arith.addf %89, %107 : vector<8x8x32xf32>
    %c0_51 = arith.constant 0 : index
    %c0_52 = arith.constant 0 : index
    %c0_53 = arith.constant 0 : index
    %109 = vector.load %arg13[%c0_51, %c0_52, %c0_53] : memref<2x1x32xf32, #tpu.memory_space<vmem>>, vector<1x1x32xf32>
    %110 = vector.shape_cast %109 : vector<1x1x32xf32> to vector<1x32xf32>
    %c0_54 = arith.constant 0 : index
    %c0_55 = arith.constant 0 : index
    %c0_56 = arith.constant 0 : index
    %111 = vector.load %arg14[%c0_54, %c0_55, %c0_56] : memref<2x1x32xf32, #tpu.memory_space<vmem>>, vector<1x1x32xf32>
    %112 = vector.shape_cast %111 : vector<1x1x32xf32> to vector<1x32xf32>
    %cst_57 = arith.constant dense<0.000000e+00> : vector<8x8xf32>
    %113 = vector.multi_reduction <add>, %108, %cst_57 [2] : vector<8x8x32xf32> to vector<8x8xf32>
    %114 = vector.shape_cast %113 : vector<8x8xf32> to vector<8x8x1xf32>
    %cst_58 = arith.constant 3.200000e+01 : f32
    %115 = vector.broadcast %cst_58 : f32 to vector<8x8x1xf32>
    %116 = arith.divf %114, %115 : vector<8x8x1xf32>
    %117 = vector.broadcast %116 : vector<8x8x1xf32> to vector<8x8x32xf32>
    %118 = arith.subf %108, %117 : vector<8x8x32xf32>
    %119 = arith.mulf %118, %118 : vector<8x8x32xf32>
    %cst_59 = arith.constant dense<0.000000e+00> : vector<8x8xf32>
    %120 = vector.multi_reduction <add>, %119, %cst_59 [2] : vector<8x8x32xf32> to vector<8x8xf32>
    %121 = vector.shape_cast %120 : vector<8x8xf32> to vector<8x8x1xf32>
    %cst_60 = arith.constant 3.200000e+01 : f32
    %122 = vector.broadcast %cst_60 : f32 to vector<8x8x1xf32>
    %123 = arith.divf %121, %122 : vector<8x8x1xf32>
    %124 = vector.broadcast %116 : vector<8x8x1xf32> to vector<8x8x32xf32>
    %125 = arith.subf %108, %124 : vector<8x8x32xf32>
    %cst_61 = arith.constant 9.99999974E-6 : f32
    %126 = vector.broadcast %cst_61 : f32 to vector<8x8x1xf32>
    %127 = arith.addf %123, %126 : vector<8x8x1xf32>
    %128 = math.rsqrt %127 : vector<8x8x1xf32>
    %129 = vector.broadcast %128 : vector<8x8x1xf32> to vector<8x8x32xf32>
    %130 = arith.mulf %125, %129 : vector<8x8x32xf32>
    %131 = vector.shape_cast %110 : vector<1x32xf32> to vector<1x1x32xf32>
    %132 = vector.broadcast %131 : vector<1x1x32xf32> to vector<8x8x32xf32>
    %133 = arith.mulf %130, %132 : vector<8x8x32xf32>
    %134 = vector.shape_cast %112 : vector<1x32xf32> to vector<1x1x32xf32>
    %135 = vector.broadcast %134 : vector<1x1x32xf32> to vector<8x8x32xf32>
    %136 = arith.addf %133, %135 : vector<8x8x32xf32>
    %c1 = arith.constant 1 : index
    %c0_62 = arith.constant 0 : index
    %c0_63 = arith.constant 0 : index
    %137 = vector.load %arg3[%c1, %c0_62, %c0_63] : memref<2x32x96xf32, #tpu.memory_space<vmem>>, vector<1x32x96xf32>
    %138 = vector.shape_cast %137 : vector<1x32x96xf32> to vector<32x96xf32>
    "tpu.trace_start"() <{level = 10 : i32, message = "slk,kn->sln"}> : () -> ()
    %cst_64 = arith.constant dense<0.000000e+00> : vector<8x8x96xf32>
    %139 = tpu.matmul %136, %138, %cst_64 {dimension_numbers = #tpu.dot_dimension_numbers<[2], [0], [0, 1], [1], [0, 0, 0, 1, 1, 1], [], []>} : vector<8x8x32xf32>, vector<32x96xf32>, vector<8x8x96xf32> -> vector<8x8x96xf32>
    "tpu.trace_stop"() : () -> ()
    %c1_65 = arith.constant 1 : index
    %c0_66 = arith.constant 0 : index
    %c0_67 = arith.constant 0 : index
    %140 = vector.load %arg4[%c1_65, %c0_66, %c0_67] : memref<2x1x96xf32, #tpu.memory_space<vmem>>, vector<1x1x96xf32>
    %141 = vector.shape_cast %140 : vector<1x1x96xf32> to vector<1x96xf32>
    %142 = vector.shape_cast %141 : vector<1x96xf32> to vector<1x1x96xf32>
    %143 = vector.broadcast %142 : vector<1x1x96xf32> to vector<8x8x96xf32>
    %144 = arith.addf %139, %143 : vector<8x8x96xf32>
    %145 = vector.extract_strided_slice %144 {offsets = [0, 0, 0], sizes = [8, 8, 32], strides = [1, 1, 1]} : vector<8x8x96xf32> to vector<8x8x32xf32>
    %146 = vector.extract_strided_slice %144 {offsets = [0, 0, 32], sizes = [8, 8, 32], strides = [1, 1, 1]} : vector<8x8x96xf32> to vector<8x8x32xf32>
    %147 = vector.extract_strided_slice %144 {offsets = [0, 0, 64], sizes = [8, 8, 32], strides = [1, 1, 1]} : vector<8x8x96xf32> to vector<8x8x32xf32>
    %148 = vector.extract_strided_slice %145 {offsets = [0, 0, 0], sizes = [8, 8, 8], strides = [1, 1, 1]} : vector<8x8x32xf32> to vector<8x8x8xf32>
    %149 = vector.extract_strided_slice %145 {offsets = [0, 0, 8], sizes = [8, 8, 8], strides = [1, 1, 1]} : vector<8x8x32xf32> to vector<8x8x8xf32>
    %150 = vector.extract_strided_slice %145 {offsets = [0, 0, 16], sizes = [8, 8, 8], strides = [1, 1, 1]} : vector<8x8x32xf32> to vector<8x8x8xf32>
    %151 = vector.extract_strided_slice %145 {offsets = [0, 0, 24], sizes = [8, 8, 8], strides = [1, 1, 1]} : vector<8x8x32xf32> to vector<8x8x8xf32>
    %152 = tpu.concatenate %148, %149, %150, %151 in 0 : vector<8x8x8xf32>, vector<8x8x8xf32>, vector<8x8x8xf32>, vector<8x8x8xf32> -> vector<32x8x8xf32>
    %153 = vector.extract_strided_slice %146 {offsets = [0, 0, 0], sizes = [8, 8, 8], strides = [1, 1, 1]} : vector<8x8x32xf32> to vector<8x8x8xf32>
    %154 = vector.extract_strided_slice %146 {offsets = [0, 0, 8], sizes = [8, 8, 8], strides = [1, 1, 1]} : vector<8x8x32xf32> to vector<8x8x8xf32>
    %155 = vector.extract_strided_slice %146 {offsets = [0, 0, 16], sizes = [8, 8, 8], strides = [1, 1, 1]} : vector<8x8x32xf32> to vector<8x8x8xf32>
    %156 = vector.extract_strided_slice %146 {offsets = [0, 0, 24], sizes = [8, 8, 8], strides = [1, 1, 1]} : vector<8x8x32xf32> to vector<8x8x8xf32>
    %157 = tpu.concatenate %153, %154, %155, %156 in 0 : vector<8x8x8xf32>, vector<8x8x8xf32>, vector<8x8x8xf32>, vector<8x8x8xf32> -> vector<32x8x8xf32>
    %158 = vector.extract_strided_slice %147 {offsets = [0, 0, 0], sizes = [8, 8, 8], strides = [1, 1, 1]} : vector<8x8x32xf32> to vector<8x8x8xf32>
    %159 = vector.extract_strided_slice %147 {offsets = [0, 0, 8], sizes = [8, 8, 8], strides = [1, 1, 1]} : vector<8x8x32xf32> to vector<8x8x8xf32>
    %160 = vector.extract_strided_slice %147 {offsets = [0, 0, 16], sizes = [8, 8, 8], strides = [1, 1, 1]} : vector<8x8x32xf32> to vector<8x8x8xf32>
    %161 = vector.extract_strided_slice %147 {offsets = [0, 0, 24], sizes = [8, 8, 8], strides = [1, 1, 1]} : vector<8x8x32xf32> to vector<8x8x8xf32>
    %162 = tpu.concatenate %158, %159, %160, %161 in 0 : vector<8x8x8xf32>, vector<8x8x8xf32>, vector<8x8x8xf32>, vector<8x8x8xf32> -> vector<32x8x8xf32>
    "tpu.trace_start"() <{level = 10 : i32, message = "bld,bmd->blm"}> : () -> ()
    %cst_68 = arith.constant dense<0.000000e+00> : vector<32x8x8xf32>
    %163 = tpu.matmul %152, %157, %cst_68 {dimension_numbers = #tpu.dot_dimension_numbers<[2], [2], [1], [1], [0, 0, 0, 1, 1, 1], [0], [0]>} : vector<32x8x8xf32>, vector<32x8x8xf32>, vector<32x8x8xf32> -> vector<32x8x8xf32>
    "tpu.trace_stop"() : () -> ()
    %cst_69 = arith.constant dense<0xFF800000> : vector<32x8xf32>
    %164 = vector.multi_reduction <maximumf>, %163, %cst_69 [2] : vector<32x8x8xf32> to vector<32x8xf32>
    %165 = vector.shape_cast %164 : vector<32x8xf32> to vector<32x8x1xf32>
    %166 = vector.broadcast %165 : vector<32x8x1xf32> to vector<32x8x8xf32>
    %167 = arith.subf %163, %166 : vector<32x8x8xf32>
    %168 = math.exp %167 : vector<32x8x8xf32>
    %cst_70 = arith.constant dense<0.000000e+00> : vector<32x8xf32>
    %169 = vector.multi_reduction <add>, %168, %cst_70 [2] : vector<32x8x8xf32> to vector<32x8xf32>
    %170 = vector.shape_cast %169 : vector<32x8xf32> to vector<32x8x1xf32>
    %171 = vector.broadcast %170 : vector<32x8x1xf32> to vector<32x8x8xf32>
    %172 = arith.divf %168, %171 : vector<32x8x8xf32>
    "tpu.trace_start"() <{level = 10 : i32, message = "blm,bmd->bld"}> : () -> ()
    %cst_71 = arith.constant dense<0.000000e+00> : vector<32x8x8xf32>
    %173 = tpu.matmul %172, %162, %cst_71 {dimension_numbers = #tpu.dot_dimension_numbers<[2], [1], [1], [2], [0, 0, 0, 1, 1, 2], [0], [0]>} : vector<32x8x8xf32>, vector<32x8x8xf32>, vector<32x8x8xf32> -> vector<32x8x8xf32>
    "tpu.trace_stop"() : () -> ()
    %174 = vector.extract_strided_slice %173 {offsets = [0, 0, 0], sizes = [8, 8, 8], strides = [1, 1, 1]} : vector<32x8x8xf32> to vector<8x8x8xf32>
    %175 = vector.extract_strided_slice %173 {offsets = [8, 0, 0], sizes = [8, 8, 8], strides = [1, 1, 1]} : vector<32x8x8xf32> to vector<8x8x8xf32>
    %176 = vector.extract_strided_slice %173 {offsets = [16, 0, 0], sizes = [8, 8, 8], strides = [1, 1, 1]} : vector<32x8x8xf32> to vector<8x8x8xf32>
    %177 = vector.extract_strided_slice %173 {offsets = [24, 0, 0], sizes = [8, 8, 8], strides = [1, 1, 1]} : vector<32x8x8xf32> to vector<8x8x8xf32>
    %178 = tpu.concatenate %174, %175, %176, %177 in 2 : vector<8x8x8xf32>, vector<8x8x8xf32>, vector<8x8x8xf32>, vector<8x8x8xf32> -> vector<8x8x32xf32>
    %c1_72 = arith.constant 1 : index
    %c0_73 = arith.constant 0 : index
    %c0_74 = arith.constant 0 : index
    %179 = vector.load %arg5[%c1_72, %c0_73, %c0_74] : memref<2x32x32xf32, #tpu.memory_space<vmem>>, vector<1x32x32xf32>
    %180 = vector.shape_cast %179 : vector<1x32x32xf32> to vector<32x32xf32>
    "tpu.trace_start"() <{level = 10 : i32, message = "slk,kn->sln"}> : () -> ()
    %cst_75 = arith.constant dense<0.000000e+00> : vector<8x8x32xf32>
    %181 = tpu.matmul %178, %180, %cst_75 {dimension_numbers = #tpu.dot_dimension_numbers<[2], [0], [0, 1], [1], [0, 0, 0, 1, 1, 1], [], []>} : vector<8x8x32xf32>, vector<32x32xf32>, vector<8x8x32xf32> -> vector<8x8x32xf32>
    "tpu.trace_stop"() : () -> ()
    %c1_76 = arith.constant 1 : index
    %c0_77 = arith.constant 0 : index
    %c0_78 = arith.constant 0 : index
    %182 = vector.load %arg6[%c1_76, %c0_77, %c0_78] : memref<2x1x32xf32, #tpu.memory_space<vmem>>, vector<1x1x32xf32>
    %183 = vector.shape_cast %182 : vector<1x1x32xf32> to vector<1x32xf32>
    %184 = vector.shape_cast %183 : vector<1x32xf32> to vector<1x1x32xf32>
    %185 = vector.broadcast %184 : vector<1x1x32xf32> to vector<8x8x32xf32>
    %186 = arith.addf %181, %185 : vector<8x8x32xf32>
    %187 = arith.addf %136, %186 : vector<8x8x32xf32>
    %c1_79 = arith.constant 1 : index
    %c0_80 = arith.constant 0 : index
    %c0_81 = arith.constant 0 : index
    %188 = vector.load %arg7[%c1_79, %c0_80, %c0_81] : memref<2x1x32xf32, #tpu.memory_space<vmem>>, vector<1x1x32xf32>
    %189 = vector.shape_cast %188 : vector<1x1x32xf32> to vector<1x32xf32>
    %c1_82 = arith.constant 1 : index
    %c0_83 = arith.constant 0 : index
    %c0_84 = arith.constant 0 : index
    %190 = vector.load %arg8[%c1_82, %c0_83, %c0_84] : memref<2x1x32xf32, #tpu.memory_space<vmem>>, vector<1x1x32xf32>
    %191 = vector.shape_cast %190 : vector<1x1x32xf32> to vector<1x32xf32>
    %cst_85 = arith.constant dense<0.000000e+00> : vector<8x8xf32>
    %192 = vector.multi_reduction <add>, %187, %cst_85 [2] : vector<8x8x32xf32> to vector<8x8xf32>
    %193 = vector.shape_cast %192 : vector<8x8xf32> to vector<8x8x1xf32>
    %cst_86 = arith.constant 3.200000e+01 : f32
    %194 = vector.broadcast %cst_86 : f32 to vector<8x8x1xf32>
    %195 = arith.divf %193, %194 : vector<8x8x1xf32>
    %196 = vector.broadcast %195 : vector<8x8x1xf32> to vector<8x8x32xf32>
    %197 = arith.subf %187, %196 : vector<8x8x32xf32>
    %198 = arith.mulf %197, %197 : vector<8x8x32xf32>
    %cst_87 = arith.constant dense<0.000000e+00> : vector<8x8xf32>
    %199 = vector.multi_reduction <add>, %198, %cst_87 [2] : vector<8x8x32xf32> to vector<8x8xf32>
    %200 = vector.shape_cast %199 : vector<8x8xf32> to vector<8x8x1xf32>
    %cst_88 = arith.constant 3.200000e+01 : f32
    %201 = vector.broadcast %cst_88 : f32 to vector<8x8x1xf32>
    %202 = arith.divf %200, %201 : vector<8x8x1xf32>
    %203 = vector.broadcast %195 : vector<8x8x1xf32> to vector<8x8x32xf32>
    %204 = arith.subf %187, %203 : vector<8x8x32xf32>
    %cst_89 = arith.constant 9.99999974E-6 : f32
    %205 = vector.broadcast %cst_89 : f32 to vector<8x8x1xf32>
    %206 = arith.addf %202, %205 : vector<8x8x1xf32>
    %207 = math.rsqrt %206 : vector<8x8x1xf32>
    %208 = vector.broadcast %207 : vector<8x8x1xf32> to vector<8x8x32xf32>
    %209 = arith.mulf %204, %208 : vector<8x8x32xf32>
    %210 = vector.shape_cast %189 : vector<1x32xf32> to vector<1x1x32xf32>
    %211 = vector.broadcast %210 : vector<1x1x32xf32> to vector<8x8x32xf32>
    %212 = arith.mulf %209, %211 : vector<8x8x32xf32>
    %213 = vector.shape_cast %191 : vector<1x32xf32> to vector<1x1x32xf32>
    %214 = vector.broadcast %213 : vector<1x1x32xf32> to vector<8x8x32xf32>
    %215 = arith.addf %212, %214 : vector<8x8x32xf32>
    %c1_90 = arith.constant 1 : index
    %c0_91 = arith.constant 0 : index
    %c0_92 = arith.constant 0 : index
    %216 = vector.load %arg9[%c1_90, %c0_91, %c0_92] : memref<2x32x64xf32, #tpu.memory_space<vmem>>, vector<1x32x64xf32>
    %217 = vector.shape_cast %216 : vector<1x32x64xf32> to vector<32x64xf32>
    "tpu.trace_start"() <{level = 10 : i32, message = "slk,kn->sln"}> : () -> ()
    %cst_93 = arith.constant dense<0.000000e+00> : vector<8x8x64xf32>
    %218 = tpu.matmul %215, %217, %cst_93 {dimension_numbers = #tpu.dot_dimension_numbers<[2], [0], [0, 1], [1], [0, 0, 0, 1, 1, 1], [], []>} : vector<8x8x32xf32>, vector<32x64xf32>, vector<8x8x64xf32> -> vector<8x8x64xf32>
    "tpu.trace_stop"() : () -> ()
    %c1_94 = arith.constant 1 : index
    %c0_95 = arith.constant 0 : index
    %c0_96 = arith.constant 0 : index
    %219 = vector.load %arg10[%c1_94, %c0_95, %c0_96] : memref<2x1x64xf32, #tpu.memory_space<vmem>>, vector<1x1x64xf32>
    %220 = vector.shape_cast %219 : vector<1x1x64xf32> to vector<1x64xf32>
    %221 = vector.shape_cast %220 : vector<1x64xf32> to vector<1x1x64xf32>
    %222 = vector.broadcast %221 : vector<1x1x64xf32> to vector<8x8x64xf32>
    %223 = arith.addf %218, %222 : vector<8x8x64xf32>
    %cst_97 = arith.constant 0.000000e+00 : f32
    %224 = vector.broadcast %cst_97 : f32 to vector<8x8x64xf32>
    %225 = arith.maximumf %223, %224 : vector<8x8x64xf32>
    %c1_98 = arith.constant 1 : index
    %c0_99 = arith.constant 0 : index
    %c0_100 = arith.constant 0 : index
    %226 = vector.load %arg11[%c1_98, %c0_99, %c0_100] : memref<2x64x32xf32, #tpu.memory_space<vmem>>, vector<1x64x32xf32>
    %227 = vector.shape_cast %226 : vector<1x64x32xf32> to vector<64x32xf32>
    "tpu.trace_start"() <{level = 10 : i32, message = "slk,kn->sln"}> : () -> ()
    %cst_101 = arith.constant dense<0.000000e+00> : vector<8x8x32xf32>
    %228 = tpu.matmul %225, %227, %cst_101 {dimension_numbers = #tpu.dot_dimension_numbers<[2], [0], [0, 1], [1], [0, 0, 0, 1, 1, 1], [], []>} : vector<8x8x64xf32>, vector<64x32xf32>, vector<8x8x32xf32> -> vector<8x8x32xf32>
    "tpu.trace_stop"() : () -> ()
    %c1_102 = arith.constant 1 : index
    %c0_103 = arith.constant 0 : index
    %c0_104 = arith.constant 0 : index
    %229 = vector.load %arg12[%c1_102, %c0_103, %c0_104] : memref<2x1x32xf32, #tpu.memory_space<vmem>>, vector<1x1x32xf32>
    %230 = vector.shape_cast %229 : vector<1x1x32xf32> to vector<1x32xf32>
    %231 = vector.shape_cast %230 : vector<1x32xf32> to vector<1x1x32xf32>
    %232 = vector.broadcast %231 : vector<1x1x32xf32> to vector<8x8x32xf32>
    %233 = arith.addf %228, %232 : vector<8x8x32xf32>
    %234 = arith.addf %215, %233 : vector<8x8x32xf32>
    %c1_105 = arith.constant 1 : index
    %c0_106 = arith.constant 0 : index
    %c0_107 = arith.constant 0 : index
    %235 = vector.load %arg13[%c1_105, %c0_106, %c0_107] : memref<2x1x32xf32, #tpu.memory_space<vmem>>, vector<1x1x32xf32>
    %236 = vector.shape_cast %235 : vector<1x1x32xf32> to vector<1x32xf32>
    %c1_108 = arith.constant 1 : index
    %c0_109 = arith.constant 0 : index
    %c0_110 = arith.constant 0 : index
    %237 = vector.load %arg14[%c1_108, %c0_109, %c0_110] : memref<2x1x32xf32, #tpu.memory_space<vmem>>, vector<1x1x32xf32>
    %238 = vector.shape_cast %237 : vector<1x1x32xf32> to vector<1x32xf32>
    %cst_111 = arith.constant dense<0.000000e+00> : vector<8x8xf32>
    %239 = vector.multi_reduction <add>, %234, %cst_111 [2] : vector<8x8x32xf32> to vector<8x8xf32>
    %240 = vector.shape_cast %239 : vector<8x8xf32> to vector<8x8x1xf32>
    %cst_112 = arith.constant 3.200000e+01 : f32
    %241 = vector.broadcast %cst_112 : f32 to vector<8x8x1xf32>
    %242 = arith.divf %240, %241 : vector<8x8x1xf32>
    %243 = vector.broadcast %242 : vector<8x8x1xf32> to vector<8x8x32xf32>
    %244 = arith.subf %234, %243 : vector<8x8x32xf32>
    %245 = arith.mulf %244, %244 : vector<8x8x32xf32>
    %cst_113 = arith.constant dense<0.000000e+00> : vector<8x8xf32>
    %246 = vector.multi_reduction <add>, %245, %cst_113 [2] : vector<8x8x32xf32> to vector<8x8xf32>
    %247 = vector.shape_cast %246 : vector<8x8xf32> to vector<8x8x1xf32>
    %cst_114 = arith.constant 3.200000e+01 : f32
    %248 = vector.broadcast %cst_114 : f32 to vector<8x8x1xf32>
    %249 = arith.divf %247, %248 : vector<8x8x1xf32>
    %250 = vector.broadcast %242 : vector<8x8x1xf32> to vector<8x8x32xf32>
    %251 = arith.subf %234, %250 : vector<8x8x32xf32>
    %cst_115 = arith.constant 9.99999974E-6 : f32
    %252 = vector.broadcast %cst_115 : f32 to vector<8x8x1xf32>
    %253 = arith.addf %249, %252 : vector<8x8x1xf32>
    %254 = math.rsqrt %253 : vector<8x8x1xf32>
    %255 = vector.broadcast %254 : vector<8x8x1xf32> to vector<8x8x32xf32>
    %256 = arith.mulf %251, %255 : vector<8x8x32xf32>
    %257 = vector.shape_cast %236 : vector<1x32xf32> to vector<1x1x32xf32>
    %258 = vector.broadcast %257 : vector<1x1x32xf32> to vector<8x8x32xf32>
    %259 = arith.mulf %256, %258 : vector<8x8x32xf32>
    %260 = vector.shape_cast %238 : vector<1x32xf32> to vector<1x1x32xf32>
    %261 = vector.broadcast %260 : vector<1x1x32xf32> to vector<8x8x32xf32>
    %262 = arith.addf %259, %261 : vector<8x8x32xf32>
    %cst_116 = arith.constant dense<0.000000e+00> : vector<8x32xf32>
    %263 = vector.multi_reduction <add>, %262, %cst_116 [0] : vector<8x8x32xf32> to vector<8x32xf32>
    %cst_117 = arith.constant 8.000000e+00 : f32
    %264 = vector.broadcast %cst_117 : f32 to vector<8x32xf32>
    %265 = arith.divf %263, %264 : vector<8x32xf32>
    %c0_118 = arith.constant 0 : index
    %c0_119 = arith.constant 0 : index
    %266 = vector.load %arg15[%c0_118, %c0_119] : memref<32x16xf32, #tpu.memory_space<vmem>>, vector<32x16xf32>
    %cst_120 = arith.constant dense<0.000000e+00> : vector<8x16xf32>
    %267 = tpu.matmul %265, %266, %cst_120 {dimension_numbers = #tpu.dot_dimension_numbers<[1], [0], [0], [1], [0, 0, 1, 1], [], []>} : vector<8x32xf32>, vector<32x16xf32>, vector<8x16xf32> -> vector<8x16xf32>
    %c0_121 = arith.constant 0 : index
    %c0_122 = arith.constant 0 : index
    %268 = vector.load %arg16[%c0_121, %c0_122] : memref<1x16xf32, #tpu.memory_space<vmem>>, vector<1x16xf32>
    %269 = vector.broadcast %268 : vector<1x16xf32> to vector<8x16xf32>
    %270 = arith.addf %267, %269 : vector<8x16xf32>
    %c0_123 = arith.constant 0 : index
    %c0_124 = arith.constant 0 : index
    %271 = vector.load %arg17[%c0_123, %c0_124] : memref<16x96xf32, #tpu.memory_space<vmem>>, vector<16x96xf32>
    %cst_125 = arith.constant dense<0.000000e+00> : vector<8x96xf32>
    %272 = tpu.matmul %270, %271, %cst_125 {dimension_numbers = #tpu.dot_dimension_numbers<[1], [0], [0], [1], [0, 0, 1, 1], [], []>} : vector<8x16xf32>, vector<16x96xf32>, vector<8x96xf32> -> vector<8x96xf32>
    %c0_126 = arith.constant 0 : index
    %c0_127 = arith.constant 0 : index
    %273 = vector.load %arg18[%c0_126, %c0_127] : memref<1x96xf32, #tpu.memory_space<vmem>>, vector<1x96xf32>
    %274 = vector.broadcast %273 : vector<1x96xf32> to vector<8x96xf32>
    %275 = arith.addf %272, %274 : vector<8x96xf32>
    %276 = vector.extract_strided_slice %275 {offsets = [0, 0], sizes = [2, 96], strides = [1, 1]} : vector<8x96xf32> to vector<2x96xf32>
    %277 = vector.extract_strided_slice %275 {offsets = [2, 0], sizes = [2, 96], strides = [1, 1]} : vector<8x96xf32> to vector<2x96xf32>
    %278 = vector.extract_strided_slice %275 {offsets = [4, 0], sizes = [2, 96], strides = [1, 1]} : vector<8x96xf32> to vector<2x96xf32>
    %279 = vector.extract_strided_slice %275 {offsets = [6, 0], sizes = [2, 96], strides = [1, 1]} : vector<8x96xf32> to vector<2x96xf32>
    %c0_128 = arith.constant 0 : index
    %c0_129 = arith.constant 0 : index
    %280 = vector.load %arg19[%c0_128, %c0_129] : memref<32x96xf32, #tpu.memory_space<vmem>>, vector<32x96xf32>
    %c0_130 = arith.constant 0 : index
    %c0_131 = arith.constant 0 : index
    %281 = vector.load %arg20[%c0_130, %c0_131] : memref<1x96xf32, #tpu.memory_space<vmem>>, vector<1x96xf32>
    %cst_132 = arith.constant 0.000000e+00 : f32
    %282 = vector.broadcast %cst_132 : f32 to vector<2x32xf32>
    %cst_133 = arith.constant dense<0.000000e+00> : vector<2x96xf32>
    %283 = tpu.matmul %282, %280, %cst_133 {dimension_numbers = #tpu.dot_dimension_numbers<[1], [0], [0], [1], [0, 0, 1, 1], [], []>} : vector<2x32xf32>, vector<32x96xf32>, vector<2x96xf32> -> vector<2x96xf32>
    %284 = vector.broadcast %281 : vector<1x96xf32> to vector<2x96xf32>
    %285 = arith.addf %283, %284 : vector<2x96xf32>
    %286 = vector.extract_strided_slice %276 {offsets = [0, 0], sizes = [2, 48], strides = [1, 1]} : vector<2x96xf32> to vector<2x48xf32>
    %287 = vector.extract_strided_slice %285 {offsets = [0, 0], sizes = [2, 48], strides = [1, 1]} : vector<2x96xf32> to vector<2x48xf32>
    %288 = vector.extract_strided_slice %286 {offsets = [0, 0], sizes = [2, 16], strides = [1, 1]} : vector<2x48xf32> to vector<2x16xf32>
    %289 = vector.extract_strided_slice %287 {offsets = [0, 0], sizes = [2, 16], strides = [1, 1]} : vector<2x48xf32> to vector<2x16xf32>
    %290 = arith.addf %288, %289 : vector<2x16xf32>
    %291 = arith.negf %290 : vector<2x16xf32>
    %292 = math.exp %291 : vector<2x16xf32>
    %cst_134 = arith.constant 1.000000e+00 : f32
    %293 = vector.broadcast %cst_134 : f32 to vector<2x16xf32>
    %294 = arith.addf %293, %292 : vector<2x16xf32>
    %295 = arith.divf %293, %294 : vector<2x16xf32>
    %296 = vector.extract_strided_slice %286 {offsets = [0, 16], sizes = [2, 16], strides = [1, 1]} : vector<2x48xf32> to vector<2x16xf32>
    %297 = vector.extract_strided_slice %287 {offsets = [0, 16], sizes = [2, 16], strides = [1, 1]} : vector<2x48xf32> to vector<2x16xf32>
    %298 = arith.addf %296, %297 : vector<2x16xf32>
    %299 = arith.negf %298 : vector<2x16xf32>
    %300 = math.exp %299 : vector<2x16xf32>
    %cst_135 = arith.constant 1.000000e+00 : f32
    %301 = vector.broadcast %cst_135 : f32 to vector<2x16xf32>
    %302 = arith.addf %301, %300 : vector<2x16xf32>
    %303 = arith.divf %301, %302 : vector<2x16xf32>
    %304 = vector.extract_strided_slice %286 {offsets = [0, 32], sizes = [2, 16], strides = [1, 1]} : vector<2x48xf32> to vector<2x16xf32>
    %305 = vector.extract_strided_slice %287 {offsets = [0, 32], sizes = [2, 16], strides = [1, 1]} : vector<2x48xf32> to vector<2x16xf32>
    %306 = arith.mulf %295, %305 : vector<2x16xf32>
    %307 = arith.addf %304, %306 : vector<2x16xf32>
    %308 = math.tanh %307 : vector<2x16xf32>
    %cst_136 = arith.constant 1.000000e+00 : f32
    %309 = vector.broadcast %cst_136 : f32 to vector<2x16xf32>
    %310 = arith.subf %309, %303 : vector<2x16xf32>
    %311 = arith.mulf %310, %308 : vector<2x16xf32>
    %312 = vector.extract_strided_slice %282 {offsets = [0, 0], sizes = [2, 16], strides = [1, 1]} : vector<2x32xf32> to vector<2x16xf32>
    %313 = arith.mulf %303, %312 : vector<2x16xf32>
    %314 = arith.addf %311, %313 : vector<2x16xf32>
    %315 = vector.extract_strided_slice %279 {offsets = [0, 48], sizes = [2, 48], strides = [1, 1]} : vector<2x96xf32> to vector<2x48xf32>
    %316 = vector.extract_strided_slice %285 {offsets = [0, 48], sizes = [2, 48], strides = [1, 1]} : vector<2x96xf32> to vector<2x48xf32>
    %317 = vector.extract_strided_slice %315 {offsets = [0, 0], sizes = [2, 16], strides = [1, 1]} : vector<2x48xf32> to vector<2x16xf32>
    %318 = vector.extract_strided_slice %316 {offsets = [0, 0], sizes = [2, 16], strides = [1, 1]} : vector<2x48xf32> to vector<2x16xf32>
    %319 = arith.addf %317, %318 : vector<2x16xf32>
    %320 = arith.negf %319 : vector<2x16xf32>
    %321 = math.exp %320 : vector<2x16xf32>
    %cst_137 = arith.constant 1.000000e+00 : f32
    %322 = vector.broadcast %cst_137 : f32 to vector<2x16xf32>
    %323 = arith.addf %322, %321 : vector<2x16xf32>
    %324 = arith.divf %322, %323 : vector<2x16xf32>
    %325 = vector.extract_strided_slice %315 {offsets = [0, 16], sizes = [2, 16], strides = [1, 1]} : vector<2x48xf32> to vector<2x16xf32>
    %326 = vector.extract_strided_slice %316 {offsets = [0, 16], sizes = [2, 16], strides = [1, 1]} : vector<2x48xf32> to vector<2x16xf32>
    %327 = arith.addf %325, %326 : vector<2x16xf32>
    %328 = arith.negf %327 : vector<2x16xf32>
    %329 = math.exp %328 : vector<2x16xf32>
    %cst_138 = arith.constant 1.000000e+00 : f32
    %330 = vector.broadcast %cst_138 : f32 to vector<2x16xf32>
    %331 = arith.addf %330, %329 : vector<2x16xf32>
    %332 = arith.divf %330, %331 : vector<2x16xf32>
    %333 = vector.extract_strided_slice %315 {offsets = [0, 32], sizes = [2, 16], strides = [1, 1]} : vector<2x48xf32> to vector<2x16xf32>
    %334 = vector.extract_strided_slice %316 {offsets = [0, 32], sizes = [2, 16], strides = [1, 1]} : vector<2x48xf32> to vector<2x16xf32>
    %335 = arith.mulf %324, %334 : vector<2x16xf32>
    %336 = arith.addf %333, %335 : vector<2x16xf32>
    %337 = math.tanh %336 : vector<2x16xf32>
    %cst_139 = arith.constant 1.000000e+00 : f32
    %338 = vector.broadcast %cst_139 : f32 to vector<2x16xf32>
    %339 = arith.subf %338, %332 : vector<2x16xf32>
    %340 = arith.mulf %339, %337 : vector<2x16xf32>
    %341 = vector.extract_strided_slice %282 {offsets = [0, 16], sizes = [2, 16], strides = [1, 1]} : vector<2x32xf32> to vector<2x16xf32>
    %342 = arith.mulf %332, %341 : vector<2x16xf32>
    %343 = arith.addf %340, %342 : vector<2x16xf32>
    %344 = tpu.concatenate %314, %343 in 1 : vector<2x16xf32>, vector<2x16xf32> -> vector<2x32xf32>
    %cst_140 = arith.constant dense<0.000000e+00> : vector<2x96xf32>
    %345 = tpu.matmul %344, %280, %cst_140 {dimension_numbers = #tpu.dot_dimension_numbers<[1], [0], [0], [1], [0, 0, 1, 1], [], []>} : vector<2x32xf32>, vector<32x96xf32>, vector<2x96xf32> -> vector<2x96xf32>
    %346 = vector.broadcast %281 : vector<1x96xf32> to vector<2x96xf32>
    %347 = arith.addf %345, %346 : vector<2x96xf32>
    %348 = vector.extract_strided_slice %277 {offsets = [0, 0], sizes = [2, 48], strides = [1, 1]} : vector<2x96xf32> to vector<2x48xf32>
    %349 = vector.extract_strided_slice %347 {offsets = [0, 0], sizes = [2, 48], strides = [1, 1]} : vector<2x96xf32> to vector<2x48xf32>
    %350 = vector.extract_strided_slice %348 {offsets = [0, 0], sizes = [2, 16], strides = [1, 1]} : vector<2x48xf32> to vector<2x16xf32>
    %351 = vector.extract_strided_slice %349 {offsets = [0, 0], sizes = [2, 16], strides = [1, 1]} : vector<2x48xf32> to vector<2x16xf32>
    %352 = arith.addf %350, %351 : vector<2x16xf32>
    %353 = arith.negf %352 : vector<2x16xf32>
    %354 = math.exp %353 : vector<2x16xf32>
    %cst_141 = arith.constant 1.000000e+00 : f32
    %355 = vector.broadcast %cst_141 : f32 to vector<2x16xf32>
    %356 = arith.addf %355, %354 : vector<2x16xf32>
    %357 = arith.divf %355, %356 : vector<2x16xf32>
    %358 = vector.extract_strided_slice %348 {offsets = [0, 16], sizes = [2, 16], strides = [1, 1]} : vector<2x48xf32> to vector<2x16xf32>
    %359 = vector.extract_strided_slice %349 {offsets = [0, 16], sizes = [2, 16], strides = [1, 1]} : vector<2x48xf32> to vector<2x16xf32>
    %360 = arith.addf %358, %359 : vector<2x16xf32>
    %361 = arith.negf %360 : vector<2x16xf32>
    %362 = math.exp %361 : vector<2x16xf32>
    %cst_142 = arith.constant 1.000000e+00 : f32
    %363 = vector.broadcast %cst_142 : f32 to vector<2x16xf32>
    %364 = arith.addf %363, %362 : vector<2x16xf32>
    %365 = arith.divf %363, %364 : vector<2x16xf32>
    %366 = vector.extract_strided_slice %348 {offsets = [0, 32], sizes = [2, 16], strides = [1, 1]} : vector<2x48xf32> to vector<2x16xf32>
    %367 = vector.extract_strided_slice %349 {offsets = [0, 32], sizes = [2, 16], strides = [1, 1]} : vector<2x48xf32> to vector<2x16xf32>
    %368 = arith.mulf %357, %367 : vector<2x16xf32>
    %369 = arith.addf %366, %368 : vector<2x16xf32>
    %370 = math.tanh %369 : vector<2x16xf32>
    %cst_143 = arith.constant 1.000000e+00 : f32
    %371 = vector.broadcast %cst_143 : f32 to vector<2x16xf32>
    %372 = arith.subf %371, %365 : vector<2x16xf32>
    %373 = arith.mulf %372, %370 : vector<2x16xf32>
    %374 = vector.extract_strided_slice %344 {offsets = [0, 0], sizes = [2, 16], strides = [1, 1]} : vector<2x32xf32> to vector<2x16xf32>
    %375 = arith.mulf %365, %374 : vector<2x16xf32>
    %376 = arith.addf %373, %375 : vector<2x16xf32>
    %377 = vector.extract_strided_slice %278 {offsets = [0, 48], sizes = [2, 48], strides = [1, 1]} : vector<2x96xf32> to vector<2x48xf32>
    %378 = vector.extract_strided_slice %347 {offsets = [0, 48], sizes = [2, 48], strides = [1, 1]} : vector<2x96xf32> to vector<2x48xf32>
    %379 = vector.extract_strided_slice %377 {offsets = [0, 0], sizes = [2, 16], strides = [1, 1]} : vector<2x48xf32> to vector<2x16xf32>
    %380 = vector.extract_strided_slice %378 {offsets = [0, 0], sizes = [2, 16], strides = [1, 1]} : vector<2x48xf32> to vector<2x16xf32>
    %381 = arith.addf %379, %380 : vector<2x16xf32>
    %382 = arith.negf %381 : vector<2x16xf32>
    %383 = math.exp %382 : vector<2x16xf32>
    %cst_144 = arith.constant 1.000000e+00 : f32
    %384 = vector.broadcast %cst_144 : f32 to vector<2x16xf32>
    %385 = arith.addf %384, %383 : vector<2x16xf32>
    %386 = arith.divf %384, %385 : vector<2x16xf32>
    %387 = vector.extract_strided_slice %377 {offsets = [0, 16], sizes = [2, 16], strides = [1, 1]} : vector<2x48xf32> to vector<2x16xf32>
    %388 = vector.extract_strided_slice %378 {offsets = [0, 16], sizes = [2, 16], strides = [1, 1]} : vector<2x48xf32> to vector<2x16xf32>
    %389 = arith.addf %387, %388 : vector<2x16xf32>
    %390 = arith.negf %389 : vector<2x16xf32>
    %391 = math.exp %390 : vector<2x16xf32>
    %cst_145 = arith.constant 1.000000e+00 : f32
    %392 = vector.broadcast %cst_145 : f32 to vector<2x16xf32>
    %393 = arith.addf %392, %391 : vector<2x16xf32>
    %394 = arith.divf %392, %393 : vector<2x16xf32>
    %395 = vector.extract_strided_slice %377 {offsets = [0, 32], sizes = [2, 16], strides = [1, 1]} : vector<2x48xf32> to vector<2x16xf32>
    %396 = vector.extract_strided_slice %378 {offsets = [0, 32], sizes = [2, 16], strides = [1, 1]} : vector<2x48xf32> to vector<2x16xf32>
    %397 = arith.mulf %386, %396 : vector<2x16xf32>
    %398 = arith.addf %395, %397 : vector<2x16xf32>
    %399 = math.tanh %398 : vector<2x16xf32>
    %cst_146 = arith.constant 1.000000e+00 : f32
    %400 = vector.broadcast %cst_146 : f32 to vector<2x16xf32>
    %401 = arith.subf %400, %394 : vector<2x16xf32>
    %402 = arith.mulf %401, %399 : vector<2x16xf32>
    %403 = vector.extract_strided_slice %344 {offsets = [0, 16], sizes = [2, 16], strides = [1, 1]} : vector<2x32xf32> to vector<2x16xf32>
    %404 = arith.mulf %394, %403 : vector<2x16xf32>
    %405 = arith.addf %402, %404 : vector<2x16xf32>
    %406 = tpu.concatenate %376, %405 in 1 : vector<2x16xf32>, vector<2x16xf32> -> vector<2x32xf32>
    %cst_147 = arith.constant dense<0.000000e+00> : vector<2x96xf32>
    %407 = tpu.matmul %406, %280, %cst_147 {dimension_numbers = #tpu.dot_dimension_numbers<[1], [0], [0], [1], [0, 0, 1, 1], [], []>} : vector<2x32xf32>, vector<32x96xf32>, vector<2x96xf32> -> vector<2x96xf32>
    %408 = vector.broadcast %281 : vector<1x96xf32> to vector<2x96xf32>
    %409 = arith.addf %407, %408 : vector<2x96xf32>
    %410 = vector.extract_strided_slice %278 {offsets = [0, 0], sizes = [2, 48], strides = [1, 1]} : vector<2x96xf32> to vector<2x48xf32>
    %411 = vector.extract_strided_slice %409 {offsets = [0, 0], sizes = [2, 48], strides = [1, 1]} : vector<2x96xf32> to vector<2x48xf32>
    %412 = vector.extract_strided_slice %410 {offsets = [0, 0], sizes = [2, 16], strides = [1, 1]} : vector<2x48xf32> to vector<2x16xf32>
    %413 = vector.extract_strided_slice %411 {offsets = [0, 0], sizes = [2, 16], strides = [1, 1]} : vector<2x48xf32> to vector<2x16xf32>
    %414 = arith.addf %412, %413 : vector<2x16xf32>
    %415 = arith.negf %414 : vector<2x16xf32>
    %416 = math.exp %415 : vector<2x16xf32>
    %cst_148 = arith.constant 1.000000e+00 : f32
    %417 = vector.broadcast %cst_148 : f32 to vector<2x16xf32>
    %418 = arith.addf %417, %416 : vector<2x16xf32>
    %419 = arith.divf %417, %418 : vector<2x16xf32>
    %420 = vector.extract_strided_slice %410 {offsets = [0, 16], sizes = [2, 16], strides = [1, 1]} : vector<2x48xf32> to vector<2x16xf32>
    %421 = vector.extract_strided_slice %411 {offsets = [0, 16], sizes = [2, 16], strides = [1, 1]} : vector<2x48xf32> to vector<2x16xf32>
    %422 = arith.addf %420, %421 : vector<2x16xf32>
    %423 = arith.negf %422 : vector<2x16xf32>
    %424 = math.exp %423 : vector<2x16xf32>
    %cst_149 = arith.constant 1.000000e+00 : f32
    %425 = vector.broadcast %cst_149 : f32 to vector<2x16xf32>
    %426 = arith.addf %425, %424 : vector<2x16xf32>
    %427 = arith.divf %425, %426 : vector<2x16xf32>
    %428 = vector.extract_strided_slice %410 {offsets = [0, 32], sizes = [2, 16], strides = [1, 1]} : vector<2x48xf32> to vector<2x16xf32>
    %429 = vector.extract_strided_slice %411 {offsets = [0, 32], sizes = [2, 16], strides = [1, 1]} : vector<2x48xf32> to vector<2x16xf32>
    %430 = arith.mulf %419, %429 : vector<2x16xf32>
    %431 = arith.addf %428, %430 : vector<2x16xf32>
    %432 = math.tanh %431 : vector<2x16xf32>
    %cst_150 = arith.constant 1.000000e+00 : f32
    %433 = vector.broadcast %cst_150 : f32 to vector<2x16xf32>
    %434 = arith.subf %433, %427 : vector<2x16xf32>
    %435 = arith.mulf %434, %432 : vector<2x16xf32>
    %436 = vector.extract_strided_slice %406 {offsets = [0, 0], sizes = [2, 16], strides = [1, 1]} : vector<2x32xf32> to vector<2x16xf32>
    %437 = arith.mulf %427, %436 : vector<2x16xf32>
    %438 = arith.addf %435, %437 : vector<2x16xf32>
    %439 = vector.extract_strided_slice %277 {offsets = [0, 48], sizes = [2, 48], strides = [1, 1]} : vector<2x96xf32> to vector<2x48xf32>
    %440 = vector.extract_strided_slice %409 {offsets = [0, 48], sizes = [2, 48], strides = [1, 1]} : vector<2x96xf32> to vector<2x48xf32>
    %441 = vector.extract_strided_slice %439 {offsets = [0, 0], sizes = [2, 16], strides = [1, 1]} : vector<2x48xf32> to vector<2x16xf32>
    %442 = vector.extract_strided_slice %440 {offsets = [0, 0], sizes = [2, 16], strides = [1, 1]} : vector<2x48xf32> to vector<2x16xf32>
    %443 = arith.addf %441, %442 : vector<2x16xf32>
    %444 = arith.negf %443 : vector<2x16xf32>
    %445 = math.exp %444 : vector<2x16xf32>
    %cst_151 = arith.constant 1.000000e+00 : f32
    %446 = vector.broadcast %cst_151 : f32 to vector<2x16xf32>
    %447 = arith.addf %446, %445 : vector<2x16xf32>
    %448 = arith.divf %446, %447 : vector<2x16xf32>
    %449 = vector.extract_strided_slice %439 {offsets = [0, 16], sizes = [2, 16], strides = [1, 1]} : vector<2x48xf32> to vector<2x16xf32>
    %450 = vector.extract_strided_slice %440 {offsets = [0, 16], sizes = [2, 16], strides = [1, 1]} : vector<2x48xf32> to vector<2x16xf32>
    %451 = arith.addf %449, %450 : vector<2x16xf32>
    %452 = arith.negf %451 : vector<2x16xf32>
    %453 = math.exp %452 : vector<2x16xf32>
    %cst_152 = arith.constant 1.000000e+00 : f32
    %454 = vector.broadcast %cst_152 : f32 to vector<2x16xf32>
    %455 = arith.addf %454, %453 : vector<2x16xf32>
    %456 = arith.divf %454, %455 : vector<2x16xf32>
    %457 = vector.extract_strided_slice %439 {offsets = [0, 32], sizes = [2, 16], strides = [1, 1]} : vector<2x48xf32> to vector<2x16xf32>
    %458 = vector.extract_strided_slice %440 {offsets = [0, 32], sizes = [2, 16], strides = [1, 1]} : vector<2x48xf32> to vector<2x16xf32>
    %459 = arith.mulf %448, %458 : vector<2x16xf32>
    %460 = arith.addf %457, %459 : vector<2x16xf32>
    %461 = math.tanh %460 : vector<2x16xf32>
    %cst_153 = arith.constant 1.000000e+00 : f32
    %462 = vector.broadcast %cst_153 : f32 to vector<2x16xf32>
    %463 = arith.subf %462, %456 : vector<2x16xf32>
    %464 = arith.mulf %463, %461 : vector<2x16xf32>
    %465 = vector.extract_strided_slice %406 {offsets = [0, 16], sizes = [2, 16], strides = [1, 1]} : vector<2x32xf32> to vector<2x16xf32>
    %466 = arith.mulf %456, %465 : vector<2x16xf32>
    %467 = arith.addf %464, %466 : vector<2x16xf32>
    %468 = tpu.concatenate %438, %467 in 1 : vector<2x16xf32>, vector<2x16xf32> -> vector<2x32xf32>
    %cst_154 = arith.constant dense<0.000000e+00> : vector<2x96xf32>
    %469 = tpu.matmul %468, %280, %cst_154 {dimension_numbers = #tpu.dot_dimension_numbers<[1], [0], [0], [1], [0, 0, 1, 1], [], []>} : vector<2x32xf32>, vector<32x96xf32>, vector<2x96xf32> -> vector<2x96xf32>
    %470 = vector.broadcast %281 : vector<1x96xf32> to vector<2x96xf32>
    %471 = arith.addf %469, %470 : vector<2x96xf32>
    %472 = vector.extract_strided_slice %279 {offsets = [0, 0], sizes = [2, 48], strides = [1, 1]} : vector<2x96xf32> to vector<2x48xf32>
    %473 = vector.extract_strided_slice %471 {offsets = [0, 0], sizes = [2, 48], strides = [1, 1]} : vector<2x96xf32> to vector<2x48xf32>
    %474 = vector.extract_strided_slice %472 {offsets = [0, 0], sizes = [2, 16], strides = [1, 1]} : vector<2x48xf32> to vector<2x16xf32>
    %475 = vector.extract_strided_slice %473 {offsets = [0, 0], sizes = [2, 16], strides = [1, 1]} : vector<2x48xf32> to vector<2x16xf32>
    %476 = arith.addf %474, %475 : vector<2x16xf32>
    %477 = arith.negf %476 : vector<2x16xf32>
    %478 = math.exp %477 : vector<2x16xf32>
    %cst_155 = arith.constant 1.000000e+00 : f32
    %479 = vector.broadcast %cst_155 : f32 to vector<2x16xf32>
    %480 = arith.addf %479, %478 : vector<2x16xf32>
    %481 = arith.divf %479, %480 : vector<2x16xf32>
    %482 = vector.extract_strided_slice %472 {offsets = [0, 16], sizes = [2, 16], strides = [1, 1]} : vector<2x48xf32> to vector<2x16xf32>
    %483 = vector.extract_strided_slice %473 {offsets = [0, 16], sizes = [2, 16], strides = [1, 1]} : vector<2x48xf32> to vector<2x16xf32>
    %484 = arith.addf %482, %483 : vector<2x16xf32>
    %485 = arith.negf %484 : vector<2x16xf32>
    %486 = math.exp %485 : vector<2x16xf32>
    %cst_156 = arith.constant 1.000000e+00 : f32
    %487 = vector.broadcast %cst_156 : f32 to vector<2x16xf32>
    %488 = arith.addf %487, %486 : vector<2x16xf32>
    %489 = arith.divf %487, %488 : vector<2x16xf32>
    %490 = vector.extract_strided_slice %472 {offsets = [0, 32], sizes = [2, 16], strides = [1, 1]} : vector<2x48xf32> to vector<2x16xf32>
    %491 = vector.extract_strided_slice %473 {offsets = [0, 32], sizes = [2, 16], strides = [1, 1]} : vector<2x48xf32> to vector<2x16xf32>
    %492 = arith.mulf %481, %491 : vector<2x16xf32>
    %493 = arith.addf %490, %492 : vector<2x16xf32>
    %494 = math.tanh %493 : vector<2x16xf32>
    %cst_157 = arith.constant 1.000000e+00 : f32
    %495 = vector.broadcast %cst_157 : f32 to vector<2x16xf32>
    %496 = arith.subf %495, %489 : vector<2x16xf32>
    %497 = arith.mulf %496, %494 : vector<2x16xf32>
    %498 = vector.extract_strided_slice %468 {offsets = [0, 0], sizes = [2, 16], strides = [1, 1]} : vector<2x32xf32> to vector<2x16xf32>
    %499 = arith.mulf %489, %498 : vector<2x16xf32>
    %500 = arith.addf %497, %499 : vector<2x16xf32>
    %501 = vector.extract_strided_slice %276 {offsets = [0, 48], sizes = [2, 48], strides = [1, 1]} : vector<2x96xf32> to vector<2x48xf32>
    %502 = vector.extract_strided_slice %471 {offsets = [0, 48], sizes = [2, 48], strides = [1, 1]} : vector<2x96xf32> to vector<2x48xf32>
    %503 = vector.extract_strided_slice %501 {offsets = [0, 0], sizes = [2, 16], strides = [1, 1]} : vector<2x48xf32> to vector<2x16xf32>
    %504 = vector.extract_strided_slice %502 {offsets = [0, 0], sizes = [2, 16], strides = [1, 1]} : vector<2x48xf32> to vector<2x16xf32>
    %505 = arith.addf %503, %504 : vector<2x16xf32>
    %506 = arith.negf %505 : vector<2x16xf32>
    %507 = math.exp %506 : vector<2x16xf32>
    %cst_158 = arith.constant 1.000000e+00 : f32
    %508 = vector.broadcast %cst_158 : f32 to vector<2x16xf32>
    %509 = arith.addf %508, %507 : vector<2x16xf32>
    %510 = arith.divf %508, %509 : vector<2x16xf32>
    %511 = vector.extract_strided_slice %501 {offsets = [0, 16], sizes = [2, 16], strides = [1, 1]} : vector<2x48xf32> to vector<2x16xf32>
    %512 = vector.extract_strided_slice %502 {offsets = [0, 16], sizes = [2, 16], strides = [1, 1]} : vector<2x48xf32> to vector<2x16xf32>
    %513 = arith.addf %511, %512 : vector<2x16xf32>
    %514 = arith.negf %513 : vector<2x16xf32>
    %515 = math.exp %514 : vector<2x16xf32>
    %cst_159 = arith.constant 1.000000e+00 : f32
    %516 = vector.broadcast %cst_159 : f32 to vector<2x16xf32>
    %517 = arith.addf %516, %515 : vector<2x16xf32>
    %518 = arith.divf %516, %517 : vector<2x16xf32>
    %519 = vector.extract_strided_slice %501 {offsets = [0, 32], sizes = [2, 16], strides = [1, 1]} : vector<2x48xf32> to vector<2x16xf32>
    %520 = vector.extract_strided_slice %502 {offsets = [0, 32], sizes = [2, 16], strides = [1, 1]} : vector<2x48xf32> to vector<2x16xf32>
    %521 = arith.mulf %510, %520 : vector<2x16xf32>
    %522 = arith.addf %519, %521 : vector<2x16xf32>
    %523 = math.tanh %522 : vector<2x16xf32>
    %cst_160 = arith.constant 1.000000e+00 : f32
    %524 = vector.broadcast %cst_160 : f32 to vector<2x16xf32>
    %525 = arith.subf %524, %518 : vector<2x16xf32>
    %526 = arith.mulf %525, %523 : vector<2x16xf32>
    %527 = vector.extract_strided_slice %468 {offsets = [0, 16], sizes = [2, 16], strides = [1, 1]} : vector<2x32xf32> to vector<2x16xf32>
    %528 = arith.mulf %518, %527 : vector<2x16xf32>
    %529 = arith.addf %526, %528 : vector<2x16xf32>
    %530 = tpu.concatenate %314, %529 in 1 : vector<2x16xf32>, vector<2x16xf32> -> vector<2x32xf32>
    %531 = tpu.concatenate %376, %467 in 1 : vector<2x16xf32>, vector<2x16xf32> -> vector<2x32xf32>
    %532 = tpu.concatenate %438, %405 in 1 : vector<2x16xf32>, vector<2x16xf32> -> vector<2x32xf32>
    %533 = tpu.concatenate %500, %343 in 1 : vector<2x16xf32>, vector<2x16xf32> -> vector<2x32xf32>
    %534 = tpu.concatenate %530, %531, %532, %533 in 0 : vector<2x32xf32>, vector<2x32xf32>, vector<2x32xf32>, vector<2x32xf32> -> vector<8x32xf32>
    %c0_161 = arith.constant 0 : index
    %c0_162 = arith.constant 0 : index
    %535 = vector.load %arg21[%c0_161, %c0_162] : memref<32x96xf32, #tpu.memory_space<vmem>>, vector<32x96xf32>
    %cst_163 = arith.constant dense<0.000000e+00> : vector<8x96xf32>
    %536 = tpu.matmul %534, %535, %cst_163 {dimension_numbers = #tpu.dot_dimension_numbers<[1], [0], [0], [1], [0, 0, 1, 1], [], []>} : vector<8x32xf32>, vector<32x96xf32>, vector<8x96xf32> -> vector<8x96xf32>
    %c0_164 = arith.constant 0 : index
    %c0_165 = arith.constant 0 : index
    %537 = vector.load %arg22[%c0_164, %c0_165] : memref<1x96xf32, #tpu.memory_space<vmem>>, vector<1x96xf32>
    %538 = vector.broadcast %537 : vector<1x96xf32> to vector<8x96xf32>
    %539 = arith.addf %536, %538 : vector<8x96xf32>
    %540 = vector.extract_strided_slice %539 {offsets = [0, 0], sizes = [2, 96], strides = [1, 1]} : vector<8x96xf32> to vector<2x96xf32>
    %541 = vector.extract_strided_slice %539 {offsets = [2, 0], sizes = [2, 96], strides = [1, 1]} : vector<8x96xf32> to vector<2x96xf32>
    %542 = vector.extract_strided_slice %539 {offsets = [4, 0], sizes = [2, 96], strides = [1, 1]} : vector<8x96xf32> to vector<2x96xf32>
    %543 = vector.extract_strided_slice %539 {offsets = [6, 0], sizes = [2, 96], strides = [1, 1]} : vector<8x96xf32> to vector<2x96xf32>
    %c0_166 = arith.constant 0 : index
    %c0_167 = arith.constant 0 : index
    %544 = vector.load %arg23[%c0_166, %c0_167] : memref<32x96xf32, #tpu.memory_space<vmem>>, vector<32x96xf32>
    %c0_168 = arith.constant 0 : index
    %c0_169 = arith.constant 0 : index
    %545 = vector.load %arg24[%c0_168, %c0_169] : memref<1x96xf32, #tpu.memory_space<vmem>>, vector<1x96xf32>
    %cst_170 = arith.constant 0.000000e+00 : f32
    %546 = vector.broadcast %cst_170 : f32 to vector<2x32xf32>
    %cst_171 = arith.constant dense<0.000000e+00> : vector<2x96xf32>
    %547 = tpu.matmul %546, %544, %cst_171 {dimension_numbers = #tpu.dot_dimension_numbers<[1], [0], [0], [1], [0, 0, 1, 1], [], []>} : vector<2x32xf32>, vector<32x96xf32>, vector<2x96xf32> -> vector<2x96xf32>
    %548 = vector.broadcast %545 : vector<1x96xf32> to vector<2x96xf32>
    %549 = arith.addf %547, %548 : vector<2x96xf32>
    %550 = vector.extract_strided_slice %540 {offsets = [0, 0], sizes = [2, 48], strides = [1, 1]} : vector<2x96xf32> to vector<2x48xf32>
    %551 = vector.extract_strided_slice %549 {offsets = [0, 0], sizes = [2, 48], strides = [1, 1]} : vector<2x96xf32> to vector<2x48xf32>
    %552 = vector.extract_strided_slice %550 {offsets = [0, 0], sizes = [2, 16], strides = [1, 1]} : vector<2x48xf32> to vector<2x16xf32>
    %553 = vector.extract_strided_slice %551 {offsets = [0, 0], sizes = [2, 16], strides = [1, 1]} : vector<2x48xf32> to vector<2x16xf32>
    %554 = arith.addf %552, %553 : vector<2x16xf32>
    %555 = arith.negf %554 : vector<2x16xf32>
    %556 = math.exp %555 : vector<2x16xf32>
    %cst_172 = arith.constant 1.000000e+00 : f32
    %557 = vector.broadcast %cst_172 : f32 to vector<2x16xf32>
    %558 = arith.addf %557, %556 : vector<2x16xf32>
    %559 = arith.divf %557, %558 : vector<2x16xf32>
    %560 = vector.extract_strided_slice %550 {offsets = [0, 16], sizes = [2, 16], strides = [1, 1]} : vector<2x48xf32> to vector<2x16xf32>
    %561 = vector.extract_strided_slice %551 {offsets = [0, 16], sizes = [2, 16], strides = [1, 1]} : vector<2x48xf32> to vector<2x16xf32>
    %562 = arith.addf %560, %561 : vector<2x16xf32>
    %563 = arith.negf %562 : vector<2x16xf32>
    %564 = math.exp %563 : vector<2x16xf32>
    %cst_173 = arith.constant 1.000000e+00 : f32
    %565 = vector.broadcast %cst_173 : f32 to vector<2x16xf32>
    %566 = arith.addf %565, %564 : vector<2x16xf32>
    %567 = arith.divf %565, %566 : vector<2x16xf32>
    %568 = vector.extract_strided_slice %550 {offsets = [0, 32], sizes = [2, 16], strides = [1, 1]} : vector<2x48xf32> to vector<2x16xf32>
    %569 = vector.extract_strided_slice %551 {offsets = [0, 32], sizes = [2, 16], strides = [1, 1]} : vector<2x48xf32> to vector<2x16xf32>
    %570 = arith.mulf %559, %569 : vector<2x16xf32>
    %571 = arith.addf %568, %570 : vector<2x16xf32>
    %572 = math.tanh %571 : vector<2x16xf32>
    %cst_174 = arith.constant 1.000000e+00 : f32
    %573 = vector.broadcast %cst_174 : f32 to vector<2x16xf32>
    %574 = arith.subf %573, %567 : vector<2x16xf32>
    %575 = arith.mulf %574, %572 : vector<2x16xf32>
    %576 = vector.extract_strided_slice %546 {offsets = [0, 0], sizes = [2, 16], strides = [1, 1]} : vector<2x32xf32> to vector<2x16xf32>
    %577 = arith.mulf %567, %576 : vector<2x16xf32>
    %578 = arith.addf %575, %577 : vector<2x16xf32>
    %579 = vector.extract_strided_slice %543 {offsets = [0, 48], sizes = [2, 48], strides = [1, 1]} : vector<2x96xf32> to vector<2x48xf32>
    %580 = vector.extract_strided_slice %549 {offsets = [0, 48], sizes = [2, 48], strides = [1, 1]} : vector<2x96xf32> to vector<2x48xf32>
    %581 = vector.extract_strided_slice %579 {offsets = [0, 0], sizes = [2, 16], strides = [1, 1]} : vector<2x48xf32> to vector<2x16xf32>
    %582 = vector.extract_strided_slice %580 {offsets = [0, 0], sizes = [2, 16], strides = [1, 1]} : vector<2x48xf32> to vector<2x16xf32>
    %583 = arith.addf %581, %582 : vector<2x16xf32>
    %584 = arith.negf %583 : vector<2x16xf32>
    %585 = math.exp %584 : vector<2x16xf32>
    %cst_175 = arith.constant 1.000000e+00 : f32
    %586 = vector.broadcast %cst_175 : f32 to vector<2x16xf32>
    %587 = arith.addf %586, %585 : vector<2x16xf32>
    %588 = arith.divf %586, %587 : vector<2x16xf32>
    %589 = vector.extract_strided_slice %579 {offsets = [0, 16], sizes = [2, 16], strides = [1, 1]} : vector<2x48xf32> to vector<2x16xf32>
    %590 = vector.extract_strided_slice %580 {offsets = [0, 16], sizes = [2, 16], strides = [1, 1]} : vector<2x48xf32> to vector<2x16xf32>
    %591 = arith.addf %589, %590 : vector<2x16xf32>
    %592 = arith.negf %591 : vector<2x16xf32>
    %593 = math.exp %592 : vector<2x16xf32>
    %cst_176 = arith.constant 1.000000e+00 : f32
    %594 = vector.broadcast %cst_176 : f32 to vector<2x16xf32>
    %595 = arith.addf %594, %593 : vector<2x16xf32>
    %596 = arith.divf %594, %595 : vector<2x16xf32>
    %597 = vector.extract_strided_slice %579 {offsets = [0, 32], sizes = [2, 16], strides = [1, 1]} : vector<2x48xf32> to vector<2x16xf32>
    %598 = vector.extract_strided_slice %580 {offsets = [0, 32], sizes = [2, 16], strides = [1, 1]} : vector<2x48xf32> to vector<2x16xf32>
    %599 = arith.mulf %588, %598 : vector<2x16xf32>
    %600 = arith.addf %597, %599 : vector<2x16xf32>
    %601 = math.tanh %600 : vector<2x16xf32>
    %cst_177 = arith.constant 1.000000e+00 : f32
    %602 = vector.broadcast %cst_177 : f32 to vector<2x16xf32>
    %603 = arith.subf %602, %596 : vector<2x16xf32>
    %604 = arith.mulf %603, %601 : vector<2x16xf32>
    %605 = vector.extract_strided_slice %546 {offsets = [0, 16], sizes = [2, 16], strides = [1, 1]} : vector<2x32xf32> to vector<2x16xf32>
    %606 = arith.mulf %596, %605 : vector<2x16xf32>
    %607 = arith.addf %604, %606 : vector<2x16xf32>
    %608 = tpu.concatenate %578, %607 in 1 : vector<2x16xf32>, vector<2x16xf32> -> vector<2x32xf32>
    %cst_178 = arith.constant dense<0.000000e+00> : vector<2x96xf32>
    %609 = tpu.matmul %608, %544, %cst_178 {dimension_numbers = #tpu.dot_dimension_numbers<[1], [0], [0], [1], [0, 0, 1, 1], [], []>} : vector<2x32xf32>, vector<32x96xf32>, vector<2x96xf32> -> vector<2x96xf32>
    %610 = vector.broadcast %545 : vector<1x96xf32> to vector<2x96xf32>
    %611 = arith.addf %609, %610 : vector<2x96xf32>
    %612 = vector.extract_strided_slice %541 {offsets = [0, 0], sizes = [2, 48], strides = [1, 1]} : vector<2x96xf32> to vector<2x48xf32>
    %613 = vector.extract_strided_slice %611 {offsets = [0, 0], sizes = [2, 48], strides = [1, 1]} : vector<2x96xf32> to vector<2x48xf32>
    %614 = vector.extract_strided_slice %612 {offsets = [0, 0], sizes = [2, 16], strides = [1, 1]} : vector<2x48xf32> to vector<2x16xf32>
    %615 = vector.extract_strided_slice %613 {offsets = [0, 0], sizes = [2, 16], strides = [1, 1]} : vector<2x48xf32> to vector<2x16xf32>
    %616 = arith.addf %614, %615 : vector<2x16xf32>
    %617 = arith.negf %616 : vector<2x16xf32>
    %618 = math.exp %617 : vector<2x16xf32>
    %cst_179 = arith.constant 1.000000e+00 : f32
    %619 = vector.broadcast %cst_179 : f32 to vector<2x16xf32>
    %620 = arith.addf %619, %618 : vector<2x16xf32>
    %621 = arith.divf %619, %620 : vector<2x16xf32>
    %622 = vector.extract_strided_slice %612 {offsets = [0, 16], sizes = [2, 16], strides = [1, 1]} : vector<2x48xf32> to vector<2x16xf32>
    %623 = vector.extract_strided_slice %613 {offsets = [0, 16], sizes = [2, 16], strides = [1, 1]} : vector<2x48xf32> to vector<2x16xf32>
    %624 = arith.addf %622, %623 : vector<2x16xf32>
    %625 = arith.negf %624 : vector<2x16xf32>
    %626 = math.exp %625 : vector<2x16xf32>
    %cst_180 = arith.constant 1.000000e+00 : f32
    %627 = vector.broadcast %cst_180 : f32 to vector<2x16xf32>
    %628 = arith.addf %627, %626 : vector<2x16xf32>
    %629 = arith.divf %627, %628 : vector<2x16xf32>
    %630 = vector.extract_strided_slice %612 {offsets = [0, 32], sizes = [2, 16], strides = [1, 1]} : vector<2x48xf32> to vector<2x16xf32>
    %631 = vector.extract_strided_slice %613 {offsets = [0, 32], sizes = [2, 16], strides = [1, 1]} : vector<2x48xf32> to vector<2x16xf32>
    %632 = arith.mulf %621, %631 : vector<2x16xf32>
    %633 = arith.addf %630, %632 : vector<2x16xf32>
    %634 = math.tanh %633 : vector<2x16xf32>
    %cst_181 = arith.constant 1.000000e+00 : f32
    %635 = vector.broadcast %cst_181 : f32 to vector<2x16xf32>
    %636 = arith.subf %635, %629 : vector<2x16xf32>
    %637 = arith.mulf %636, %634 : vector<2x16xf32>
    %638 = vector.extract_strided_slice %608 {offsets = [0, 0], sizes = [2, 16], strides = [1, 1]} : vector<2x32xf32> to vector<2x16xf32>
    %639 = arith.mulf %629, %638 : vector<2x16xf32>
    %640 = arith.addf %637, %639 : vector<2x16xf32>
    %641 = vector.extract_strided_slice %542 {offsets = [0, 48], sizes = [2, 48], strides = [1, 1]} : vector<2x96xf32> to vector<2x48xf32>
    %642 = vector.extract_strided_slice %611 {offsets = [0, 48], sizes = [2, 48], strides = [1, 1]} : vector<2x96xf32> to vector<2x48xf32>
    %643 = vector.extract_strided_slice %641 {offsets = [0, 0], sizes = [2, 16], strides = [1, 1]} : vector<2x48xf32> to vector<2x16xf32>
    %644 = vector.extract_strided_slice %642 {offsets = [0, 0], sizes = [2, 16], strides = [1, 1]} : vector<2x48xf32> to vector<2x16xf32>
    %645 = arith.addf %643, %644 : vector<2x16xf32>
    %646 = arith.negf %645 : vector<2x16xf32>
    %647 = math.exp %646 : vector<2x16xf32>
    %cst_182 = arith.constant 1.000000e+00 : f32
    %648 = vector.broadcast %cst_182 : f32 to vector<2x16xf32>
    %649 = arith.addf %648, %647 : vector<2x16xf32>
    %650 = arith.divf %648, %649 : vector<2x16xf32>
    %651 = vector.extract_strided_slice %641 {offsets = [0, 16], sizes = [2, 16], strides = [1, 1]} : vector<2x48xf32> to vector<2x16xf32>
    %652 = vector.extract_strided_slice %642 {offsets = [0, 16], sizes = [2, 16], strides = [1, 1]} : vector<2x48xf32> to vector<2x16xf32>
    %653 = arith.addf %651, %652 : vector<2x16xf32>
    %654 = arith.negf %653 : vector<2x16xf32>
    %655 = math.exp %654 : vector<2x16xf32>
    %cst_183 = arith.constant 1.000000e+00 : f32
    %656 = vector.broadcast %cst_183 : f32 to vector<2x16xf32>
    %657 = arith.addf %656, %655 : vector<2x16xf32>
    %658 = arith.divf %656, %657 : vector<2x16xf32>
    %659 = vector.extract_strided_slice %641 {offsets = [0, 32], sizes = [2, 16], strides = [1, 1]} : vector<2x48xf32> to vector<2x16xf32>
    %660 = vector.extract_strided_slice %642 {offsets = [0, 32], sizes = [2, 16], strides = [1, 1]} : vector<2x48xf32> to vector<2x16xf32>
    %661 = arith.mulf %650, %660 : vector<2x16xf32>
    %662 = arith.addf %659, %661 : vector<2x16xf32>
    %663 = math.tanh %662 : vector<2x16xf32>
    %cst_184 = arith.constant 1.000000e+00 : f32
    %664 = vector.broadcast %cst_184 : f32 to vector<2x16xf32>
    %665 = arith.subf %664, %658 : vector<2x16xf32>
    %666 = arith.mulf %665, %663 : vector<2x16xf32>
    %667 = vector.extract_strided_slice %608 {offsets = [0, 16], sizes = [2, 16], strides = [1, 1]} : vector<2x32xf32> to vector<2x16xf32>
    %668 = arith.mulf %658, %667 : vector<2x16xf32>
    %669 = arith.addf %666, %668 : vector<2x16xf32>
    %670 = tpu.concatenate %640, %669 in 1 : vector<2x16xf32>, vector<2x16xf32> -> vector<2x32xf32>
    %cst_185 = arith.constant dense<0.000000e+00> : vector<2x96xf32>
    %671 = tpu.matmul %670, %544, %cst_185 {dimension_numbers = #tpu.dot_dimension_numbers<[1], [0], [0], [1], [0, 0, 1, 1], [], []>} : vector<2x32xf32>, vector<32x96xf32>, vector<2x96xf32> -> vector<2x96xf32>
    %672 = vector.broadcast %545 : vector<1x96xf32> to vector<2x96xf32>
    %673 = arith.addf %671, %672 : vector<2x96xf32>
    %674 = vector.extract_strided_slice %542 {offsets = [0, 0], sizes = [2, 48], strides = [1, 1]} : vector<2x96xf32> to vector<2x48xf32>
    %675 = vector.extract_strided_slice %673 {offsets = [0, 0], sizes = [2, 48], strides = [1, 1]} : vector<2x96xf32> to vector<2x48xf32>
    %676 = vector.extract_strided_slice %674 {offsets = [0, 0], sizes = [2, 16], strides = [1, 1]} : vector<2x48xf32> to vector<2x16xf32>
    %677 = vector.extract_strided_slice %675 {offsets = [0, 0], sizes = [2, 16], strides = [1, 1]} : vector<2x48xf32> to vector<2x16xf32>
    %678 = arith.addf %676, %677 : vector<2x16xf32>
    %679 = arith.negf %678 : vector<2x16xf32>
    %680 = math.exp %679 : vector<2x16xf32>
    %cst_186 = arith.constant 1.000000e+00 : f32
    %681 = vector.broadcast %cst_186 : f32 to vector<2x16xf32>
    %682 = arith.addf %681, %680 : vector<2x16xf32>
    %683 = arith.divf %681, %682 : vector<2x16xf32>
    %684 = vector.extract_strided_slice %674 {offsets = [0, 16], sizes = [2, 16], strides = [1, 1]} : vector<2x48xf32> to vector<2x16xf32>
    %685 = vector.extract_strided_slice %675 {offsets = [0, 16], sizes = [2, 16], strides = [1, 1]} : vector<2x48xf32> to vector<2x16xf32>
    %686 = arith.addf %684, %685 : vector<2x16xf32>
    %687 = arith.negf %686 : vector<2x16xf32>
    %688 = math.exp %687 : vector<2x16xf32>
    %cst_187 = arith.constant 1.000000e+00 : f32
    %689 = vector.broadcast %cst_187 : f32 to vector<2x16xf32>
    %690 = arith.addf %689, %688 : vector<2x16xf32>
    %691 = arith.divf %689, %690 : vector<2x16xf32>
    %692 = vector.extract_strided_slice %674 {offsets = [0, 32], sizes = [2, 16], strides = [1, 1]} : vector<2x48xf32> to vector<2x16xf32>
    %693 = vector.extract_strided_slice %675 {offsets = [0, 32], sizes = [2, 16], strides = [1, 1]} : vector<2x48xf32> to vector<2x16xf32>
    %694 = arith.mulf %683, %693 : vector<2x16xf32>
    %695 = arith.addf %692, %694 : vector<2x16xf32>
    %696 = math.tanh %695 : vector<2x16xf32>
    %cst_188 = arith.constant 1.000000e+00 : f32
    %697 = vector.broadcast %cst_188 : f32 to vector<2x16xf32>
    %698 = arith.subf %697, %691 : vector<2x16xf32>
    %699 = arith.mulf %698, %696 : vector<2x16xf32>
    %700 = vector.extract_strided_slice %670 {offsets = [0, 0], sizes = [2, 16], strides = [1, 1]} : vector<2x32xf32> to vector<2x16xf32>
    %701 = arith.mulf %691, %700 : vector<2x16xf32>
    %702 = arith.addf %699, %701 : vector<2x16xf32>
    %703 = vector.extract_strided_slice %541 {offsets = [0, 48], sizes = [2, 48], strides = [1, 1]} : vector<2x96xf32> to vector<2x48xf32>
    %704 = vector.extract_strided_slice %673 {offsets = [0, 48], sizes = [2, 48], strides = [1, 1]} : vector<2x96xf32> to vector<2x48xf32>
    %705 = vector.extract_strided_slice %703 {offsets = [0, 0], sizes = [2, 16], strides = [1, 1]} : vector<2x48xf32> to vector<2x16xf32>
    %706 = vector.extract_strided_slice %704 {offsets = [0, 0], sizes = [2, 16], strides = [1, 1]} : vector<2x48xf32> to vector<2x16xf32>
    %707 = arith.addf %705, %706 : vector<2x16xf32>
    %708 = arith.negf %707 : vector<2x16xf32>
    %709 = math.exp %708 : vector<2x16xf32>
    %cst_189 = arith.constant 1.000000e+00 : f32
    %710 = vector.broadcast %cst_189 : f32 to vector<2x16xf32>
    %711 = arith.addf %710, %709 : vector<2x16xf32>
    %712 = arith.divf %710, %711 : vector<2x16xf32>
    %713 = vector.extract_strided_slice %703 {offsets = [0, 16], sizes = [2, 16], strides = [1, 1]} : vector<2x48xf32> to vector<2x16xf32>
    %714 = vector.extract_strided_slice %704 {offsets = [0, 16], sizes = [2, 16], strides = [1, 1]} : vector<2x48xf32> to vector<2x16xf32>
    %715 = arith.addf %713, %714 : vector<2x16xf32>
    %716 = arith.negf %715 : vector<2x16xf32>
    %717 = math.exp %716 : vector<2x16xf32>
    %cst_190 = arith.constant 1.000000e+00 : f32
    %718 = vector.broadcast %cst_190 : f32 to vector<2x16xf32>
    %719 = arith.addf %718, %717 : vector<2x16xf32>
    %720 = arith.divf %718, %719 : vector<2x16xf32>
    %721 = vector.extract_strided_slice %703 {offsets = [0, 32], sizes = [2, 16], strides = [1, 1]} : vector<2x48xf32> to vector<2x16xf32>
    %722 = vector.extract_strided_slice %704 {offsets = [0, 32], sizes = [2, 16], strides = [1, 1]} : vector<2x48xf32> to vector<2x16xf32>
    %723 = arith.mulf %712, %722 : vector<2x16xf32>
    %724 = arith.addf %721, %723 : vector<2x16xf32>
    %725 = math.tanh %724 : vector<2x16xf32>
    %cst_191 = arith.constant 1.000000e+00 : f32
    %726 = vector.broadcast %cst_191 : f32 to vector<2x16xf32>
    %727 = arith.subf %726, %720 : vector<2x16xf32>
    %728 = arith.mulf %727, %725 : vector<2x16xf32>
    %729 = vector.extract_strided_slice %670 {offsets = [0, 16], sizes = [2, 16], strides = [1, 1]} : vector<2x32xf32> to vector<2x16xf32>
    %730 = arith.mulf %720, %729 : vector<2x16xf32>
    %731 = arith.addf %728, %730 : vector<2x16xf32>
    %732 = tpu.concatenate %702, %731 in 1 : vector<2x16xf32>, vector<2x16xf32> -> vector<2x32xf32>
    %cst_192 = arith.constant dense<0.000000e+00> : vector<2x96xf32>
    %733 = tpu.matmul %732, %544, %cst_192 {dimension_numbers = #tpu.dot_dimension_numbers<[1], [0], [0], [1], [0, 0, 1, 1], [], []>} : vector<2x32xf32>, vector<32x96xf32>, vector<2x96xf32> -> vector<2x96xf32>
    %734 = vector.broadcast %545 : vector<1x96xf32> to vector<2x96xf32>
    %735 = arith.addf %733, %734 : vector<2x96xf32>
    %736 = vector.extract_strided_slice %543 {offsets = [0, 0], sizes = [2, 48], strides = [1, 1]} : vector<2x96xf32> to vector<2x48xf32>
    %737 = vector.extract_strided_slice %735 {offsets = [0, 0], sizes = [2, 48], strides = [1, 1]} : vector<2x96xf32> to vector<2x48xf32>
    %738 = vector.extract_strided_slice %736 {offsets = [0, 0], sizes = [2, 16], strides = [1, 1]} : vector<2x48xf32> to vector<2x16xf32>
    %739 = vector.extract_strided_slice %737 {offsets = [0, 0], sizes = [2, 16], strides = [1, 1]} : vector<2x48xf32> to vector<2x16xf32>
    %740 = arith.addf %738, %739 : vector<2x16xf32>
    %741 = arith.negf %740 : vector<2x16xf32>
    %742 = math.exp %741 : vector<2x16xf32>
    %cst_193 = arith.constant 1.000000e+00 : f32
    %743 = vector.broadcast %cst_193 : f32 to vector<2x16xf32>
    %744 = arith.addf %743, %742 : vector<2x16xf32>
    %745 = arith.divf %743, %744 : vector<2x16xf32>
    %746 = vector.extract_strided_slice %736 {offsets = [0, 16], sizes = [2, 16], strides = [1, 1]} : vector<2x48xf32> to vector<2x16xf32>
    %747 = vector.extract_strided_slice %737 {offsets = [0, 16], sizes = [2, 16], strides = [1, 1]} : vector<2x48xf32> to vector<2x16xf32>
    %748 = arith.addf %746, %747 : vector<2x16xf32>
    %749 = arith.negf %748 : vector<2x16xf32>
    %750 = math.exp %749 : vector<2x16xf32>
    %cst_194 = arith.constant 1.000000e+00 : f32
    %751 = vector.broadcast %cst_194 : f32 to vector<2x16xf32>
    %752 = arith.addf %751, %750 : vector<2x16xf32>
    %753 = arith.divf %751, %752 : vector<2x16xf32>
    %754 = vector.extract_strided_slice %736 {offsets = [0, 32], sizes = [2, 16], strides = [1, 1]} : vector<2x48xf32> to vector<2x16xf32>
    %755 = vector.extract_strided_slice %737 {offsets = [0, 32], sizes = [2, 16], strides = [1, 1]} : vector<2x48xf32> to vector<2x16xf32>
    %756 = arith.mulf %745, %755 : vector<2x16xf32>
    %757 = arith.addf %754, %756 : vector<2x16xf32>
    %758 = math.tanh %757 : vector<2x16xf32>
    %cst_195 = arith.constant 1.000000e+00 : f32
    %759 = vector.broadcast %cst_195 : f32 to vector<2x16xf32>
    %760 = arith.subf %759, %753 : vector<2x16xf32>
    %761 = arith.mulf %760, %758 : vector<2x16xf32>
    %762 = vector.extract_strided_slice %732 {offsets = [0, 0], sizes = [2, 16], strides = [1, 1]} : vector<2x32xf32> to vector<2x16xf32>
    %763 = arith.mulf %753, %762 : vector<2x16xf32>
    %764 = arith.addf %761, %763 : vector<2x16xf32>
    %765 = vector.extract_strided_slice %540 {offsets = [0, 48], sizes = [2, 48], strides = [1, 1]} : vector<2x96xf32> to vector<2x48xf32>
    %766 = vector.extract_strided_slice %735 {offsets = [0, 48], sizes = [2, 48], strides = [1, 1]} : vector<2x96xf32> to vector<2x48xf32>
    %767 = vector.extract_strided_slice %765 {offsets = [0, 0], sizes = [2, 16], strides = [1, 1]} : vector<2x48xf32> to vector<2x16xf32>
    %768 = vector.extract_strided_slice %766 {offsets = [0, 0], sizes = [2, 16], strides = [1, 1]} : vector<2x48xf32> to vector<2x16xf32>
    %769 = arith.addf %767, %768 : vector<2x16xf32>
    %770 = arith.negf %769 : vector<2x16xf32>
    %771 = math.exp %770 : vector<2x16xf32>
    %cst_196 = arith.constant 1.000000e+00 : f32
    %772 = vector.broadcast %cst_196 : f32 to vector<2x16xf32>
    %773 = arith.addf %772, %771 : vector<2x16xf32>
    %774 = arith.divf %772, %773 : vector<2x16xf32>
    %775 = vector.extract_strided_slice %765 {offsets = [0, 16], sizes = [2, 16], strides = [1, 1]} : vector<2x48xf32> to vector<2x16xf32>
    %776 = vector.extract_strided_slice %766 {offsets = [0, 16], sizes = [2, 16], strides = [1, 1]} : vector<2x48xf32> to vector<2x16xf32>
    %777 = arith.addf %775, %776 : vector<2x16xf32>
    %778 = arith.negf %777 : vector<2x16xf32>
    %779 = math.exp %778 : vector<2x16xf32>
    %cst_197 = arith.constant 1.000000e+00 : f32
    %780 = vector.broadcast %cst_197 : f32 to vector<2x16xf32>
    %781 = arith.addf %780, %779 : vector<2x16xf32>
    %782 = arith.divf %780, %781 : vector<2x16xf32>
    %783 = vector.extract_strided_slice %765 {offsets = [0, 32], sizes = [2, 16], strides = [1, 1]} : vector<2x48xf32> to vector<2x16xf32>
    %784 = vector.extract_strided_slice %766 {offsets = [0, 32], sizes = [2, 16], strides = [1, 1]} : vector<2x48xf32> to vector<2x16xf32>
    %785 = arith.mulf %774, %784 : vector<2x16xf32>
    %786 = arith.addf %783, %785 : vector<2x16xf32>
    %787 = math.tanh %786 : vector<2x16xf32>
    %cst_198 = arith.constant 1.000000e+00 : f32
    %788 = vector.broadcast %cst_198 : f32 to vector<2x16xf32>
    %789 = arith.subf %788, %782 : vector<2x16xf32>
    %790 = arith.mulf %789, %787 : vector<2x16xf32>
    %791 = vector.extract_strided_slice %732 {offsets = [0, 16], sizes = [2, 16], strides = [1, 1]} : vector<2x32xf32> to vector<2x16xf32>
    %792 = arith.mulf %782, %791 : vector<2x16xf32>
    %793 = arith.addf %790, %792 : vector<2x16xf32>
    %794 = tpu.concatenate %578, %793 in 1 : vector<2x16xf32>, vector<2x16xf32> -> vector<2x32xf32>
    %795 = tpu.concatenate %640, %731 in 1 : vector<2x16xf32>, vector<2x16xf32> -> vector<2x32xf32>
    %796 = tpu.concatenate %702, %669 in 1 : vector<2x16xf32>, vector<2x16xf32> -> vector<2x32xf32>
    %797 = tpu.concatenate %764, %607 in 1 : vector<2x16xf32>, vector<2x16xf32> -> vector<2x32xf32>
    %798 = tpu.concatenate %794, %795, %796, %797 in 0 : vector<2x32xf32>, vector<2x32xf32>, vector<2x32xf32>, vector<2x32xf32> -> vector<8x32xf32>
    %c0_199 = arith.constant 0 : index
    %c0_200 = arith.constant 0 : index
    %799 = vector.load %arg25[%c0_199, %c0_200] : memref<32x32xf32, #tpu.memory_space<vmem>>, vector<32x32xf32>
    %cst_201 = arith.constant dense<0.000000e+00> : vector<8x32xf32>
    %800 = tpu.matmul %798, %799, %cst_201 {dimension_numbers = #tpu.dot_dimension_numbers<[1], [0], [0], [1], [0, 0, 1, 1], [], []>} : vector<8x32xf32>, vector<32x32xf32>, vector<8x32xf32> -> vector<8x32xf32>
    %c0_202 = arith.constant 0 : index
    %c0_203 = arith.constant 0 : index
    %801 = vector.load %arg26[%c0_202, %c0_203] : memref<1x32xf32, #tpu.memory_space<vmem>>, vector<1x32xf32>
    %802 = vector.broadcast %801 : vector<1x32xf32> to vector<8x32xf32>
    %803 = arith.addf %800, %802 : vector<8x32xf32>
    %804 = math.tanh %803 : vector<8x32xf32>
    %c0_204 = arith.constant 0 : index
    %c0_205 = arith.constant 0 : index
    %805 = vector.load %arg27[%c0_204, %c0_205] : memref<1x32xf32, #tpu.memory_space<vmem>>, vector<1x32xf32>
    %806 = vector.broadcast %805 : vector<1x32xf32> to vector<8x32xf32>
    %807 = arith.mulf %804, %806 : vector<8x32xf32>
    %cst_206 = arith.constant dense<0.000000e+00> : vector<8xf32>
    %808 = vector.multi_reduction <add>, %807, %cst_206 [1] : vector<8x32xf32> to vector<8xf32>
    %809 = vector.shape_cast %808 : vector<8xf32> to vector<8x1xf32>
    %810 = vector.extract_strided_slice %809 {offsets = [0, 0], sizes = [2, 1], strides = [1, 1]} : vector<8x1xf32> to vector<2x1xf32>
    %811 = vector.extract_strided_slice %809 {offsets = [2, 0], sizes = [2, 1], strides = [1, 1]} : vector<8x1xf32> to vector<2x1xf32>
    %812 = vector.extract_strided_slice %809 {offsets = [4, 0], sizes = [2, 1], strides = [1, 1]} : vector<8x1xf32> to vector<2x1xf32>
    %813 = vector.extract_strided_slice %809 {offsets = [6, 0], sizes = [2, 1], strides = [1, 1]} : vector<8x1xf32> to vector<2x1xf32>
    %814 = tpu.concatenate %810, %811, %812, %813 in 1 : vector<2x1xf32>, vector<2x1xf32>, vector<2x1xf32>, vector<2x1xf32> -> vector<2x4xf32>
    %cst_207 = arith.constant dense<0xFF800000> : vector<2xf32>
    %815 = vector.multi_reduction <maximumf>, %814, %cst_207 [1] : vector<2x4xf32> to vector<2xf32>
    %816 = vector.shape_cast %815 : vector<2xf32> to vector<2x1xf32>
    %817 = vector.broadcast %816 : vector<2x1xf32> to vector<2x4xf32>
    %818 = arith.subf %814, %817 : vector<2x4xf32>
    %819 = math.exp %818 : vector<2x4xf32>
    %cst_208 = arith.constant dense<0.000000e+00> : vector<2xf32>
    %820 = vector.multi_reduction <add>, %819, %cst_208 [1] : vector<2x4xf32> to vector<2xf32>
    %821 = vector.shape_cast %820 : vector<2xf32> to vector<2x1xf32>
    %822 = vector.broadcast %821 : vector<2x1xf32> to vector<2x4xf32>
    %823 = arith.divf %819, %822 : vector<2x4xf32>
    %cst_209 = arith.constant 0.000000e+00 : f32
    %824 = vector.broadcast %cst_209 : f32 to vector<2x32xf32>
    %825 = vector.extract_strided_slice %823 {offsets = [0, 0], sizes = [2, 1], strides = [1, 1]} : vector<2x4xf32> to vector<2x1xf32>
    %826 = vector.broadcast %825 : vector<2x1xf32> to vector<2x32xf32>
    %827 = arith.mulf %826, %794 : vector<2x32xf32>
    %828 = arith.addf %824, %827 : vector<2x32xf32>
    %829 = vector.extract_strided_slice %823 {offsets = [0, 1], sizes = [2, 1], strides = [1, 1]} : vector<2x4xf32> to vector<2x1xf32>
    %830 = vector.broadcast %829 : vector<2x1xf32> to vector<2x32xf32>
    %831 = arith.mulf %830, %795 : vector<2x32xf32>
    %832 = arith.addf %828, %831 : vector<2x32xf32>
    %833 = vector.extract_strided_slice %823 {offsets = [0, 2], sizes = [2, 1], strides = [1, 1]} : vector<2x4xf32> to vector<2x1xf32>
    %834 = vector.broadcast %833 : vector<2x1xf32> to vector<2x32xf32>
    %835 = arith.mulf %834, %796 : vector<2x32xf32>
    %836 = arith.addf %832, %835 : vector<2x32xf32>
    %837 = vector.extract_strided_slice %823 {offsets = [0, 3], sizes = [2, 1], strides = [1, 1]} : vector<2x4xf32> to vector<2x1xf32>
    %838 = vector.broadcast %837 : vector<2x1xf32> to vector<2x32xf32>
    %839 = arith.mulf %838, %797 : vector<2x32xf32>
    %840 = arith.addf %836, %839 : vector<2x32xf32>
    %c0_210 = arith.constant 0 : index
    %c0_211 = arith.constant 0 : index
    %841 = vector.load %arg28[%c0_210, %c0_211] : memref<2x32xf32, #tpu.memory_space<vmem>>, vector<2x32xf32>
    tpu.vector_store %arg28[%c0_210, %c0_211], %840 {strides = array<i32>} : memref<2x32xf32, #tpu.memory_space<vmem>>, vector<2x32xf32>,
    return
  }
}

</mosaic_0001>

<bundles_post_ra>
// kernel: forward.1
= control target key start
LH: loop header
LB: loop body
LE: loop exit
PB: predicated region body
PF: predicated region fallthrough
CT: control target
= control target key end

     0   :  { %s20585_s0 = inlined_call_operand.vmem [shape: s32[8,8,1], index: 0, kind: input, shape index: {}]   ;;  %s20586_s1 = inlined_call_operand.vmem [shape: f32[50,32], index: 1, kind: input, shape index: {}]   ;;  %s20587_s2 = inlined_call_operand.vmem [shape: f32[8,1,32], index: 2, kind: input, shape index: {}]   ;;  %s20588_s3 = inlined_call_operand.vmem [shape: f32[2,32,96], index: 3, kind: input, shape index: {}]   ;;  %s20589_s4 = inlined_call_operand.hbm [shape: f32[2,1,96], index: 4, kind: input, shape index: {}]   ;;  %s20590_s5 = inlined_call_operand.vmem [shape: f32[2,32,32], index: 5, kind: input, shape index: {}]   ;;  %s20591_s6 = inlined_call_operand.hbm [shape: f32[2,1,32], index: 6, kind: input, shape index: {}]   ;;  %s20592_s7 = inlined_call_operand.hbm [shape: f32[2,1,32], index: 7, kind: input, shape index: {}]   ;;  %s20593_s8 = inlined_call_operand.hbm [shape: f32[2,1,32], index: 8, kind: input, shape index: {}]   ;;  %s20594_s9 = inlined_call_operand.vmem [shape: f32[2,32,64], index: 9, kind: input, shape index: {}]   ;;  %s20595_s10 = inlined_call_operand.hbm [shape: f32[2,1,64], index: 10, kind: input, shape index: {}]   ;;  %s20596_s11 = inlined_call_operand.vmem [shape: f32[2,64,32], index: 11, kind: input, shape index: {}]   ;;  %s20597_s12 = inlined_call_operand.hbm [shape: f32[2,1,32], index: 12, kind: input, shape index: {}]   ;;  %s20598_s13 = inlined_call_operand.hbm [shape: f32[2,1,32], index: 13, kind: input, shape index: {}]   ;;  %s20599_s14 = inlined_call_operand.hbm [shape: f32[2,1,32], index: 14, kind: input, shape index: {}]   ;;  %s20600_s15 = inlined_call_operand.vmem [shape: f32[32,16], index: 15, kind: input, shape index: {}]   ;;  %s20601_s16 = inlined_call_operand.hbm [shape: f32[1,16], index: 16, kind: input, shape index: {}]   ;;  %s20602_s17 = inlined_call_operand.vmem [shape: f32[16,96], index: 17, kind: input, shape index: {}]   ;;  %s20603_s18 = inlined_call_operand.hbm [shape: f32[1,96], index: 18, kind: input, shape index: {}]   ;;  %s20604_s19 = inlined_call_operand.vmem [shape: f32[32,96], index: 19, kind: input, shape index: {}]   ;;  %s20605_s20 = inlined_call_operand.hbm [shape: f32[1,96], index: 20, kind: input, shape index: {}]   ;;  %s20606_s21 = inlined_call_operand.vmem [shape: f32[32,96], index: 21, kind: input, shape index: {}]   ;;  %s20607_s22 = inlined_call_operand.hbm [shape: f32[1,96], index: 22, kind: input, shape index: {}]   ;;  %s20608_s23 = inlined_call_operand.vmem [shape: f32[32,96], index: 23, kind: input, shape index: {}]   ;;  %s20609_s24 = inlined_call_operand.hbm [shape: f32[1,96], index: 24, kind: input, shape index: {}]   ;;  %s20610_s25 = inlined_call_operand.vmem [shape: f32[32,32], index: 25, kind: input, shape index: {}]   ;;  %s20611_s26 = inlined_call_operand.hbm [shape: f32[1,32], index: 26, kind: input, shape index: {}]   ;;  %s20612_s27 = inlined_call_operand.hbm [shape: f32[1,32], index: 27, kind: input, shape index: {}]   ;;  %s20613_s28 = inlined_call_operand.hbm [shape: f32[2,32], index: 28, kind: output, shape index: {}]  }
   0x1   :  { %20639 = sst [smem:[#allocation58_spill]] %s20585_s0 }
   0x2   :  { %20640 = sst [smem:[#allocation59_spill]] %s20586_s1 }
   0x3   :  { %20641 = sst [smem:[#allocation60_spill]] %s20587_s2 }
   0x4   :  { %20642 = sst [smem:[#allocation61_spill]] %s20588_s3 }
   0x5   :  { %20643 = sst [smem:[#allocation62_spill]] %s20589_s4 }
   0x6   :  { %20644 = sst [smem:[#allocation63_spill]] %s20590_s5 }
   0x7   :  { %20645 = sst [smem:[#allocation64_spill]] %s20591_s6 }
   0x8   :  { %20646 = sst [smem:[#allocation65_spill]] %s20592_s7 }
   0x9   :  { %20647 = sst [smem:[#allocation66_spill]] %s20593_s8 }
   0xa   :  { %20648 = sst [smem:[#allocation67_spill]] %s20594_s9 }
   0xb   :  { %20649 = sst [smem:[#allocation68_spill]] %s20595_s10 }
   0xc   :  { %20650 = sst [smem:[#allocation69_spill]] %s20596_s11 }
   0xd   :  { %20651 = sst [smem:[#allocation70_spill]] %s20597_s12 }
   0xe   :  { %33 = vsyncpa [#allocation3], 0 }
   0xf   :  { %34 = vsyncpa [#allocation6], 0 }
  0x10   :  { %35 = vsyncpa [#allocation9], 0 }
  0x11   :  { %36 = vsyncpa [#allocation12], 0 }
  0x12   :  { %37 = vsyncpa [#allocation15], 0 }
  0x13   :  { %38 = vsyncpa [#allocation18], 0 }
  0x14   :  { %39 = vsyncpa [#allocation21], 0 }
  0x15   :  { %40 = vsyncpa [#allocation24], 0 }
  0x16   :  { %41 = vsyncpa [#allocation4], 0  ;;  %s17239_s8 = smov [#allocation5]   ;;  %s17240_s9 = smov [#allocation8]  }
  0x17   :  { %s69_s5 = sshll.u32 %s17239_s8, 4  ;;  %s93_s30 = sshll.u32 %s17240_s9, 4  ;;  %s70_s5 = int_to_ptr.vmem [resolvable:$true] %s69_s5  ;;  %s94_s30 = int_to_ptr.vmem [resolvable:$true] %s93_s30 }
  0x18   :  { %s16909_s3 = scalar_lea.vmem %s70_s5, 32  ;;  %p16914_p1 = scmp.lt.s32.totalorder %s70_s5, %s70_s5 }
  0x19   :  { %p16910_p0 = scmp.ne.s32.totalorder %s70_s5, %s16909_s3  ;;  %p16915_p2 = scmp.lt.s32.totalorder %s16909_s3, %s16909_s3 }
  0x1b   :  { %p16916_p3 = por %p16915_p2, %p16914_p1 }
  0x1d   :  { %p16917_p4 = pnand %p16916_p3, %p16910_p0 }
  0x1f   :  { %16920 = shalt.err (!%p16917_p4)
}
  0x20   :  { %s17241_s6 = smov 16   ;;  %s17242_s10 = smov 1  }
  0x21   :  { %s20652_s29 = sld [smem:[#allocation64_spill]]  ;;  %s16929_s2 = scalar_lea.vmem %s94_s30, 32 }
  0x22   :  { %p16930_p5 = scmp.ne.s32.totalorder %s94_s30, %s16929_s2  ;;  %p16934_p6 = scmp.lt.s32.totalorder %s94_s30, %s94_s30 }
  0x23   :  { %p16935_p7 = scmp.lt.s32.totalorder %s16929_s2, %s16929_s2 }
  0x25   :  { %p16936_p8 = por %p16935_p7, %p16934_p6 }
  0x27   :  { %75 = dma.hbm_to_vmem [thread:$0]  %s20652_s29, 32, %s70_s5, [#allocation6], %s17241_s6, %s17241_s6, %s17242_s10  }
  0x28   :  { %p16937_p9 = pnand %p16936_p8, %p16930_p5 }
  0x2a   :  { %16940 = shalt.err (!%p16937_p9)
}
  0x2b   :  { %s20653_s1 = sld [smem:[#allocation66_spill]]  ;;  %s17243_s4 = smov [#allocation11]  }
  0x2c   :  { %s121_s8 = sshll.u32 %s17243_s4, 4  ;;  %s17244_s9 = smov [#allocation14]   ;;  %s122_s8 = int_to_ptr.vmem [resolvable:$true] %s121_s8 }
  0x2d   :  { %s145_s3 = sshll.u32 %s17244_s9, 4  ;;  %s16949_s5 = scalar_lea.vmem %s122_s8, 32  ;;  %s146_s3 = int_to_ptr.vmem [resolvable:$true] %s145_s3 }
  0x2e   :  { %p16950_p10 = scmp.ne.s32.totalorder %s122_s8, %s16949_s5  ;;  %p16954_p11 = scmp.lt.s32.totalorder %s122_s8, %s122_s8 }
  0x2f   :  { %p16955_p12 = scmp.lt.s32.totalorder %s16949_s5, %s16949_s5 }
  0x31   :  { %99 = dma.hbm_to_vmem [thread:$0]  %s20653_s1, 32, %s94_s30, [#allocation9], %s17241_s6, %s17241_s6, %s17242_s10  }
  0x32   :  { %p16956_p13 = por %p16955_p12, %p16954_p11 }
  0x34   :  { %p16957_p0 = pnand %p16956_p13, %p16950_p10 }
  0x36   :  { %16960 = shalt.err (!%p16957_p0)
}
  0x37   :  { %s20654_s29 = sld [smem:[#allocation70_spill]]  ;;  %s16969_s30 = scalar_lea.vmem %s146_s3, 32 }
  0x38   :  { %p16970_p1 = scmp.ne.s32.totalorder %s146_s3, %s16969_s30  ;;  %p16974_p2 = scmp.lt.s32.totalorder %s146_s3, %s146_s3 }
  0x39   :  { %p16975_p3 = scmp.lt.s32.totalorder %s16969_s30, %s16969_s30 }
  0x3b   :  { %p16976_p4 = por %p16975_p3, %p16974_p2 }
  0x3d   :  { %127 = dma.hbm_to_vmem [thread:$0]  %s20654_s29, 32, %s122_s8, [#allocation12], %s17241_s6, %s17241_s6, %s17242_s10  }
  0x3e   :  { %p16977_p5 = pnand %p16976_p4, %p16970_p1 }
  0x40   :  { %16980 = shalt.err (!%p16977_p5)
}
  0x41   :  { %151 = dma.hbm_to_vmem [thread:$0]  %s20599_s14, 32, %s146_s3, [#allocation15], %s17241_s6, %s17241_s6, %s17242_s10  }
  0x42   :  { %s17245_s12 = smov [#allocation17]   ;;  %s17246_s4 = smov [#allocation20]  }
  0x43   :  { %s172_s1 = sshll.u32 %s17245_s12, 4  ;;  %s196_s9 = sshll.u32 %s17246_s4, 4  ;;  %s173_s1 = int_to_ptr.vmem [resolvable:$true] %s172_s1  ;;  %s197_s9 = int_to_ptr.vmem [resolvable:$true] %s196_s9 }
  0x44   :  { %s16989_s8 = scalar_lea.vmem %s173_s1, 16  ;;  %s16993_s5 = scalar_lea.vmem %s173_s1, 32 }
  0x45   :  { %p16990_p6 = scmp.ne.s32.totalorder %s173_s1, %s16989_s8  ;;  %p16994_p7 = scmp.lt.s32.totalorder %s173_s1, %s173_s1 }
  0x46   :  { %p16995_p8 = scmp.lt.s32.totalorder %s16993_s5, %s16989_s8 }
  0x48   :  { %p16996_p9 = por %p16995_p8, %p16994_p7 }
  0x4a   :  { %p16997_p10 = pnand %p16996_p9, %p16990_p6 }
  0x4c   :  { %17000 = shalt.err (!%p16997_p10)
}
  0x4d   :  { %175 = dma.hbm_to_vmem [thread:$0]  %s20603_s18, 16, %s173_s1, [#allocation18]  }
  0x4e   :  { %s17009_s29 = scalar_lea.vmem %s197_s9, 16  ;;  %s17013_s14 = scalar_lea.vmem %s197_s9, 32 }
  0x4f   :  { %p17010_p11 = scmp.ne.s32.totalorder %s197_s9, %s17009_s29  ;;  %p17014_p12 = scmp.lt.s32.totalorder %s197_s9, %s197_s9 }
  0x50   :  { %p17015_p13 = scmp.lt.s32.totalorder %s17013_s14, %s17009_s29 }
  0x52   :  { %p17016_p0 = por %p17015_p13, %p17014_p12 }
  0x54   :  { %p17017_p1 = pnand %p17016_p0, %p17010_p11 }
  0x56   :  { %17020 = shalt.err (!%p17017_p1)
}
  0x57   :  { %199 = dma.hbm_to_vmem [thread:$0]  %s20607_s22, 16, %s197_s9, [#allocation21]  }
  0x58   :  { %s17247_s2 = smov [#allocation23]   ;;  %s17248_s12 = smov [#allocation2]  }
  0x59   :  { %s220_s7 = sshll.u32 %s17247_s2, 4  ;;  %s55_s4 = sshll.u32 %s17248_s12, 4  ;;  %s221_s7 = int_to_ptr.vmem [resolvable:$true] %s220_s7  ;;  %s56_s4 = int_to_ptr.vmem [resolvable:$true] %s55_s4 }
  0x5a   :  { %s17029_s8 = scalar_lea.vmem %s221_s7, 16  ;;  %s17033_s18 = scalar_lea.vmem %s221_s7, 32 }
  0x5b   :  { %p17030_p2 = scmp.ne.s32.totalorder %s221_s7, %s17029_s8  ;;  %p17034_p3 = scmp.lt.s32.totalorder %s221_s7, %s221_s7 }
  0x5c   :  { %p17035_p4 = scmp.lt.s32.totalorder %s17033_s18, %s17029_s8 }
  0x5e   :  { %p17036_p5 = por %p17035_p4, %p17034_p3 }
  0x60   :  { %p17037_p6 = pnand %p17036_p5, %p17030_p2 }
  0x62   :  { %17040 = shalt.err (!%p17037_p6)
}
  0x63   :  { %223 = dma.hbm_to_vmem [thread:$0]  %s20611_s26, 16, %s221_s7, [#allocation24]  }
  0x64   :  { %s17049_s0 = scalar_lea.vmem %s56_s4, 32  ;;  %p17054_p8 = scmp.lt.s32.totalorder %s56_s4, %s56_s4 }
  0x65   :  { %p17050_p7 = scmp.ne.s32.totalorder %s56_s4, %s17049_s0  ;;  %p17055_p9 = scmp.lt.s32.totalorder %s17049_s0, %s17049_s0 }
  0x67   :  { %p17056_p10 = por %p17055_p9, %p17054_p8 }
  0x69   :  { %p17057_p11 = pnand %p17056_p10, %p17050_p7 }
  0x6b   :  { %17060 = shalt.err (!%p17057_p11)
}
  0x6c   :  { %s20655_s11 = sld [smem:[#allocation62_spill]]  ;;  %s17249_s29 = smov [#allocation7]  }
  0x6d   :  { %s81_s14 = sshll.u32 %s17249_s29, 4  ;;  %s17250_s3 = smov [#allocation10]   ;;  %s82_s14 = int_to_ptr.vmem [resolvable:$true] %s81_s14 }
  0x6e   :  { %s107_s30 = sshll.u32 %s17250_s3, 4  ;;  %s17069_s26 = scalar_lea.vmem %s82_s14, 32  ;;  %s108_s30 = int_to_ptr.vmem [resolvable:$true] %s107_s30 }
  0x6f   :  { %p17070_p12 = scmp.ne.s32.totalorder %s82_s14, %s17069_s26  ;;  %p17074_p13 = scmp.lt.s32.totalorder %s82_s14, %s82_s14 }
  0x70   :  { %p17075_p0 = scmp.lt.s32.totalorder %s17069_s26, %s17069_s26 }
  0x72   :  { %61 = dma.hbm_to_vmem [thread:$0]  %s20655_s11, 32, %s56_s4, [#allocation3], %s17241_s6, %s17241_s6, %s17242_s10  }
  0x73   :  { %p17076_p1 = por %p17075_p0, %p17074_p13 }
  0x75   :  { %p17077_p2 = pnand %p17076_p1, %p17070_p12 }
  0x77   :  { %17080 = shalt.err (!%p17077_p2)
}
  0x78   :  { %s20656_s12 = sld [smem:[#allocation65_spill]]  ;;  %s17089_s4 = scalar_lea.vmem %s108_s30, 32 }
  0x79   :  { %p17090_p3 = scmp.ne.s32.totalorder %s108_s30, %s17089_s4  ;;  %p17094_p4 = scmp.lt.s32.totalorder %s108_s30, %s108_s30 }
  0x7a   :  { %p17095_p5 = scmp.lt.s32.totalorder %s17089_s4, %s17089_s4 }
  0x7c   :  { %p17096_p6 = por %p17095_p5, %p17094_p4 }
  0x7e   :  { %87 = dma.hbm_to_vmem [thread:$0]  %s20656_s12, 32, %s82_s14, [#allocation6], %s17241_s6, %s17241_s6, %s17242_s10  }
  0x7f   :  { %p17097_p7 = pnand %p17096_p6, %p17090_p3 }
  0x81   :  { %17100 = shalt.err (!%p17097_p7)
}
  0x82   :  { %s20657_s1 = sld [smem:[#allocation68_spill]]  ;;  %s17251_s5 = smov [#allocation13]  }
  0x83   :  { %s133_s0 = sshll.u32 %s17251_s5, 4  ;;  %s17252_s22 = smov [#allocation16]   ;;  %s134_s0 = int_to_ptr.vmem [resolvable:$true] %s133_s0 }
  0x84   :  { %s160_s9 = sshll.u32 %s17252_s22, 4  ;;  %s17109_s11 = scalar_lea.vmem %s134_s0, 32  ;;  %s161_s9 = int_to_ptr.vmem [resolvable:$true] %s160_s9 }
  0x85   :  { %p17110_p8 = scmp.ne.s32.totalorder %s134_s0, %s17109_s11  ;;  %p17114_p9 = scmp.lt.s32.totalorder %s134_s0, %s134_s0 }
  0x86   :  { %p17115_p10 = scmp.lt.s32.totalorder %s17109_s11, %s17109_s11 }
  0x88   :  { %113 = dma.hbm_to_vmem [thread:$0]  %s20657_s1, 32, %s108_s30, [#allocation9], %s17241_s6, %s17241_s6, %s17242_s10  }
  0x89   :  { %p17116_p11 = por %p17115_p10, %p17114_p9 }
  0x8b   :  { %p17117_p12 = pnand %p17116_p11, %p17110_p8 }
  0x8d   :  { %17120 = shalt.err (!%p17117_p12)
}
  0x8e   :  { %139 = dma.hbm_to_vmem [thread:$0]  %s20598_s13, 32, %s134_s0, [#allocation12], %s17241_s6, %s17241_s6, %s17242_s10  }
  0x8f   :  { %s17129_s3 = scalar_lea.vmem %s161_s9, 16  ;;  %s17133_s30 = scalar_lea.vmem %s161_s9, 32 }
  0x90   :  { %p17130_p13 = scmp.ne.s32.totalorder %s161_s9, %s17129_s3  ;;  %p17134_p0 = scmp.lt.s32.totalorder %s161_s9, %s161_s9 }
  0x91   :  { %p17135_p1 = scmp.lt.s32.totalorder %s17133_s30, %s17129_s3 }
  0x93   :  { %p17136_p2 = por %p17135_p1, %p17134_p0 }
  0x95   :  { %p17137_p3 = pnand %p17136_p2, %p17130_p13 }
  0x97   :  { %17140 = shalt.err (!%p17137_p3)
}
  0x98   :  { %163 = dma.hbm_to_vmem [thread:$0]  %s20601_s16, 16, %s161_s9, [#allocation15]  }
  0x99   :  { %s17253_s7 = smov [#allocation19]   ;;  %s17254_s4 = smov [#allocation22]  }
  0x9a   :  { %s184_s12 = sshll.u32 %s17253_s7, 4  ;;  %s208_s8 = sshll.u32 %s17254_s4, 4  ;;  %s185_s12 = int_to_ptr.vmem [resolvable:$true] %s184_s12  ;;  %s209_s8 = int_to_ptr.vmem [resolvable:$true] %s208_s8 }
  0x9b   :  { %s17149_s18 = scalar_lea.vmem %s185_s12, 16  ;;  %s17153_s13 = scalar_lea.vmem %s185_s12, 32 }
  0x9c   :  { %p17150_p4 = scmp.ne.s32.totalorder %s185_s12, %s17149_s18  ;;  %p17154_p5 = scmp.lt.s32.totalorder %s185_s12, %s185_s12 }
  0x9d   :  { %p17155_p6 = scmp.lt.s32.totalorder %s17153_s13, %s17149_s18 }
  0x9f   :  { %p17156_p7 = por %p17155_p6, %p17154_p5 }
  0xa1   :  { %p17157_p8 = pnand %p17156_p7, %p17150_p4 }
  0xa3   :  { %17160 = shalt.err (!%p17157_p8)
}
  0xa4   :  { %187 = dma.hbm_to_vmem [thread:$0]  %s20605_s20, 16, %s185_s12, [#allocation18]  }
  0xa5   :  { %s17169_s5 = scalar_lea.vmem %s209_s8, 16  ;;  %s17173_s16 = scalar_lea.vmem %s209_s8, 32 }
  0xa6   :  { %p17170_p9 = scmp.ne.s32.totalorder %s209_s8, %s17169_s5  ;;  %p17174_p10 = scmp.lt.s32.totalorder %s209_s8, %s209_s8 }
  0xa7   :  { %p17175_p11 = scmp.lt.s32.totalorder %s17173_s16, %s17169_s5 }
  0xa9   :  { %p17176_p12 = por %p17175_p11, %p17174_p10 }
  0xab   :  { %p17177_p13 = pnand %p17176_p12, %p17170_p9 }
  0xad   :  { %17180 = shalt.err (!%p17177_p13)
}
  0xae   :  { %211 = dma.hbm_to_vmem [thread:$0]  %s20609_s24, 16, %s209_s8, [#allocation21]  }
  0xaf   :  { %s17255_s9 = smov [#allocation25]  }
  0xb0   :  { %s230_s11 = sshll.u32 %s17255_s9, 4  ;;  %s231_s11 = int_to_ptr.vmem [resolvable:$true] %s230_s11 }
  0xb1   :  { %s17189_s29 = scalar_lea.vmem %s231_s11, 16  ;;  %s17193_s14 = scalar_lea.vmem %s231_s11, 32 }
  0xb2   :  { %p17190_p0 = scmp.ne.s32.totalorder %s231_s11, %s17189_s29  ;;  %p17194_p1 = scmp.lt.s32.totalorder %s231_s11, %s231_s11 }
  0xb3   :  { %p17195_p2 = scmp.lt.s32.totalorder %s17193_s14, %s17189_s29 }
  0xb5   :  { %p17196_p3 = por %p17195_p2, %p17194_p1 }
  0xb7   :  { %p17197_p4 = pnand %p17196_p3, %p17190_p0 }
  0xb9   :  { %17200 = shalt.err (!%p17197_p4)
}
  0xba   :  { %233 = dma.hbm_to_vmem [thread:$0]  %s20612_s27, 16, %s231_s11, [#allocation24]  }
  0xbb   :  { %17221 = dma.done.wait [#allocation3], 32  }
  0xbc   :  { %17222 = vsyncadd [#allocation3], 4294967264 }
  0xbd   :  { %17223 = dma.done.wait [#allocation6], 64  }
  0xbe   :  { %17224 = vsyncadd [#allocation6], 4294967232 }
  0xbf   :  { %17225 = dma.done.wait [#allocation9], 64  }
  0xc0   :  { %17226 = vsyncadd [#allocation9], 4294967232 }
  0xc1   :  { %17227 = dma.done.wait [#allocation12], 64  }
  0xc2   :  { %17228 = vsyncadd [#allocation12], 4294967232 }
  0xc3   :  { %17229 = dma.done.wait [#allocation15], 48  }
  0xc4   :  { %17230 = vsyncadd [#allocation15], 4294967248 }
  0xc5   :  { %17231 = dma.done.wait [#allocation18], 32  }
  0xc6   :  { %17232 = vsyncadd [#allocation18], 4294967264 }
  0xc7   :  { %17233 = dma.done.wait [#allocation21], 32  }
  0xc8   :  { %17234 = vsyncadd [#allocation21], 4294967264 }
  0xc9   :  { %17235 = dma.done.wait [#allocation24], 32  }
  0xca   :  { %17236 = vsyncadd [#allocation24], 4294967264  ;;  %v17256_v0 = vmov 0   ;;  %s20658_s30 = sld [smem:[#allocation58_spill]]  ;;  %vm425_vm0 = vcmask 1041408   ;;  %v20621_v17 = vmov 0.0   ;;  %v287_v18 = vlaneseq }
  0xcb   :  { %16475 = vset.pattern.permute.xlu1 %v17256_v0  ;;  %16474 = vset.pattern.permute.xlu0 %v17256_v0  ;;  %s20659_s10 = sld [smem:[#allocation59_spill]]  ;;  %vm400_vm1 = vcmask 408576   ;;  %vm545_vm10 = vcmask 261120   ;;  %v14712_v63 = vld [vmem:[#allocation2] ss:$0 sm:$0xff]  ;;  %s17258_s5 = smov 120  }
  0xcc   :  { %s20660_s1 = sld [smem:[#allocation61_spill]]  ;;  %v288_v19 = vand.u32 127, %v287_v18  ;;  %s17259_s16 = smov 112   ;;  %vm17261_vm11 = vmmov 0   ;;  %vm733_vm12 = vcmask 64512   ;;  %vm6052_vm13 = vcmask 130048  }
  0xcd   :  { %s20661_s14 = sld [smem:[#allocation60_spill]]  ;;  %s17260_s0 = smov 104   ;;  %vm6061_vm14 = vcmask 195584   ;;  %vm6516_vm15 = vcmask 523264  }
  0xce   :  { %s17262_s22 = smov 96   ;;  %s17263_s9 = smov 64  }
  0xcf   :  { %s17264_s11 = smov 8   ;;  %s20693_s20 = sld [smem:[#allocation63_spill]] }
  0xd0   :  { %v281_v1 = vld [vmem:[%s20658_s30 + $0x10] sm:$0xff]  ;;  %v279_v2 = vld [vmem:[%s20658_s30] sm:$0xff]  ;;  %v282_v3 = vld [vmem:[%s20658_s30 + $0x18] sm:$0xff]  ;;  %s17265_s12 = smov 24   ;;  %s20702_s18 = sld [smem:[#allocation67_spill]] }
  0xd1   :  { %296 = vperm.xlu1 %16475, %v281_v1   ;;  %290 = vperm.xlu0 %16474, %v279_v2   ;;  %v280_v4 = vld [vmem:[%s20658_s30 + $0x8] sm:$0xff]  ;;  %v343_v5 = vld [vmem:[%s20659_s10 + $0x30] sm:$0x3]  ;;  %v341_v7 = vld [vmem:[%s20659_s10 + $0x20] sm:$0xff]  ;;  %s20703_s26 = sld [smem:[#allocation69_spill]]  ;;  %s17268_s7 = smov 48  }
  0xd2   :  { %15470 = vmatprep.subr.msk.mxu0 %vm425_vm0, %v343_v5  ;;  %v342_v6 = vld [vmem:[%s20659_s10 + $0x28] sm:$0xff]  ;;  %v283_v9 = vld [vmem:[%s20658_s30 + $0x20] sm:$0xff]  ;;  %v340_v10 = vld [vmem:[%s20659_s10 + $0x18] sm:$0xff] }
  0xd3   :  { %15471 = vmatpush3.msk.msra.mxu0 %vm425_vm0, %v343_v5  ;;  %v284_v8 = vld [vmem:[%s20658_s30 + $0x28] sm:$0xff]  ;;  %v286_v11 = vld [vmem:[%s20658_s30 + $0x38] sm:$0xff]  ;;  %v285_v12 = vld [vmem:[%s20658_s30 + $0x30] sm:$0xff] }
  0xd4   :  { %15472 = vmatprep.subr.mxu0 %v342_v6  ;;  %v339_v13 = vld [vmem:[%s20659_s10 + $0x10] sm:$0xff]  ;;  %v338_v14 = vld [vmem:[%s20659_s10 + $0x8] sm:$0xff]  ;;  %v337_v15 = vld [vmem:[%s20659_s10] sm:$0xff] }
  0xd5   :  { %299 = vperm.xlu1 %16475, %v282_v3   ;;  %293 = vperm.xlu0 %16474, %v280_v4   ;;  %v537_v16 = vld [vmem:[%s20660_s1 + $0x18] sm:$0xff]  ;;  %v536_v36 = vld [vmem:[%s20660_s1 + $0x10] sm:$0xff]  ;;  %v535_v37 = vld [vmem:[%s20660_s1 + $0x8] sm:$0xff] }
  0xd6   :  { %15473 = vmatpush3.msra.mxu0 %v342_v6  ;;  %15496 = vmatprep.subr.mxu1 %v537_v16  ;;  %v534_v38 = vld [vmem:[%s20660_s1] sm:$0xff] }
  0xd7   :  { %15474 = vmatprep.subr.mxu0 %v341_v7  ;;  %15497 = vmatpush3.msra.mxu1 %v537_v16  ;;  %v14695_v40 = vld [vmem:[%s20661_s14] ss:$0 sm:$0xff]  ;;  %v14696_v41 = vld [vmem:[%s20661_s14 + $0x1] ss:$0 sm:$0xff]  ;;  %v14697_v46 = vld [vmem:[%s20661_s14 + $0x2] ss:$0 sm:$0xff] }
  0xd8   :  { %15475 = vmatpush3.msra.mxu0 %v341_v7  ;;  %15498 = vmatprep.subr.mxu1 %v536_v36  ;;  %v14698_v47 = vld [vmem:[%s20661_s14 + $0x3] ss:$0 sm:$0xff]  ;;  %v14699_v52 = vld [vmem:[%s20661_s14 + $0x4] ss:$0 sm:$0xff]  ;;  %v14700_v53 = vld [vmem:[%s20661_s14 + $0x5] ss:$0 sm:$0xff] }
  0xd9   :  { %305 = vperm.xlu1 %16475, %v284_v8   ;;  %302 = vperm.xlu0 %16474, %v283_v9   ;;  %v14701_v58 = vld [vmem:[%s20661_s14 + $0x6] ss:$0 sm:$0xff]  ;;  %v14702_v59 = vld [vmem:[%s20661_s14 + $0x7] ss:$0 sm:$0xff] }
  0xda   :  { %15476 = vmatprep.subr.mxu0 %v340_v10  ;;  %15499 = vmatpush3.msra.mxu1 %v536_v36 }
  0xdb   :  { %15477 = vmatpush3.msra.mxu0 %v340_v10  ;;  %15500 = vmatprep.subr.mxu1 %v535_v37 }
  0xdc   :  { %15478 = vmatprep.subr.mxu0 %v339_v13  ;;  %15501 = vmatpush3.msra.mxu1 %v535_v37 }
  0xdd   :  { %311 = vperm.xlu1 %16475, %v286_v11   ;;  %308 = vperm.xlu0 %16474, %v285_v12  }
  0xde   :  { %15479 = vmatpush3.msra.mxu0 %v339_v13  ;;  %15502 = vmatprep.subr.mxu1 %v534_v38 }
  0xdf   :  { %15480 = vmatprep.subr.mxu0 %v338_v14  ;;  %15503 = vmatpush3.msra.mxu1 %v534_v38 }
  0xe0   :  { %15481 = vmatpush3.msra.mxu0 %v338_v14  ;;  %15516 = vmatprep.subr.mxu1 %v20621_v17 }
  0xe1   :  { %15482 = vmatprep.subr.mxu0 %v337_v15 }
  0xe2   :  { %15483 = vmatpush3.msra.mxu0 %v337_v15 }
  0xe3   :  { %15526 = vmatprep.subr.mxu0 %v20621_v17 }
 0x14c   :  { %v297_v20 = vpop.permute.xlu1 %296  ;;  %v291_v21 = vpop.permute.xlu0 %290 }
 0x14d   :  { %vm313_vm2 = vcmp.eq.s32.totalorder %v288_v19, %v291_v21  ;;  %vm315_vm3 = vcmp.eq.s32.totalorder %v288_v19, %v297_v20 }
 0x14e   :  { %v14687_v22 = vsel %vm313_vm2, 1.0, %v20621_v17  ;;  %v14689_v25 = vsel %vm315_vm3, 1.0, %v20621_v17  ;;  %vm13828_vm2 = vcmask 1045504   ;;  %vm14613_vm3 = vcmask 15360  }
 0x14f   :  { %15484 = vmatprep.mubr.msk.f32.mxu0 %vm400_vm1, %v14687_v22 }
 0x150   :  { %v300_v23 = vpop.permute.xlu1 %299  ;;  %v294_v24 = vpop.permute.xlu0 %293 }
 0x151   :  { %vm316_vm4 = vcmp.eq.s32.totalorder %v288_v19, %v300_v23  ;;  %vm314_vm5 = vcmp.eq.s32.totalorder %v288_v19, %v294_v24 }
 0x152   :  { %v14688_v26 = vsel %vm314_vm5, 1.0, %v20621_v17  ;;  %v14690_v27 = vsel %vm316_vm4, 1.0, %v20621_v17  ;;  %vm14615_vm4 = vcmask 23552   ;;  %vm14617_vm5 = vcmask 25600  }
 0x153   :  { %15485 = vmatmul.mubr.msk.f32.vlgmr.msra.gmra.mxu0 %vm400_vm1, %v14688_v26 }
 0x154   :  { %v306_v28 = vpop.permute.xlu1 %305  ;;  %v303_v29 = vpop.permute.xlu0 %302  ;;  %15487 = vmatprep.mubr.msk.f32.mxu0 %vm400_vm1, %v14689_v25 }
 0x155   :  { %vm317_vm6 = vcmp.eq.s32.totalorder %v288_v19, %v303_v29  ;;  %vm318_vm7 = vcmp.eq.s32.totalorder %v288_v19, %v306_v28 }
 0x156   :  { %v14691_v30 = vsel %vm317_vm6, 1.0, %v20621_v17  ;;  %v14692_v33 = vsel %vm318_vm7, 1.0, %v20621_v17  ;;  %vm14663_vm6 = vcmask 254976  }
 0x157   :  { %15488 = vmatmul.mubr.msk.f32.gmra.mxu0 %vm400_vm1, %v14690_v27 }
 0x158   :  { %v312_v31 = vpop.permute.xlu1 %311  ;;  %15490 = vmatprep.mubr.msk.f32.mxu0 %vm400_vm1, %v14691_v30  ;;  %v309_v32 = vpop.permute.xlu0 %308 }
 0x159   :  { %vm319_vm8 = vcmp.eq.s32.totalorder %v288_v19, %v309_v32  ;;  %vm320_vm9 = vcmp.eq.s32.totalorder %v288_v19, %v312_v31 }
 0x15a   :  { %v14693_v34 = vsel %vm319_vm8, 1.0, %v20621_v17  ;;  %v14694_v35 = vsel %vm320_vm9, 1.0, %v20621_v17 }
 0x15b   :  { %15491 = vmatmul.mubr.msk.f32.gmra.mxu0 %vm400_vm1, %v14692_v33 }
 0x15c   :  { %15493 = vmatprep.mubr.msk.f32.mxu0 %vm400_vm1, %v14693_v34 }
 0x15f   :  { %15494 = vmatmul.mubr.msk.f32.gmra.mxu0 %vm400_vm1, %v14694_v35  ;;  %vm13826_vm1 = vcmask 1043456  }
 0x160   :  { %15528 = vmatprep.mubr.msk.f32.mxu0 %vm17261_vm11, %v20621_v17 }
 0x213   :  { %v15486_v39 = vpop.f32.mrf.mxu0 }
 0x214   :  { %v17572_v44 = vadd.f32 %v15486_v39, %v14696_v41 }
 0x215   :  { %v495_v42 = vpop.f32.mrf.mxu0 }
 0x216   :  { %v17570_v43 = vadd.f32 %v14695_v40, %v495_v42  ;;  %20663 = vst [vmem:[#allocation37_spill] sm:$0xff] %v17572_v44 }
 0x217   :  { %v15489_v45 = vpop.f32.mrf.mxu0 }
 0x218   :  { %20662 = vst [vmem:[#allocation36_spill] sm:$0xff] %v17570_v43  ;;  %15504 = vmatprep.mubr.msk.f32.mxu1 %vm545_vm10, %v17570_v43  ;;  %v17586_v50 = vadd.f32 %v15489_v45, %v14698_v47 }
 0x219   :  { %v505_v48 = vpop.f32.mrf.mxu0  ;;  %15505 = vmatmul.mubr.msk.f32.vlgmr.msra.gmra.mxu1 %vm545_vm10, %v17572_v44 }
 0x21a   :  { %v17584_v49 = vadd.f32 %v14697_v46, %v505_v48  ;;  %20665 = vst [vmem:[#allocation39_spill] sm:$0xff] %v17586_v50 }
 0x21b   :  { %v15492_v51 = vpop.f32.mrf.mxu0 }
 0x21c   :  { %20664 = vst [vmem:[#allocation38_spill] sm:$0xff] %v17584_v49  ;;  %15507 = vmatprep.mubr.msk.f32.mxu1 %vm545_vm10, %v17584_v49  ;;  %v17600_v56 = vadd.f32 %v15492_v51, %v14700_v53 }
 0x21d   :  { %v515_v54 = vpop.f32.mrf.mxu0  ;;  %15508 = vmatmul.mubr.msk.f32.gmra.mxu1 %vm545_vm10, %v17586_v50 }
 0x21e   :  { %v17598_v55 = vadd.f32 %v14699_v52, %v515_v54  ;;  %20667 = vst [vmem:[#allocation41_spill] sm:$0xff] %v17600_v56 }
 0x21f   :  { %v15495_v57 = vpop.f32.mrf.mxu0 }
 0x220   :  { %20666 = vst [vmem:[#allocation40_spill] sm:$0xff] %v17598_v55  ;;  %15510 = vmatprep.mubr.msk.f32.mxu1 %vm545_vm10, %v17598_v55  ;;  %v17614_v62 = vadd.f32 %v15495_v57, %v14702_v59 }
 0x221   :  { %v525_v60 = vpop.f32.mrf.mxu0  ;;  %15511 = vmatmul.mubr.msk.f32.gmra.mxu1 %vm545_vm10, %v17600_v56 }
 0x222   :  { %v17612_v61 = vadd.f32 %v14701_v58, %v525_v60  ;;  %20669 = vst [vmem:[#allocation43_spill] sm:$0xff] %v17614_v62 }
 0x224   :  { %20668 = vst [vmem:[#allocation42_spill] sm:$0xff] %v17612_v61  ;;  %15513 = vmatprep.mubr.msk.f32.mxu1 %vm545_vm10, %v17612_v61 }
 0x225   :  { %15514 = vmatmul.mubr.msk.f32.gmra.mxu1 %vm545_vm10, %v17614_v62 }
 0x226   :  { %15518 = vmatprep.mubr.msk.f32.mxu1 %vm17261_vm11, %v20621_v17 }
 0x2d9   :  { %v15506_v0 = vpop.f32.mrf.mxu1 }
 0x2da   :  { %v17620_v1 = vadd.f32 %v15506_v0, %v14712_v63 }
 0x2db   :  { %v636_v2 = vpop.f32.mrf.mxu1 }
 0x2dc   :  { %v17622_v3 = vadd.f32 %v14712_v63, %v636_v2  ;;  %685 = vrot.lane.b32.xlu1 %v17620_v1, %s17258_s5 }
 0x2dd   :  { %v15509_v4 = vpop.f32.mrf.mxu1 }
 0x2de   :  { %683 = vrot.lane.b32.xlu0 %v17622_v3, %s17258_s5  ;;  %v17630_v7 = vadd.f32 %v15509_v4, %v14712_v63 }
 0x2df   :  { %v646_v5 = vpop.f32.mrf.mxu1 }
 0x2e0   :  { %701 = vrot.lane.b32.xlu1 %v17620_v1, %s17259_s16  ;;  %v17634_v9 = vadd.f32 %v14712_v63, %v646_v5 }
 0x2e1   :  { %v15512_v6 = vpop.f32.mrf.mxu1 }
 0x2e2   :  { %699 = vrot.lane.b32.xlu0 %v17622_v3, %s17259_s16  ;;  %v17638_v11 = vadd.f32 %v15512_v6, %v14712_v63 }
 0x2e3   :  { %v656_v8 = vpop.f32.mrf.mxu1 }
 0x2e4   :  { %689 = vrot.lane.b32.xlu1 %v17630_v7, %s17258_s5  ;;  %v17642_v12 = vadd.f32 %v14712_v63, %v656_v8 }
 0x2e5   :  { %v15515_v10 = vpop.f32.mrf.mxu1 }
 0x2e6   :  { %687 = vrot.lane.b32.xlu0 %v17634_v9, %s17258_s5  ;;  %v17646_v14 = vadd.f32 %v15515_v10, %v14712_v63 }
 0x2e7   :  { %v666_v13 = vpop.f32.mrf.mxu1 }
 0x2e8   :  { %693 = vrot.lane.b32.xlu1 %v17638_v11, %s17258_s5  ;;  %v17650_v15 = vadd.f32 %v14712_v63, %v666_v13 }
 0x2ea   :  { %691 = vrot.lane.b32.xlu0 %v17642_v12, %s17258_s5 }
 0x2ec   :  { %697 = vrot.lane.b32.xlu1 %v17646_v14, %s17258_s5 }
 0x2ee   :  { %695 = vrot.lane.b32.xlu0 %v17650_v15, %s17258_s5 }
 0x2f0   :  { %705 = vrot.lane.b32.xlu1 %v17630_v7, %s17259_s16 }
 0x2f2   :  { %703 = vrot.lane.b32.xlu0 %v17634_v9, %s17259_s16 }
 0x2f4   :  { %709 = vrot.lane.b32.xlu1 %v17638_v11, %s17259_s16 }
 0x2f6   :  { %707 = vrot.lane.b32.xlu0 %v17642_v12, %s17259_s16 }
 0x2f8   :  { %713 = vrot.lane.b32.xlu1 %v17646_v14, %s17259_s16 }
 0x2fa   :  { %715 = vrot.lane.b32.xlu0 %v17622_v3, %s17260_s0 }
 0x2fc   :  { %717 = vrot.lane.b32.xlu1 %v17620_v1, %s17260_s0 }
 0x2fe   :  { %711 = vrot.lane.b32.xlu0 %v17650_v15, %s17259_s16 }
 0x300   :  { %721 = vrot.lane.b32.xlu1 %v17630_v7, %s17260_s0 }
 0x302   :  { %719 = vrot.lane.b32.xlu0 %v17634_v9, %s17260_s0 }
 0x304   :  { %723 = vrot.lane.b32.xlu1 %v17642_v12, %s17260_s0 }
 0x306   :  { %731 = vrot.lane.b32.xlu0 %v17622_v3, %s17262_s22 }
 0x308   :  { %808 = vrot.lane.b32.xlu1 %v17620_v1, %s17262_s22 }
 0x30a   :  { %725 = vrot.lane.b32.xlu0 %v17638_v11, %s17260_s0 }
 0x30c   :  { %729 = vrot.lane.b32.xlu1 %v17646_v14, %s17260_s0 }
 0x30e   :  { %727 = vrot.lane.b32.xlu0 %v17650_v15, %s17260_s0 }
 0x310   :  { %960 = vrot.lane.b32.xlu1 %v17630_v7, %s17262_s22 }
 0x312   :  { %884 = vrot.lane.b32.xlu0 %v17634_v9, %s17262_s22 }
 0x314   :  { %1112 = vrot.lane.b32.xlu1 %v17638_v11, %s17262_s22 }
 0x316   :  { %1036 = vrot.lane.b32.xlu0 %v17642_v12, %s17262_s22 }
 0x318   :  { %1264 = vrot.lane.b32.xlu1 %v17646_v14, %s17262_s22 }
 0x31a   :  { %1188 = vrot.lane.b32.xlu0 %v17650_v15, %s17262_s22 }
 0x34e   :  { %v17704_v16 = vpop.permute.xlu1 %685 }
 0x34f   :  { %1416 = vrot.lane.b32.xlu1 %v17704_v16, %s17262_s22 }
 0x350   :  { %v17708_v18 = vpop.permute.xlu0 %683 }
 0x351   :  { %1340 = vrot.lane.b32.xlu0 %v17708_v18, %s17262_s22 }
 0x352   :  { %v17712_v19 = vpop.permute.xlu1 %701 }
 0x354   :  { %v17714_v20 = vpop.permute.xlu0 %699 }
 0x356   :  { %v17716_v21 = vpop.permute.xlu1 %689 }
 0x357   :  { %1568 = vrot.lane.b32.xlu1 %v17716_v21, %s17262_s22 }
 0x358   :  { %v17720_v22 = vpop.permute.xlu0 %687 }
 0x359   :  { %1492 = vrot.lane.b32.xlu0 %v17720_v22, %s17262_s22 }
 0x35a   :  { %v17724_v23 = vpop.permute.xlu1 %693 }
 0x35b   :  { %1720 = vrot.lane.b32.xlu1 %v17724_v23, %s17262_s22 }
 0x35c   :  { %v17728_v24 = vpop.permute.xlu0 %691 }
 0x35d   :  { %1644 = vrot.lane.b32.xlu0 %v17728_v24, %s17262_s22 }
 0x35e   :  { %v17732_v25 = vpop.permute.xlu1 %697 }
 0x35f   :  { %1872 = vrot.lane.b32.xlu1 %v17732_v25, %s17262_s22 }
 0x360   :  { %v17736_v26 = vpop.permute.xlu0 %695 }
 0x361   :  { %1796 = vrot.lane.b32.xlu0 %v17736_v26, %s17262_s22 }
 0x362   :  { %v17740_v27 = vpop.permute.xlu1 %705 }
 0x363   :  { %2024 = vrot.lane.b32.xlu1 %v17712_v19, %s17262_s22 }
 0x364   :  { %v17744_v28 = vpop.permute.xlu0 %703 }
 0x365   :  { %1948 = vrot.lane.b32.xlu0 %v17714_v20, %s17262_s22 }
 0x366   :  { %v17748_v29 = vpop.permute.xlu1 %709 }
 0x367   :  { %2176 = vrot.lane.b32.xlu1 %v17740_v27, %s17262_s22 }
 0x368   :  { %v17752_v30 = vpop.permute.xlu0 %707 }
 0x369   :  { %2100 = vrot.lane.b32.xlu0 %v17744_v28, %s17262_s22 }
 0x36a   :  { %v17756_v31 = vpop.permute.xlu1 %713 }
 0x36b   :  { %2328 = vrot.lane.b32.xlu1 %v17748_v29, %s17262_s22 }
 0x36c   :  { %v17760_v32 = vpop.permute.xlu0 %715 }
 0x36d   :  { %2252 = vrot.lane.b32.xlu0 %v17752_v30, %s17262_s22 }
 0x36e   :  { %v17764_v33 = vpop.permute.xlu1 %717 }
 0x36f   :  { %2480 = vrot.lane.b32.xlu1 %v17756_v31, %s17262_s22 }
 0x370   :  { %v17768_v34 = vpop.permute.xlu0 %711 }
 0x371   :  { %2404 = vrot.lane.b32.xlu0 %v17768_v34, %s17262_s22 }
 0x372   :  { %v17772_v35 = vpop.permute.xlu1 %721 }
 0x373   :  { %2632 = vrot.lane.b32.xlu1 %v17764_v33, %s17262_s22 }
 0x374   :  { %v17776_v36 = vpop.permute.xlu0 %719 }
 0x375   :  { %2556 = vrot.lane.b32.xlu0 %v17760_v32, %s17262_s22 }
 0x376   :  { %v17780_v37 = vpop.permute.xlu1 %723 }
 0x377   :  { %2784 = vrot.lane.b32.xlu1 %v17772_v35, %s17262_s22 }
 0x378   :  { %v732_v38 = vpop.permute.xlu0 %731 }
 0x379   :  { %2708 = vrot.lane.b32.xlu0 %v17776_v36, %s17262_s22  ;;  %15517 = vmatpush3.xpose.msk.msra.mxu1 %vm733_vm12, %v732_v38 }
 0x37a   :  { %v809_v39 = vpop.permute.xlu1 %808  ;;  %15521 = vmatprep.subr.mxu1 %v20621_v17 }
 0x37c   :  { %15519 = vmatmul.mubr.msk.f32.vlgmr.msra.gmra.mxu1 %vm733_vm12, %v17622_v3  ;;  %v17790_v40 = vpop.permute.xlu0 %725 }
 0x37d   :  { %2860 = vrot.lane.b32.xlu0 %v17780_v37, %s17262_s22  ;;  %15522 = vmatpush3.xpose.msk.msra.mxu1 %vm733_vm12, %v809_v39 }
 0x37e   :  { %2936 = vrot.lane.b32.xlu1 %v17790_v40, %s17262_s22  ;;  %v17797_v41 = vpop.permute.xlu1 %729  ;;  %15523 = vmatprep.mubr.msk.f32.mxu1 %vm17261_vm11, %v20621_v17 }
 0x37f   :  { %15531 = vmatprep.subr.mxu1 %v20621_v17 }
 0x380   :  { %15524 = vmatmul.mubr.msk.f32.vlgmr.msra.gmra.mxu1 %vm733_vm12, %v17620_v1  ;;  %v17804_v42 = vpop.permute.xlu0 %727 }
 0x381   :  { %3012 = vrot.lane.b32.xlu0 %v17804_v42, %s17262_s22  ;;  %15533 = vmatprep.mubr.msk.f32.mxu1 %vm17261_vm11, %v20621_v17 }
 0x382   :  { %3088 = vrot.lane.b32.xlu1 %v17797_v41, %s17262_s22  ;;  %v961_v45 = vpop.permute.xlu1 %960 }
 0x383   :  { %15532 = vmatpush3.xpose.msk.msra.mxu1 %vm733_vm12, %v961_v45 }
 0x384   :  { %v885_v46 = vpop.permute.xlu0 %884  ;;  %15541 = vmatprep.subr.mxu1 %v20621_v17 }
 0x385   :  { %3592 = vrot.lane.b32.xlu0 %v17620_v1, %s17263_s9  ;;  %15527 = vmatpush3.xpose.msk.msra.mxu0 %vm733_vm12, %v885_v46 }
 0x386   :  { %3516 = vrot.lane.b32.xlu1 %v17622_v3, %s17263_s9  ;;  %v1113_v47 = vpop.permute.xlu1 %1112  ;;  %15534 = vmatmul.mubr.msk.f32.vlgmr.msra.gmra.mxu1 %vm733_vm12, %v17630_v7 }
 0x387   :  { %15542 = vmatpush3.xpose.msk.msra.mxu1 %vm733_vm12, %v1113_v47  ;;  %15536 = vmatprep.subr.mxu0 %v20621_v17 }
 0x388   :  { %15529 = vmatmul.mubr.msk.f32.vlgmr.msra.gmra.mxu0 %vm733_vm12, %v17634_v9  ;;  %v1037_v48 = vpop.permute.xlu0 %1036  ;;  %15543 = vmatprep.mubr.msk.f32.mxu1 %vm17261_vm11, %v20621_v17 }
 0x389   :  { %3668 = vrot.lane.b32.xlu0 %v17634_v9, %s17263_s9  ;;  %15537 = vmatpush3.xpose.msk.msra.mxu0 %vm733_vm12, %v1037_v48 }
 0x38a   :  { %3744 = vrot.lane.b32.xlu1 %v17630_v7, %s17263_s9  ;;  %v1265_v51 = vpop.permute.xlu1 %1264  ;;  %15544 = vmatmul.mubr.msk.f32.vlgmr.msra.gmra.mxu1 %vm733_vm12, %v17638_v11 }
 0x38b   :  { %15551 = vmatprep.subr.mxu1 %v20621_v17  ;;  %15538 = vmatprep.mubr.msk.f32.mxu0 %vm17261_vm11, %v20621_v17 }
 0x38c   :  { %15552 = vmatpush3.xpose.msk.msra.mxu1 %vm733_vm12, %v1265_v51  ;;  %15539 = vmatmul.mubr.msk.f32.vlgmr.msra.gmra.mxu0 %vm733_vm12, %v17642_v12  ;;  %v1189_v52 = vpop.permute.xlu0 %1188 }
 0x38d   :  { %15546 = vmatprep.subr.mxu0 %v20621_v17  ;;  %15553 = vmatprep.mubr.msk.f32.mxu1 %vm17261_vm11, %v20621_v17 }
 0x38e   :  { %3972 = vrot.lane.b32.xlu1 %v17650_v15, %s17263_s9  ;;  %3820 = vrot.lane.b32.xlu0 %v17642_v12, %s17263_s9 }
 0x38f   :  { %15547 = vmatpush3.xpose.msk.msra.mxu0 %vm733_vm12, %v1189_v52  ;;  %15554 = vmatmul.mubr.msk.f32.vlgmr.msra.gmra.mxu1 %vm733_vm12, %v17646_v14 }
 0x390   :  { %15548 = vmatprep.mubr.msk.f32.mxu0 %vm17261_vm11, %v20621_v17  ;;  %15561 = vmatprep.subr.mxu1 %v20621_v17 }
 0x391   :  { %15556 = vmatprep.subr.mxu0 %v20621_v17  ;;  %15563 = vmatprep.mubr.msk.f32.mxu1 %vm17261_vm11, %v20621_v17 }
 0x392   :  { %15549 = vmatmul.mubr.msk.f32.vlgmr.msra.gmra.mxu0 %vm733_vm12, %v17650_v15  ;;  %4124 = vrot.lane.b32.xlu1 %v17708_v18, %s17263_s9 }
 0x393   :  { %3896 = vrot.lane.b32.xlu0 %v17638_v11, %s17263_s9  ;;  %15558 = vmatprep.mubr.msk.f32.mxu0 %vm17261_vm11, %v20621_v17 }
 0x396   :  { %4276 = vrot.lane.b32.xlu1 %v17720_v22, %s17263_s9 }
 0x397   :  { %4048 = vrot.lane.b32.xlu0 %v17646_v14, %s17263_s9 }
 0x39a   :  { %4428 = vrot.lane.b32.xlu1 %v17728_v24, %s17263_s9 }
 0x39b   :  { %4200 = vrot.lane.b32.xlu0 %v17704_v16, %s17263_s9 }
 0x39e   :  { %4732 = vrot.lane.b32.xlu1 %v17714_v20, %s17263_s9 }
 0x39f   :  { %4352 = vrot.lane.b32.xlu0 %v17716_v21, %s17263_s9 }
 0x3a2   :  { %4884 = vrot.lane.b32.xlu1 %v17744_v28, %s17263_s9 }
 0x3a3   :  { %4504 = vrot.lane.b32.xlu0 %v17724_v23, %s17263_s9 }
 0x3a6   :  { %4960 = vrot.lane.b32.xlu1 %v17740_v27, %s17263_s9 }
 0x3a7   :  { %4656 = vrot.lane.b32.xlu0 %v17732_v25, %s17263_s9 }
 0x3aa   :  { %5112 = vrot.lane.b32.xlu1 %v17748_v29, %s17263_s9 }
 0x3ab   :  { %4808 = vrot.lane.b32.xlu0 %v17712_v19, %s17263_s9 }
 0x3ae   :  { %5264 = vrot.lane.b32.xlu1 %v17756_v31, %s17263_s9 }
 0x3af   :  { %5036 = vrot.lane.b32.xlu0 %v17752_v30, %s17263_s9 }
 0x3b2   :  { %5340 = vrot.lane.b32.xlu1 %v17760_v32, %s17263_s9 }
 0x3b3   :  { %5492 = vrot.lane.b32.xlu0 %v17776_v36, %s17263_s9 }
 0x3b6   :  { %5416 = vrot.lane.b32.xlu1 %v17764_v33, %s17263_s9 }
 0x3ba   :  { %5568 = vrot.lane.b32.xlu1 %v17772_v35, %s17263_s9 }
 0x3be   :  { %4580 = vrot.lane.b32.xlu1 %v17736_v26, %s17263_s9 }
 0x3c1   :  { %v1417_v53 = vpop.permute.xlu1 %1416 }
 0x3c2   :  { %5188 = vrot.lane.b32.xlu1 %v17768_v34, %s17263_s9  ;;  %15562 = vmatpush3.xpose.msk.msra.mxu1 %vm733_vm12, %v1417_v53 }
 0x3c3   :  { %v1341_v54 = vpop.permute.xlu0 %1340  ;;  %15571 = vmatprep.subr.mxu1 %v20621_v17 }
 0x3c4   :  { %15557 = vmatpush3.xpose.msk.msra.mxu0 %vm733_vm12, %v1341_v54 }
 0x3c5   :  { %15564 = vmatmul.mubr.msk.f32.vlgmr.msra.gmra.mxu1 %vm733_vm12, %v17704_v16  ;;  %15566 = vmatprep.subr.mxu0 %v20621_v17 }
 0x3c6   :  { %15573 = vmatprep.mubr.msk.f32.mxu1 %vm17261_vm11, %v20621_v17 }
 0x3c7   :  { %15559 = vmatmul.mubr.msk.f32.vlgmr.msra.gmra.mxu0 %vm733_vm12, %v17708_v18 }
 0x3c8   :  { %15568 = vmatprep.mubr.msk.f32.mxu0 %vm17261_vm11, %v20621_v17 }
 0x3c9   :  { %v1569_v57 = vpop.permute.xlu1 %1568 }
 0x3ca   :  { %15572 = vmatpush3.xpose.msk.msra.mxu1 %vm733_vm12, %v1569_v57 }
 0x3cb   :  { %v1493_v58 = vpop.permute.xlu0 %1492  ;;  %15581 = vmatprep.subr.mxu1 %v20621_v17 }
 0x3cc   :  { %15567 = vmatpush3.xpose.msk.msra.mxu0 %vm733_vm12, %v1493_v58 }
 0x3cd   :  { %v1721_v59 = vpop.permute.xlu1 %1720  ;;  %15574 = vmatmul.mubr.msk.f32.vlgmr.msra.gmra.mxu1 %vm733_vm12, %v17716_v21  ;;  %15576 = vmatprep.subr.mxu0 %v20621_v17 }
 0x3ce   :  { %15582 = vmatpush3.xpose.msk.msra.mxu1 %vm733_vm12, %v1721_v59  ;;  %15583 = vmatprep.mubr.msk.f32.mxu1 %vm17261_vm11, %v20621_v17 }
 0x3cf   :  { %15569 = vmatmul.mubr.msk.f32.vlgmr.msra.gmra.mxu0 %vm733_vm12, %v17720_v22  ;;  %v1645_v60 = vpop.permute.xlu0 %1644  ;;  %15591 = vmatprep.subr.mxu1 %v20621_v17 }
 0x3d0   :  { %15577 = vmatpush3.xpose.msk.msra.mxu0 %vm733_vm12, %v1645_v60  ;;  %15578 = vmatprep.mubr.msk.f32.mxu0 %vm17261_vm11, %v20621_v17 }
 0x3d1   :  { %v1873_v63 = vpop.permute.xlu1 %1872  ;;  %15584 = vmatmul.mubr.msk.f32.vlgmr.msra.gmra.mxu1 %vm733_vm12, %v17724_v23  ;;  %15586 = vmatprep.subr.mxu0 %v20621_v17 }
 0x3d2   :  { %15592 = vmatpush3.xpose.msk.msra.mxu1 %vm733_vm12, %v1873_v63  ;;  %15593 = vmatprep.mubr.msk.f32.mxu1 %vm17261_vm11, %v20621_v17 }
 0x3d3   :  { %15579 = vmatmul.mubr.msk.f32.vlgmr.msra.gmra.mxu0 %vm733_vm12, %v17728_v24  ;;  %v1797_v0 = vpop.permute.xlu0 %1796  ;;  %15601 = vmatprep.subr.mxu1 %v20621_v17 }
 0x3d4   :  { %15587 = vmatpush3.xpose.msk.msra.mxu0 %vm733_vm12, %v1797_v0  ;;  %15588 = vmatprep.mubr.msk.f32.mxu0 %vm17261_vm11, %v20621_v17 }
 0x3d5   :  { %v2025_v1 = vpop.permute.xlu1 %2024  ;;  %15594 = vmatmul.mubr.msk.f32.vlgmr.msra.gmra.mxu1 %vm733_vm12, %v17732_v25  ;;  %15596 = vmatprep.subr.mxu0 %v20621_v17 }
 0x3d6   :  { %15602 = vmatpush3.xpose.msk.msra.mxu1 %vm733_vm12, %v2025_v1  ;;  %15603 = vmatprep.mubr.msk.f32.mxu1 %vm17261_vm11, %v20621_v17 }
 0x3d7   :  { %15589 = vmatmul.mubr.msk.f32.vlgmr.msra.gmra.mxu0 %vm733_vm12, %v17736_v26  ;;  %v1949_v2 = vpop.permute.xlu0 %1948  ;;  %15611 = vmatprep.subr.mxu1 %v20621_v17 }
 0x3d8   :  { %15597 = vmatpush3.xpose.msk.msra.mxu0 %vm733_vm12, %v1949_v2  ;;  %15598 = vmatprep.mubr.msk.f32.mxu0 %vm17261_vm11, %v20621_v17 }
 0x3d9   :  { %v2177_v3 = vpop.permute.xlu1 %2176  ;;  %15604 = vmatmul.mubr.msk.f32.vlgmr.msra.gmra.mxu1 %vm733_vm12, %v17712_v19  ;;  %15606 = vmatprep.subr.mxu0 %v20621_v17 }
 0x3da   :  { %15612 = vmatpush3.xpose.msk.msra.mxu1 %vm733_vm12, %v2177_v3  ;;  %15613 = vmatprep.mubr.msk.f32.mxu1 %vm17261_vm11, %v20621_v17 }
 0x3db   :  { %15599 = vmatmul.mubr.msk.f32.vlgmr.msra.gmra.mxu0 %vm733_vm12, %v17714_v20  ;;  %v2101_v4 = vpop.permute.xlu0 %2100  ;;  %15621 = vmatprep.subr.mxu1 %v20621_v17 }
 0x3dc   :  { %15607 = vmatpush3.xpose.msk.msra.mxu0 %vm733_vm12, %v2101_v4  ;;  %15608 = vmatprep.mubr.msk.f32.mxu0 %vm17261_vm11, %v20621_v17 }
 0x3dd   :  { %v2329_v5 = vpop.permute.xlu1 %2328  ;;  %15614 = vmatmul.mubr.msk.f32.vlgmr.msra.gmra.mxu1 %vm733_vm12, %v17740_v27  ;;  %15616 = vmatprep.subr.mxu0 %v20621_v17 }
 0x3de   :  { %15622 = vmatpush3.xpose.msk.msra.mxu1 %vm733_vm12, %v2329_v5  ;;  %15623 = vmatprep.mubr.msk.f32.mxu1 %vm17261_vm11, %v20621_v17 }
 0x3df   :  { %15609 = vmatmul.mubr.msk.f32.vlgmr.msra.gmra.mxu0 %vm733_vm12, %v17744_v28  ;;  %v2253_v6 = vpop.permute.xlu0 %2252  ;;  %15631 = vmatprep.subr.mxu1 %v20621_v17 }
 0x3e0   :  { %15617 = vmatpush3.xpose.msk.msra.mxu0 %vm733_vm12, %v2253_v6  ;;  %15618 = vmatprep.mubr.msk.f32.mxu0 %vm17261_vm11, %v20621_v17 }
 0x3e1   :  { %v2481_v7 = vpop.permute.xlu1 %2480  ;;  %15624 = vmatmul.mubr.msk.f32.vlgmr.msra.gmra.mxu1 %vm733_vm12, %v17748_v29  ;;  %15626 = vmatprep.subr.mxu0 %v20621_v17 }
 0x3e2   :  { %15632 = vmatpush3.xpose.msk.msra.mxu1 %vm733_vm12, %v2481_v7  ;;  %15633 = vmatprep.mubr.msk.f32.mxu1 %vm17261_vm11, %v20621_v17 }
 0x3e3   :  { %15619 = vmatmul.mubr.msk.f32.vlgmr.msra.gmra.mxu0 %vm733_vm12, %v17752_v30  ;;  %v2405_v8 = vpop.permute.xlu0 %2404  ;;  %15641 = vmatprep.subr.mxu1 %v20621_v17 }
 0x3e4   :  { %15627 = vmatpush3.xpose.msk.msra.mxu0 %vm733_vm12, %v2405_v8  ;;  %15628 = vmatprep.mubr.msk.f32.mxu0 %vm17261_vm11, %v20621_v17 }
 0x3e5   :  { %v2633_v9 = vpop.permute.xlu1 %2632  ;;  %15634 = vmatmul.mubr.msk.f32.vlgmr.msra.gmra.mxu1 %vm733_vm12, %v17756_v31  ;;  %15636 = vmatprep.subr.mxu0 %v20621_v17 }
 0x3e6   :  { %15642 = vmatpush3.xpose.msk.msra.mxu1 %vm733_vm12, %v2633_v9  ;;  %15643 = vmatprep.mubr.msk.f32.mxu1 %vm17261_vm11, %v20621_v17 }
 0x3e7   :  { %15629 = vmatmul.mubr.msk.f32.vlgmr.msra.gmra.mxu0 %vm733_vm12, %v17768_v34  ;;  %v2557_v10 = vpop.permute.xlu0 %2556  ;;  %15651 = vmatprep.subr.mxu1 %v20621_v17 }
 0x3e8   :  { %15637 = vmatpush3.xpose.msk.msra.mxu0 %vm733_vm12, %v2557_v10  ;;  %15638 = vmatprep.mubr.msk.f32.mxu0 %vm17261_vm11, %v20621_v17 }
 0x3e9   :  { %v2785_v11 = vpop.permute.xlu1 %2784  ;;  %15644 = vmatmul.mubr.msk.f32.vlgmr.msra.gmra.mxu1 %vm733_vm12, %v17764_v33  ;;  %15646 = vmatprep.subr.mxu0 %v20621_v17 }
 0x3ea   :  { %15652 = vmatpush3.xpose.msk.msra.mxu1 %vm733_vm12, %v2785_v11  ;;  %15653 = vmatprep.mubr.msk.f32.mxu1 %vm17261_vm11, %v20621_v17 }
 0x3eb   :  { %15639 = vmatmul.mubr.msk.f32.vlgmr.msra.gmra.mxu0 %vm733_vm12, %v17760_v32  ;;  %v2709_v12 = vpop.permute.xlu0 %2708  ;;  %15661 = vmatprep.subr.mxu1 %v20621_v17 }
 0x3ec   :  { %15647 = vmatpush3.xpose.msk.msra.mxu0 %vm733_vm12, %v2709_v12  ;;  %15648 = vmatprep.mubr.msk.f32.mxu0 %vm17261_vm11, %v20621_v17 }
 0x3ed   :  { %15654 = vmatmul.mubr.msk.f32.vlgmr.msra.gmra.mxu1 %vm733_vm12, %v17772_v35  ;;  %15656 = vmatprep.subr.mxu0 %v20621_v17 }
 0x3ee   :  { %15663 = vmatprep.mubr.msk.f32.mxu1 %vm17261_vm11, %v20621_v17 }
 0x3ef   :  { %15649 = vmatmul.mubr.msk.f32.vlgmr.msra.gmra.mxu0 %vm733_vm12, %v17776_v36  ;;  %v2861_v13 = vpop.permute.xlu0 %2860 }
 0x3f0   :  { %v2937_v14 = vpop.permute.xlu1 %2936  ;;  %15657 = vmatpush3.xpose.msk.msra.mxu0 %vm733_vm12, %v2861_v13  ;;  %15658 = vmatprep.mubr.msk.f32.mxu0 %vm17261_vm11, %v20621_v17 }
 0x3f1   :  { %15662 = vmatpush3.xpose.msk.msra.mxu1 %vm733_vm12, %v2937_v14  ;;  %15666 = vmatprep.subr.mxu0 %v20621_v17 }
 0x3f2   :  { %15671 = vmatprep.subr.mxu1 %v20621_v17 }
 0x3f3   :  { %15659 = vmatmul.mubr.msk.f32.vlgmr.msra.gmra.mxu0 %vm733_vm12, %v17780_v37  ;;  %v3013_v15 = vpop.permute.xlu0 %3012 }
 0x3f4   :  { %15664 = vmatmul.mubr.msk.f32.vlgmr.msra.gmra.mxu1 %vm733_vm12, %v17790_v40  ;;  %v3089_v16 = vpop.permute.xlu1 %3088  ;;  %15667 = vmatpush3.xpose.msk.msra.mxu0 %vm733_vm12, %v3013_v15 }
 0x3f5   :  { %15672 = vmatpush3.xpose.msk.msra.mxu1 %vm733_vm12, %v3089_v16  ;;  %15668 = vmatprep.mubr.msk.f32.mxu0 %vm17261_vm11, %v20621_v17 }
 0x3f6   :  { %15673 = vmatprep.mubr.msk.f32.mxu1 %vm17261_vm11, %v20621_v17  ;;  %15681 = vmatprep.subr.mxu1 %v20621_v17 }
 0x3f7   :  { %15669 = vmatmul.mubr.msk.f32.vlgmr.msra.gmra.mxu0 %vm733_vm12, %v17804_v42  ;;  %15676 = vmatprep.subr.mxu0 %v20621_v17  ;;  %v3593_v18 = vpop.permute.xlu0 %3592 }
 0x3f8   :  { %15674 = vmatmul.mubr.msk.f32.vlgmr.msra.gmra.mxu1 %vm733_vm12, %v17797_v41  ;;  %v3517_v19 = vpop.permute.xlu1 %3516  ;;  %15678 = vmatprep.mubr.msk.f32.mxu0 %vm17261_vm11, %v20621_v17 }
 0x3f9   :  { %15677 = vmatpush3.msra.mxu0 %v3517_v19  ;;  %15682 = vmatpush3.msra.mxu1 %v3593_v18 }
 0x3fa   :  { %15686 = vmatprep.subr.mxu0 %v20621_v17  ;;  %15683 = vmatprep.mubr.msk.f32.mxu1 %vm17261_vm11, %v20621_v17 }
 0x3fb   :  { %15691 = vmatprep.subr.mxu1 %v20621_v17  ;;  %v18088_v57 = vpop.permute.xlu0 %3668 }
 0x3fc   :  { %v18082_v52 = vpop.permute.xlu1 %3744 }
 0x400   :  { %v18084_v53 = vpop.permute.xlu1 %3972  ;;  %v18098_v2 = vpop.permute.xlu0 %3820 }
 0x404   :  { %v18090_v58 = vpop.permute.xlu1 %4124 }
 0x405   :  { %v18112_v11 = vpop.permute.xlu0 %3896 }
 0x408   :  { %v18100_v3 = vpop.permute.xlu1 %4276 }
 0x40c   :  { %v18114_v12 = vpop.permute.xlu1 %4428 }
 0x43c   :  { %v18050_v20 = vpop.f32.mrf.mxu1 }
 0x43d   :  { %v3164_v21 = vsel %vm733_vm12, %v18050_v20, -inf }
 0x43e   :  { %v15520_v22 = vpop.f32.mrf.mxu1  ;;  %3165 = vmax.xlane.f32.xlu0 %v3164_v21 }
 0x440   :  { %v18054_v23 = vpop.f32.mrf.mxu1 }
 0x441   :  { %v3167_v24 = vsel %vm733_vm12, %v18054_v23, -inf }
 0x442   :  { %v15525_v25 = vpop.f32.mrf.mxu1  ;;  %3168 = vmax.xlane.f32.xlu1 %v3167_v24 }
 0x443   :  { %v18128_v25 = vpop.permute.xlu0 %4048 }
 0x446   :  { %v18058_v26 = vpop.f32.mrf.mxu1 }
 0x447   :  { %v3173_v34 = vsel %vm733_vm12, %v18058_v26, -inf }
 0x448   :  { %v18060_v27 = vpop.f32.mrf.mxu0  ;;  %v15535_v28 = vpop.f32.mrf.mxu1 }
 0x449   :  { %v3170_v29 = vsel %vm733_vm12, %v18060_v27, -inf  ;;  %v18130_v28 = vpop.permute.xlu1 %4732 }
 0x44a   :  { %v18064_v30 = vpop.f32.mrf.mxu1  ;;  %3171 = vmax.xlane.f32.xlu0 %v3170_v29  ;;  %v15530_v31 = vpop.f32.mrf.mxu0  ;;  %20670 = vst [vmem:[#allocation44_spill] sm:$0xff] %v18130_v28 }
 0x44b   :  { %v3179_v45 = vsel %vm733_vm12, %v18064_v30, -inf }
 0x44c   :  { %v18066_v32 = vpop.f32.mrf.mxu0  ;;  %v15545_v33 = vpop.f32.mrf.mxu1 }
 0x44d   :  { %v3176_v35 = vsel %vm733_vm12, %v18066_v32, -inf }
 0x44e   :  { %3174 = vmax.xlane.f32.xlu0 %v3173_v34  ;;  %3177 = vmax.xlane.f32.xlu1 %v3176_v35  ;;  %v15540_v36 = vpop.f32.mrf.mxu0 }
 0x44f   :  { %v18072_v38 = vpop.f32.mrf.mxu1 }
 0x450   :  { %v3185_v51 = vsel %vm733_vm12, %v18072_v38, -inf }
 0x451   :  { %v15555_v39 = vpop.f32.mrf.mxu1 }
 0x452   :  { %v18076_v46 = vpop.f32.mrf.mxu0  ;;  %3180 = vmax.xlane.f32.xlu0 %v3179_v45 }
 0x453   :  { %v3182_v47 = vsel %vm733_vm12, %v18076_v46, -inf }
 0x454   :  { %3183 = vmax.xlane.f32.xlu1 %v3182_v47  ;;  %v15550_v48 = vpop.f32.mrf.mxu0 }
 0x455   :  { %v18144_v48 = vpop.permute.xlu0 %4200 }
 0x456   :  { %3186 = vmax.xlane.f32.xlu0 %v3185_v51  ;;  %v18146_v51 = vpop.permute.xlu1 %4884 }
 0x457   :  { %20671 = vst [vmem:[#allocation45_spill] sm:$0xff] %v18146_v51 }
 0x485   :  { %v18086_v54 = vpop.f32.mrf.mxu1 }
 0x486   :  { %v3191_v59 = vsel %vm733_vm12, %v18086_v54, -inf }
 0x487   :  { %v15565_v60 = vpop.f32.mrf.mxu1  ;;  %3192 = vmax.xlane.f32.xlu0 %v3191_v59  ;;  %v18094_v63 = vpop.f32.mrf.mxu0 }
 0x488   :  { %v3188_v0 = vsel %vm733_vm12, %v18094_v63, -inf }
 0x489   :  { %3189 = vmax.xlane.f32.xlu1 %v3188_v0  ;;  %v15560_v1 = vpop.f32.mrf.mxu0 }
 0x48d   :  { %v18102_v4 = vpop.f32.mrf.mxu1 }
 0x48e   :  { %v3197_v5 = vsel %vm733_vm12, %v18102_v4, -inf }
 0x48f   :  { %v15575_v6 = vpop.f32.mrf.mxu1  ;;  %3198 = vmax.xlane.f32.xlu0 %v3197_v5  ;;  %v18106_v7 = vpop.f32.mrf.mxu0 }
 0x490   :  { %v3194_v8 = vsel %vm733_vm12, %v18106_v7, -inf }
 0x491   :  { %v18110_v9 = vpop.f32.mrf.mxu1  ;;  %3195 = vmax.xlane.f32.xlu1 %v3194_v8  ;;  %v15570_v10 = vpop.f32.mrf.mxu0 }
 0x492   :  { %v3203_v13 = vsel %vm733_vm12, %v18110_v9, -inf }
 0x493   :  { %v15585_v14 = vpop.f32.mrf.mxu1  ;;  %3204 = vmax.xlane.f32.xlu0 %v3203_v13  ;;  %v18118_v15 = vpop.f32.mrf.mxu0 }
 0x494   :  { %v3200_v16 = vsel %vm733_vm12, %v18118_v15, -inf  ;;  %v18160_v14 = vpop.permute.xlu0 %4352 }
 0x495   :  { %v18122_v18 = vpop.f32.mrf.mxu1  ;;  %3201 = vmax.xlane.f32.xlu1 %v3200_v16  ;;  %v15580_v19 = vpop.f32.mrf.mxu0 }
 0x496   :  { %v3209_v21 = vsel %vm733_vm12, %v18122_v18, -inf  ;;  %v18162_v16 = vpop.permute.xlu1 %4960 }
 0x497   :  { %v15595_v22 = vpop.f32.mrf.mxu1  ;;  %3210 = vmax.xlane.f32.xlu0 %v3209_v21  ;;  %v18126_v24 = vpop.f32.mrf.mxu0  ;;  %20672 = vst [vmem:[#allocation46_spill] sm:$0xff] %v18162_v16 }
 0x498   :  { %v3206_v29 = vsel %vm733_vm12, %v18126_v24, -inf }
 0x499   :  { %v18134_v31 = vpop.f32.mrf.mxu1  ;;  %3207 = vmax.xlane.f32.xlu1 %v3206_v29  ;;  %v15590_v33 = vpop.f32.mrf.mxu0 }
 0x49a   :  { %v3215_v34 = vsel %vm733_vm12, %v18134_v31, -inf }
 0x49b   :  { %v15605_v35 = vpop.f32.mrf.mxu1  ;;  %3216 = vmax.xlane.f32.xlu0 %v3215_v34  ;;  %v18138_v36 = vpop.f32.mrf.mxu0 }
 0x49c   :  { %v3212_v39 = vsel %vm733_vm12, %v18138_v36, -inf }
 0x49d   :  { %v18142_v45 = vpop.f32.mrf.mxu1  ;;  %3213 = vmax.xlane.f32.xlu1 %v3212_v39  ;;  %v15600_v47 = vpop.f32.mrf.mxu0 }
 0x49e   :  { %v3221_v59 = vsel %vm733_vm12, %v18142_v45, -inf }
 0x49f   :  { %v15615_v60 = vpop.f32.mrf.mxu1  ;;  %3222 = vmax.xlane.f32.xlu0 %v3221_v59  ;;  %v18150_v0 = vpop.f32.mrf.mxu0 }
 0x4a0   :  { %v3218_v1 = vsel %vm733_vm12, %v18150_v0, -inf  ;;  %v18176_v59 = vpop.permute.xlu0 %4504  ;;  %v18178_v60 = vpop.permute.xlu1 %5112 }
 0x4a1   :  { %v18154_v5 = vpop.f32.mrf.mxu1  ;;  %3219 = vmax.xlane.f32.xlu1 %v3218_v1  ;;  %v15610_v6 = vpop.f32.mrf.mxu0  ;;  %20673 = vst [vmem:[#allocation47_spill] sm:$0xff] %v18178_v60 }
 0x4a2   :  { %v3227_v8 = vsel %vm733_vm12, %v18154_v5, -inf }
 0x4a3   :  { %v15625_v10 = vpop.f32.mrf.mxu1  ;;  %3228 = vmax.xlane.f32.xlu0 %v3227_v8  ;;  %v18158_v13 = vpop.f32.mrf.mxu0 }
 0x4a4   :  { %v3224_v19 = vsel %vm733_vm12, %v18158_v13, -inf }
 0x4a5   :  { %v18166_v21 = vpop.f32.mrf.mxu1  ;;  %3225 = vmax.xlane.f32.xlu1 %v3224_v19  ;;  %v15620_v22 = vpop.f32.mrf.mxu0 }
 0x4a6   :  { %v3233_v29 = vsel %vm733_vm12, %v18166_v21, -inf }
 0x4a7   :  { %v15635_v33 = vpop.f32.mrf.mxu1  ;;  %3234 = vmax.xlane.f32.xlu0 %v3233_v29  ;;  %v18170_v34 = vpop.f32.mrf.mxu0 }
 0x4a8   :  { %v3230_v35 = vsel %vm733_vm12, %v18170_v34, -inf }
 0x4a9   :  { %v18174_v39 = vpop.f32.mrf.mxu1  ;;  %3231 = vmax.xlane.f32.xlu1 %v3230_v35  ;;  %v15630_v47 = vpop.f32.mrf.mxu0 }
 0x4aa   :  { %v3239_v1 = vsel %vm733_vm12, %v18174_v39, -inf  ;;  %v18192_v47 = vpop.permute.xlu0 %4656 }
 0x4ab   :  { %v15645_v6 = vpop.f32.mrf.mxu1  ;;  %3240 = vmax.xlane.f32.xlu0 %v3239_v1  ;;  %v18182_v8 = vpop.f32.mrf.mxu0 }
 0x4ac   :  { %v3236_v10 = vsel %vm733_vm12, %v18182_v8, -inf  ;;  %v18196_v6 = vpop.permute.xlu1 %5264 }
 0x4ad   :  { %v18186_v19 = vpop.f32.mrf.mxu1  ;;  %3237 = vmax.xlane.f32.xlu1 %v3236_v10  ;;  %v15640_v22 = vpop.f32.mrf.mxu0  ;;  %20674 = vst [vmem:[#allocation48_spill] sm:$0xff] %v18196_v6 }
 0x4ae   :  { %v3245_v29 = vsel %vm733_vm12, %v18186_v19, -inf  ;;  %v18206_v62 = vpop.permute.xlu0 %4808 }
 0x4af   :  { %v15655_v33 = vpop.f32.mrf.mxu1  ;;  %3246 = vmax.xlane.f32.xlu0 %v3245_v29  ;;  %v18190_v35 = vpop.f32.mrf.mxu0 }
 0x4b0   :  { %v3242_v1 = vsel %vm733_vm12, %v18190_v35, -inf  ;;  %v18208_v55 = vpop.permute.xlu1 %5340 }
 0x4b1   :  { %3243 = vmax.xlane.f32.xlu1 %v3242_v1  ;;  %v15650_v17 = vpop.f32.mrf.mxu0  ;;  %20675 = vst [vmem:[#allocation49_spill] sm:$0xff] %v18208_v55 }
 0x4b2   :  { %v18216_v44 = vpop.permute.xlu0 %5036 }
 0x4b3   :  { %v18198_v61 = vpop.f32.mrf.mxu0  ;;  %20676 = vst [vmem:[#allocation50_spill] sm:$0xff] %v18216_v44 }
 0x4b4   :  { %v18200_v10 = vpop.f32.mrf.mxu1  ;;  %v3248_v22 = vsel %vm733_vm12, %v18198_v61, -inf }
 0x4b5   :  { %v3251_v29 = vsel %vm733_vm12, %v18200_v10, -inf  ;;  %3249 = vmax.xlane.f32.xlu1 %v3248_v22  ;;  %v15660_v33 = vpop.f32.mrf.mxu0  ;;  %v18218_v22 = vpop.permute.xlu1 %5416 }
 0x4b6   :  { %v15665_v56 = vpop.f32.mrf.mxu1  ;;  %3252 = vmax.xlane.f32.xlu0 %v3251_v29  ;;  %20677 = vst [vmem:[#allocation51_spill] sm:$0xff] %v18218_v22  ;;  %v18220_v33 = vpop.permute.xlu0 %5492 }
 0x4b7   :  { %v18210_v1 = vpop.f32.mrf.mxu0  ;;  %20678 = vst [vmem:[#allocation52_spill] sm:$0xff] %v18220_v33 }
 0x4b8   :  { %v18212_v17 = vpop.f32.mrf.mxu1 }
 0x4b9   :  { %v3257_v50 = vsel %vm733_vm12, %v18212_v17, -inf  ;;  %v15670_v49 = vpop.f32.mrf.mxu0  ;;  %v18222_v56 = vpop.permute.xlu1 %5568 }
 0x4ba   :  { %v15675_v43 = vpop.f32.mrf.mxu1  ;;  %3258 = vmax.xlane.f32.xlu0 %v3257_v50  ;;  %20679 = vst [vmem:[#allocation53_spill] sm:$0xff] %v18222_v56 }
 0x4bd   :  { %v18225_v6 = vpop.permute.xlu1 %4580 }
 0x4c1   :  { %v18227_v51 = vpop.permute.xlu1 %5188 }
 0x4c2   :  { %20680 = vst [vmem:[#allocation54_spill] sm:$0xff] %v18227_v51 }
 0x4c7   :  { %v3166_v29 = vpop.xlane.xlu0 %3165 }
 0x4c8   :  { %v3260_v55 = vsub.f32 %v18050_v20, %v3166_v29 }
 0x4ca   :  { %v3292_v60 = vmul.f32 1.442695, %v3260_v55 }
 0x4cb   :  { %v3169_v43 = vpop.xlane.xlu1 %3168 }
 0x4cc   :  { %16479 = vpow2.f32 %v3292_v60  ;;  %v3261_v50 = vsub.f32 %v18054_v23, %v3169_v43 }
 0x4ce   :  { %v3294_v56 = vmul.f32 1.442695, %v3261_v50 }
 0x4d0   :  { %5644 = vrot.lane.b32.xlu0 %v17780_v37, %s17263_s9  ;;  %16481 = vpow2.f32 %v3294_v56  ;;  %v3254_v37 = vsel %vm733_vm12, %v18210_v1, -inf }
 0x4d3   :  { %v3172_v49 = vpop.xlane.xlu0 %3171 }
 0x4d7   :  { %v3175_v22 = vpop.xlane.xlu0 %3174 }
 0x4d8   :  { %v3263_v44 = vsub.f32 %v18058_v26, %v3175_v22 }
 0x4d9   :  { %v18232_v33 = vpop.eup %16479 }
 0x4da   :  { %v3356_v20 = vsel %vm733_vm12, %v18232_v33, 0.0  ;;  %v3298_v60 = vmul.f32 1.442695, %v3263_v44 }
 0x4db   :  { %3357 = vadd.xlane.f32.xlu1 %v3356_v20  ;;  %v3181_v55 = vpop.xlane.xlu0 %3180 }
 0x4dc   :  { %v3265_v29 = vsub.f32 %v18064_v30, %v3181_v55  ;;  %16483 = vpow2.f32 %v3298_v60  ;;  %v3178_v60 = vpop.xlane.xlu1 %3177 }
 0x4dd   :  { %v18241_v22 = vpop.eup %16481 }
 0x4de   :  { %v3302_v43 = vmul.f32 1.442695, %v3265_v29  ;;  %v3359_v56 = vsel %vm733_vm12, %v18241_v22, 0.0 }
 0x4df   :  { %3255 = vmax.xlane.f32.xlu1 %v3254_v37  ;;  %v3187_v23 = vpop.xlane.xlu0 %3186  ;;  %v3262_v37 = vsub.f32 %v18060_v27, %v3172_v49 }
 0x4e0   :  { %v3267_v50 = vsub.f32 %v18072_v38, %v3187_v23  ;;  %16485 = vpow2.f32 %v3302_v43  ;;  %v3264_v23 = vsub.f32 %v18066_v32, %v3178_v60  ;;  %v3184_v43 = vpop.xlane.xlu1 %3183 }
 0x4e2   :  { %v3306_v26 = vmul.f32 1.442695, %v3267_v50  ;;  %v3300_v50 = vmul.f32 1.442695, %v3264_v23 }
 0x4e4   :  { %16487 = vpow2.f32 %v3306_v26  ;;  %v3266_v26 = vsub.f32 %v18076_v46, %v3184_v43 }
 0x4e9   :  { %v18245_v44 = vpop.eup %16483 }
 0x4ea   :  { %v3365_v30 = vsel %vm733_vm12, %v18245_v44, 0.0 }
 0x4ed   :  { %v18251_v20 = vpop.eup %16485 }
 0x4ee   :  { %v3371_v38 = vsel %vm733_vm12, %v18251_v20, 0.0 }
 0x4ef   :  { %3360 = vadd.xlane.f32.xlu0 %v3359_v56  ;;  %v3304_v56 = vmul.f32 1.442695, %v3266_v26 }
 0x4f0   :  { %5720 = vrot.lane.b32.xlu1 %v17790_v40, %s17263_s9  ;;  %v3296_v40 = vmul.f32 1.442695, %v3262_v37 }
 0x4f1   :  { %v18255_v55 = vpop.eup %16487 }
 0x4f2   :  { %v3377_v29 = vsel %vm733_vm12, %v18255_v55, 0.0  ;;  %16489 = vpow2.f32 %v3296_v40 }
 0x4f3   :  { %3366 = vadd.xlane.f32.xlu0 %v3365_v30  ;;  %16491 = vpow2.f32 %v3300_v50 }
 0x4f4   :  { %16493 = vpow2.f32 %v3304_v56 }
 0x4f7   :  { %3372 = vadd.xlane.f32.xlu0 %v3371_v38 }
 0x4fb   :  { %3378 = vadd.xlane.f32.xlu0 %v3377_v29 }
 0x4ff   :  { %v18262_v30 = vpop.eup %16489 }
 0x500   :  { %v3362_v32 = vsel %vm733_vm12, %v18262_v30, 0.0  ;;  %v18268_v49 = vpop.eup %16491 }
 0x501   :  { %v3368_v60 = vsel %vm733_vm12, %v18268_v49, 0.0  ;;  %v18272_v29 = vpop.eup %16493 }
 0x502   :  { %v3374_v40 = vsel %vm733_vm12, %v18272_v29, 0.0 }
 0x510   :  { %v3193_v38 = vpop.xlane.xlu0 %3192 }
 0x511   :  { %v3269_v51 = vsub.f32 %v18086_v54, %v3193_v38 }
 0x512   :  { %v3190_v16 = vpop.xlane.xlu1 %3189 }
 0x513   :  { %v3310_v28 = vmul.f32 1.442695, %v3269_v51  ;;  %v3268_v27 = vsub.f32 %v18094_v63, %v3190_v16 }
 0x514   :  { %3363 = vadd.xlane.f32.xlu1 %v3362_v32 }
 0x515   :  { %16495 = vpow2.f32 %v3310_v28  ;;  %v3308_v46 = vmul.f32 1.442695, %v3268_v27 }
 0x517   :  { %16497 = vpow2.f32 %v3308_v46 }
 0x518   :  { %3369 = vadd.xlane.f32.xlu1 %v3368_v60  ;;  %v3199_v54 = vpop.xlane.xlu0 %3198 }
 0x519   :  { %v3271_v51 = vsub.f32 %v18102_v4, %v3199_v54 }
 0x51a   :  { %v3196_v37 = vpop.xlane.xlu1 %3195 }
 0x51b   :  { %v3314_v63 = vmul.f32 1.442695, %v3271_v51  ;;  %v3270_v16 = vsub.f32 %v18106_v7, %v3196_v37 }
 0x51c   :  { %3375 = vadd.xlane.f32.xlu1 %v3374_v40  ;;  %v3205_v28 = vpop.xlane.xlu0 %3204 }
 0x51d   :  { %16499 = vpow2.f32 %v3314_v63  ;;  %v3312_v23 = vmul.f32 1.442695, %v3270_v16  ;;  %v3273_v43 = vsub.f32 %v18110_v9, %v3205_v28 }
 0x51e   :  { %v3202_v50 = vpop.xlane.xlu1 %3201 }
 0x51f   :  { %16501 = vpow2.f32 %v3312_v23  ;;  %v3318_v26 = vmul.f32 1.442695, %v3273_v43  ;;  %v3272_v56 = vsub.f32 %v18118_v15, %v3202_v50 }
 0x520   :  { %v3211_v38 = vpop.xlane.xlu0 %3210 }
 0x521   :  { %16503 = vpow2.f32 %v3318_v26  ;;  %v3316_v4 = vmul.f32 1.442695, %v3272_v56  ;;  %v3275_v27 = vsub.f32 %v18122_v18, %v3211_v38 }
 0x522   :  { %v18281_v7 = vpop.eup %16495  ;;  %v3208_v32 = vpop.xlane.xlu1 %3207 }
 0x523   :  { %16505 = vpow2.f32 %v3316_v4  ;;  %v3322_v46 = vmul.f32 1.442695, %v3275_v27  ;;  %v3274_v60 = vsub.f32 %v18126_v24, %v3208_v32  ;;  %v3383_v9 = vsel %vm733_vm12, %v18281_v7, 0.0 }
 0x524   :  { %v18286_v54 = vpop.eup %16497  ;;  %3384 = vadd.xlane.f32.xlu0 %v3383_v9  ;;  %v3217_v51 = vpop.xlane.xlu0 %3216 }
 0x525   :  { %16507 = vpow2.f32 %v3322_v46  ;;  %v3320_v15 = vmul.f32 1.442695, %v3274_v60  ;;  %v3277_v37 = vsub.f32 %v18134_v31, %v3217_v51  ;;  %v3380_v18 = vsel %vm733_vm12, %v18286_v54, 0.0 }
 0x526   :  { %v3214_v63 = vpop.xlane.xlu1 %3213  ;;  %3381 = vadd.xlane.f32.xlu1 %v3380_v18 }
 0x527   :  { %16509 = vpow2.f32 %v3320_v15  ;;  %v3326_v16 = vmul.f32 1.442695, %v3277_v37  ;;  %v3276_v24 = vsub.f32 %v18138_v36, %v3214_v63 }
 0x528   :  { %v3223_v40 = vpop.xlane.xlu0 %3222 }
 0x529   :  { %16511 = vpow2.f32 %v3326_v16  ;;  %v3324_v28 = vmul.f32 1.442695, %v3276_v24  ;;  %v3279_v23 = vsub.f32 %v18142_v45, %v3223_v40 }
 0x52a   :  { %v18293_v43 = vpop.eup %16499  ;;  %v3220_v50 = vpop.xlane.xlu1 %3219 }
 0x52b   :  { %v3278_v26 = vsub.f32 %v18150_v0, %v3220_v50  ;;  %v3389_v31 = vsel %vm733_vm12, %v18293_v43, 0.0  ;;  %16513 = vpow2.f32 %v3324_v28  ;;  %v3330_v4 = vmul.f32 1.442695, %v3279_v23 }
 0x52c   :  { %v18298_v56 = vpop.eup %16501  ;;  %3390 = vadd.xlane.f32.xlu0 %v3389_v31  ;;  %v3229_v38 = vpop.xlane.xlu0 %3228 }
 0x52d   :  { %v3328_v36 = vmul.f32 1.442695, %v3278_v26  ;;  %v3281_v27 = vsub.f32 %v18154_v5, %v3229_v38  ;;  %v3386_v45 = vsel %vm733_vm12, %v18298_v56, 0.0 }
 0x52e   :  { %v18303_v32 = vpop.eup %16503  ;;  %v3226_v46 = vpop.xlane.xlu1 %3225  ;;  %3387 = vadd.xlane.f32.xlu1 %v3386_v45 }
 0x52f   :  { %16515 = vpow2.f32 %v3328_v36  ;;  %v3280_v0 = vsub.f32 %v18158_v13, %v3226_v46  ;;  %v3395_v60 = vsel %vm733_vm12, %v18303_v32, 0.0  ;;  %v3334_v51 = vmul.f32 1.442695, %v3281_v27 }
 0x530   :  { %v18308_v9 = vpop.eup %16505  ;;  %3396 = vadd.xlane.f32.xlu0 %v3395_v60  ;;  %v3235_v15 = vpop.xlane.xlu0 %3234  ;;  %16517 = vpow2.f32 %v3330_v4 }
 0x531   :  { %v3332_v5 = vmul.f32 1.442695, %v3280_v0  ;;  %v3283_v37 = vsub.f32 %v18166_v21, %v3235_v15  ;;  %v3392_v18 = vsel %vm733_vm12, %v18308_v9, 0.0 }
 0x532   :  { %v18313_v63 = vpop.eup %16507  ;;  %v3232_v16 = vpop.xlane.xlu1 %3231  ;;  %3393 = vadd.xlane.f32.xlu1 %v3392_v18 }
 0x533   :  { %16519 = vpow2.f32 %v3332_v5  ;;  %v3282_v13 = vsub.f32 %v18170_v34, %v3232_v16  ;;  %v3338_v40 = vmul.f32 1.442695, %v3283_v37  ;;  %v3401_v26 = vsel %vm733_vm12, %v18313_v63, 0.0 }
 0x534   :  { %v18316_v24 = vpop.eup %16509  ;;  %16521 = vpow2.f32 %v3334_v51  ;;  %v3241_v28 = vpop.xlane.xlu0 %3240 }
 0x535   :  { %v3336_v23 = vmul.f32 1.442695, %v3282_v13  ;;  %v3285_v50 = vsub.f32 %v18174_v39, %v3241_v28  ;;  %v3398_v21 = vsel %vm733_vm12, %v18316_v24, 0.0 }
 0x536   :  { %v18323_v31 = vpop.eup %16511  ;;  %v3238_v38 = vpop.xlane.xlu1 %3237  ;;  %3399 = vadd.xlane.f32.xlu0 %v3398_v21  ;;  %3402 = vadd.xlane.f32.xlu1 %v3401_v26 }
 0x537   :  { %16523 = vpow2.f32 %v3336_v23  ;;  %v3284_v34 = vsub.f32 %v18182_v8, %v3238_v38  ;;  %v3342_v4 = vmul.f32 1.442695, %v3285_v50  ;;  %v3407_v46 = vsel %vm733_vm12, %v18323_v31, 0.0 }
 0x538   :  { %v3247_v36 = vpop.xlane.xlu0 %3246  ;;  %v18326_v27 = vpop.eup %16513  ;;  %16525 = vpow2.f32 %v3338_v40 }
 0x539   :  { %v3340_v39 = vmul.f32 1.442695, %v3284_v34  ;;  %v3287_v45 = vsub.f32 %v18186_v19, %v3247_v36  ;;  %v3404_v37 = vsel %vm733_vm12, %v18326_v27, 0.0 }
 0x53a   :  { %v3244_v0 = vpop.xlane.xlu1 %3243  ;;  %3408 = vadd.xlane.f32.xlu0 %v3407_v46 }
 0x53b   :  { %16527 = vpow2.f32 %v3340_v39  ;;  %v3286_v60 = vsub.f32 %v18190_v35, %v3244_v0  ;;  %v3346_v8 = vmul.f32 1.442695, %v3287_v45 }
 0x53c   :  { %v18332_v51 = vpop.eup %16515  ;;  %16529 = vpow2.f32 %v3342_v4 }
 0x53d   :  { %v3344_v15 = vmul.f32 1.442695, %v3286_v60  ;;  %v3410_v5 = vsel %vm733_vm12, %v18332_v51, 0.0  ;;  %v18338_v19 = vpop.eup %16517 }
 0x53e   :  { %v3250_v18 = vpop.xlane.xlu1 %3249  ;;  %3411 = vadd.xlane.f32.xlu1 %v3410_v5  ;;  %3405 = vadd.xlane.f32.xlu0 %v3404_v37  ;;  %v3413_v21 = vsel %vm733_vm12, %v18338_v19, 0.0 }
 0x53f   :  { %16531 = vpow2.f32 %v3344_v15  ;;  %v3288_v16 = vsub.f32 %v18198_v61, %v3250_v18  ;;  %v3253_v35 = vpop.xlane.xlu0 %3252 }
 0x540   :  { %v18341_v13 = vpop.eup %16519  ;;  %v3289_v40 = vsub.f32 %v18200_v10, %v3253_v35  ;;  %16533 = vpow2.f32 %v3346_v8 }
 0x541   :  { %v18344_v28 = vpop.eup %16521  ;;  %v3348_v23 = vmul.f32 1.442695, %v3288_v16  ;;  %v3416_v50 = vsel %vm733_vm12, %v18341_v13, 0.0 }
 0x542   :  { %v3350_v26 = vmul.f32 1.442695, %v3289_v40  ;;  %3417 = vadd.xlane.f32.xlu1 %v3416_v50  ;;  %3414 = vadd.xlane.f32.xlu0 %v3413_v21  ;;  %v3419_v4 = vsel %vm733_vm12, %v18344_v28, 0.0 }
 0x543   :  { %16535 = vpow2.f32 %v3348_v23  ;;  %v3259_v61 = vpop.xlane.xlu0 %3258 }
 0x544   :  { %v18350_v38 = vpop.eup %16523  ;;  %v3291_v34 = vsub.f32 %v18212_v17, %v3259_v61  ;;  %16537 = vpow2.f32 %v3350_v26 }
 0x545   :  { %v3422_v10 = vsel %vm733_vm12, %v18350_v38, 0.0  ;;  %v18357_v36 = vpop.eup %16525 }
 0x546   :  { %v3354_v39 = vmul.f32 1.442695, %v3291_v34  ;;  %3423 = vadd.xlane.f32.xlu1 %v3422_v10  ;;  %3420 = vadd.xlane.f32.xlu0 %v3419_v4  ;;  %v3425_v0 = vsel %vm733_vm12, %v18357_v36, 0.0 }
 0x548   :  { %v18359_v45 = vpop.eup %16527  ;;  %16539 = vpow2.f32 %v3354_v39  ;;  %v18393_v39 = vpop.permute.xlu0 %5644 }
 0x549   :  { %v18361_v46 = vpop.eup %16529  ;;  %v3428_v17 = vsel %vm733_vm12, %v18359_v45, 0.0 }
 0x54a   :  { %3429 = vadd.xlane.f32.xlu1 %v3428_v17  ;;  %3426 = vadd.xlane.f32.xlu0 %v3425_v0  ;;  %v3431_v15 = vsel %vm733_vm12, %v18361_v46, 0.0  ;;  %v20681_v17 = vmov 0.0  }
 0x54c   :  { %v18367_v60 = vpop.eup %16531 }
 0x54d   :  { %v3434_v8 = vsel %vm733_vm12, %v18367_v60, 0.0  ;;  %v18373_v5 = vpop.eup %16533 }
 0x54e   :  { %3435 = vadd.xlane.f32.xlu1 %v3434_v8  ;;  %3432 = vadd.xlane.f32.xlu0 %v3431_v15  ;;  %v3437_v16 = vsel %vm733_vm12, %v18373_v5, 0.0 }
 0x550   :  { %v18375_v37 = vpop.eup %16535 }
 0x551   :  { %v3440_v18 = vsel %vm733_vm12, %v18375_v37, 0.0  ;;  %v18381_v35 = vpop.eup %16537 }
 0x552   :  { %3441 = vadd.xlane.f32.xlu1 %v3440_v18  ;;  %3438 = vadd.xlane.f32.xlu0 %v3437_v16  ;;  %v3443_v40 = vsel %vm733_vm12, %v18381_v35, 0.0 }
 0x555   :  { %v18385_v23 = vpop.eup %16539 }
 0x556   :  { %3444 = vadd.xlane.f32.xlu0 %v3443_v40  ;;  %v3449_v50 = vsel %vm733_vm12, %v18385_v23, 0.0 }
 0x55a   :  { %3450 = vadd.xlane.f32.xlu0 %v3449_v50 }
 0x564   :  { %v3358_v21 = vpop.xlane.xlu1 %3357 }
 0x565   :  { %16541 = vrcp.f32 %v3358_v21 }
 0x568   :  { %v3256_v26 = vpop.xlane.xlu1 %3255 }
 0x569   :  { %v3290_v61 = vsub.f32 %v18210_v1, %v3256_v26 }
 0x56b   :  { %v3352_v34 = vmul.f32 1.442695, %v3290_v61 }
 0x56d   :  { %16543 = vpow2.f32 %v3352_v34 }
 0x570   :  { %5796 = vrot.lane.b32.xlu0 %v17804_v42, %s17263_s9 }
 0x572   :  { %v16542_v10 = vpop.eup %16541 }
 0x573   :  { %v3453_v4 = vmul.f32 %v16542_v10, %v18232_v33 }
 0x575   :  { %15679 = vmatmul.mubr.msk.f32.vlgmr.msra.gmra.mxu0 %vm733_vm12, %v3453_v4 }
 0x576   :  { %15687 = vmatpush3.msra.mxu0 %v18088_v57  ;;  %15688 = vmatprep.mubr.msk.f32.mxu0 %vm17261_vm11, %v20681_v17 }
 0x577   :  { %15696 = vmatprep.subr.mxu0 %v20681_v17 }
 0x578   :  { %v3361_v1 = vpop.xlane.xlu0 %3360 }
 0x579   :  { %16545 = vrcp.f32 %v3361_v1 }
 0x57a   :  { %v18400_v0 = vpop.eup %16543 }
 0x57b   :  { %v3446_v42 = vsel %vm733_vm12, %v18400_v0, 0.0 }
 0x57c   :  { %v3367_v8 = vpop.xlane.xlu0 %3366  ;;  %3447 = vadd.xlane.f32.xlu1 %v3446_v42 }
 0x57d   :  { %16547 = vrcp.f32 %v3367_v8 }
 0x580   :  { %v3373_v33 = vpop.xlane.xlu0 %3372 }
 0x581   :  { %16549 = vrcp.f32 %v3373_v33 }
 0x584   :  { %v3379_v15 = vpop.xlane.xlu0 %3378 }
 0x585   :  { %16551 = vrcp.f32 %v3379_v15 }
 0x586   :  { %v16546_v57 = vpop.eup %16545 }
 0x587   :  { %v3455_v18 = vmul.f32 %v16546_v57, %v18241_v22 }
 0x589   :  { %15684 = vmatmul.mubr.msk.f32.vlgmr.msra.gmra.mxu1 %vm733_vm12, %v3455_v18 }
 0x58a   :  { %v16548_v16 = vpop.eup %16547  ;;  %15692 = vmatpush3.msra.mxu1 %v18082_v52  ;;  %15693 = vmatprep.mubr.msk.f32.mxu1 %vm17261_vm11, %v20681_v17 }
 0x58b   :  { %15701 = vmatprep.subr.mxu1 %v20681_v17  ;;  %v3459_v40 = vmul.f32 %v16548_v16, %v18245_v44 }
 0x58d   :  { %15694 = vmatmul.mubr.msk.f32.vlgmr.msra.gmra.mxu1 %vm733_vm12, %v3459_v40  ;;  %5872 = vrot.lane.b32.xlu1 %v17797_v41, %s17263_s9 }
 0x58e   :  { %v16550_v50 = vpop.eup %16549  ;;  %15702 = vmatpush3.msra.mxu1 %v18112_v11  ;;  %15703 = vmatprep.mubr.msk.f32.mxu1 %vm17261_vm11, %v20681_v17  ;;  %v18430_v11 = vpop.permute.xlu1 %5720 }
 0x58f   :  { %15711 = vmatprep.subr.mxu1 %v20681_v17  ;;  %v3463_v52 = vmul.f32 %v16550_v50, %v18251_v20 }
 0x591   :  { %15704 = vmatmul.mubr.msk.f32.vlgmr.msra.gmra.mxu1 %vm733_vm12, %v3463_v52 }
 0x592   :  { %v16552_v22 = vpop.eup %16551  ;;  %15712 = vmatpush3.msra.mxu1 %v18128_v25  ;;  %15713 = vmatprep.mubr.msk.f32.mxu1 %vm17261_vm11, %v20681_v17 }
 0x593   :  { %15721 = vmatprep.subr.mxu1 %v20681_v17  ;;  %v3467_v41 = vmul.f32 %v16552_v22, %v18255_v55 }
 0x595   :  { %15714 = vmatmul.mubr.msk.f32.vlgmr.msra.gmra.mxu1 %vm733_vm12, %v3467_v41 }
 0x596   :  { %15722 = vmatpush3.msra.mxu1 %v18144_v48  ;;  %15723 = vmatprep.mubr.msk.f32.mxu1 %vm17261_vm11, %v20681_v17 }
 0x597   :  { %15731 = vmatprep.subr.mxu1 %v20681_v17 }
 0x59d   :  { %v3364_v44 = vpop.xlane.xlu1 %3363 }
 0x59e   :  { %16553 = vrcp.f32 %v3364_v44 }
 0x5a1   :  { %v3370_v25 = vpop.xlane.xlu1 %3369 }
 0x5a2   :  { %16555 = vrcp.f32 %v3370_v25 }
 0x5a5   :  { %v3376_v20 = vpop.xlane.xlu1 %3375 }
 0x5a6   :  { %16557 = vrcp.f32 %v3376_v20 }
 0x5ab   :  { %v16554_v21 = vpop.eup %16553 }
 0x5ac   :  { %v3457_v55 = vmul.f32 %v16554_v21, %v18262_v30 }
 0x5ad   :  { %v3385_v26 = vpop.xlane.xlu0 %3384 }
 0x5ae   :  { %16559 = vrcp.f32 %v3385_v26  ;;  %15689 = vmatmul.mubr.msk.f32.vlgmr.msra.gmra.mxu0 %vm733_vm12, %v3457_v55 }
 0x5af   :  { %v16556_v48 = vpop.eup %16555  ;;  %15697 = vmatpush3.msra.mxu0 %v18098_v2  ;;  %v3382_v61 = vpop.xlane.xlu1 %3381  ;;  %15698 = vmatprep.mubr.msk.f32.mxu0 %vm17261_vm11, %v20681_v17 }
 0x5b0   :  { %16561 = vrcp.f32 %v3382_v61  ;;  %15706 = vmatprep.subr.mxu0 %v20681_v17  ;;  %v3461_v34 = vmul.f32 %v16556_v48, %v18268_v49  ;;  %v20684_v48 = vld [vmem:[#allocation45_spill] sm:$0xff] }
 0x5b2   :  { %15699 = vmatmul.mubr.msk.f32.vlgmr.msra.gmra.mxu0 %vm733_vm12, %v3461_v34 }
 0x5b3   :  { %v16558_v10 = vpop.eup %16557  ;;  %15707 = vmatpush3.msra.mxu0 %v18084_v53  ;;  %15708 = vmatprep.mubr.msk.f32.mxu0 %vm17261_vm11, %v20681_v17 }
 0x5b4   :  { %15716 = vmatprep.subr.mxu0 %v20681_v17  ;;  %v3465_v2 = vmul.f32 %v16558_v10, %v18272_v29 }
 0x5b5   :  { %v3391_v30 = vpop.xlane.xlu0 %3390 }
 0x5b6   :  { %16563 = vrcp.f32 %v3391_v30  ;;  %15709 = vmatmul.mubr.msk.f32.vlgmr.msra.gmra.mxu0 %vm733_vm12, %v3465_v2 }
 0x5b7   :  { %15717 = vmatpush3.msra.mxu0 %v18090_v58  ;;  %v3388_v4 = vpop.xlane.xlu1 %3387  ;;  %15718 = vmatprep.mubr.msk.f32.mxu0 %vm17261_vm11, %v20681_v17 }
 0x5b8   :  { %16565 = vrcp.f32 %v3388_v4  ;;  %15726 = vmatprep.subr.mxu0 %v20681_v17  ;;  %v20685_v4 = vld [vmem:[#allocation50_spill] sm:$0xff] }
 0x5b9   :  { %v3397_v53 = vpop.xlane.xlu0 %3396 }
 0x5ba   :  { %16567 = vrcp.f32 %v3397_v53  ;;  %v20686_v53 = vld [vmem:[#allocation47_spill] sm:$0xff] }
 0x5bb   :  { %v16560_v49 = vpop.eup %16559  ;;  %v3394_v1 = vpop.xlane.xlu1 %3393 }
 0x5bc   :  { %16569 = vrcp.f32 %v3394_v1  ;;  %v3471_v29 = vmul.f32 %v16560_v49, %v18281_v7 }
 0x5bd   :  { %v16562_v42 = vpop.eup %16561 }
 0x5be   :  { %15724 = vmatmul.mubr.msk.f32.vlgmr.msra.gmra.mxu1 %vm733_vm12, %v3471_v29  ;;  %v3469_v8 = vmul.f32 %v16562_v42, %v18286_v54  ;;  %v20687_v42 = vld [vmem:[#allocation54_spill] sm:$0xff] }
 0x5bf   :  { %15732 = vmatpush3.msra.mxu1 %v18160_v14  ;;  %v3403_v58 = vpop.xlane.xlu1 %3402  ;;  %v3400_v33 = vpop.xlane.xlu0 %3399  ;;  %15733 = vmatprep.mubr.msk.f32.mxu1 %vm17261_vm11, %v20681_v17 }
 0x5c0   :  { %16571 = vrcp.f32 %v3403_v58  ;;  %15719 = vmatmul.mubr.msk.f32.vlgmr.msra.gmra.mxu0 %vm733_vm12, %v3469_v8  ;;  %15741 = vmatprep.subr.mxu1 %v20681_v17  ;;  %v20688_v8 = vld [vmem:[#allocation48_spill] sm:$0xff] }
 0x5c1   :  { %16573 = vrcp.f32 %v3400_v33  ;;  %15727 = vmatpush3.msra.mxu0 %v18100_v3  ;;  %15728 = vmatprep.mubr.msk.f32.mxu0 %vm17261_vm11, %v20681_v17 }
 0x5c2   :  { %15736 = vmatprep.subr.mxu0 %v20681_v17 }
 0x5c3   :  { %v16564_v7 = vpop.eup %16563  ;;  %v3409_v14 = vpop.xlane.xlu0 %3408 }
 0x5c4   :  { %16575 = vrcp.f32 %v3409_v14  ;;  %v3475_v54 = vmul.f32 %v16564_v7, %v18293_v43  ;;  %v20689_v7 = vld [vmem:[#allocation49_spill] sm:$0xff]  ;;  %v20690_v14 = vld [vmem:[#allocation51_spill] sm:$0xff] }
 0x5c5   :  { %v16566_v15 = vpop.eup %16565 }
 0x5c6   :  { %15734 = vmatmul.mubr.msk.f32.vlgmr.msra.gmra.mxu1 %vm733_vm12, %v3475_v54  ;;  %v3473_v57 = vmul.f32 %v16566_v15, %v18298_v56 }
 0x5c7   :  { %v16568_v18 = vpop.eup %16567  ;;  %15742 = vmatpush3.msra.mxu1 %v18176_v59  ;;  %v3412_v16 = vpop.xlane.xlu1 %3411  ;;  %15743 = vmatprep.mubr.msk.f32.mxu1 %vm17261_vm11, %v20681_v17 }
 0x5c8   :  { %v3406_v3 = vpop.xlane.xlu0 %3405  ;;  %15729 = vmatmul.mubr.msk.f32.vlgmr.msra.gmra.mxu0 %vm733_vm12, %v3473_v57  ;;  %15751 = vmatprep.subr.mxu1 %v20681_v17  ;;  %v3479_v40 = vmul.f32 %v16568_v18, %v18303_v32  ;;  %v20691_v57 = vld [vmem:[#allocation52_spill] sm:$0xff]  ;;  %v20692_v18 = vld [vmem:[#allocation53_spill] sm:$0xff] }
 0x5c9   :  { %v16570_v43 = vpop.eup %16569  ;;  %16577 = vrcp.f32 %v3406_v3  ;;  %15737 = vmatpush3.msra.mxu0 %v18114_v12  ;;  %15738 = vmatprep.mubr.msk.f32.mxu0 %vm17261_vm11, %v20681_v17 }
 0x5ca   :  { %15744 = vmatmul.mubr.msk.f32.vlgmr.msra.gmra.mxu1 %vm733_vm12, %v3479_v40  ;;  %15746 = vmatprep.subr.mxu0 %v20681_v17  ;;  %v3477_v59 = vmul.f32 %v16570_v43, %v18308_v9  ;;  %16579 = vrcp.f32 %v3412_v16 }
 0x5cb   :  { %15752 = vmatpush3.msra.mxu1 %v18192_v47  ;;  %v3418_v56 = vpop.xlane.xlu1 %3417  ;;  %15753 = vmatprep.mubr.msk.f32.mxu1 %vm17261_vm11, %v20681_v17 }
 0x5cc   :  { %v3415_v50 = vpop.xlane.xlu0 %3414  ;;  %15739 = vmatmul.mubr.msk.f32.vlgmr.msra.gmra.mxu0 %vm733_vm12, %v3477_v59  ;;  %15761 = vmatprep.subr.mxu1 %v20681_v17 }
 0x5cd   :  { %v16572_v12 = vpop.eup %16571  ;;  %16581 = vrcp.f32 %v3415_v50  ;;  %15747 = vmatpush3.msra.mxu0 %v18225_v6  ;;  %15748 = vmatprep.mubr.msk.f32.mxu0 %vm17261_vm11, %v20681_v17  ;;  %v20682_v6 = vld [vmem:[#allocation44_spill] sm:$0xff] }
 0x5ce   :  { %v16574_v32 = vpop.eup %16573  ;;  %15756 = vmatprep.subr.mxu0 %v20681_v17  ;;  %v3483_v47 = vmul.f32 %v16572_v12, %v18313_v63  ;;  %16583 = vrcp.f32 %v3418_v56 }
 0x5cf   :  { %v3424_v9 = vpop.xlane.xlu1 %3423  ;;  %v3481_v22 = vmul.f32 %v16574_v32, %v18316_v24 }
 0x5d0   :  { %v3421_v52 = vpop.xlane.xlu0 %3420  ;;  %15754 = vmatmul.mubr.msk.f32.vlgmr.msra.gmra.mxu1 %vm733_vm12, %v3483_v47 }
 0x5d1   :  { %v16576_v41 = vpop.eup %16575  ;;  %16585 = vrcp.f32 %v3421_v52  ;;  %15749 = vmatmul.mubr.msk.f32.vlgmr.msra.gmra.mxu0 %vm733_vm12, %v3481_v22  ;;  %15762 = vmatpush3.msra.mxu1 %v18206_v62  ;;  %v20683_v62 = vld [vmem:[#allocation46_spill] sm:$0xff] }
 0x5d2   :  { %15757 = vmatpush3.msra.mxu0 %v20682_v6  ;;  %15763 = vmatprep.mubr.msk.f32.mxu1 %vm17261_vm11, %v20681_v17  ;;  %v3487_v63 = vmul.f32 %v16576_v41, %v18323_v31  ;;  %16587 = vrcp.f32 %v3424_v9 }
 0x5d3   :  { %v3430_v44 = vpop.xlane.xlu1 %3429  ;;  %15771 = vmatprep.subr.mxu1 %v20681_v17  ;;  %15758 = vmatprep.mubr.msk.f32.mxu0 %vm17261_vm11, %v20681_v17 }
 0x5d4   :  { %v3427_v24 = vpop.xlane.xlu0 %3426  ;;  %15764 = vmatmul.mubr.msk.f32.vlgmr.msra.gmra.mxu1 %vm733_vm12, %v3487_v63  ;;  %15766 = vmatprep.subr.mxu0 %v20681_v17 }
 0x5d5   :  { %16589 = vrcp.f32 %v3427_v24  ;;  %15772 = vmatpush3.msra.mxu1 %v20683_v62  ;;  %15773 = vmatprep.mubr.msk.f32.mxu1 %vm17261_vm11, %v20681_v17 }
 0x5d6   :  { %v16578_v25 = vpop.eup %16577  ;;  %15781 = vmatprep.subr.mxu1 %v20681_v17  ;;  %16591 = vrcp.f32 %v3430_v44 }
 0x5d7   :  { %v3436_v31 = vpop.xlane.xlu1 %3435  ;;  %v3485_v21 = vmul.f32 %v16578_v25, %v18326_v27  ;;  %v16580_v55 = vpop.eup %16579 }
 0x5d8   :  { %v3433_v20 = vpop.xlane.xlu0 %3432  ;;  %v3489_v34 = vmul.f32 %v16580_v55, %v18332_v51 }
 0x5d9   :  { %16593 = vrcp.f32 %v3433_v20  ;;  %15759 = vmatmul.mubr.msk.f32.vlgmr.msra.gmra.mxu0 %vm733_vm12, %v3485_v21 }
 0x5da   :  { %v16582_v26 = vpop.eup %16581  ;;  %15767 = vmatpush3.msra.mxu0 %v20684_v48  ;;  %15768 = vmatprep.mubr.msk.f32.mxu0 %vm17261_vm11, %v20681_v17  ;;  %16595 = vrcp.f32 %v3436_v31 }
 0x5db   :  { %15776 = vmatprep.subr.mxu0 %v20681_v17  ;;  %v3491_v10 = vmul.f32 %v16582_v26, %v18338_v19  ;;  %v16584_v2 = vpop.eup %16583  ;;  %v3442_v27 = vpop.xlane.xlu1 %3441 }
 0x5dc   :  { %v3439_v61 = vpop.xlane.xlu0 %3438  ;;  %v3493_v19 = vmul.f32 %v16584_v2, %v18341_v13 }
 0x5dd   :  { %16597 = vrcp.f32 %v3439_v61  ;;  %15769 = vmatmul.mubr.msk.f32.vlgmr.msra.gmra.mxu0 %vm733_vm12, %v3489_v34  ;;  %15774 = vmatmul.mubr.msk.f32.vlgmr.msra.gmra.mxu1 %vm733_vm12, %v3491_v10 }
 0x5de   :  { %v16586_v30 = vpop.eup %16585  ;;  %15777 = vmatpush3.msra.mxu0 %v20685_v4  ;;  %15782 = vmatpush3.msra.mxu1 %v20686_v53  ;;  %16599 = vrcp.f32 %v3442_v27 }
 0x5df   :  { %15778 = vmatprep.mubr.msk.f32.mxu0 %vm17261_vm11, %v20681_v17  ;;  %15783 = vmatprep.mubr.msk.f32.mxu1 %vm17261_vm11, %v20681_v17  ;;  %v3495_v49 = vmul.f32 %v16586_v30, %v18344_v28  ;;  %v16588_v1 = vpop.eup %16587 }
 0x5e0   :  { %v3445_v51 = vpop.xlane.xlu0 %3444  ;;  %15786 = vmatprep.subr.mxu0 %v20681_v17  ;;  %15791 = vmatprep.subr.mxu1 %v20681_v17  ;;  %v3497_v13 = vmul.f32 %v16588_v1, %v18350_v38  ;;  %v6073_v1 = vld [vmem:[%s20693_s20 + $0x18] sm:$0xff] }
 0x5e1   :  { %16601 = vrcp.f32 %v3445_v51  ;;  %15779 = vmatmul.mubr.msk.f32.vlgmr.msra.gmra.mxu0 %vm733_vm12, %v3493_v19  ;;  %15784 = vmatmul.mubr.msk.f32.vlgmr.msra.gmra.mxu1 %vm733_vm12, %v3495_v49 }
 0x5e2   :  { %v16590_v29 = vpop.eup %16589  ;;  %15787 = vmatpush3.msra.mxu0 %v20687_v42  ;;  %15792 = vmatpush3.msra.mxu1 %v20688_v8  ;;  %v6072_v8 = vld [vmem:[%s20693_s20 + $0x10] sm:$0xff] }
 0x5e3   :  { %15788 = vmatprep.mubr.msk.f32.mxu0 %vm17261_vm11, %v20681_v17  ;;  %15793 = vmatprep.mubr.msk.f32.mxu1 %vm17261_vm11, %v20681_v17  ;;  %v3499_v28 = vmul.f32 %v16590_v29, %v18357_v36  ;;  %v16592_v58 = vpop.eup %16591 }
 0x5e4   :  { %15796 = vmatprep.subr.mxu0 %v20681_v17  ;;  %15801 = vmatprep.subr.mxu1 %v20681_v17  ;;  %v3501_v38 = vmul.f32 %v16592_v58, %v18359_v45  ;;  %v3451_v16 = vpop.xlane.xlu0 %3450 }
 0x5e5   :  { %15789 = vmatmul.mubr.msk.f32.vlgmr.msra.gmra.mxu0 %vm733_vm12, %v3497_v13  ;;  %15794 = vmatmul.mubr.msk.f32.vlgmr.msra.gmra.mxu1 %vm733_vm12, %v3499_v28  ;;  %16603 = vrcp.f32 %v3451_v16  ;;  %v6071_v13 = vld [vmem:[%s20693_s20 + $0x8] sm:$0xff] }
 0x5e6   :  { %v16594_v33 = vpop.eup %16593  ;;  %15797 = vmatpush3.msra.mxu0 %v20689_v7  ;;  %15802 = vmatpush3.msra.mxu1 %v20690_v14  ;;  %v6070_v7 = vld [vmem:[%s20693_s20] sm:$0xff] }
 0x5e7   :  { %15798 = vmatprep.mubr.msk.f32.mxu0 %vm17261_vm11, %v20681_v17  ;;  %15803 = vmatprep.mubr.msk.f32.mxu1 %vm17261_vm11, %v20681_v17  ;;  %v3503_v36 = vmul.f32 %v16594_v33, %v18361_v46  ;;  %v16596_v54 = vpop.eup %16595 }
 0x5e8   :  { %15806 = vmatprep.subr.mxu0 %v20681_v17  ;;  %15811 = vmatprep.subr.mxu1 %v20681_v17  ;;  %v3505_v45 = vmul.f32 %v16596_v54, %v18367_v60 }
 0x5e9   :  { %15799 = vmatmul.mubr.msk.f32.vlgmr.msra.gmra.mxu0 %vm733_vm12, %v3501_v38  ;;  %15804 = vmatmul.mubr.msk.f32.vlgmr.msra.gmra.mxu1 %vm733_vm12, %v3503_v36 }
 0x5ea   :  { %v16598_v15 = vpop.eup %16597  ;;  %15807 = vmatpush3.msra.mxu0 %v20691_v57  ;;  %15812 = vmatpush3.msra.mxu1 %v20692_v18 }
 0x5eb   :  { %15808 = vmatprep.mubr.msk.f32.mxu0 %vm17261_vm11, %v20681_v17  ;;  %15813 = vmatprep.mubr.msk.f32.mxu1 %vm17261_vm11, %v20681_v17  ;;  %v3507_v46 = vmul.f32 %v16598_v15, %v18373_v5  ;;  %v16600_v3 = vpop.eup %16599  ;;  %v5797_v5 = vpop.permute.xlu0 %5796 }
 0x5ec   :  { %15816 = vmatprep.subr.mxu0 %v20681_v17  ;;  %15821 = vmatprep.subr.mxu1 %v20681_v17  ;;  %v3509_v60 = vmul.f32 %v16600_v3, %v18375_v37 }
 0x5ed   :  { %15809 = vmatmul.mubr.msk.f32.vlgmr.msra.gmra.mxu0 %vm733_vm12, %v3505_v45  ;;  %15814 = vmatmul.mubr.msk.f32.vlgmr.msra.gmra.mxu1 %vm733_vm12, %v3507_v46 }
 0x5ee   :  { %v16602_v40 = vpop.eup %16601  ;;  %15817 = vmatpush3.msra.mxu0 %v18393_v39  ;;  %15822 = vmatpush3.msra.mxu1 %v18430_v11 }
 0x5ef   :  { %v3511_v43 = vmul.f32 %v16602_v40, %v18381_v35  ;;  %15818 = vmatprep.mubr.msk.f32.mxu0 %vm17261_vm11, %v20681_v17  ;;  %15823 = vmatprep.mubr.msk.f32.mxu1 %vm17261_vm11, %v20681_v17 }
 0x5f0   :  { %15826 = vmatprep.subr.mxu0 %v20681_v17  ;;  %15831 = vmatprep.subr.mxu1 %v20681_v17 }
 0x5f1   :  { %15819 = vmatmul.mubr.msk.f32.vlgmr.msra.gmra.mxu0 %vm733_vm12, %v3509_v60  ;;  %15824 = vmatmul.mubr.msk.f32.vlgmr.msra.gmra.mxu1 %vm733_vm12, %v3511_v43 }
 0x5f2   :  { %15827 = vmatpush3.msra.mxu0 %v5797_v5  ;;  %15833 = vmatprep.mubr.msk.f32.mxu1 %vm17261_vm11, %v20681_v17  ;;  %v16604_v39 = vpop.eup %16603 }
 0x5f3   :  { %15828 = vmatprep.mubr.msk.f32.mxu0 %vm17261_vm11, %v20681_v17  ;;  %v3515_v11 = vmul.f32 %v16604_v39, %v18385_v23  ;;  %15836 = vmatprep.subr.mxu0 %v6073_v1 }
 0x605   :  { %v3448_v35 = vpop.xlane.xlu1 %3447 }
 0x606   :  { %16605 = vrcp.f32 %v3448_v35 }
 0x609   :  { %v5873_v37 = vpop.permute.xlu1 %5872 }
 0x60a   :  { %15832 = vmatpush3.msra.mxu1 %v5873_v37 }
 0x60b   :  { %15834 = vmatmul.mubr.msk.f32.vlgmr.msra.gmra.mxu1 %vm733_vm12, %v3515_v11 }
 0x613   :  { %v16606_v59 = vpop.eup %16605 }
 0x614   :  { %v3513_v56 = vmul.f32 %v16606_v59, %v18400_v0 }
 0x616   :  { %15829 = vmatmul.mubr.msk.f32.vlgmr.msra.gmra.mxu0 %vm733_vm12, %v3513_v56 }
 0x617   :  { %15837 = vmatpush3.msra.mxu0 %v6073_v1 }
 0x618   :  { %15838 = vmatprep.subr.mxu0 %v6072_v8 }
 0x619   :  { %15839 = vmatpush3.msra.mxu0 %v6072_v8 }
 0x61a   :  { %15840 = vmatprep.subr.mxu0 %v6071_v13 }
 0x61b   :  { %15841 = vmatpush3.msra.mxu0 %v6071_v13 }
 0x61c   :  { %15842 = vmatprep.subr.mxu0 %v6070_v7 }
 0x61d   :  { %15843 = vmatpush3.msra.mxu0 %v6070_v7 }
 0x635   :  { %v18582_v50 = vpop.f32.mrf.mxu0 }
 0x637   :  { %v15680_v12 = vpop.f32.mrf.mxu0 }
 0x649   :  { %v18584_v32 = vpop.f32.mrf.mxu1 }
 0x64b   :  { %v15685_v47 = vpop.f32.mrf.mxu1 }
 0x64d   :  { %v18586_v9 = vpop.f32.mrf.mxu1 }
 0x64f   :  { %v15695_v52 = vpop.f32.mrf.mxu1 }
 0x651   :  { %v18588_v22 = vpop.f32.mrf.mxu1 }
 0x653   :  { %v15705_v23 = vpop.f32.mrf.mxu1 }
 0x655   :  { %v18590_v41 = vpop.f32.mrf.mxu1 }
 0x657   :  { %v15715_v6 = vpop.f32.mrf.mxu1 }
 0x66e   :  { %v18592_v63 = vpop.f32.mrf.mxu0 }
 0x670   :  { %v15690_v0 = vpop.f32.mrf.mxu0 }
 0x672   :  { %v18594_v44 = vpop.f32.mrf.mxu0 }
 0x674   :  { %v15700_v24 = vpop.f32.mrf.mxu0 }
 0x676   :  { %v18596_v62 = vpop.f32.mrf.mxu0 }
 0x678   :  { %v15710_v25 = vpop.f32.mrf.mxu0 }
 0x67e   :  { %v4272_v31 = vpop.f32.mrf.mxu1 }
 0x67f   :  { %5958 = vrot.lane.b32.xlu1 %v4272_v31, %s17264_s11 }
 0x680   :  { %v4196_v20 = vpop.f32.mrf.mxu0  ;;  %v15725_v21 = vpop.f32.mrf.mxu1 }
 0x681   :  { %5956 = vrot.lane.b32.xlu0 %v4196_v20, %s17264_s11 }
 0x682   :  { %v15720_v55 = vpop.f32.mrf.mxu0 }
 0x686   :  { %v4424_v26 = vpop.f32.mrf.mxu1 }
 0x687   :  { %5962 = vrot.lane.b32.xlu1 %v4424_v26, %s17264_s11 }
 0x688   :  { %v4348_v48 = vpop.f32.mrf.mxu0  ;;  %v15735_v61 = vpop.f32.mrf.mxu1 }
 0x689   :  { %5960 = vrot.lane.b32.xlu0 %v4348_v48, %s17264_s11 }
 0x68a   :  { %v15730_v34 = vpop.f32.mrf.mxu0  ;;  %v4576_v10 = vpop.f32.mrf.mxu1 }
 0x68b   :  { %5966 = vrot.lane.b32.xlu1 %v4576_v10, %s17264_s11 }
 0x68c   :  { %v4500_v2 = vpop.f32.mrf.mxu0  ;;  %v15745_v27 = vpop.f32.mrf.mxu1 }
 0x68d   :  { %5964 = vrot.lane.b32.xlu0 %v4500_v2, %s17264_s11 }
 0x68e   :  { %v15740_v30 = vpop.f32.mrf.mxu0 }
 0x690   :  { %v4728_v4 = vpop.f32.mrf.mxu1 }
 0x691   :  { %v4652_v53 = vpop.f32.mrf.mxu0  ;;  %5970 = vrot.lane.b32.xlu1 %v4728_v4, %s17264_s11 }
 0x692   :  { %5968 = vrot.lane.b32.xlu0 %v4652_v53, %s17264_s11  ;;  %v15755_v51 = vpop.f32.mrf.mxu1 }
 0x693   :  { %v15750_v19 = vpop.f32.mrf.mxu0 }
 0x694   :  { %v4880_v49 = vpop.f32.mrf.mxu1 }
 0x695   :  { %5990 = vrot.lane.b32.xlu1 %v4880_v49, %s17241_s6 }
 0x696   :  { %v15765_v29 = vpop.f32.mrf.mxu1 }
 0x699   :  { %v4804_v42 = vpop.f32.mrf.mxu0 }
 0x69a   :  { %5988 = vrot.lane.b32.xlu0 %v4804_v42, %s17241_s6 }
 0x69b   :  { %v15760_v28 = vpop.f32.mrf.mxu0 }
 0x69d   :  { %v4956_v58 = vpop.f32.mrf.mxu0  ;;  %v5032_v33 = vpop.f32.mrf.mxu1 }
 0x69e   :  { %5992 = vrot.lane.b32.xlu0 %v4956_v58, %s17241_s6  ;;  %5994 = vrot.lane.b32.xlu1 %v5032_v33, %s17241_s6 }
 0x69f   :  { %v15770_v14 = vpop.f32.mrf.mxu0  ;;  %v15775_v38 = vpop.f32.mrf.mxu1 }
 0x6a1   :  { %v5108_v36 = vpop.f32.mrf.mxu0  ;;  %v5184_v54 = vpop.f32.mrf.mxu1 }
 0x6a2   :  { %5996 = vrot.lane.b32.xlu0 %v5108_v36, %s17241_s6  ;;  %5998 = vrot.lane.b32.xlu1 %v5184_v54, %s17241_s6 }
 0x6a3   :  { %v15780_v15 = vpop.f32.mrf.mxu0  ;;  %v15785_v57 = vpop.f32.mrf.mxu1 }
 0x6a5   :  { %v5260_v18 = vpop.f32.mrf.mxu0  ;;  %v5336_v16 = vpop.f32.mrf.mxu1 }
 0x6a6   :  { %6000 = vrot.lane.b32.xlu0 %v5260_v18, %s17241_s6  ;;  %6002 = vrot.lane.b32.xlu1 %v5336_v16, %s17241_s6 }
 0x6a7   :  { %v15790_v45 = vpop.f32.mrf.mxu0  ;;  %v15795_v46 = vpop.f32.mrf.mxu1 }
 0x6a9   :  { %v5412_v3 = vpop.f32.mrf.mxu0  ;;  %v5488_v40 = vpop.f32.mrf.mxu1 }
 0x6aa   :  { %6020 = vrot.lane.b32.xlu0 %v5412_v3, %s17265_s12  ;;  %6022 = vrot.lane.b32.xlu1 %v5488_v40, %s17265_s12 }
 0x6ab   :  { %v15800_v43 = vpop.f32.mrf.mxu0  ;;  %v15805_v60 = vpop.f32.mrf.mxu1 }
 0x6ac   :  { %v14817_v60 = vld [vmem:[#allocation5] ss:$0 sm:$0xff] }
 0x6ad   :  { %v5564_v5 = vpop.f32.mrf.mxu0  ;;  %v5640_v35 = vpop.f32.mrf.mxu1 }
 0x6ae   :  { %6024 = vrot.lane.b32.xlu0 %v5564_v5, %s17265_s12  ;;  %6026 = vrot.lane.b32.xlu1 %v5640_v35, %s17265_s12 }
 0x6af   :  { %v15810_v39 = vpop.f32.mrf.mxu0  ;;  %v15815_v37 = vpop.f32.mrf.mxu1 }
 0x6b0   :  { %v20694_v39 = vld [vmem:[#allocation37_spill] sm:$0xff] }
 0x6b1   :  { %v5716_v11 = vpop.f32.mrf.mxu0  ;;  %v5792_v59 = vpop.f32.mrf.mxu1 }
 0x6b2   :  { %6028 = vrot.lane.b32.xlu0 %v5716_v11, %s17265_s12  ;;  %6030 = vrot.lane.b32.xlu1 %v5792_v59, %s17265_s12  ;;  %v20695_v59 = vld [vmem:[#allocation36_spill] sm:$0xff] }
 0x6b3   :  { %v15820_v56 = vpop.f32.mrf.mxu0  ;;  %v15825_v12 = vpop.f32.mrf.mxu1 }
 0x6cb   :  { %v5944_v47 = vpop.f32.mrf.mxu1 }
 0x6cc   :  { %6034 = vrot.lane.b32.xlu1 %v5944_v47, %s17265_s12 }
 0x6cd   :  { %v15835_v52 = vpop.f32.mrf.mxu1 }
 0x6d6   :  { %v5868_v23 = vpop.f32.mrf.mxu0 }
 0x6d7   :  { %6032 = vrot.lane.b32.xlu0 %v5868_v23, %s17265_s12 }
 0x6d8   :  { %v15830_v6 = vpop.f32.mrf.mxu0 }
 0x6f1   :  { %v5959_v0 = vpop.permute.xlu1 %5958 }
 0x6f2   :  { %v6045_v53 = vsel %vm733_vm12, %v18584_v32, %v5959_v0 }
 0x6f3   :  { %v5957_v24 = vpop.permute.xlu0 %5956 }
 0x6f4   :  { %v6044_v51 = vsel %vm733_vm12, %v18582_v50, %v5957_v24  ;;  %v20696_v24 = vld [vmem:[#allocation38_spill] sm:$0xff] }
 0x6f9   :  { %v5963_v25 = vpop.permute.xlu1 %5962 }
 0x6fa   :  { %v6047_v13 = vsel %vm733_vm12, %v18586_v9, %v5963_v25 }
 0x6fb   :  { %v5961_v31 = vpop.permute.xlu0 %5960 }
 0x6fc   :  { %v6046_v32 = vsel %vm733_vm12, %v18592_v63, %v5961_v31 }
 0x6fd   :  { %v5967_v20 = vpop.permute.xlu1 %5966 }
 0x6fe   :  { %v6049_v9 = vsel %vm733_vm12, %v18588_v22, %v5967_v20  ;;  %v20697_v20 = vld [vmem:[#allocation39_spill] sm:$0xff] }
 0x6ff   :  { %v5965_v21 = vpop.permute.xlu0 %5964 }
 0x700   :  { %v6048_v63 = vsel %vm733_vm12, %v18594_v44, %v5965_v21 }
 0x703   :  { %v5971_v55 = vpop.permute.xlu1 %5970 }
 0x704   :  { %v5969_v26 = vpop.permute.xlu0 %5968  ;;  %v6051_v16 = vsel %vm733_vm12, %v18590_v41, %v5971_v55 }
 0x705   :  { %v6050_v22 = vsel %vm733_vm12, %v18596_v62, %v5969_v26 }
 0x707   :  { %v5991_v48 = vpop.permute.xlu1 %5990 }
 0x708   :  { %v6054_v19 = vsel %vm6052_vm13, %v6045_v53, %v5991_v48 }
 0x70c   :  { %v5989_v61 = vpop.permute.xlu0 %5988 }
 0x70d   :  { %v6053_v49 = vsel %vm6052_vm13, %v6044_v51, %v5989_v61  ;;  %v20698_v61 = vld [vmem:[#allocation40_spill] sm:$0xff] }
 0x710   :  { %v5995_v34 = vpop.permute.xlu1 %5994  ;;  %v5993_v10 = vpop.permute.xlu0 %5992 }
 0x711   :  { %v6056_v50 = vsel %vm6052_vm13, %v6047_v13, %v5995_v34  ;;  %v6055_v28 = vsel %vm6052_vm13, %v6046_v32, %v5993_v10  ;;  %v20699_v10 = vld [vmem:[#allocation41_spill] sm:$0xff] }
 0x714   :  { %v5999_v2 = vpop.permute.xlu1 %5998  ;;  %v5997_v27 = vpop.permute.xlu0 %5996 }
 0x715   :  { %v6058_v38 = vsel %vm6052_vm13, %v6049_v9, %v5999_v2  ;;  %v6057_v36 = vsel %vm6052_vm13, %v6048_v63, %v5997_v27 }
 0x718   :  { %v6003_v30 = vpop.permute.xlu1 %6002  ;;  %v6001_v4 = vpop.permute.xlu0 %6000 }
 0x719   :  { %v6059_v45 = vsel %vm6052_vm13, %v6050_v22, %v6001_v4  ;;  %v6060_v3 = vsel %vm6052_vm13, %v6051_v16, %v6003_v30 }
 0x71c   :  { %v6023_v1 = vpop.permute.xlu1 %6022  ;;  %v6021_v29 = vpop.permute.xlu0 %6020 }
 0x71d   :  { %v6063_v42 = vsel %vm6061_vm14, %v6054_v19, %v6023_v1  ;;  %v6062_v8 = vsel %vm6061_vm14, %v6053_v49, %v6021_v29  ;;  %v20700_v49 = vld [vmem:[#allocation43_spill] sm:$0xff] }
 0x71e   :  { %15844 = vmatprep.mubr.msk.f32.mxu0 %vm545_vm10, %v6062_v8 }
 0x71f   :  { %15845 = vmatmul.mubr.msk.f32.vlgmr.msra.gmra.mxu0 %vm545_vm10, %v6063_v42  ;;  %v20701_v42 = vld [vmem:[#allocation42_spill] sm:$0xff] }
 0x720   :  { %v6027_v58 = vpop.permute.xlu1 %6026  ;;  %v6025_v33 = vpop.permute.xlu0 %6024 }
 0x721   :  { %v6065_v7 = vsel %vm6061_vm14, %v6056_v50, %v6027_v58  ;;  %v6064_v14 = vsel %vm6061_vm14, %v6055_v28, %v6025_v33 }
 0x722   :  { %15847 = vmatprep.mubr.msk.f32.mxu0 %vm545_vm10, %v6064_v14 }
 0x723   :  { %15848 = vmatmul.mubr.msk.f32.gmra.mxu0 %vm545_vm10, %v6065_v7 }
 0x724   :  { %v6031_v54 = vpop.permute.xlu1 %6030  ;;  %v6029_v15 = vpop.permute.xlu0 %6028 }
 0x725   :  { %v6067_v57 = vsel %vm6061_vm14, %v6058_v38, %v6031_v54  ;;  %v6066_v18 = vsel %vm6061_vm14, %v6057_v36, %v6029_v15 }
 0x726   :  { %15850 = vmatprep.mubr.msk.f32.mxu0 %vm545_vm10, %v6066_v18 }
 0x727   :  { %15851 = vmatmul.mubr.msk.f32.gmra.mxu0 %vm545_vm10, %v6067_v57 }
 0x73e   :  { %v6035_v44 = vpop.permute.xlu1 %6034 }
 0x73f   :  { %v6069_v43 = vsel %vm6061_vm14, %v6060_v3, %v6035_v44 }
 0x749   :  { %v6033_v46 = vpop.permute.xlu0 %6032 }
 0x74a   :  { %v6068_v40 = vsel %vm6061_vm14, %v6059_v45, %v6033_v46 }
 0x74b   :  { %15853 = vmatprep.mubr.msk.f32.mxu0 %vm545_vm10, %v6068_v40 }
 0x74c   :  { %15854 = vmatmul.mubr.msk.f32.gmra.mxu0 %vm545_vm10, %v6069_v43 }
 0x7df   :  { %v15846_v5 = vpop.f32.mrf.mxu0 }
 0x7e0   :  { %v6177_v62 = vadd.f32 %v15846_v5, %v14817_v60 }
 0x7e1   :  { %v6171_v35 = vpop.f32.mrf.mxu0 }
 0x7e2   :  { %v6211_v37 = vadd.f32 %v6177_v62, %v20694_v39  ;;  %v6172_v41 = vadd.f32 %v14817_v60, %v6171_v35 }
 0x7e3   :  { %v15849_v11 = vpop.f32.mrf.mxu0 }
 0x7e4   :  { %v6210_v56 = vadd.f32 %v6172_v41, %v20695_v59  ;;  %v6223_v12 = vsel %vm545_vm10, %v6211_v37, 0.0  ;;  %v6187_v52 = vadd.f32 %v15849_v11, %v14817_v60  ;;  %v6356_v59 = vld [vmem:[%s20702_s18 + $0x18] sm:$0xff] }
 0x7e5   :  { %6224 = vadd.xlane.f32.xlu1 %v6223_v12  ;;  %v6181_v47 = vpop.f32.mrf.mxu0  ;;  %15856 = vmatprep.subr.mxu1 %v6356_v59  ;;  %v6354_v12 = vld [vmem:[%s20702_s18 + $0x8] sm:$0xff] }
 0x7e6   :  { %v6182_v23 = vadd.f32 %v14817_v60, %v6181_v47  ;;  %v6220_v6 = vsel %vm545_vm10, %v6210_v56, 0.0  ;;  %v6213_v21 = vadd.f32 %v6187_v52, %v20697_v20  ;;  %15857 = vmatpush3.msra.mxu1 %v6356_v59  ;;  %v6353_v47 = vld [vmem:[%s20702_s18] sm:$0xff] }
 0x7e7   :  { %6221 = vadd.xlane.f32.xlu0 %v6220_v6  ;;  %v15852_v0 = vpop.f32.mrf.mxu0 }
 0x7e8   :  { %v6212_v25 = vadd.f32 %v6182_v23, %v20696_v24  ;;  %v6197_v55 = vadd.f32 %v15852_v0, %v14817_v60  ;;  %v6229_v27 = vsel %vm545_vm10, %v6213_v21, 0.0 }
 0x7e9   :  { %v6191_v31 = vpop.f32.mrf.mxu0 }
 0x7ea   :  { %v6192_v26 = vadd.f32 %v14817_v60, %v6191_v31  ;;  %v6226_v48 = vsel %vm545_vm10, %v6212_v25, 0.0  ;;  %v6215_v2 = vadd.f32 %v6197_v55, %v20699_v10 }
 0x7eb   :  { %6227 = vadd.xlane.f32.xlu0 %v6226_v48  ;;  %v6507_v48 = vld [vmem:[%s20703_s26 + $0x30] sm:$0xff] }
 0x7ec   :  { %v6214_v34 = vadd.f32 %v6192_v26, %v20698_v61  ;;  %v6235_v4 = vsel %vm545_vm10, %v6215_v2, 0.0  ;;  %v6508_v26 = vld [vmem:[%s20703_s26 + $0x38] sm:$0xff]  ;;  %v6506_v61 = vld [vmem:[%s20703_s26 + $0x28] sm:$0xff] }
 0x7ed   :  { %15876 = vmatprep.subr.mxu0 %v6508_v26 }
 0x7ee   :  { %v6232_v30 = vsel %vm545_vm10, %v6214_v34, 0.0  ;;  %15877 = vmatpush3.msra.mxu0 %v6508_v26 }
 0x7ef   :  { %6230 = vadd.xlane.f32.xlu0 %v6229_v27  ;;  %6233 = vadd.xlane.f32.xlu1 %v6232_v30 }
 0x7f0   :  { %15878 = vmatprep.subr.mxu0 %v6507_v48 }
 0x7f1   :  { %15879 = vmatpush3.msra.mxu0 %v6507_v48  ;;  %v6504_v48 = vld [vmem:[%s20703_s26 + $0x18] sm:$0xff] }
 0x7f2   :  { %15880 = vmatprep.subr.mxu0 %v6506_v61 }
 0x7f3   :  { %6236 = vadd.xlane.f32.xlu0 %v6235_v4  ;;  %15881 = vmatpush3.msra.mxu0 %v6506_v61  ;;  %v6501_v61 = vld [vmem:[%s20703_s26] sm:$0xff] }
 0x80c   :  { %v15855_v53 = vpop.f32.mrf.mxu0 }
 0x80d   :  { %v6207_v51 = vadd.f32 %v15855_v53, %v14817_v60 }
 0x80e   :  { %v6201_v19 = vpop.f32.mrf.mxu0 }
 0x80f   :  { %v6217_v1 = vadd.f32 %v6207_v51, %v20700_v49  ;;  %v6202_v29 = vadd.f32 %v14817_v60, %v6201_v19 }
 0x811   :  { %v6216_v8 = vadd.f32 %v6202_v29, %v20701_v42  ;;  %v6241_v13 = vsel %vm545_vm10, %v6217_v1, 0.0 }
 0x812   :  { %6242 = vadd.xlane.f32.xlu0 %v6241_v13 }
 0x813   :  { %v6238_v32 = vsel %vm545_vm10, %v6216_v8, 0.0 }
 0x814   :  { %6239 = vadd.xlane.f32.xlu1 %v6238_v32 }
 0x86e   :  { %v6225_v50 = vpop.xlane.xlu1 %6224 }
 0x86f   :  { %v6246_v28 = vmul.f32 0.03125, %v6225_v50 }
 0x870   :  { %v6222_v58 = vpop.xlane.xlu0 %6221 }
 0x871   :  { %v18690_v33 = vsub.f32 %v6211_v37, %v6246_v28  ;;  %v6245_v7 = vmul.f32 0.03125, %v6222_v58 }
 0x873   :  { %v18692_v14 = vsub.f32 %v6210_v56, %v6245_v7  ;;  %v6262_v9 = vmul.f32 %v18690_v33, %v18690_v33  ;;  %v6355_v56 = vld [vmem:[%s20702_s18 + $0x10] sm:$0xff] }
 0x874   :  { %v6228_v63 = vpop.xlane.xlu0 %6227  ;;  %15858 = vmatprep.subr.mxu1 %v6355_v56 }
 0x875   :  { %v6247_v38 = vmul.f32 0.03125, %v6228_v63  ;;  %v6272_v36 = vsel %vm545_vm10, %v6262_v9, 0.0  ;;  %v6261_v54 = vmul.f32 %v18692_v14, %v18692_v14  ;;  %15859 = vmatpush3.msra.mxu1 %v6355_v56  ;;  %v14826_v9 = vld [vmem:[#allocation7] ss:$0 sm:$0xff] }
 0x876   :  { %6273 = vadd.xlane.f32.xlu0 %v6272_v36  ;;  %15860 = vmatprep.subr.mxu1 %v6354_v12 }
 0x877   :  { %v18699_v15 = vsub.f32 %v6212_v25, %v6247_v38  ;;  %v6269_v57 = vsel %vm545_vm10, %v6261_v54, 0.0  ;;  %15861 = vmatpush3.msra.mxu1 %v6354_v12 }
 0x878   :  { %v6234_v18 = vpop.xlane.xlu1 %6233  ;;  %6270 = vadd.xlane.f32.xlu1 %v6269_v57  ;;  %v6231_v22 = vpop.xlane.xlu0 %6230  ;;  %15862 = vmatprep.subr.mxu1 %v6353_v47  ;;  %v14827_v57 = vld [vmem:[#allocation8] ss:$0 sm:$0xff] }
 0x879   :  { %v6249_v44 = vmul.f32 0.03125, %v6234_v18  ;;  %v6248_v16 = vmul.f32 0.03125, %v6231_v22  ;;  %v6263_v45 = vmul.f32 %v18699_v15, %v18699_v15  ;;  %15863 = vmatpush3.msra.mxu1 %v6353_v47 }
 0x87b   :  { %v18704_v46 = vsub.f32 %v6214_v34, %v6249_v44  ;;  %v18706_v3 = vsub.f32 %v6213_v21, %v6248_v16  ;;  %v6275_v40 = vsel %vm545_vm10, %v6263_v45, 0.0  ;;  %v6505_v34 = vld [vmem:[%s20703_s26 + $0x20] sm:$0xff] }
 0x87c   :  { %6276 = vadd.xlane.f32.xlu1 %v6275_v40  ;;  %v6237_v43 = vpop.xlane.xlu0 %6236  ;;  %15882 = vmatprep.subr.mxu0 %v6505_v34 }
 0x87d   :  { %v6250_v60 = vmul.f32 0.03125, %v6237_v43  ;;  %v6265_v5 = vmul.f32 %v18704_v46, %v18704_v46  ;;  %v6264_v62 = vmul.f32 %v18706_v3, %v18706_v3  ;;  %15883 = vmatpush3.msra.mxu0 %v6505_v34  ;;  %v14828_v34 = vld [vmem:[#allocation10] ss:$0 sm:$0xff] }
 0x87e   :  { %15884 = vmatprep.subr.mxu0 %v6504_v48 }
 0x87f   :  { %v18713_v35 = vsub.f32 %v6215_v2, %v6250_v60  ;;  %v6281_v39 = vsel %vm545_vm10, %v6265_v5, 0.0  ;;  %v6278_v37 = vsel %vm545_vm10, %v6264_v62, 0.0  ;;  %15885 = vmatpush3.msra.mxu0 %v6504_v48 }
 0x880   :  { %6282 = vadd.xlane.f32.xlu1 %v6281_v39  ;;  %6279 = vadd.xlane.f32.xlu0 %v6278_v37 }
 0x881   :  { %v6266_v41 = vmul.f32 %v18713_v35, %v18713_v35 }
 0x883   :  { %v6284_v11 = vsel %vm545_vm10, %v6266_v41, 0.0 }
 0x884   :  { %6285 = vadd.xlane.f32.xlu0 %v6284_v11 }
 0x89b   :  { %v6243_v52 = vpop.xlane.xlu0 %6242 }
 0x89c   :  { %v6252_v23 = vmul.f32 0.03125, %v6243_v52 }
 0x89d   :  { %v6240_v6 = vpop.xlane.xlu1 %6239 }
 0x89e   :  { %v18732_v0 = vsub.f32 %v6217_v1, %v6252_v23  ;;  %v6251_v24 = vmul.f32 0.03125, %v6240_v6 }
 0x8a0   :  { %v18734_v25 = vsub.f32 %v6216_v8, %v6251_v24  ;;  %v6268_v31 = vmul.f32 %v18732_v0, %v18732_v0 }
 0x8a2   :  { %v6290_v20 = vsel %vm545_vm10, %v6268_v31, 0.0  ;;  %v6267_v21 = vmul.f32 %v18734_v25, %v18734_v25 }
 0x8a3   :  { %6291 = vadd.xlane.f32.xlu0 %v6290_v20 }
 0x8a4   :  { %v6287_v55 = vsel %vm545_vm10, %v6267_v21, 0.0 }
 0x8a5   :  { %6288 = vadd.xlane.f32.xlu1 %v6287_v55 }
 0x8ff   :  { %v6274_v10 = vpop.xlane.xlu0 %6273 }
 0x900   :  { %v6294_v2 = vmul.f32 0.03125, %v6274_v10 }
 0x901   :  { %v6271_v27 = vpop.xlane.xlu1 %6270 }
 0x902   :  { %v6302_v30 = vadd.f32 1e-05, %v6294_v2  ;;  %v6293_v4 = vmul.f32 0.03125, %v6271_v27 }
 0x904   :  { %16607 = vrsqrt.f32 %v6302_v30  ;;  %v6301_v53 = vadd.f32 1e-05, %v6293_v4 }
 0x905   :  { %v6277_v51 = vpop.xlane.xlu1 %6276 }
 0x906   :  { %16609 = vrsqrt.f32 %v6301_v53  ;;  %v6295_v19 = vmul.f32 0.03125, %v6277_v51 }
 0x908   :  { %v6303_v49 = vadd.f32 1e-05, %v6295_v19 }
 0x909   :  { %v6283_v1 = vpop.xlane.xlu1 %6282  ;;  %v6280_v29 = vpop.xlane.xlu0 %6279 }
 0x90a   :  { %16611 = vrsqrt.f32 %v6303_v49  ;;  %v6297_v42 = vmul.f32 0.03125, %v6283_v1  ;;  %v6296_v8 = vmul.f32 0.03125, %v6280_v29 }
 0x90c   :  { %v6305_v13 = vadd.f32 1e-05, %v6297_v42  ;;  %v6304_v32 = vadd.f32 1e-05, %v6296_v8 }
 0x90d   :  { %v6286_v50 = vpop.xlane.xlu0 %6285 }
 0x90e   :  { %16613 = vrsqrt.f32 %v6305_v13  ;;  %v6298_v28 = vmul.f32 0.03125, %v6286_v50 }
 0x90f   :  { %16615 = vrsqrt.f32 %v6304_v32 }
 0x910   :  { %v6306_v58 = vadd.f32 1e-05, %v6298_v28 }
 0x911   :  { %v16608_v7 = vpop.eup %16607 }
 0x912   :  { %16617 = vrsqrt.f32 %v6306_v58  ;;  %v6318_v63 = vmul.f32 %v16608_v7, %v18690_v33 }
 0x913   :  { %v16610_v38 = vpop.eup %16609 }
 0x914   :  { %v6317_v36 = vmul.f32 %v16610_v38, %v18692_v14  ;;  %v6332_v54 = vmul.f32 %v14826_v9, %v6318_v63 }
 0x916   :  { %v6331_v18 = vmul.f32 %v14826_v9, %v6317_v36  ;;  %v18759_v45 = vadd.f32 %v14827_v57, %v6332_v54 }
 0x917   :  { %v16612_v22 = vpop.eup %16611 }
 0x918   :  { %v18756_v44 = vadd.f32 %v14827_v57, %v6331_v18  ;;  %v6319_v16 = vmul.f32 %v16612_v22, %v18699_v15 }
 0x91a   :  { %15864 = vmatprep.mubr.msk.f32.mxu1 %vm545_vm10, %v18756_v44  ;;  %v6333_v40 = vmul.f32 %v14826_v9, %v6319_v16 }
 0x91b   :  { %v16614_v43 = vpop.eup %16613  ;;  %15865 = vmatmul.mubr.msk.f32.vlgmr.msra.gmra.mxu1 %vm545_vm10, %v18759_v45 }
 0x91c   :  { %v16616_v33 = vpop.eup %16615  ;;  %v18765_v14 = vadd.f32 %v14827_v57, %v6333_v40  ;;  %v6321_v60 = vmul.f32 %v16614_v43, %v18704_v46 }
 0x91d   :  { %v6320_v5 = vmul.f32 %v16616_v33, %v18706_v3 }
 0x91e   :  { %15867 = vmatprep.mubr.msk.f32.mxu1 %vm545_vm10, %v18765_v14  ;;  %v6335_v15 = vmul.f32 %v14826_v9, %v6321_v60 }
 0x91f   :  { %v16618_v62 = vpop.eup %16617  ;;  %v6334_v39 = vmul.f32 %v14826_v9, %v6320_v5 }
 0x920   :  { %v18771_v37 = vadd.f32 %v14827_v57, %v6335_v15  ;;  %v6322_v41 = vmul.f32 %v16618_v62, %v18713_v35 }
 0x921   :  { %v18774_v11 = vadd.f32 %v14827_v57, %v6334_v39 }
 0x922   :  { %v6336_v59 = vmul.f32 %v14826_v9, %v6322_v41 }
 0x923   :  { %15868 = vmatmul.mubr.msk.f32.gmra.mxu1 %vm545_vm10, %v18774_v11 }
 0x924   :  { %15870 = vmatprep.mubr.msk.f32.mxu1 %vm545_vm10, %v18771_v37  ;;  %v18780_v46 = vadd.f32 %v14827_v57, %v6336_v59 }
 0x927   :  { %15871 = vmatmul.mubr.msk.f32.gmra.mxu1 %vm545_vm10, %v18780_v46 }
 0x92c   :  { %v6292_v3 = vpop.xlane.xlu0 %6291 }
 0x92d   :  { %v6300_v56 = vmul.f32 0.03125, %v6292_v3 }
 0x92e   :  { %v6289_v12 = vpop.xlane.xlu1 %6288 }
 0x92f   :  { %v6308_v47 = vadd.f32 1e-05, %v6300_v56  ;;  %v6299_v52 = vmul.f32 0.03125, %v6289_v12 }
 0x931   :  { %16619 = vrsqrt.f32 %v6308_v47  ;;  %v6307_v35 = vadd.f32 1e-05, %v6299_v52 }
 0x933   :  { %16621 = vrsqrt.f32 %v6307_v35 }
 0x93e   :  { %v16620_v23 = vpop.eup %16619 }
 0x93f   :  { %v6324_v6 = vmul.f32 %v16620_v23, %v18732_v0  ;;  %v6503_v0 = vld [vmem:[%s20703_s26 + $0x10] sm:$0xff] }
 0x940   :  { %v16622_v24 = vpop.eup %16621  ;;  %15886 = vmatprep.subr.mxu0 %v6503_v0 }
 0x941   :  { %v6323_v31 = vmul.f32 %v16622_v24, %v18734_v25  ;;  %v6338_v20 = vmul.f32 %v14826_v9, %v6324_v6  ;;  %15887 = vmatpush3.msra.mxu0 %v6503_v0  ;;  %v6502_v25 = vld [vmem:[%s20703_s26 + $0x8] sm:$0xff] }
 0x942   :  { %15888 = vmatprep.subr.mxu0 %v6502_v25 }
 0x943   :  { %v6337_v21 = vmul.f32 %v14826_v9, %v6323_v31  ;;  %v18788_v26 = vadd.f32 %v14827_v57, %v6338_v20  ;;  %15889 = vmatpush3.msra.mxu0 %v6502_v25 }
 0x944   :  { %15890 = vmatprep.subr.mxu0 %v6501_v61 }
 0x945   :  { %v18786_v55 = vadd.f32 %v14827_v57, %v6337_v21  ;;  %15891 = vmatpush3.msra.mxu0 %v6501_v61  ;;  %v14837_v57 = vld [vmem:[#allocation11] ss:$0 sm:$0xff] }
 0x946   :  { %15924 = vmatprep.subr.mxu0 %v20681_v17 }
 0x947   :  { %15873 = vmatprep.mubr.msk.f32.mxu1 %vm545_vm10, %v18786_v55 }
 0x948   :  { %15874 = vmatmul.mubr.msk.f32.gmra.mxu1 %vm545_vm10, %v18788_v26 }
 0x9db   :  { %v15866_v10 = vpop.f32.mrf.mxu1 }
 0x9dc   :  { %v6460_v2 = vadd.f32 %v15866_v10, %v14828_v34 }
 0x9dd   :  { %v6454_v27 = vpop.f32.mrf.mxu1 }
 0x9de   :  { %v6455_v30 = vadd.f32 %v14828_v34, %v6454_v27  ;;  %v6494_v53 = vmax.f32 %v6460_v2, 0.0 }
 0x9e0   :  { %v6493_v4 = vmax.f32 %v6455_v30, 0.0 }
 0x9e2   :  { %15892 = vmatprep.mubr.msk.f32.mxu0 %vm6516_vm15, %v6493_v4 }
 0x9e3   :  { %v15869_v51 = vpop.f32.mrf.mxu1  ;;  %15893 = vmatmul.mubr.msk.f32.vlgmr.msra.gmra.mxu0 %vm6516_vm15, %v6494_v53 }
 0x9e4   :  { %v6470_v19 = vadd.f32 %v15869_v51, %v14828_v34 }
 0x9e5   :  { %v6464_v49 = vpop.f32.mrf.mxu1 }
 0x9e6   :  { %v6465_v1 = vadd.f32 %v14828_v34, %v6464_v49  ;;  %v6496_v8 = vmax.f32 %v6470_v19, 0.0 }
 0x9e7   :  { %v15872_v29 = vpop.f32.mrf.mxu1 }
 0x9e8   :  { %v6495_v42 = vmax.f32 %v6465_v1, 0.0  ;;  %v6480_v13 = vadd.f32 %v15872_v29, %v14828_v34 }
 0x9e9   :  { %v6474_v32 = vpop.f32.mrf.mxu1 }
 0x9ea   :  { %v6475_v50 = vadd.f32 %v14828_v34, %v6474_v32  ;;  %15895 = vmatprep.mubr.msk.f32.mxu0 %vm6516_vm15, %v6495_v42  ;;  %v6498_v58 = vmax.f32 %v6480_v13, 0.0 }
 0x9eb   :  { %15896 = vmatmul.mubr.msk.f32.gmra.mxu0 %vm6516_vm15, %v6496_v8 }
 0x9ec   :  { %v6497_v28 = vmax.f32 %v6475_v50, 0.0 }
 0x9ee   :  { %15898 = vmatprep.mubr.msk.f32.mxu0 %vm6516_vm15, %v6497_v28 }
 0x9ef   :  { %15899 = vmatmul.mubr.msk.f32.gmra.mxu0 %vm6516_vm15, %v6498_v58 }
 0xa08   :  { %v15875_v7 = vpop.f32.mrf.mxu1 }
 0xa09   :  { %v6490_v9 = vadd.f32 %v15875_v7, %v14828_v34 }
 0xa0a   :  { %v6484_v63 = vpop.f32.mrf.mxu1 }
 0xa0b   :  { %v6485_v38 = vadd.f32 %v14828_v34, %v6484_v63  ;;  %v6500_v54 = vmax.f32 %v6490_v9, 0.0 }
 0xa0d   :  { %v6499_v36 = vmax.f32 %v6485_v38, 0.0 }
 0xa0f   :  { %15901 = vmatprep.mubr.msk.f32.mxu0 %vm6516_vm15, %v6499_v36 }
 0xa10   :  { %15902 = vmatmul.mubr.msk.f32.gmra.mxu0 %vm6516_vm15, %v6500_v54 }
 0xa11   :  { %15926 = vmatprep.mubr.msk.f32.mxu0 %vm17261_vm11, %v20681_v17 }
 0xaa3   :  { %v15894_v18 = vpop.f32.mrf.mxu0 }
 0xaa4   :  { %v6613_v22 = vadd.f32 %v15894_v18, %v14837_v57  ;;  %v14850_v18 = vld [vmem:[%s20660_s1 + $0x30] sm:$0xff] }
 0xaa5   :  { %v6607_v16 = vpop.f32.mrf.mxu0 }
 0xaa6   :  { %v6647_v40 = vadd.f32 %v6613_v22, %v18759_v45  ;;  %v6608_v43 = vadd.f32 %v14837_v57, %v6607_v16  ;;  %v14849_v22 = vld [vmem:[%s20660_s1 + $0x28] sm:$0xff]  ;;  %v14848_v16 = vld [vmem:[%s20660_s1 + $0x20] sm:$0xff] }
 0xaa8   :  { %v6646_v33 = vadd.f32 %v6608_v43, %v18756_v44  ;;  %v6659_v60 = vsel %vm545_vm10, %v6647_v40, 0.0 }
 0xaa9   :  { %6660 = vadd.xlane.f32.xlu0 %v6659_v60 }
 0xaaa   :  { %v6656_v5 = vsel %vm545_vm10, %v6646_v33, 0.0 }
 0xaab   :  { %v15897_v15 = vpop.f32.mrf.mxu0  ;;  %6657 = vadd.xlane.f32.xlu1 %v6656_v5 }
 0xaac   :  { %v6623_v62 = vadd.f32 %v15897_v15, %v14837_v57 }
 0xaad   :  { %v6617_v39 = vpop.f32.mrf.mxu0 }
 0xaae   :  { %v6649_v41 = vadd.f32 %v6623_v62, %v18774_v11  ;;  %v6618_v59 = vadd.f32 %v14837_v57, %v6617_v39 }
 0xaaf   :  { %v15900_v3 = vpop.f32.mrf.mxu0 }
 0xab0   :  { %v6648_v56 = vadd.f32 %v6618_v59, %v18765_v14  ;;  %v6633_v12 = vadd.f32 %v15900_v3, %v14837_v57  ;;  %v6665_v45 = vsel %vm545_vm10, %v6649_v41, 0.0 }
 0xab1   :  { %6666 = vadd.xlane.f32.xlu0 %v6665_v45  ;;  %v6627_v44 = vpop.f32.mrf.mxu0 }
 0xab2   :  { %v6651_v47 = vadd.f32 %v6633_v12, %v18780_v46  ;;  %v6628_v52 = vadd.f32 %v14837_v57, %v6627_v44  ;;  %v6662_v35 = vsel %vm545_vm10, %v6648_v56, 0.0 }
 0xab3   :  { %6663 = vadd.xlane.f32.xlu1 %v6662_v35 }
 0xab4   :  { %v6650_v23 = vadd.f32 %v6628_v52, %v18771_v37  ;;  %v6671_v6 = vsel %vm545_vm10, %v6651_v47, 0.0 }
 0xab5   :  { %6672 = vadd.xlane.f32.xlu0 %v6671_v6 }
 0xab6   :  { %v6668_v11 = vsel %vm545_vm10, %v6650_v23, 0.0 }
 0xab7   :  { %6669 = vadd.xlane.f32.xlu1 %v6668_v11 }
 0xad0   :  { %v15903_v14 = vpop.f32.mrf.mxu0 }
 0xad1   :  { %v6643_v24 = vadd.f32 %v15903_v14, %v14837_v57 }
 0xad2   :  { %v6637_v31 = vpop.f32.mrf.mxu0 }
 0xad3   :  { %v6653_v20 = vadd.f32 %v6643_v24, %v18788_v26  ;;  %v6638_v21 = vadd.f32 %v14837_v57, %v6637_v31  ;;  %v14851_v57 = vld [vmem:[%s20660_s1 + $0x38] sm:$0xff] }
 0xad4   :  { %15904 = vmatprep.subr.mxu1 %v14851_v57 }
 0xad5   :  { %v6652_v46 = vadd.f32 %v6638_v21, %v18786_v55  ;;  %v6677_v48 = vsel %vm545_vm10, %v6653_v20, 0.0  ;;  %15905 = vmatpush3.msra.mxu1 %v14851_v57 }
 0xad6   :  { %6678 = vadd.xlane.f32.xlu0 %v6677_v48  ;;  %15906 = vmatprep.subr.mxu1 %v14850_v18 }
 0xad7   :  { %v6674_v0 = vsel %vm545_vm10, %v6652_v46, 0.0  ;;  %15907 = vmatpush3.msra.mxu1 %v14850_v18 }
 0xad8   :  { %6675 = vadd.xlane.f32.xlu1 %v6674_v0  ;;  %15908 = vmatprep.subr.mxu1 %v14849_v22 }
 0xad9   :  { %15909 = vmatpush3.msra.mxu1 %v14849_v22 }
 0xada   :  { %15910 = vmatprep.subr.mxu1 %v14848_v16 }
 0xadb   :  { %15911 = vmatpush3.msra.mxu1 %v14848_v16 }
 0xadc   :  { %15929 = vmatprep.subr.mxu1 %v20681_v17 }
 0xb32   :  { %v6661_v37 = vpop.xlane.xlu0 %6660 }
 0xb33   :  { %v6681_v25 = vmul.f32 0.03125, %v6661_v37  ;;  %v14846_v37 = vld [vmem:[#allocation13] ss:$0 sm:$0xff] }
 0xb34   :  { %v6658_v61 = vpop.xlane.xlu1 %6657 }
 0xb35   :  { %v18833_v34 = vsub.f32 %v6647_v40, %v6681_v25  ;;  %v6680_v10 = vmul.f32 0.03125, %v6658_v61 }
 0xb37   :  { %v18835_v2 = vsub.f32 %v6646_v33, %v6680_v10  ;;  %v6697_v26 = vmul.f32 %v18833_v34, %v18833_v34 }
 0xb39   :  { %v6707_v27 = vsel %vm545_vm10, %v6697_v26, 0.0  ;;  %v6696_v55 = vmul.f32 %v18835_v2, %v18835_v2 }
 0xb3a   :  { %v6667_v30 = vpop.xlane.xlu0 %6666  ;;  %6708 = vadd.xlane.f32.xlu0 %v6707_v27  ;;  %v14847_v27 = vld [vmem:[#allocation14] ss:$0 sm:$0xff] }
 0xb3b   :  { %v6683_v4 = vmul.f32 0.03125, %v6667_v30  ;;  %v6704_v53 = vsel %vm545_vm10, %v6696_v55, 0.0 }
 0xb3c   :  { %v6664_v51 = vpop.xlane.xlu1 %6663  ;;  %6705 = vadd.xlane.f32.xlu1 %v6704_v53 }
 0xb3d   :  { %v18843_v19 = vsub.f32 %v6649_v41, %v6683_v4  ;;  %v6682_v49 = vmul.f32 0.03125, %v6664_v51 }
 0xb3e   :  { %v6673_v1 = vpop.xlane.xlu0 %6672 }
 0xb3f   :  { %v18845_v29 = vsub.f32 %v6648_v56, %v6682_v49  ;;  %v6685_v42 = vmul.f32 0.03125, %v6673_v1  ;;  %v6699_v8 = vmul.f32 %v18843_v19, %v18843_v19 }
 0xb40   :  { %v6670_v13 = vpop.xlane.xlu1 %6669 }
 0xb41   :  { %v18849_v32 = vsub.f32 %v6651_v47, %v6685_v42  ;;  %v6684_v50 = vmul.f32 0.03125, %v6670_v13  ;;  %v6713_v28 = vsel %vm545_vm10, %v6699_v8, 0.0  ;;  %v6698_v58 = vmul.f32 %v18845_v29, %v18845_v29 }
 0xb42   :  { %6714 = vadd.xlane.f32.xlu0 %v6713_v28 }
 0xb43   :  { %v18854_v7 = vsub.f32 %v6650_v23, %v6684_v50  ;;  %v6710_v9 = vsel %vm545_vm10, %v6698_v58, 0.0  ;;  %v6701_v63 = vmul.f32 %v18849_v32, %v18849_v32 }
 0xb44   :  { %6711 = vadd.xlane.f32.xlu1 %v6710_v9 }
 0xb45   :  { %v6719_v38 = vsel %vm545_vm10, %v6701_v63, 0.0  ;;  %v6700_v36 = vmul.f32 %v18854_v7, %v18854_v7 }
 0xb46   :  { %6720 = vadd.xlane.f32.xlu0 %v6719_v38 }
 0xb47   :  { %v6716_v54 = vsel %vm545_vm10, %v6700_v36, 0.0 }
 0xb48   :  { %6717 = vadd.xlane.f32.xlu1 %v6716_v54 }
 0xb5f   :  { %v6679_v40 = vpop.xlane.xlu0 %6678 }
 0xb60   :  { %v6687_v43 = vmul.f32 0.03125, %v6679_v40 }
 0xb61   :  { %v6676_v33 = vpop.xlane.xlu1 %6675 }
 0xb62   :  { %v18876_v60 = vsub.f32 %v6653_v20, %v6687_v43  ;;  %v6686_v5 = vmul.f32 0.03125, %v6676_v33 }
 0xb64   :  { %v18878_v15 = vsub.f32 %v6652_v46, %v6686_v5  ;;  %v6703_v62 = vmul.f32 %v18876_v60, %v18876_v60 }
 0xb66   :  { %v6725_v39 = vsel %vm545_vm10, %v6703_v62, 0.0  ;;  %v6702_v41 = vmul.f32 %v18878_v15, %v18878_v15 }
 0xb67   :  { %6726 = vadd.xlane.f32.xlu0 %v6725_v39  ;;  %v14852_v39 = vld [vmem:[#allocation2 + $0x1] ss:$0 sm:$0xff] }
 0xb68   :  { %v6722_v59 = vsel %vm545_vm10, %v6702_v41, 0.0 }
 0xb69   :  { %6723 = vadd.xlane.f32.xlu1 %v6722_v59 }
 0xbc3   :  { %v6709_v3 = vpop.xlane.xlu0 %6708 }
 0xbc4   :  { %v6729_v56 = vmul.f32 0.03125, %v6709_v3 }
 0xbc5   :  { %v6706_v12 = vpop.xlane.xlu1 %6705 }
 0xbc6   :  { %v6737_v45 = vadd.f32 1e-05, %v6729_v56  ;;  %v6728_v44 = vmul.f32 0.03125, %v6706_v12 }
 0xbc8   :  { %16623 = vrsqrt.f32 %v6737_v45  ;;  %v6736_v47 = vadd.f32 1e-05, %v6728_v44 }
 0xbca   :  { %16625 = vrsqrt.f32 %v6736_v47 }
 0xbcb   :  { %v6715_v52 = vpop.xlane.xlu0 %6714 }
 0xbcc   :  { %v6731_v35 = vmul.f32 0.03125, %v6715_v52 }
 0xbcd   :  { %v6712_v23 = vpop.xlane.xlu1 %6711 }
 0xbce   :  { %v6739_v6 = vadd.f32 1e-05, %v6731_v35  ;;  %v6730_v11 = vmul.f32 0.03125, %v6712_v23 }
 0xbcf   :  { %v6721_v14 = vpop.xlane.xlu0 %6720 }
 0xbd0   :  { %16627 = vrsqrt.f32 %v6739_v6  ;;  %v6738_v24 = vadd.f32 1e-05, %v6730_v11  ;;  %v6733_v31 = vmul.f32 0.03125, %v6721_v14 }
 0xbd1   :  { %v6718_v20 = vpop.xlane.xlu1 %6717 }
 0xbd2   :  { %16629 = vrsqrt.f32 %v6738_v24  ;;  %v6741_v21 = vadd.f32 1e-05, %v6733_v31  ;;  %v6732_v46 = vmul.f32 0.03125, %v6718_v20 }
 0xbd4   :  { %16631 = vrsqrt.f32 %v6741_v21  ;;  %v6740_v48 = vadd.f32 1e-05, %v6732_v46 }
 0xbd5   :  { %v16624_v0 = vpop.eup %16623 }
 0xbd6   :  { %v6753_v25 = vmul.f32 %v16624_v0, %v18833_v34  ;;  %16633 = vrsqrt.f32 %v6740_v48 }
 0xbd7   :  { %v16626_v61 = vpop.eup %16625 }
 0xbd8   :  { %v6752_v10 = vmul.f32 %v16626_v61, %v18835_v2  ;;  %v6767_v26 = vmul.f32 %v14846_v37, %v6753_v25 }
 0xbda   :  { %v6766_v55 = vmul.f32 %v14846_v37, %v6752_v10  ;;  %v18890_v53 = vadd.f32 %v14847_v27, %v6767_v26 }
 0xbdc   :  { %v18888_v30 = vadd.f32 %v14847_v27, %v6766_v55  ;;  %20705 = vst [vmem:[#allocation46_spill] sm:$0xff] %v18890_v53 }
 0xbdd   :  { %v16628_v4 = vpop.eup %16627 }
 0xbde   :  { %20704 = vst [vmem:[#allocation44_spill] sm:$0xff] %v18888_v30  ;;  %15912 = vmatprep.mubr.msk.f32.mxu1 %vm545_vm10, %v18888_v30  ;;  %v6755_v51 = vmul.f32 %v16628_v4, %v18843_v19 }
 0xbdf   :  { %v16630_v49 = vpop.eup %16629  ;;  %15913 = vmatmul.mubr.msk.f32.vlgmr.msra.gmra.mxu1 %vm545_vm10, %v18890_v53 }
 0xbe0   :  { %v6754_v34 = vmul.f32 %v16630_v49, %v18845_v29  ;;  %v6769_v1 = vmul.f32 %v14846_v37, %v6755_v51 }
 0xbe1   :  { %v16632_v2 = vpop.eup %16631 }
 0xbe2   :  { %v6768_v42 = vmul.f32 %v14846_v37, %v6754_v34  ;;  %v6757_v8 = vmul.f32 %v16632_v2, %v18849_v32  ;;  %v18902_v58 = vadd.f32 %v14847_v27, %v6769_v1 }
 0xbe3   :  { %v16634_v13 = vpop.eup %16633 }
 0xbe4   :  { %v18899_v50 = vadd.f32 %v14847_v27, %v6768_v42  ;;  %v6756_v28 = vmul.f32 %v16634_v13, %v18854_v7  ;;  %20707 = vst [vmem:[#allocation50_spill] sm:$0xff] %v18902_v58  ;;  %v6771_v9 = vmul.f32 %v14846_v37, %v6757_v8 }
 0xbe6   :  { %20706 = vst [vmem:[#allocation45_spill] sm:$0xff] %v18899_v50  ;;  %15915 = vmatprep.mubr.msk.f32.mxu1 %vm545_vm10, %v18899_v50  ;;  %v6770_v19 = vmul.f32 %v14846_v37, %v6756_v28  ;;  %v18910_v63 = vadd.f32 %v14847_v27, %v6771_v9 }
 0xbe7   :  { %15916 = vmatmul.mubr.msk.f32.gmra.mxu1 %vm545_vm10, %v18902_v58 }
 0xbe8   :  { %v18908_v29 = vadd.f32 %v14847_v27, %v6770_v19  ;;  %20709 = vst [vmem:[#allocation54_spill] sm:$0xff] %v18910_v63 }
 0xbea   :  { %20708 = vst [vmem:[#allocation47_spill] sm:$0xff] %v18908_v29  ;;  %15918 = vmatprep.mubr.msk.f32.mxu1 %vm545_vm10, %v18908_v29 }
 0xbeb   :  { %15919 = vmatmul.mubr.msk.f32.gmra.mxu1 %vm545_vm10, %v18910_v63 }
 0xbf0   :  { %v6727_v32 = vpop.xlane.xlu0 %6726 }
 0xbf1   :  { %v6735_v7 = vmul.f32 0.03125, %v6727_v32 }
 0xbf2   :  { %v6724_v38 = vpop.xlane.xlu1 %6723 }
 0xbf3   :  { %v6743_v36 = vadd.f32 1e-05, %v6735_v7  ;;  %v6734_v54 = vmul.f32 0.03125, %v6724_v38 }
 0xbf5   :  { %16635 = vrsqrt.f32 %v6743_v36  ;;  %v6742_v57 = vadd.f32 1e-05, %v6734_v54 }
 0xbf7   :  { %16637 = vrsqrt.f32 %v6742_v57 }
 0xc02   :  { %v16636_v18 = vpop.eup %16635 }
 0xc03   :  { %v6759_v22 = vmul.f32 %v16636_v18, %v18876_v60 }
 0xc04   :  { %v16638_v16 = vpop.eup %16637 }
 0xc05   :  { %v6758_v40 = vmul.f32 %v16638_v16, %v18878_v15  ;;  %v6773_v43 = vmul.f32 %v14846_v37, %v6759_v22 }
 0xc07   :  { %v6772_v33 = vmul.f32 %v14846_v37, %v6758_v40  ;;  %v18920_v62 = vadd.f32 %v14847_v27, %v6773_v43 }
 0xc09   :  { %v18918_v5 = vadd.f32 %v14847_v27, %v6772_v33  ;;  %20711 = vst [vmem:[#allocation49_spill] sm:$0xff] %v18920_v62 }
 0xc0b   :  { %20710 = vst [vmem:[#allocation48_spill] sm:$0xff] %v18918_v5  ;;  %15921 = vmatprep.mubr.msk.f32.mxu1 %vm545_vm10, %v18918_v5 }
 0xc0c   :  { %15922 = vmatmul.mubr.msk.f32.gmra.mxu1 %vm545_vm10, %v18920_v62 }
 0xc0d   :  { %15931 = vmatprep.mubr.msk.f32.mxu1 %vm17261_vm11, %v20681_v17 }
 0xc9f   :  { %v15914_v60 = vpop.f32.mrf.mxu1 }
 0xca0   :  { %v18928_v41 = vadd.f32 %v15914_v60, %v14852_v39 }
 0xca1   :  { %v6891_v15 = vpop.f32.mrf.mxu1 }
 0xca2   :  { %6956 = vrot.lane.b32.xlu1 %v18928_v41, %s17259_s16  ;;  %6940 = vrot.lane.b32.xlu0 %v18928_v41, %s17258_s5  ;;  %v18934_v59 = vadd.f32 %v14852_v39, %v6891_v15 }
 0xca6   :  { %6954 = vrot.lane.b32.xlu0 %v18934_v59, %s17259_s16  ;;  %6938 = vrot.lane.b32.xlu1 %v18934_v59, %s17258_s5 }
 0xca7   :  { %v15917_v3 = vpop.f32.mrf.mxu1 }
 0xca8   :  { %v18940_v56 = vadd.f32 %v15917_v3, %v14852_v39 }
 0xca9   :  { %v6901_v12 = vpop.f32.mrf.mxu1 }
 0xcaa   :  { %6944 = vrot.lane.b32.xlu1 %v18940_v56, %s17258_s5  ;;  %v18944_v44 = vadd.f32 %v14852_v39, %v6901_v12 }
 0xcab   :  { %v15920_v45 = vpop.f32.mrf.mxu1 }
 0xcac   :  { %v18950_v35 = vadd.f32 %v15920_v45, %v14852_v39 }
 0xcad   :  { %v6911_v47 = vpop.f32.mrf.mxu1 }
 0xcae   :  { %v18946_v52 = vadd.f32 %v14852_v39, %v6911_v47  ;;  %6942 = vrot.lane.b32.xlu1 %v18944_v44, %s17258_s5 }
 0xcb0   :  { %6946 = vrot.lane.b32.xlu0 %v18946_v52, %s17258_s5 }
 0xcb2   :  { %6948 = vrot.lane.b32.xlu1 %v18950_v35, %s17258_s5 }
 0xccc   :  { %v15923_v23 = vpop.f32.mrf.mxu1 }
 0xccd   :  { %v18956_v6 = vadd.f32 %v15923_v23, %v14852_v39 }
 0xcce   :  { %v6921_v11 = vpop.f32.mrf.mxu1 }
 0xccf   :  { %v18958_v14 = vadd.f32 %v14852_v39, %v6921_v11  ;;  %6952 = vrot.lane.b32.xlu1 %v18956_v6, %s17258_s5 }
 0xcd1   :  { %6950 = vrot.lane.b32.xlu0 %v18958_v14, %s17258_s5 }
 0xcd3   :  { %6960 = vrot.lane.b32.xlu1 %v18940_v56, %s17259_s16 }
 0xcd5   :  { %6958 = vrot.lane.b32.xlu0 %v18944_v44, %s17259_s16 }
 0xcd7   :  { %6964 = vrot.lane.b32.xlu1 %v18950_v35, %s17259_s16 }
 0xcd9   :  { %6962 = vrot.lane.b32.xlu0 %v18946_v52, %s17259_s16 }
 0xcdb   :  { %6968 = vrot.lane.b32.xlu1 %v18956_v6, %s17259_s16 }
 0xcdd   :  { %6970 = vrot.lane.b32.xlu0 %v18934_v59, %s17260_s0 }
 0xcdf   :  { %6972 = vrot.lane.b32.xlu1 %v18928_v41, %s17260_s0 }
 0xce1   :  { %6966 = vrot.lane.b32.xlu0 %v18958_v14, %s17259_s16 }
 0xce3   :  { %6976 = vrot.lane.b32.xlu1 %v18940_v56, %s17260_s0 }
 0xce5   :  { %6974 = vrot.lane.b32.xlu0 %v18944_v44, %s17260_s0 }
 0xce7   :  { %6980 = vrot.lane.b32.xlu1 %v18950_v35, %s17260_s0 }
 0xce9   :  { %6978 = vrot.lane.b32.xlu0 %v18946_v52, %s17260_s0 }
 0xceb   :  { %7062 = vrot.lane.b32.xlu1 %v18928_v41, %s17262_s22 }
 0xced   :  { %6986 = vrot.lane.b32.xlu0 %v18934_v59, %s17262_s22 }
 0xcef   :  { %6984 = vrot.lane.b32.xlu1 %v18956_v6, %s17260_s0 }
 0xcf1   :  { %6982 = vrot.lane.b32.xlu0 %v18958_v14, %s17260_s0 }
 0xcf3   :  { %7214 = vrot.lane.b32.xlu1 %v18940_v56, %s17262_s22 }
 0xcf5   :  { %7138 = vrot.lane.b32.xlu0 %v18944_v44, %s17262_s22 }
 0xcf7   :  { %7366 = vrot.lane.b32.xlu1 %v18950_v35, %s17262_s22 }
 0xcf9   :  { %7290 = vrot.lane.b32.xlu0 %v18946_v52, %s17262_s22 }
 0xcfb   :  { %7518 = vrot.lane.b32.xlu1 %v18956_v6, %s17262_s22 }
 0xcfd   :  { %7442 = vrot.lane.b32.xlu0 %v18958_v14, %s17262_s22 }
 0xd14   :  { %v19008_v24 = vpop.permute.xlu1 %6956  ;;  %v19010_v31 = vpop.permute.xlu0 %6940 }
 0xd15   :  { %7670 = vrot.lane.b32.xlu1 %v19010_v31, %s17262_s22 }
 0xd18   :  { %v19014_v20 = vpop.permute.xlu1 %6938  ;;  %v19022_v46 = vpop.permute.xlu0 %6954 }
 0xd19   :  { %7594 = vrot.lane.b32.xlu0 %v19014_v20, %s17262_s22 }
 0xd1c   :  { %v19018_v21 = vpop.permute.xlu1 %6944 }
 0xd1d   :  { %7822 = vrot.lane.b32.xlu1 %v19018_v21, %s17262_s22 }
 0xd20   :  { %v19024_v48 = vpop.permute.xlu1 %6942 }
 0xd21   :  { %7746 = vrot.lane.b32.xlu0 %v19024_v48, %s17262_s22 }
 0xd22   :  { %v19028_v0 = vpop.permute.xlu0 %6946 }
 0xd24   :  { %v19030_v37 = vpop.permute.xlu1 %6948 }
 0xd25   :  { %7974 = vrot.lane.b32.xlu1 %v19030_v37, %s17262_s22  ;;  %7898 = vrot.lane.b32.xlu0 %v19028_v0, %s17262_s22 }
 0xd41   :  { %v19036_v25 = vpop.permute.xlu1 %6952 }
 0xd42   :  { %8126 = vrot.lane.b32.xlu1 %v19036_v25, %s17262_s22 }
 0xd43   :  { %v19040_v61 = vpop.permute.xlu0 %6950 }
 0xd44   :  { %8050 = vrot.lane.b32.xlu0 %v19040_v61, %s17262_s22 }
 0xd45   :  { %v19044_v10 = vpop.permute.xlu1 %6960 }
 0xd46   :  { %8278 = vrot.lane.b32.xlu1 %v19008_v24, %s17262_s22 }
 0xd47   :  { %v19048_v26 = vpop.permute.xlu0 %6958 }
 0xd48   :  { %8202 = vrot.lane.b32.xlu0 %v19022_v46, %s17262_s22 }
 0xd49   :  { %v19052_v27 = vpop.permute.xlu1 %6964 }
 0xd4a   :  { %8430 = vrot.lane.b32.xlu1 %v19044_v10, %s17262_s22 }
 0xd4b   :  { %v19056_v55 = vpop.permute.xlu0 %6962 }
 0xd4c   :  { %8354 = vrot.lane.b32.xlu0 %v19048_v26, %s17262_s22 }
 0xd4d   :  { %v19060_v4 = vpop.permute.xlu1 %6968 }
 0xd4e   :  { %8582 = vrot.lane.b32.xlu1 %v19052_v27, %s17262_s22 }
 0xd4f   :  { %v19064_v51 = vpop.permute.xlu0 %6970 }
 0xd50   :  { %8506 = vrot.lane.b32.xlu0 %v19056_v55, %s17262_s22 }
 0xd51   :  { %v19068_v49 = vpop.permute.xlu1 %6972 }
 0xd52   :  { %8734 = vrot.lane.b32.xlu1 %v19060_v4, %s17262_s22 }
 0xd53   :  { %v19072_v34 = vpop.permute.xlu0 %6966 }
 0xd54   :  { %8658 = vrot.lane.b32.xlu0 %v19072_v34, %s17262_s22 }
 0xd55   :  { %v19076_v2 = vpop.permute.xlu1 %6976 }
 0xd56   :  { %8886 = vrot.lane.b32.xlu1 %v19068_v49, %s17262_s22 }
 0xd57   :  { %v19080_v1 = vpop.permute.xlu0 %6974 }
 0xd58   :  { %8810 = vrot.lane.b32.xlu0 %v19064_v51, %s17262_s22 }
 0xd59   :  { %v19084_v42 = vpop.permute.xlu1 %6980 }
 0xd5a   :  { %9038 = vrot.lane.b32.xlu1 %v19076_v2, %s17262_s22 }
 0xd5b   :  { %v19088_v8 = vpop.permute.xlu0 %6978 }
 0xd5c   :  { %8962 = vrot.lane.b32.xlu0 %v19080_v1, %s17262_s22 }
 0xd5d   :  { %v7063_v13 = vpop.permute.xlu1 %7062 }
 0xd5e   :  { %15930 = vmatpush3.xpose.msk.msra.mxu1 %vm733_vm12, %v7063_v13  ;;  %9190 = vrot.lane.b32.xlu1 %v19084_v42, %s17262_s22 }
 0xd5f   :  { %v6987_v28 = vpop.permute.xlu0 %6986  ;;  %15939 = vmatprep.subr.mxu1 %v20681_v17 }
 0xd60   :  { %9114 = vrot.lane.b32.xlu0 %v19088_v8, %s17262_s22  ;;  %15925 = vmatpush3.xpose.msk.msra.mxu0 %vm733_vm12, %v6987_v28 }
 0xd61   :  { %15932 = vmatmul.mubr.msk.f32.vlgmr.msra.gmra.mxu1 %vm733_vm12, %v18928_v41  ;;  %v19101_v9 = vpop.permute.xlu1 %6984  ;;  %15934 = vmatprep.subr.mxu0 %v20681_v17 }
 0xd62   :  { %9342 = vrot.lane.b32.xlu1 %v19101_v9, %s17262_s22  ;;  %15941 = vmatprep.mubr.msk.f32.mxu1 %vm17261_vm11, %v20681_v17 }
 0xd63   :  { %15927 = vmatmul.mubr.msk.f32.vlgmr.msra.gmra.mxu0 %vm733_vm12, %v18934_v59  ;;  %v19110_v19 = vpop.permute.xlu0 %6982 }
 0xd64   :  { %9266 = vrot.lane.b32.xlu0 %v19110_v19, %s17262_s22  ;;  %15936 = vmatprep.mubr.msk.f32.mxu0 %vm17261_vm11, %v20681_v17 }
 0xd65   :  { %v7215_v32 = vpop.permute.xlu1 %7214 }
 0xd66   :  { %15940 = vmatpush3.xpose.msk.msra.mxu1 %vm733_vm12, %v7215_v32  ;;  %9770 = vrot.lane.b32.xlu1 %v18934_v59, %s17263_s9 }
 0xd67   :  { %v7139_v7 = vpop.permute.xlu0 %7138  ;;  %15949 = vmatprep.subr.mxu1 %v20681_v17 }
 0xd68   :  { %9846 = vrot.lane.b32.xlu0 %v18928_v41, %s17263_s9  ;;  %15935 = vmatpush3.xpose.msk.msra.mxu0 %vm733_vm12, %v7139_v7 }
 0xd69   :  { %15942 = vmatmul.mubr.msk.f32.vlgmr.msra.gmra.mxu1 %vm733_vm12, %v18940_v56  ;;  %v7367_v38 = vpop.permute.xlu1 %7366  ;;  %15944 = vmatprep.subr.mxu0 %v20681_v17 }
 0xd6a   :  { %15950 = vmatpush3.xpose.msk.msra.mxu1 %vm733_vm12, %v7367_v38  ;;  %9998 = vrot.lane.b32.xlu1 %v18940_v56, %s17263_s9 }
 0xd6b   :  { %15937 = vmatmul.mubr.msk.f32.vlgmr.msra.gmra.mxu0 %vm733_vm12, %v18944_v44  ;;  %v7291_v36 = vpop.permute.xlu0 %7290  ;;  %15951 = vmatprep.mubr.msk.f32.mxu1 %vm17261_vm11, %v20681_v17 }
 0xd6c   :  { %9922 = vrot.lane.b32.xlu0 %v18944_v44, %s17263_s9  ;;  %15945 = vmatpush3.xpose.msk.msra.mxu0 %vm733_vm12, %v7291_v36 }
 0xd6d   :  { %15952 = vmatmul.mubr.msk.f32.vlgmr.msra.gmra.mxu1 %vm733_vm12, %v18950_v35  ;;  %15959 = vmatprep.subr.mxu1 %v20681_v17  ;;  %v7519_v54 = vpop.permute.xlu1 %7518 }
 0xd6e   :  { %15960 = vmatpush3.xpose.msk.msra.mxu1 %vm733_vm12, %v7519_v54  ;;  %10226 = vrot.lane.b32.xlu1 %v18958_v14, %s17263_s9 }
 0xd6f   :  { %15946 = vmatprep.mubr.msk.f32.mxu0 %vm17261_vm11, %v20681_v17  ;;  %15954 = vmatprep.subr.mxu0 %v20681_v17  ;;  %v7443_v57 = vpop.permute.xlu0 %7442 }
 0xd70   :  { %15947 = vmatmul.mubr.msk.f32.vlgmr.msra.gmra.mxu0 %vm733_vm12, %v18946_v52  ;;  %15961 = vmatprep.mubr.msk.f32.mxu1 %vm17261_vm11, %v20681_v17 }
 0xd71   :  { %10074 = vrot.lane.b32.xlu0 %v18946_v52, %s17263_s9  ;;  %15955 = vmatpush3.xpose.msk.msra.mxu0 %vm733_vm12, %v7443_v57 }
 0xd72   :  { %15962 = vmatmul.mubr.msk.f32.vlgmr.msra.gmra.mxu1 %vm733_vm12, %v18956_v6  ;;  %10378 = vrot.lane.b32.xlu1 %v19014_v20, %s17263_s9 }
 0xd73   :  { %15956 = vmatprep.mubr.msk.f32.mxu0 %vm17261_vm11, %v20681_v17  ;;  %15969 = vmatprep.subr.mxu1 %v20681_v17 }
 0xd74   :  { %15957 = vmatmul.mubr.msk.f32.vlgmr.msra.gmra.mxu0 %vm733_vm12, %v18958_v14  ;;  %15971 = vmatprep.mubr.msk.f32.mxu1 %vm17261_vm11, %v20681_v17 }
 0xd75   :  { %10150 = vrot.lane.b32.xlu0 %v18950_v35, %s17263_s9  ;;  %15964 = vmatprep.subr.mxu0 %v20681_v17 }
 0xd76   :  { %10530 = vrot.lane.b32.xlu1 %v19024_v48, %s17263_s9  ;;  %15966 = vmatprep.mubr.msk.f32.mxu0 %vm17261_vm11, %v20681_v17 }
 0xd79   :  { %10302 = vrot.lane.b32.xlu0 %v18956_v6, %s17263_s9 }
 0xd7a   :  { %10682 = vrot.lane.b32.xlu1 %v19028_v0, %s17263_s9 }
 0xd7d   :  { %10454 = vrot.lane.b32.xlu0 %v19010_v31, %s17263_s9 }
 0xd7e   :  { %10986 = vrot.lane.b32.xlu1 %v19022_v46, %s17263_s9 }
 0xd81   :  { %10606 = vrot.lane.b32.xlu0 %v19018_v21, %s17263_s9 }
 0xd82   :  { %11138 = vrot.lane.b32.xlu1 %v19048_v26, %s17263_s9 }
 0xd85   :  { %10758 = vrot.lane.b32.xlu0 %v19030_v37, %s17263_s9 }
 0xd86   :  { %11214 = vrot.lane.b32.xlu1 %v19044_v10, %s17263_s9 }
 0xd87   :  { %v7671_v18 = vpop.permute.xlu1 %7670 }
 0xd88   :  { %15970 = vmatpush3.xpose.msk.msra.mxu1 %vm733_vm12, %v7671_v18 }
 0xd89   :  { %10910 = vrot.lane.b32.xlu0 %v19036_v25, %s17263_s9  ;;  %15979 = vmatprep.subr.mxu1 %v20681_v17 }
 0xd8a   :  { %11366 = vrot.lane.b32.xlu1 %v19052_v27, %s17263_s9 }
 0xd8b   :  { %15972 = vmatmul.mubr.msk.f32.vlgmr.msra.gmra.mxu1 %vm733_vm12, %v19010_v31  ;;  %v7595_v22 = vpop.permute.xlu0 %7594 }
 0xd8c   :  { %15965 = vmatpush3.xpose.msk.msra.mxu0 %vm733_vm12, %v7595_v22  ;;  %15981 = vmatprep.mubr.msk.f32.mxu1 %vm17261_vm11, %v20681_v17 }
 0xd8d   :  { %11062 = vrot.lane.b32.xlu0 %v19008_v24, %s17263_s9  ;;  %15974 = vmatprep.subr.mxu0 %v20681_v17 }
 0xd8e   :  { %11518 = vrot.lane.b32.xlu1 %v19060_v4, %s17263_s9 }
 0xd8f   :  { %v7823_v16 = vpop.permute.xlu1 %7822  ;;  %15967 = vmatmul.mubr.msk.f32.vlgmr.msra.gmra.mxu0 %vm733_vm12, %v19014_v20 }
 0xd90   :  { %15980 = vmatpush3.xpose.msk.msra.mxu1 %vm733_vm12, %v7823_v16  ;;  %15976 = vmatprep.mubr.msk.f32.mxu0 %vm17261_vm11, %v20681_v17 }
 0xd91   :  { %11290 = vrot.lane.b32.xlu0 %v19056_v55, %s17263_s9  ;;  %15989 = vmatprep.subr.mxu1 %v20681_v17 }
 0xd92   :  { %11594 = vrot.lane.b32.xlu1 %v19064_v51, %s17263_s9 }
 0xd93   :  { %15982 = vmatmul.mubr.msk.f32.vlgmr.msra.gmra.mxu1 %vm733_vm12, %v19018_v21  ;;  %v7747_v40 = vpop.permute.xlu0 %7746 }
 0xd94   :  { %15975 = vmatpush3.xpose.msk.msra.mxu0 %vm733_vm12, %v7747_v40  ;;  %15991 = vmatprep.mubr.msk.f32.mxu1 %vm17261_vm11, %v20681_v17 }
 0xd95   :  { %11746 = vrot.lane.b32.xlu0 %v19080_v1, %s17263_s9  ;;  %15984 = vmatprep.subr.mxu0 %v20681_v17 }
 0xd96   :  { %11670 = vrot.lane.b32.xlu1 %v19068_v49, %s17263_s9 }
 0xd97   :  { %v7975_v43 = vpop.permute.xlu1 %7974  ;;  %15977 = vmatmul.mubr.msk.f32.vlgmr.msra.gmra.mxu0 %vm733_vm12, %v19024_v48  ;;  %v7899_v33 = vpop.permute.xlu0 %7898 }
 0xd98   :  { %15985 = vmatpush3.xpose.msk.msra.mxu0 %vm733_vm12, %v7899_v33  ;;  %15990 = vmatpush3.xpose.msk.msra.mxu1 %vm733_vm12, %v7975_v43 }
 0xd99   :  { %15986 = vmatprep.mubr.msk.f32.mxu0 %vm17261_vm11, %v20681_v17  ;;  %15999 = vmatprep.subr.mxu1 %v20681_v17 }
 0xd9a   :  { %11822 = vrot.lane.b32.xlu1 %v19076_v2, %s17263_s9  ;;  %15994 = vmatprep.subr.mxu0 %v20681_v17 }
 0xd9b   :  { %15992 = vmatmul.mubr.msk.f32.vlgmr.msra.gmra.mxu1 %vm733_vm12, %v19030_v37  ;;  %15987 = vmatmul.mubr.msk.f32.vlgmr.msra.gmra.mxu0 %vm733_vm12, %v19028_v0 }
 0xd9c   :  { %16001 = vmatprep.mubr.msk.f32.mxu1 %vm17261_vm11, %v20681_v17  ;;  %15996 = vmatprep.mubr.msk.f32.mxu0 %vm17261_vm11, %v20681_v17 }
 0xd9e   :  { %10834 = vrot.lane.b32.xlu1 %v19040_v61, %s17263_s9 }
 0xda2   :  { %11442 = vrot.lane.b32.xlu1 %v19072_v34, %s17263_s9 }
 0xdb4   :  { %v8127_v39 = vpop.permute.xlu1 %8126 }
 0xdb5   :  { %16000 = vmatpush3.xpose.msk.msra.mxu1 %vm733_vm12, %v8127_v39 }
 0xdb6   :  { %v8051_v60 = vpop.permute.xlu0 %8050  ;;  %16009 = vmatprep.subr.mxu1 %v20681_v17 }
 0xdb7   :  { %15995 = vmatpush3.xpose.msk.msra.mxu0 %vm733_vm12, %v8051_v60 }
 0xdb8   :  { %16002 = vmatmul.mubr.msk.f32.vlgmr.msra.gmra.mxu1 %vm733_vm12, %v19036_v25  ;;  %v8279_v41 = vpop.permute.xlu1 %8278  ;;  %16004 = vmatprep.subr.mxu0 %v20681_v17 }
 0xdb9   :  { %16010 = vmatpush3.xpose.msk.msra.mxu1 %vm733_vm12, %v8279_v41  ;;  %16011 = vmatprep.mubr.msk.f32.mxu1 %vm17261_vm11, %v20681_v17 }
 0xdba   :  { %15997 = vmatmul.mubr.msk.f32.vlgmr.msra.gmra.mxu0 %vm733_vm12, %v19040_v61  ;;  %v8203_v15 = vpop.permute.xlu0 %8202  ;;  %16019 = vmatprep.subr.mxu1 %v20681_v17 }
 0xdbb   :  { %16005 = vmatpush3.xpose.msk.msra.mxu0 %vm733_vm12, %v8203_v15  ;;  %16006 = vmatprep.mubr.msk.f32.mxu0 %vm17261_vm11, %v20681_v17 }
 0xdbc   :  { %16012 = vmatmul.mubr.msk.f32.vlgmr.msra.gmra.mxu1 %vm733_vm12, %v19008_v24  ;;  %v8431_v59 = vpop.permute.xlu1 %8430  ;;  %16014 = vmatprep.subr.mxu0 %v20681_v17 }
 0xdbd   :  { %16020 = vmatpush3.xpose.msk.msra.mxu1 %vm733_vm12, %v8431_v59  ;;  %16021 = vmatprep.mubr.msk.f32.mxu1 %vm17261_vm11, %v20681_v17 }
 0xdbe   :  { %16007 = vmatmul.mubr.msk.f32.vlgmr.msra.gmra.mxu0 %vm733_vm12, %v19022_v46  ;;  %v8355_v3 = vpop.permute.xlu0 %8354  ;;  %16029 = vmatprep.subr.mxu1 %v20681_v17 }
 0xdbf   :  { %16015 = vmatpush3.xpose.msk.msra.mxu0 %vm733_vm12, %v8355_v3  ;;  %16016 = vmatprep.mubr.msk.f32.mxu0 %vm17261_vm11, %v20681_v17 }
 0xdc0   :  { %16022 = vmatmul.mubr.msk.f32.vlgmr.msra.gmra.mxu1 %vm733_vm12, %v19044_v10  ;;  %v8583_v56 = vpop.permute.xlu1 %8582  ;;  %16024 = vmatprep.subr.mxu0 %v20681_v17 }
 0xdc1   :  { %16030 = vmatpush3.xpose.msk.msra.mxu1 %vm733_vm12, %v8583_v56  ;;  %16031 = vmatprep.mubr.msk.f32.mxu1 %vm17261_vm11, %v20681_v17 }
 0xdc2   :  { %16017 = vmatmul.mubr.msk.f32.vlgmr.msra.gmra.mxu0 %vm733_vm12, %v19048_v26  ;;  %v8507_v12 = vpop.permute.xlu0 %8506  ;;  %16039 = vmatprep.subr.mxu1 %v20681_v17 }
 0xdc3   :  { %16025 = vmatpush3.xpose.msk.msra.mxu0 %vm733_vm12, %v8507_v12  ;;  %16026 = vmatprep.mubr.msk.f32.mxu0 %vm17261_vm11, %v20681_v17 }
 0xdc4   :  { %16032 = vmatmul.mubr.msk.f32.vlgmr.msra.gmra.mxu1 %vm733_vm12, %v19052_v27  ;;  %v8735_v45 = vpop.permute.xlu1 %8734  ;;  %16034 = vmatprep.subr.mxu0 %v20681_v17 }
 0xdc5   :  { %16040 = vmatpush3.xpose.msk.msra.mxu1 %vm733_vm12, %v8735_v45  ;;  %16041 = vmatprep.mubr.msk.f32.mxu1 %vm17261_vm11, %v20681_v17 }
 0xdc6   :  { %16027 = vmatmul.mubr.msk.f32.vlgmr.msra.gmra.mxu0 %vm733_vm12, %v19056_v55  ;;  %v8659_v44 = vpop.permute.xlu0 %8658  ;;  %16049 = vmatprep.subr.mxu1 %v20681_v17 }
 0xdc7   :  { %16035 = vmatpush3.xpose.msk.msra.mxu0 %vm733_vm12, %v8659_v44  ;;  %16036 = vmatprep.mubr.msk.f32.mxu0 %vm17261_vm11, %v20681_v17 }
 0xdc8   :  { %16042 = vmatmul.mubr.msk.f32.vlgmr.msra.gmra.mxu1 %vm733_vm12, %v19060_v4  ;;  %v8887_v47 = vpop.permute.xlu1 %8886  ;;  %16044 = vmatprep.subr.mxu0 %v20681_v17 }
 0xdc9   :  { %16050 = vmatpush3.xpose.msk.msra.mxu1 %vm733_vm12, %v8887_v47  ;;  %16051 = vmatprep.mubr.msk.f32.mxu1 %vm17261_vm11, %v20681_v17 }
 0xdca   :  { %16037 = vmatmul.mubr.msk.f32.vlgmr.msra.gmra.mxu0 %vm733_vm12, %v19072_v34  ;;  %v8811_v52 = vpop.permute.xlu0 %8810  ;;  %16059 = vmatprep.subr.mxu1 %v20681_v17 }
 0xdcb   :  { %16045 = vmatpush3.xpose.msk.msra.mxu0 %vm733_vm12, %v8811_v52  ;;  %16046 = vmatprep.mubr.msk.f32.mxu0 %vm17261_vm11, %v20681_v17 }
 0xdcc   :  { %16052 = vmatmul.mubr.msk.f32.vlgmr.msra.gmra.mxu1 %vm733_vm12, %v19068_v49  ;;  %v9039_v35 = vpop.permute.xlu1 %9038  ;;  %16054 = vmatprep.subr.mxu0 %v20681_v17 }
 0xdcd   :  { %16060 = vmatpush3.xpose.msk.msra.mxu1 %vm733_vm12, %v9039_v35  ;;  %16061 = vmatprep.mubr.msk.f32.mxu1 %vm17261_vm11, %v20681_v17 }
 0xdce   :  { %16047 = vmatmul.mubr.msk.f32.vlgmr.msra.gmra.mxu0 %vm733_vm12, %v19064_v51  ;;  %v8963_v23 = vpop.permute.xlu0 %8962  ;;  %16069 = vmatprep.subr.mxu1 %v20681_v17 }
 0xdcf   :  { %16055 = vmatpush3.xpose.msk.msra.mxu0 %vm733_vm12, %v8963_v23  ;;  %16056 = vmatprep.mubr.msk.f32.mxu0 %vm17261_vm11, %v20681_v17 }
 0xdd0   :  { %16062 = vmatmul.mubr.msk.f32.vlgmr.msra.gmra.mxu1 %vm733_vm12, %v19076_v2  ;;  %v9191_v6 = vpop.permute.xlu1 %9190  ;;  %16064 = vmatprep.subr.mxu0 %v20681_v17 }
 0xdd1   :  { %16070 = vmatpush3.xpose.msk.msra.mxu1 %vm733_vm12, %v9191_v6  ;;  %16071 = vmatprep.mubr.msk.f32.mxu1 %vm17261_vm11, %v20681_v17 }
 0xdd2   :  { %16057 = vmatmul.mubr.msk.f32.vlgmr.msra.gmra.mxu0 %vm733_vm12, %v19080_v1  ;;  %v9115_v11 = vpop.permute.xlu0 %9114  ;;  %16079 = vmatprep.subr.mxu1 %v20681_v17 }
 0xdd3   :  { %16065 = vmatpush3.xpose.msk.msra.mxu0 %vm733_vm12, %v9115_v11  ;;  %16066 = vmatprep.mubr.msk.f32.mxu0 %vm17261_vm11, %v20681_v17 }
 0xdd4   :  { %16072 = vmatmul.mubr.msk.f32.vlgmr.msra.gmra.mxu1 %vm733_vm12, %v19084_v42  ;;  %v9343_v14 = vpop.permute.xlu1 %9342  ;;  %16074 = vmatprep.subr.mxu0 %v20681_v17 }
 0xdd5   :  { %16080 = vmatpush3.xpose.msk.msra.mxu1 %vm733_vm12, %v9343_v14  ;;  %16081 = vmatprep.mubr.msk.f32.mxu1 %vm17261_vm11, %v20681_v17 }
 0xdd6   :  { %16067 = vmatmul.mubr.msk.f32.vlgmr.msra.gmra.mxu0 %vm733_vm12, %v19088_v8  ;;  %v9267_v24 = vpop.permute.xlu0 %9266  ;;  %16089 = vmatprep.subr.mxu1 %v20681_v17 }
 0xdd7   :  { %16075 = vmatpush3.xpose.msk.msra.mxu0 %vm733_vm12, %v9267_v24  ;;  %16076 = vmatprep.mubr.msk.f32.mxu0 %vm17261_vm11, %v20681_v17 }
 0xdd8   :  { %16082 = vmatmul.mubr.msk.f32.vlgmr.msra.gmra.mxu1 %vm733_vm12, %v19101_v9  ;;  %16084 = vmatprep.subr.mxu0 %v20681_v17  ;;  %v9771_v31 = vpop.permute.xlu1 %9770 }
 0xdd9   :  { %16091 = vmatprep.mubr.msk.f32.mxu1 %vm17261_vm11, %v20681_v17 }
 0xdda   :  { %16077 = vmatmul.mubr.msk.f32.vlgmr.msra.gmra.mxu0 %vm733_vm12, %v19110_v19  ;;  %v9847_v20 = vpop.permute.xlu0 %9846 }
 0xddb   :  { %16085 = vmatpush3.msra.mxu0 %v9771_v31  ;;  %16090 = vmatpush3.msra.mxu1 %v9847_v20 }
 0xddc   :  { %16099 = vmatprep.subr.mxu1 %v20681_v17  ;;  %16086 = vmatprep.mubr.msk.f32.mxu0 %vm17261_vm11, %v20681_v17  ;;  %v19394_v33 = vpop.permute.xlu1 %9998 }
 0xddd   :  { %16094 = vmatprep.subr.mxu0 %v20681_v17 }
 0xdde   :  { %v19420_v14 = vpop.permute.xlu0 %9922 }
 0xde0   :  { %v19404_v3 = vpop.permute.xlu1 %10226 }
 0xde3   :  { %v19424_v31 = vpop.permute.xlu0 %10074 }
 0xde4   :  { %v19414_v23 = vpop.permute.xlu1 %10378 }
 0xde8   :  { %v19416_v6 = vpop.permute.xlu1 %10530 }
 0xdec   :  { %v19418_v11 = vpop.permute.xlu1 %10682 }
 0xdf0   :  { %v19422_v24 = vpop.permute.xlu1 %10986 }
 0xdf1   :  { %20712 = vst [vmem:[#allocation51_spill] sm:$0xff] %v19422_v24 }
 0xdf4   :  { %v19426_v20 = vpop.permute.xlu1 %11138 }
 0xdf5   :  { %20713 = vst [vmem:[#allocation52_spill] sm:$0xff] %v19426_v20 }
 0xe21   :  { %v19354_v21 = vpop.f32.mrf.mxu1 }
 0xe22   :  { %v9421_v46 = vsel %vm733_vm12, %v19354_v21, -inf }
 0xe23   :  { %v15933_v48 = vpop.f32.mrf.mxu1  ;;  %9422 = vmax.xlane.f32.xlu1 %v9421_v46  ;;  %v19358_v0 = vpop.f32.mrf.mxu0 }
 0xe24   :  { %v9418_v37 = vsel %vm733_vm12, %v19358_v0, -inf  ;;  %v19430_v48 = vpop.permute.xlu0 %10150 }
 0xe25   :  { %v15928_v25 = vpop.f32.mrf.mxu0  ;;  %9419 = vmax.xlane.f32.xlu0 %v9418_v37 }
 0xe29   :  { %v19362_v61 = vpop.f32.mrf.mxu1 }
 0xe2a   :  { %v9427_v10 = vsel %vm733_vm12, %v19362_v61, -inf }
 0xe2b   :  { %v15943_v26 = vpop.f32.mrf.mxu1  ;;  %9428 = vmax.xlane.f32.xlu0 %v9427_v10  ;;  %v19366_v27 = vpop.f32.mrf.mxu0 }
 0xe2c   :  { %v9424_v51 = vsel %vm733_vm12, %v19366_v27, -inf }
 0xe2d   :  { %v15938_v55 = vpop.f32.mrf.mxu0  ;;  %v19368_v4 = vpop.f32.mrf.mxu1 }
 0xe2e   :  { %v9433_v28 = vsel %vm733_vm12, %v19368_v4, -inf }
 0xe2f   :  { %v15953_v49 = vpop.f32.mrf.mxu1  ;;  %9425 = vmax.xlane.f32.xlu0 %v9424_v51 }
 0xe30   :  { %v19372_v34 = vpop.f32.mrf.mxu0  ;;  %v19440_v49 = vpop.permute.xlu1 %11214 }
 0xe31   :  { %v9430_v2 = vsel %vm733_vm12, %v19372_v34, -inf  ;;  %20714 = vst [vmem:[#allocation53_spill] sm:$0xff] %v19440_v49 }
 0xe32   :  { %v19376_v1 = vpop.f32.mrf.mxu1  ;;  %9431 = vmax.xlane.f32.xlu1 %v9430_v2  ;;  %v15948_v13 = vpop.f32.mrf.mxu0 }
 0xe33   :  { %9434 = vmax.xlane.f32.xlu0 %v9433_v28  ;;  %v9439_v54 = vsel %vm733_vm12, %v19376_v1, -inf }
 0xe34   :  { %v15963_v32 = vpop.f32.mrf.mxu1  ;;  %v19380_v7 = vpop.f32.mrf.mxu0 }
 0xe35   :  { %v9436_v38 = vsel %vm733_vm12, %v19380_v7, -inf  ;;  %v19446_v32 = vpop.permute.xlu0 %10302 }
 0xe36   :  { %9437 = vmax.xlane.f32.xlu1 %v9436_v38  ;;  %v15958_v36 = vpop.f32.mrf.mxu0 }
 0xe37   :  { %9440 = vmax.xlane.f32.xlu0 %v9439_v54 }
 0xe4b   :  { %v19386_v57 = vpop.f32.mrf.mxu1 }
 0xe4c   :  { %v9445_v18 = vsel %vm733_vm12, %v19386_v57, -inf }
 0xe4d   :  { %v15973_v22 = vpop.f32.mrf.mxu1  ;;  %9446 = vmax.xlane.f32.xlu0 %v9445_v18 }
 0xe4f   :  { %v19390_v16 = vpop.f32.mrf.mxu0 }
 0xe50   :  { %v9442_v40 = vsel %vm733_vm12, %v19390_v16, -inf }
 0xe51   :  { %9443 = vmax.xlane.f32.xlu1 %v9442_v40  ;;  %v15968_v43 = vpop.f32.mrf.mxu0 }
 0xe52   :  { %v19456_v43 = vpop.permute.xlu1 %11366 }
 0xe53   :  { %v19396_v39 = vpop.f32.mrf.mxu1  ;;  %20715 = vst [vmem:[#allocation37_spill] sm:$0xff] %v19456_v43 }
 0xe54   :  { %v9451_v60 = vsel %vm733_vm12, %v19396_v39, -inf }
 0xe55   :  { %v15983_v41 = vpop.f32.mrf.mxu1  ;;  %9452 = vmax.xlane.f32.xlu0 %v9451_v60 }
 0xe57   :  { %v19400_v15 = vpop.f32.mrf.mxu0 }
 0xe58   :  { %v9448_v59 = vsel %vm733_vm12, %v19400_v15, -inf }
 0xe59   :  { %9449 = vmax.xlane.f32.xlu1 %v9448_v59  ;;  %v15978_v56 = vpop.f32.mrf.mxu0 }
 0xe5a   :  { %v19462_v56 = vpop.permute.xlu0 %10454 }
 0xe5b   :  { %v19406_v12 = vpop.f32.mrf.mxu0  ;;  %v19408_v45 = vpop.f32.mrf.mxu1 }
 0xe5c   :  { %v9457_v44 = vsel %vm733_vm12, %v19408_v45, -inf  ;;  %v9454_v47 = vsel %vm733_vm12, %v19406_v12, -inf }
 0xe5d   :  { %v15993_v52 = vpop.f32.mrf.mxu1  ;;  %9458 = vmax.xlane.f32.xlu0 %v9457_v44  ;;  %9455 = vmax.xlane.f32.xlu1 %v9454_v47  ;;  %v15988_v35 = vpop.f32.mrf.mxu0 }
 0xe78   :  { %v19428_v46 = vpop.f32.mrf.mxu1 }
 0xe79   :  { %v9463_v37 = vsel %vm733_vm12, %v19428_v46, -inf }
 0xe7a   :  { %v16003_v25 = vpop.f32.mrf.mxu1  ;;  %9464 = vmax.xlane.f32.xlu0 %v9463_v37  ;;  %v19434_v10 = vpop.f32.mrf.mxu0 }
 0xe7b   :  { %v9460_v26 = vsel %vm733_vm12, %v19434_v10, -inf }
 0xe7c   :  { %v19438_v55 = vpop.f32.mrf.mxu1  ;;  %9461 = vmax.xlane.f32.xlu1 %v9460_v26  ;;  %v15998_v51 = vpop.f32.mrf.mxu0 }
 0xe7d   :  { %v9469_v2 = vsel %vm733_vm12, %v19438_v55, -inf  ;;  %v19472_v26 = vpop.permute.xlu1 %11518 }
 0xe7e   :  { %v16013_v13 = vpop.f32.mrf.mxu1  ;;  %9470 = vmax.xlane.f32.xlu0 %v9469_v2  ;;  %v19444_v28 = vpop.f32.mrf.mxu0  ;;  %20716 = vst [vmem:[#allocation36_spill] sm:$0xff] %v19472_v26 }
 0xe7f   :  { %v9466_v38 = vsel %vm733_vm12, %v19444_v28, -inf }
 0xe80   :  { %v19450_v36 = vpop.f32.mrf.mxu1  ;;  %9467 = vmax.xlane.f32.xlu1 %v9466_v38  ;;  %v16008_v54 = vpop.f32.mrf.mxu0 }
 0xe81   :  { %v9475_v18 = vsel %vm733_vm12, %v19450_v36, -inf  ;;  %v19478_v38 = vpop.permute.xlu0 %10606 }
 0xe82   :  { %v16023_v22 = vpop.f32.mrf.mxu1  ;;  %9476 = vmax.xlane.f32.xlu0 %v9475_v18  ;;  %v19454_v40 = vpop.f32.mrf.mxu0 }
 0xe83   :  { %v9472_v60 = vsel %vm733_vm12, %v19454_v40, -inf }
 0xe84   :  { %v19460_v41 = vpop.f32.mrf.mxu1  ;;  %9473 = vmax.xlane.f32.xlu1 %v9472_v60  ;;  %v16018_v59 = vpop.f32.mrf.mxu0 }
 0xe85   :  { %v9481_v44 = vsel %vm733_vm12, %v19460_v41, -inf }
 0xe86   :  { %v16033_v47 = vpop.f32.mrf.mxu1  ;;  %9482 = vmax.xlane.f32.xlu0 %v9481_v44  ;;  %v19466_v52 = vpop.f32.mrf.mxu0 }
 0xe87   :  { %v9478_v35 = vsel %vm733_vm12, %v19466_v52, -inf  ;;  %v19488_v47 = vpop.permute.xlu1 %11594 }
 0xe88   :  { %v19470_v37 = vpop.f32.mrf.mxu1  ;;  %9479 = vmax.xlane.f32.xlu1 %v9478_v35  ;;  %v16028_v25 = vpop.f32.mrf.mxu0  ;;  %20717 = vst [vmem:[#allocation38_spill] sm:$0xff] %v19488_v47 }
 0xe89   :  { %v9487_v51 = vsel %vm733_vm12, %v19470_v37, -inf }
 0xe8a   :  { %v16043_v2 = vpop.f32.mrf.mxu1  ;;  %9488 = vmax.xlane.f32.xlu0 %v9487_v51  ;;  %v19476_v13 = vpop.f32.mrf.mxu0 }
 0xe8b   :  { %v9484_v54 = vsel %vm733_vm12, %v19476_v13, -inf  ;;  %v19494_v2 = vpop.permute.xlu0 %10758  ;;  %v19504_v63 = vpop.permute.xlu1 %11670 }
 0xe8c   :  { %v19482_v18 = vpop.f32.mrf.mxu1  ;;  %9485 = vmax.xlane.f32.xlu1 %v9484_v54  ;;  %v16038_v22 = vpop.f32.mrf.mxu0  ;;  %20718 = vst [vmem:[#allocation39_spill] sm:$0xff] %v19504_v63 }
 0xe8d   :  { %v9493_v60 = vsel %vm733_vm12, %v19482_v18, -inf }
 0xe8e   :  { %v16053_v59 = vpop.f32.mrf.mxu1  ;;  %9494 = vmax.xlane.f32.xlu0 %v9493_v60  ;;  %v19486_v44 = vpop.f32.mrf.mxu0 }
 0xe8f   :  { %v9490_v35 = vsel %vm733_vm12, %v19486_v44, -inf  ;;  %v19518_v30 = vpop.permute.xlu1 %11822 }
 0xe90   :  { %v19492_v25 = vpop.f32.mrf.mxu1  ;;  %9491 = vmax.xlane.f32.xlu1 %v9490_v35  ;;  %v16048_v51 = vpop.f32.mrf.mxu0  ;;  %20720 = vst [vmem:[#allocation41_spill] sm:$0xff] %v19518_v30 }
 0xe91   :  { %v9499_v54 = vsel %vm733_vm12, %v19492_v25, -inf }
 0xe92   :  { %v16063_v22 = vpop.f32.mrf.mxu1  ;;  %9500 = vmax.xlane.f32.xlu0 %v9499_v54  ;;  %v19498_v59 = vpop.f32.mrf.mxu0 }
 0xe93   :  { %v9496_v60 = vsel %vm733_vm12, %v19498_v59, -inf  ;;  %v19510_v22 = vpop.permute.xlu0 %10910 }
 0xe94   :  { %v19502_v5 = vpop.f32.mrf.mxu1  ;;  %9497 = vmax.xlane.f32.xlu1 %v9496_v60  ;;  %v16058_v62 = vpop.f32.mrf.mxu0  ;;  %20719 = vst [vmem:[#allocation40_spill] sm:$0xff] %v19510_v22 }
 0xe95   :  { %v9505_v35 = vsel %vm733_vm12, %v19502_v5, -inf }
 0xe96   :  { %v16073_v51 = vpop.f32.mrf.mxu1  ;;  %9506 = vmax.xlane.f32.xlu0 %v9505_v35  ;;  %v19508_v29 = vpop.f32.mrf.mxu0 }
 0xe97   :  { %v9502_v54 = vsel %vm733_vm12, %v19508_v29, -inf  ;;  %v19520_v63 = vpop.permute.xlu0 %11062  ;;  %v19522_v35 = vpop.permute.xlu1 %10834 }
 0xe98   :  { %v19514_v58 = vpop.f32.mrf.mxu1  ;;  %9503 = vmax.xlane.f32.xlu1 %v9502_v54  ;;  %v16068_v50 = vpop.f32.mrf.mxu0  ;;  %20721 = vst [vmem:[#allocation43_spill] sm:$0xff] %v19520_v63  ;;  %20722 = vst [vmem:[#allocation42_spill] sm:$0xff] %v19522_v35 }
 0xe9a   :  { %v19516_v60 = vpop.f32.mrf.mxu0  ;;  %v16083_v62 = vpop.f32.mrf.mxu1 }
 0xe9b   :  { %v19524_v51 = vpop.permute.xlu0 %11290  ;;  %v19526_v47 = vpop.permute.xlu1 %11442 }
 0xe9c   :  { %v16078_v53 = vpop.f32.mrf.mxu0  ;;  %20723 = vst [vmem:[#allocation55_spill] sm:$0xff] %v19524_v51  ;;  %20724 = vst [vmem:[#allocation56_spill] sm:$0xff] %v19526_v47 }
 0xe9f   :  { %v19528_v26 = vpop.permute.xlu0 %11746 }
 0xea0   :  { %20725 = vst [vmem:[#allocation57_spill] sm:$0xff] %v19528_v26 }
 0xeac   :  { %v9423_v43 = vpop.xlane.xlu1 %9422 }
 0xead   :  { %v9515_v54 = vsub.f32 %v19354_v21, %v9423_v43  ;;  %v9511_v21 = vsel %vm733_vm12, %v19514_v58, -inf }
 0xeae   :  { %v9420_v50 = vpop.xlane.xlu0 %9419 }
 0xeaf   :  { %v9548_v20 = vmul.f32 1.442695, %v9515_v54  ;;  %v9514_v62 = vsub.f32 %v19358_v0, %v9420_v50  ;;  %v9508_v0 = vsel %vm733_vm12, %v19516_v60, -inf }
 0xeb1   :  { %16639 = vpow2.f32 %v9548_v20  ;;  %v9546_v30 = vmul.f32 1.442695, %v9514_v62 }
 0xeb3   :  { %16641 = vpow2.f32 %v9546_v30 }
 0xeb4   :  { %v9429_v30 = vpop.xlane.xlu0 %9428 }
 0xeb8   :  { %v9426_v20 = vpop.xlane.xlu0 %9425 }
 0xeb9   :  { %v9516_v54 = vsub.f32 %v19366_v27, %v9426_v20 }
 0xebc   :  { %v9435_v43 = vpop.xlane.xlu0 %9434 }
 0xebd   :  { %v9519_v62 = vsub.f32 %v19368_v4, %v9435_v43 }
 0xebe   :  { %v19532_v53 = vpop.eup %16639 }
 0xebf   :  { %v9613_v49 = vsel %vm733_vm12, %v19532_v53, 0.0 }
 0xec0   :  { %v19536_v51 = vpop.eup %16641  ;;  %9614 = vadd.xlane.f32.xlu0 %v9613_v49  ;;  %v9432_v49 = vpop.xlane.xlu1 %9431 }
 0xec1   :  { %v9610_v26 = vsel %vm733_vm12, %v19536_v51, 0.0  ;;  %v9441_v47 = vpop.xlane.xlu0 %9440  ;;  %v9518_v24 = vsub.f32 %v19372_v34, %v9432_v49 }
 0xec2   :  { %9611 = vadd.xlane.f32.xlu1 %v9610_v26  ;;  %v9517_v26 = vsub.f32 %v19362_v61, %v9429_v30  ;;  %v9521_v63 = vsub.f32 %v19376_v1, %v9441_v47 }
 0xec3   :  { %v9554_v22 = vmul.f32 1.442695, %v9518_v24 }
 0xec4   :  { %9512 = vmax.xlane.f32.xlu0 %v9511_v21  ;;  %v9552_v50 = vmul.f32 1.442695, %v9517_v26  ;;  %v9438_v21 = vpop.xlane.xlu1 %9437  ;;  %v9560_v27 = vmul.f32 1.442695, %v9521_v63 }
 0xec5   :  { %v9520_v61 = vsub.f32 %v19380_v7, %v9438_v21 }
 0xec6   :  { %9509 = vmax.xlane.f32.xlu1 %v9508_v0  ;;  %v9550_v0 = vmul.f32 1.442695, %v9516_v54  ;;  %16643 = vpow2.f32 %v9552_v50 }
 0xec7   :  { %v9558_v43 = vmul.f32 1.442695, %v9520_v61 }
 0xec8   :  { %16645 = vpow2.f32 %v9550_v0 }
 0xed6   :  { %v9447_v35 = vpop.xlane.xlu0 %9446 }
 0xed7   :  { %11974 = vrot.lane.b32.xlu1 %v19084_v42, %s17263_s9  ;;  %v9556_v42 = vmul.f32 1.442695, %v9519_v62  ;;  %v9523_v30 = vsub.f32 %v19386_v57, %v9447_v35  ;;  %v19559_v35 = vpop.eup %16643 }
 0xed8   :  { %v19562_v54 = vpop.eup %16645  ;;  %v9619_v50 = vsel %vm733_vm12, %v19559_v35, 0.0 }
 0xed9   :  { %16647 = vpow2.f32 %v9556_v42  ;;  %v9564_v49 = vmul.f32 1.442695, %v9523_v30 }
 0xeda   :  { %11898 = vrot.lane.b32.xlu0 %v19088_v8, %s17263_s9  ;;  %v9444_v8 = vpop.xlane.xlu1 %9443  ;;  %16649 = vpow2.f32 %v9554_v22 }
 0xedb   :  { %v9522_v34 = vsub.f32 %v19390_v16, %v9444_v8  ;;  %16651 = vpow2.f32 %v9560_v27 }
 0xedc   :  { %16653 = vpow2.f32 %v9558_v43 }
 0xedd   :  { %v9562_v26 = vmul.f32 1.442695, %v9522_v34  ;;  %16655 = vpow2.f32 %v9564_v49 }
 0xede   :  { %v9453_v4 = vpop.xlane.xlu0 %9452 }
 0xedf   :  { %v9525_v1 = vsub.f32 %v19396_v39, %v9453_v4  ;;  %16657 = vpow2.f32 %v9562_v26 }
 0xee1   :  { %v9568_v63 = vmul.f32 1.442695, %v9525_v1 }
 0xee2   :  { %v9450_v20 = vpop.xlane.xlu1 %9449 }
 0xee3   :  { %v9524_v24 = vsub.f32 %v19400_v15, %v9450_v20  ;;  %16659 = vpow2.f32 %v9568_v63 }
 0xee5   :  { %v9566_v22 = vmul.f32 1.442695, %v9524_v24 }
 0xee6   :  { %v9459_v47 = vpop.xlane.xlu0 %9458  ;;  %v9456_v7 = vpop.xlane.xlu1 %9455 }
 0xee7   :  { %v9527_v57 = vsub.f32 %v19408_v45, %v9459_v47  ;;  %v9526_v16 = vsub.f32 %v19406_v12, %v9456_v7  ;;  %v19566_v62 = vpop.eup %16647  ;;  %16661 = vpow2.f32 %v9566_v22  ;;  %v9616_v45 = vsel %vm733_vm12, %v19562_v54, 0.0 }
 0xee8   :  { %v19570_v21 = vpop.eup %16649  ;;  %v9625_v12 = vsel %vm733_vm12, %v19566_v62, 0.0 }
 0xee9   :  { %v9572_v39 = vmul.f32 1.442695, %v9527_v57  ;;  %v9570_v15 = vmul.f32 1.442695, %v9526_v16  ;;  %v19574_v0 = vpop.eup %16651  ;;  %v9622_v42 = vsel %vm733_vm12, %v19570_v21, 0.0 }
 0xeea   :  { %v19578_v8 = vpop.eup %16653  ;;  %v9631_v61 = vsel %vm733_vm12, %v19574_v0, 0.0 }
 0xeeb   :  { %16663 = vpow2.f32 %v9572_v39  ;;  %v19582_v27 = vpop.eup %16655  ;;  %v9628_v30 = vsel %vm733_vm12, %v19578_v8, 0.0 }
 0xeec   :  { %16665 = vpow2.f32 %v9570_v15  ;;  %v19586_v4 = vpop.eup %16657  ;;  %v9637_v34 = vsel %vm733_vm12, %v19582_v27, 0.0 }
 0xeed   :  { %v9634_v24 = vsel %vm733_vm12, %v19586_v4, 0.0 }
 0xef0   :  { %v19591_v49 = vpop.eup %16659 }
 0xef1   :  { %v9643_v22 = vsel %vm733_vm12, %v19591_v49, 0.0 }
 0xef4   :  { %v19596_v7 = vpop.eup %16661 }
 0xef5   :  { %v9640_v15 = vsel %vm733_vm12, %v19596_v7, 0.0 }
 0xef8   :  { %v19601_v16 = vpop.eup %16663 }
 0xef9   :  { %9620 = vadd.xlane.f32.xlu0 %v9619_v50 }
 0xefb   :  { %9617 = vadd.xlane.f32.xlu1 %v9616_v45  ;;  %v19606_v45 = vpop.eup %16665 }
 0xefd   :  { %9626 = vadd.xlane.f32.xlu0 %v9625_v12 }
 0xeff   :  { %9623 = vadd.xlane.f32.xlu1 %v9622_v42 }
 0xf01   :  { %9632 = vadd.xlane.f32.xlu0 %v9631_v61  ;;  %v9649_v61 = vsel %vm733_vm12, %v19601_v16, 0.0 }
 0xf03   :  { %9629 = vadd.xlane.f32.xlu1 %v9628_v30  ;;  %v9465_v20 = vpop.xlane.xlu0 %9464 }
 0xf04   :  { %v9529_v43 = vsub.f32 %v19428_v46, %v9465_v20 }
 0xf05   :  { %v9462_v1 = vpop.xlane.xlu1 %9461  ;;  %9638 = vadd.xlane.f32.xlu0 %v9637_v34 }
 0xf06   :  { %v9576_v47 = vmul.f32 1.442695, %v9529_v43  ;;  %v9528_v26 = vsub.f32 %v19434_v10, %v9462_v1 }
 0xf07   :  { %9635 = vadd.xlane.f32.xlu1 %v9634_v24  ;;  %v9471_v63 = vpop.xlane.xlu0 %9470 }
 0xf08   :  { %16667 = vpow2.f32 %v9576_v47  ;;  %v9574_v57 = vmul.f32 1.442695, %v9528_v26  ;;  %v9531_v46 = vsub.f32 %v19438_v55, %v9471_v63 }
 0xf09   :  { %v9468_v39 = vpop.xlane.xlu1 %9467  ;;  %9644 = vadd.xlane.f32.xlu0 %v9643_v22 }
 0xf0a   :  { %16669 = vpow2.f32 %v9574_v57  ;;  %v9580_v10 = vmul.f32 1.442695, %v9531_v46  ;;  %v9530_v50 = vsub.f32 %v19444_v28, %v9468_v39  ;;  %v9646_v28 = vsel %vm733_vm12, %v19606_v45, 0.0 }
 0xf0b   :  { %9641 = vadd.xlane.f32.xlu1 %v9640_v15  ;;  %v9477_v12 = vpop.xlane.xlu0 %9476 }
 0xf0c   :  { %16671 = vpow2.f32 %v9580_v10  ;;  %v9578_v55 = vmul.f32 1.442695, %v9530_v50  ;;  %v9533_v42 = vsub.f32 %v19450_v36, %v9477_v12 }
 0xf0d   :  { %v9474_v30 = vpop.xlane.xlu1 %9473  ;;  %9650 = vadd.xlane.f32.xlu0 %v9649_v61 }
 0xf0e   :  { %v9532_v20 = vsub.f32 %v19454_v40, %v9474_v30  ;;  %16673 = vpow2.f32 %v9578_v55  ;;  %v9584_v43 = vmul.f32 1.442695, %v9533_v42 }
 0xf0f   :  { %9647 = vadd.xlane.f32.xlu1 %v9646_v28  ;;  %v9483_v34 = vpop.xlane.xlu0 %9482 }
 0xf10   :  { %v9582_v1 = vmul.f32 1.442695, %v9532_v20  ;;  %v9535_v47 = vsub.f32 %v19460_v41, %v9483_v34 }
 0xf11   :  { %v9480_v26 = vpop.xlane.xlu1 %9479 }
 0xf12   :  { %16675 = vpow2.f32 %v9582_v1  ;;  %v9534_v36 = vsub.f32 %v19466_v52, %v9480_v26  ;;  %v9588_v24 = vmul.f32 1.442695, %v9535_v47 }
 0xf13   :  { %16677 = vpow2.f32 %v9584_v43  ;;  %v9489_v63 = vpop.xlane.xlu0 %9488 }
 0xf14   :  { %v9586_v57 = vmul.f32 1.442695, %v9534_v36  ;;  %v9537_v40 = vsub.f32 %v19470_v37, %v9489_v63 }
 0xf15   :  { %v19617_v46 = vpop.eup %16667  ;;  %v9486_v22 = vpop.xlane.xlu1 %9485 }
 0xf16   :  { %16679 = vpow2.f32 %v9586_v57  ;;  %v9536_v39 = vsub.f32 %v19476_v13, %v9486_v22  ;;  %v9655_v10 = vsel %vm733_vm12, %v19617_v46, 0.0  ;;  %v9592_v50 = vmul.f32 1.442695, %v9537_v40 }
 0xf17   :  { %v19622_v41 = vpop.eup %16669  ;;  %16681 = vpow2.f32 %v9588_v24  ;;  %9656 = vadd.xlane.f32.xlu1 %v9655_v10  ;;  %v9495_v52 = vpop.xlane.xlu0 %9494 }
 0xf18   :  { %v9590_v15 = vmul.f32 1.442695, %v9536_v39  ;;  %v9539_v12 = vsub.f32 %v19482_v18, %v9495_v52  ;;  %v9652_v37 = vsel %vm733_vm12, %v19622_v41, 0.0 }
 0xf19   :  { %v19627_v55 = vpop.eup %16671  ;;  %v9492_v42 = vpop.xlane.xlu1 %9491  ;;  %9653 = vadd.xlane.f32.xlu0 %v9652_v37 }
 0xf1a   :  { %16683 = vpow2.f32 %v9590_v15  ;;  %v9538_v13 = vsub.f32 %v19486_v44, %v9492_v42  ;;  %v9596_v61 = vmul.f32 1.442695, %v9539_v12  ;;  %v9661_v18 = vsel %vm733_vm12, %v19627_v55, 0.0 }
 0xf1b   :  { %v9501_v30 = vpop.xlane.xlu0 %9500  ;;  %v19630_v20 = vpop.eup %16673  ;;  %16685 = vpow2.f32 %v9592_v50 }
 0xf1c   :  { %v9594_v28 = vmul.f32 1.442695, %v9538_v13  ;;  %v9541_v43 = vsub.f32 %v19492_v25, %v9501_v30  ;;  %v9658_v26 = vsel %vm733_vm12, %v19630_v20, 0.0 }
 0xf1d   :  { %v9498_v34 = vpop.xlane.xlu1 %9497  ;;  %9662 = vadd.xlane.f32.xlu0 %v9661_v18 }
 0xf1e   :  { %16687 = vpow2.f32 %v9594_v28  ;;  %v9540_v1 = vsub.f32 %v19498_v59, %v9498_v34  ;;  %v9600_v24 = vmul.f32 1.442695, %v9541_v43 }
 0xf1f   :  { %v19636_v47 = vpop.eup %16675  ;;  %16689 = vpow2.f32 %v9596_v61  ;;  %v9507_v44 = vpop.xlane.xlu0 %9506 }
 0xf20   :  { %v19640_v36 = vpop.eup %16677  ;;  %v9598_v63 = vmul.f32 1.442695, %v9540_v1  ;;  %v9543_v25 = vsub.f32 %v19502_v5, %v9507_v44  ;;  %v9664_v57 = vsel %vm733_vm12, %v19636_v47, 0.0 }
 0xf21   :  { %v9504_v40 = vpop.xlane.xlu1 %9503  ;;  %9665 = vadd.xlane.f32.xlu1 %v9664_v57  ;;  %9659 = vadd.xlane.f32.xlu0 %v9658_v26  ;;  %v9667_v39 = vsel %vm733_vm12, %v19640_v36, 0.0 }
 0xf22   :  { %16691 = vpow2.f32 %v9598_v63  ;;  %v9542_v59 = vsub.f32 %v19508_v29, %v9504_v40  ;;  %v9604_v52 = vmul.f32 1.442695, %v9543_v25 }
 0xf23   :  { %v19646_v22 = vpop.eup %16679  ;;  %16693 = vpow2.f32 %v9600_v24 }
 0xf24   :  { %v19650_v10 = vpop.eup %16681  ;;  %v9602_v50 = vmul.f32 1.442695, %v9542_v59  ;;  %v9670_v5 = vsel %vm733_vm12, %v19646_v22, 0.0 }
 0xf25   :  { %9671 = vadd.xlane.f32.xlu1 %v9670_v5  ;;  %9668 = vadd.xlane.f32.xlu0 %v9667_v39  ;;  %v9673_v12 = vsel %vm733_vm12, %v19650_v10, 0.0 }
 0xf26   :  { %16695 = vpow2.f32 %v9602_v50 }
 0xf27   :  { %v19654_v15 = vpop.eup %16683  ;;  %16697 = vpow2.f32 %v9604_v52 }
 0xf28   :  { %v9676_v29 = vsel %vm733_vm12, %v19654_v15, 0.0  ;;  %v19660_v37 = vpop.eup %16685 }
 0xf29   :  { %9677 = vadd.xlane.f32.xlu1 %v9676_v29  ;;  %9674 = vadd.xlane.f32.xlu0 %v9673_v12  ;;  %v9679_v30 = vsel %vm733_vm12, %v19660_v37, 0.0 }
 0xf2b   :  { %v19662_v42 = vpop.eup %16687 }
 0xf2c   :  { %v19664_v13 = vpop.eup %16689  ;;  %v9682_v61 = vsel %vm733_vm12, %v19662_v42, 0.0 }
 0xf2d   :  { %9683 = vadd.xlane.f32.xlu1 %v9682_v61  ;;  %9680 = vadd.xlane.f32.xlu0 %v9679_v30  ;;  %v9685_v18 = vsel %vm733_vm12, %v19664_v13, 0.0 }
 0xf2f   :  { %v19670_v28 = vpop.eup %16691 }
 0xf30   :  { %v9688_v43 = vsel %vm733_vm12, %v19670_v28, 0.0  ;;  %v19676_v34 = vpop.eup %16693 }
 0xf31   :  { %9689 = vadd.xlane.f32.xlu1 %v9688_v43  ;;  %9686 = vadd.xlane.f32.xlu0 %v9685_v18  ;;  %v9691_v26 = vsel %vm733_vm12, %v19676_v34, 0.0 }
 0xf33   :  { %v19678_v1 = vpop.eup %16695 }
 0xf34   :  { %v9694_v44 = vsel %vm733_vm12, %v19678_v1, 0.0  ;;  %v19684_v24 = vpop.eup %16697 }
 0xf35   :  { %9695 = vadd.xlane.f32.xlu1 %v9694_v44  ;;  %9692 = vadd.xlane.f32.xlu0 %v9691_v26  ;;  %v9697_v63 = vsel %vm733_vm12, %v19684_v24, 0.0 }
 0xf39   :  { %9698 = vadd.xlane.f32.xlu0 %v9697_v63 }
 0xf49   :  { %v9615_v25 = vpop.xlane.xlu0 %9614 }
 0xf4a   :  { %16699 = vrcp.f32 %v9615_v25 }
 0xf4b   :  { %v9612_v57 = vpop.xlane.xlu1 %9611 }
 0xf4c   :  { %16701 = vrcp.f32 %v9612_v57 }
 0xf4d   :  { %v9513_v40 = vpop.xlane.xlu0 %9512 }
 0xf4e   :  { %v9545_v59 = vsub.f32 %v19514_v58, %v9513_v40 }
 0xf4f   :  { %v9510_v39 = vpop.xlane.xlu1 %9509 }
 0xf50   :  { %v9608_v52 = vmul.f32 1.442695, %v9545_v59  ;;  %v9544_v50 = vsub.f32 %v19516_v60, %v9510_v39 }
 0xf52   :  { %16703 = vpow2.f32 %v9608_v52  ;;  %v9606_v5 = vmul.f32 1.442695, %v9544_v50 }
 0xf54   :  { %16705 = vpow2.f32 %v9606_v5 }
 0xf57   :  { %v16700_v29 = vpop.eup %16699 }
 0xf58   :  { %v9709_v12 = vmul.f32 %v16700_v29, %v19532_v53  ;;  %v19716_v53 = vpop.permute.xlu1 %11974 }
 0xf59   :  { %v16702_v61 = vpop.eup %16701 }
 0xf5a   :  { %v9707_v30 = vmul.f32 %v16702_v61, %v19536_v51  ;;  %16092 = vmatmul.mubr.msk.f32.vlgmr.msra.gmra.mxu1 %vm733_vm12, %v9709_v12 }
 0xf5b   :  { %16100 = vmatpush3.msra.mxu1 %v19394_v33  ;;  %16101 = vmatprep.mubr.msk.f32.mxu1 %vm17261_vm11, %v20681_v17 }
 0xf5c   :  { %16087 = vmatmul.mubr.msk.f32.vlgmr.msra.gmra.mxu0 %vm733_vm12, %v9707_v30  ;;  %16109 = vmatprep.subr.mxu1 %v20681_v17 }
 0xf5d   :  { %16095 = vmatpush3.msra.mxu0 %v19420_v14  ;;  %16096 = vmatprep.mubr.msk.f32.mxu0 %vm17261_vm11, %v20681_v17  ;;  %v19714_v14 = vpop.permute.xlu0 %11898 }
 0xf5e   :  { %16104 = vmatprep.subr.mxu0 %v20681_v17 }
 0xf5f   :  { %v19702_v58 = vpop.eup %16703 }
 0xf60   :  { %v9703_v60 = vsel %vm733_vm12, %v19702_v58, 0.0 }
 0xf61   :  { %v19706_v33 = vpop.eup %16705  ;;  %9704 = vadd.xlane.f32.xlu0 %v9703_v60 }
 0xf62   :  { %v9700_v51 = vsel %vm733_vm12, %v19706_v33, 0.0 }
 0xf63   :  { %9701 = vadd.xlane.f32.xlu1 %v9700_v51 }
 0xf74   :  { %12126 = vrot.lane.b32.xlu1 %v19101_v9, %s17263_s9 }
 0xf77   :  { %12050 = vrot.lane.b32.xlu0 %v19110_v19, %s17263_s9 }
 0xf82   :  { %v9621_v43 = vpop.xlane.xlu0 %9620 }
 0xf83   :  { %16707 = vrcp.f32 %v9621_v43 }
 0xf84   :  { %v9618_v18 = vpop.xlane.xlu1 %9617 }
 0xf85   :  { %16709 = vrcp.f32 %v9618_v18 }
 0xf86   :  { %v9627_v44 = vpop.xlane.xlu0 %9626 }
 0xf87   :  { %16711 = vrcp.f32 %v9627_v44 }
 0xf88   :  { %v9624_v26 = vpop.xlane.xlu1 %9623 }
 0xf89   :  { %16713 = vrcp.f32 %v9624_v26 }
 0xf8a   :  { %v9633_v63 = vpop.xlane.xlu0 %9632 }
 0xf8b   :  { %16715 = vrcp.f32 %v9633_v63 }
 0xf8c   :  { %v9630_v25 = vpop.xlane.xlu1 %9629 }
 0xf8d   :  { %16717 = vrcp.f32 %v9630_v25 }
 0xf8e   :  { %v9639_v9 = vpop.xlane.xlu0 %9638 }
 0xf8f   :  { %16719 = vrcp.f32 %v9639_v9  ;;  %v20728_v9 = vld [vmem:[#allocation43_spill] sm:$0xff] }
 0xf90   :  { %v16708_v57 = vpop.eup %16707  ;;  %v9636_v19 = vpop.xlane.xlu1 %9635 }
 0xf91   :  { %v9713_v40 = vmul.f32 %v16708_v57, %v19559_v35  ;;  %16721 = vrcp.f32 %v9636_v19 }
 0xf92   :  { %v16710_v59 = vpop.eup %16709  ;;  %v9645_v39 = vpop.xlane.xlu0 %9644 }
 0xf93   :  { %v9711_v52 = vmul.f32 %v16710_v59, %v19562_v54  ;;  %16723 = vrcp.f32 %v9645_v39  ;;  %16102 = vmatmul.mubr.msk.f32.vlgmr.msra.gmra.mxu1 %vm733_vm12, %v9713_v40 }
 0xf94   :  { %v16712_v50 = vpop.eup %16711  ;;  %16110 = vmatpush3.msra.mxu1 %v19430_v48  ;;  %v9642_v5 = vpop.xlane.xlu1 %9641  ;;  %16111 = vmatprep.mubr.msk.f32.mxu1 %vm17261_vm11, %v20681_v17 }
 0xf95   :  { %v9717_v29 = vmul.f32 %v16712_v50, %v19566_v62  ;;  %16725 = vrcp.f32 %v9642_v5  ;;  %16097 = vmatmul.mubr.msk.f32.vlgmr.msra.gmra.mxu0 %vm733_vm12, %v9711_v52  ;;  %16119 = vmatprep.subr.mxu1 %v20681_v17  ;;  %v20730_v52 = vld [vmem:[#allocation53_spill] sm:$0xff] }
 0xf96   :  { %v16714_v35 = vpop.eup %16713  ;;  %16105 = vmatpush3.msra.mxu0 %v19424_v31  ;;  %v9651_v54 = vpop.xlane.xlu0 %9650  ;;  %16106 = vmatprep.mubr.msk.f32.mxu0 %vm17261_vm11, %v20681_v17 }
 0xf97   :  { %v9715_v48 = vmul.f32 %v16714_v35, %v19570_v21  ;;  %16727 = vrcp.f32 %v9651_v54  ;;  %16112 = vmatmul.mubr.msk.f32.vlgmr.msra.gmra.mxu1 %vm733_vm12, %v9717_v29  ;;  %16114 = vmatprep.subr.mxu0 %v20681_v17 }
 0xf98   :  { %v16716_v62 = vpop.eup %16715  ;;  %16120 = vmatpush3.msra.mxu1 %v19446_v32  ;;  %v9648_v12 = vpop.xlane.xlu1 %9647  ;;  %16121 = vmatprep.mubr.msk.f32.mxu1 %vm17261_vm11, %v20681_v17 }
 0xf99   :  { %v9721_v31 = vmul.f32 %v16716_v62, %v19574_v0  ;;  %16729 = vrcp.f32 %v9648_v12  ;;  %16107 = vmatmul.mubr.msk.f32.vlgmr.msra.gmra.mxu0 %vm733_vm12, %v9715_v48  ;;  %16129 = vmatprep.subr.mxu1 %v20681_v17  ;;  %v20731_v48 = vld [vmem:[#allocation52_spill] sm:$0xff] }
 0xf9a   :  { %v16718_v21 = vpop.eup %16717  ;;  %16115 = vmatpush3.msra.mxu0 %v19404_v3  ;;  %16116 = vmatprep.mubr.msk.f32.mxu0 %vm17261_vm11, %v20681_v17 }
 0xf9b   :  { %v9719_v61 = vmul.f32 %v16718_v21, %v19578_v8  ;;  %16122 = vmatmul.mubr.msk.f32.vlgmr.msra.gmra.mxu1 %vm733_vm12, %v9721_v31  ;;  %16124 = vmatprep.subr.mxu0 %v20681_v17 }
 0xf9c   :  { %v16720_v32 = vpop.eup %16719  ;;  %16130 = vmatpush3.msra.mxu1 %v19462_v56  ;;  %16131 = vmatprep.mubr.msk.f32.mxu1 %vm17261_vm11, %v20681_v17 }
 0xf9d   :  { %v9725_v0 = vmul.f32 %v16720_v32, %v19582_v27  ;;  %16117 = vmatmul.mubr.msk.f32.vlgmr.msra.gmra.mxu0 %vm733_vm12, %v9719_v61  ;;  %16139 = vmatprep.subr.mxu1 %v20681_v17  ;;  %v20732_v32 = vld [vmem:[#allocation55_spill] sm:$0xff] }
 0xf9e   :  { %v16722_v3 = vpop.eup %16721  ;;  %16125 = vmatpush3.msra.mxu0 %v19414_v23  ;;  %16126 = vmatprep.mubr.msk.f32.mxu0 %vm17261_vm11, %v20681_v17 }
 0xf9f   :  { %v9723_v8 = vmul.f32 %v16722_v3, %v19586_v4  ;;  %16132 = vmatmul.mubr.msk.f32.vlgmr.msra.gmra.mxu1 %vm733_vm12, %v9725_v0  ;;  %16134 = vmatprep.subr.mxu0 %v20681_v17  ;;  %v20733_v0 = vld [vmem:[#allocation37_spill] sm:$0xff] }
 0xfa0   :  { %v16724_v56 = vpop.eup %16723  ;;  %16140 = vmatpush3.msra.mxu1 %v19478_v38  ;;  %v9657_v27 = vpop.xlane.xlu1 %9656  ;;  %16141 = vmatprep.mubr.msk.f32.mxu1 %vm17261_vm11, %v20681_v17 }
 0xfa1   :  { %v9729_v30 = vmul.f32 %v16724_v56, %v19591_v49  ;;  %16731 = vrcp.f32 %v9657_v27  ;;  %16127 = vmatmul.mubr.msk.f32.vlgmr.msra.gmra.mxu0 %vm733_vm12, %v9723_v8  ;;  %16149 = vmatprep.subr.mxu1 %v20681_v17  ;;  %v20735_v56 = vld [vmem:[#allocation36_spill] sm:$0xff] }
 0xfa2   :  { %v16726_v23 = vpop.eup %16725  ;;  %16135 = vmatpush3.msra.mxu0 %v19416_v6  ;;  %v9654_v4 = vpop.xlane.xlu0 %9653  ;;  %16136 = vmatprep.mubr.msk.f32.mxu0 %vm17261_vm11, %v20681_v17 }
 0xfa3   :  { %v9727_v38 = vmul.f32 %v16726_v23, %v19596_v7  ;;  %16733 = vrcp.f32 %v9654_v4  ;;  %16142 = vmatmul.mubr.msk.f32.vlgmr.msra.gmra.mxu1 %vm733_vm12, %v9729_v30  ;;  %16144 = vmatprep.subr.mxu0 %v20681_v17 }
 0xfa4   :  { %v16728_v49 = vpop.eup %16727  ;;  %16150 = vmatpush3.msra.mxu1 %v19494_v2  ;;  %16151 = vmatprep.mubr.msk.f32.mxu1 %vm17261_vm11, %v20681_v17  ;;  %v20726_v2 = vld [vmem:[#allocation40_spill] sm:$0xff] }
 0xfa5   :  { %v9733_v60 = vmul.f32 %v16728_v49, %v19601_v16  ;;  %16137 = vmatmul.mubr.msk.f32.vlgmr.msra.gmra.mxu0 %vm733_vm12, %v9727_v38  ;;  %16159 = vmatprep.subr.mxu1 %v20681_v17  ;;  %v20736_v38 = vld [vmem:[#allocation38_spill] sm:$0xff] }
 0xfa6   :  { %v16730_v6 = vpop.eup %16729  ;;  %16145 = vmatpush3.msra.mxu0 %v19418_v11  ;;  %v9663_v7 = vpop.xlane.xlu0 %9662  ;;  %16146 = vmatprep.mubr.msk.f32.mxu0 %vm17261_vm11, %v20681_v17  ;;  %v20727_v11 = vld [vmem:[#allocation42_spill] sm:$0xff] }
 0xfa7   :  { %v9731_v51 = vmul.f32 %v16730_v6, %v19606_v45  ;;  %16735 = vrcp.f32 %v9663_v7  ;;  %16152 = vmatmul.mubr.msk.f32.vlgmr.msra.gmra.mxu1 %vm733_vm12, %v9733_v60  ;;  %16154 = vmatprep.subr.mxu0 %v20681_v17  ;;  %v20738_v7 = vld [vmem:[#allocation57_spill] sm:$0xff] }
 0xfa8   :  { %16160 = vmatpush3.msra.mxu1 %v20726_v2  ;;  %16161 = vmatprep.mubr.msk.f32.mxu1 %vm17261_vm11, %v20681_v17 }
 0xfa9   :  { %16147 = vmatmul.mubr.msk.f32.vlgmr.msra.gmra.mxu0 %vm733_vm12, %v9731_v51  ;;  %16169 = vmatprep.subr.mxu1 %v20681_v17 }
 0xfaa   :  { %16155 = vmatpush3.msra.mxu0 %v20727_v11  ;;  %v9666_v16 = vpop.xlane.xlu1 %9665  ;;  %v9660_v43 = vpop.xlane.xlu0 %9659  ;;  %16156 = vmatprep.mubr.msk.f32.mxu0 %vm17261_vm11, %v20681_v17 }
 0xfab   :  { %16164 = vmatprep.subr.mxu0 %v20681_v17  ;;  %16737 = vrcp.f32 %v9660_v43 }
 0xfac   :  { %16739 = vrcp.f32 %v9666_v16 }
 0xfae   :  { %v16732_v45 = vpop.eup %16731  ;;  %v9672_v18 = vpop.xlane.xlu1 %9671 }
 0xfaf   :  { %v9669_v44 = vpop.xlane.xlu0 %9668  ;;  %v9737_v26 = vmul.f32 %v16732_v45, %v19617_v46  ;;  %v20729_v46 = vld [vmem:[#allocation51_spill] sm:$0xff] }
 0xfb0   :  { %v16734_v63 = vpop.eup %16733  ;;  %16741 = vrcp.f32 %v9669_v44 }
 0xfb1   :  { %v9735_v25 = vmul.f32 %v16734_v63, %v19622_v41  ;;  %16162 = vmatmul.mubr.msk.f32.vlgmr.msra.gmra.mxu1 %vm733_vm12, %v9737_v26  ;;  %16743 = vrcp.f32 %v9672_v18 }
 0xfb2   :  { %16170 = vmatpush3.msra.mxu1 %v20728_v9  ;;  %v9678_v57 = vpop.xlane.xlu1 %9677  ;;  %16171 = vmatprep.mubr.msk.f32.mxu1 %vm17261_vm11, %v20681_v17 }
 0xfb3   :  { %v9675_v19 = vpop.xlane.xlu0 %9674  ;;  %16157 = vmatmul.mubr.msk.f32.vlgmr.msra.gmra.mxu0 %vm733_vm12, %v9735_v25  ;;  %16179 = vmatprep.subr.mxu1 %v20681_v17 }
 0xfb4   :  { %v16736_v40 = vpop.eup %16735  ;;  %16745 = vrcp.f32 %v9675_v19  ;;  %16165 = vmatpush3.msra.mxu0 %v20729_v46  ;;  %16166 = vmatprep.mubr.msk.f32.mxu0 %vm17261_vm11, %v20681_v17 }
 0xfb5   :  { %v9741_v41 = vmul.f32 %v16736_v40, %v19627_v55  ;;  %16174 = vmatprep.subr.mxu0 %v20681_v17  ;;  %16747 = vrcp.f32 %v9678_v57 }
 0xfb6   :  { %v9684_v59 = vpop.xlane.xlu1 %9683 }
 0xfb7   :  { %v9681_v39 = vpop.xlane.xlu0 %9680  ;;  %16172 = vmatmul.mubr.msk.f32.vlgmr.msra.gmra.mxu1 %vm733_vm12, %v9741_v41 }
 0xfb8   :  { %16749 = vrcp.f32 %v9681_v39  ;;  %16180 = vmatpush3.msra.mxu1 %v20730_v52  ;;  %16181 = vmatprep.mubr.msk.f32.mxu1 %vm17261_vm11, %v20681_v17  ;;  %v16738_v50 = vpop.eup %16737 }
 0xfb9   :  { %16189 = vmatprep.subr.mxu1 %v20681_v17  ;;  %v9739_v5 = vmul.f32 %v16738_v50, %v19630_v20  ;;  %16751 = vrcp.f32 %v9684_v59  ;;  %v16740_v35 = vpop.eup %16739 }
 0xfba   :  { %v9690_v55 = vpop.xlane.xlu1 %9689  ;;  %v9743_v62 = vmul.f32 %v16740_v35, %v19636_v47 }
 0xfbb   :  { %v9687_v29 = vpop.xlane.xlu0 %9686  ;;  %16167 = vmatmul.mubr.msk.f32.vlgmr.msra.gmra.mxu0 %vm733_vm12, %v9739_v5 }
 0xfbc   :  { %16753 = vrcp.f32 %v9687_v29  ;;  %16175 = vmatpush3.msra.mxu0 %v20731_v48  ;;  %16176 = vmatprep.mubr.msk.f32.mxu0 %vm17261_vm11, %v20681_v17 }
 0xfbd   :  { %v16742_v54 = vpop.eup %16741  ;;  %16755 = vrcp.f32 %v9690_v55  ;;  %16184 = vmatprep.subr.mxu0 %v20681_v17 }
 0xfbe   :  { %v9745_v12 = vmul.f32 %v16742_v54, %v19640_v36  ;;  %v16744_v31 = vpop.eup %16743  ;;  %v9696_v21 = vpop.xlane.xlu1 %9695 }
 0xfbf   :  { %v9693_v20 = vpop.xlane.xlu0 %9692  ;;  %16177 = vmatmul.mubr.msk.f32.vlgmr.msra.gmra.mxu0 %vm733_vm12, %v9743_v62  ;;  %v9747_v47 = vmul.f32 %v16744_v31, %v19646_v22 }
 0xfc0   :  { %16757 = vrcp.f32 %v9693_v20  ;;  %16182 = vmatmul.mubr.msk.f32.vlgmr.msra.gmra.mxu1 %vm733_vm12, %v9745_v12  ;;  %16185 = vmatpush3.msra.mxu0 %v20732_v32 }
 0xfc1   :  { %v16746_v61 = vpop.eup %16745  ;;  %16190 = vmatpush3.msra.mxu1 %v20733_v0  ;;  %16759 = vrcp.f32 %v9696_v21  ;;  %16186 = vmatprep.mubr.msk.f32.mxu0 %vm17261_vm11, %v20681_v17 }
 0xfc2   :  { %v9749_v36 = vmul.f32 %v16746_v61, %v19650_v10  ;;  %16191 = vmatprep.mubr.msk.f32.mxu1 %vm17261_vm11, %v20681_v17  ;;  %v16748_v8 = vpop.eup %16747  ;;  %16194 = vmatprep.subr.mxu0 %v20681_v17  ;;  %v20734_v10 = vld [vmem:[#allocation56_spill] sm:$0xff] }
 0xfc3   :  { %v9699_v3 = vpop.xlane.xlu0 %9698  ;;  %16199 = vmatprep.subr.mxu1 %v20681_v17  ;;  %16187 = vmatmul.mubr.msk.f32.vlgmr.msra.gmra.mxu0 %vm733_vm12, %v9747_v47  ;;  %v9751_v27 = vmul.f32 %v16748_v8, %v19654_v15  ;;  %v20737_v15 = vld [vmem:[#allocation39_spill] sm:$0xff] }
 0xfc4   :  { %16761 = vrcp.f32 %v9699_v3  ;;  %16192 = vmatmul.mubr.msk.f32.vlgmr.msra.gmra.mxu1 %vm733_vm12, %v9749_v36  ;;  %16195 = vmatpush3.msra.mxu0 %v20734_v10  ;;  %v14960_v8 = vld [vmem:[%s20693_s20 + $0x38] sm:$0xff] }
 0xfc5   :  { %v16750_v22 = vpop.eup %16749  ;;  %16200 = vmatpush3.msra.mxu1 %v20735_v56  ;;  %16196 = vmatprep.mubr.msk.f32.mxu0 %vm17261_vm11, %v20681_v17  ;;  %v14959_v56 = vld [vmem:[%s20693_s20 + $0x30] sm:$0xff] }
 0xfc6   :  { %v9753_v30 = vmul.f32 %v16750_v22, %v19660_v37  ;;  %16201 = vmatprep.mubr.msk.f32.mxu1 %vm17261_vm11, %v20681_v17  ;;  %v16752_v23 = vpop.eup %16751  ;;  %16204 = vmatprep.subr.mxu0 %v20681_v17 }
 0xfc7   :  { %16209 = vmatprep.subr.mxu1 %v20681_v17  ;;  %16197 = vmatmul.mubr.msk.f32.vlgmr.msra.gmra.mxu0 %vm733_vm12, %v9751_v27  ;;  %v9755_v37 = vmul.f32 %v16752_v23, %v19662_v42  ;;  %v20739_v42 = vld [vmem:[#allocation41_spill] sm:$0xff] }
 0xfc8   :  { %16202 = vmatmul.mubr.msk.f32.vlgmr.msra.gmra.mxu1 %vm733_vm12, %v9753_v30  ;;  %16205 = vmatpush3.msra.mxu0 %v20736_v38  ;;  %v14958_v27 = vld [vmem:[%s20693_s20 + $0x28] sm:$0xff]  ;;  %v14957_v38 = vld [vmem:[%s20693_s20 + $0x20] sm:$0xff] }
 0xfc9   :  { %v16754_v4 = vpop.eup %16753  ;;  %16210 = vmatpush3.msra.mxu1 %v20737_v15  ;;  %16206 = vmatprep.mubr.msk.f32.mxu0 %vm17261_vm11, %v20681_v17 }
 0xfca   :  { %v9757_v49 = vmul.f32 %v16754_v4, %v19664_v13  ;;  %16211 = vmatprep.mubr.msk.f32.mxu1 %vm17261_vm11, %v20681_v17  ;;  %v16756_v60 = vpop.eup %16755  ;;  %16214 = vmatprep.subr.mxu0 %v20681_v17 }
 0xfcb   :  { %16219 = vmatprep.subr.mxu1 %v20681_v17  ;;  %16207 = vmatmul.mubr.msk.f32.vlgmr.msra.gmra.mxu0 %vm733_vm12, %v9755_v37  ;;  %v9759_v13 = vmul.f32 %v16756_v60, %v19670_v28 }
 0xfcc   :  { %16212 = vmatmul.mubr.msk.f32.vlgmr.msra.gmra.mxu1 %vm733_vm12, %v9757_v49  ;;  %16215 = vmatpush3.msra.mxu0 %v20738_v7 }
 0xfcd   :  { %v16758_v6 = vpop.eup %16757  ;;  %16220 = vmatpush3.msra.mxu1 %v20739_v42  ;;  %16216 = vmatprep.mubr.msk.f32.mxu0 %vm17261_vm11, %v20681_v17 }
 0xfce   :  { %v9761_v51 = vmul.f32 %v16758_v6, %v19676_v34  ;;  %16221 = vmatprep.mubr.msk.f32.mxu1 %vm17261_vm11, %v20681_v17  ;;  %v16760_v2 = vpop.eup %16759  ;;  %16224 = vmatprep.subr.mxu0 %v20681_v17 }
 0xfcf   :  { %16229 = vmatprep.subr.mxu1 %v20681_v17  ;;  %16217 = vmatmul.mubr.msk.f32.vlgmr.msra.gmra.mxu0 %vm733_vm12, %v9759_v13  ;;  %v9763_v34 = vmul.f32 %v16760_v2, %v19678_v1 }
 0xfd0   :  { %16222 = vmatmul.mubr.msk.f32.vlgmr.msra.gmra.mxu1 %vm733_vm12, %v9761_v51  ;;  %16225 = vmatpush3.msra.mxu0 %v19714_v14 }
 0xfd1   :  { %v16762_v11 = vpop.eup %16761  ;;  %16230 = vmatpush3.msra.mxu1 %v19716_v53  ;;  %16226 = vmatprep.mubr.msk.f32.mxu0 %vm17261_vm11, %v20681_v17 }
 0xfd2   :  { %v9765_v28 = vmul.f32 %v16762_v11, %v19684_v24  ;;  %16231 = vmatprep.mubr.msk.f32.mxu1 %vm17261_vm11, %v20681_v17  ;;  %16234 = vmatprep.subr.mxu0 %v20681_v17 }
 0xfd3   :  { %16239 = vmatprep.subr.mxu1 %v20681_v17  ;;  %16227 = vmatmul.mubr.msk.f32.vlgmr.msra.gmra.mxu0 %vm733_vm12, %v9763_v34 }
 0xfd4   :  { %16232 = vmatmul.mubr.msk.f32.vlgmr.msra.gmra.mxu1 %vm733_vm12, %v9765_v28  ;;  %16236 = vmatprep.mubr.msk.f32.mxu0 %vm17261_vm11, %v20681_v17 }
 0xfd5   :  { %16241 = vmatprep.mubr.msk.f32.mxu1 %vm17261_vm11, %v20681_v17 }
 0xfea   :  { %v9705_v1 = vpop.xlane.xlu0 %9704 }
 0xfeb   :  { %16763 = vrcp.f32 %v9705_v1 }
 0xfec   :  { %v9702_v24 = vpop.xlane.xlu1 %9701 }
 0xfed   :  { %16765 = vrcp.f32 %v9702_v24 }
 0xfee   :  { %v12051_v14 = vpop.permute.xlu0 %12050 }
 0xfef   :  { %16235 = vmatpush3.msra.mxu0 %v12051_v14 }
 0xff0   :  { %v12127_v53 = vpop.permute.xlu1 %12126  ;;  %16244 = vmatprep.subr.mxu0 %v14960_v8 }
 0xff1   :  { %16240 = vmatpush3.msra.mxu1 %v12127_v53 }
 0xff8   :  { %v16764_v16 = vpop.eup %16763 }
 0xff9   :  { %v9769_v43 = vmul.f32 %v16764_v16, %v19702_v58 }
 0xffa   :  { %v16766_v45 = vpop.eup %16765 }
 0xffb   :  { %v9767_v18 = vmul.f32 %v16766_v45, %v19706_v33  ;;  %16242 = vmatmul.mubr.msk.f32.vlgmr.msra.gmra.mxu1 %vm733_vm12, %v9769_v43 }
 0xffd   :  { %16237 = vmatmul.mubr.msk.f32.vlgmr.msra.gmra.mxu0 %vm733_vm12, %v9767_v18 }
 0xffe   :  { %16245 = vmatpush3.msra.mxu0 %v14960_v8 }
 0xfff   :  { %16246 = vmatprep.subr.mxu0 %v14959_v56 }
0x1000   :  { %16247 = vmatpush3.msra.mxu0 %v14959_v56 }
0x1001   :  { %16248 = vmatprep.subr.mxu0 %v14958_v27 }
0x1002   :  { %16249 = vmatpush3.msra.mxu0 %v14958_v27 }
0x1003   :  { %16250 = vmatprep.subr.mxu0 %v14957_v38 }
0x1004   :  { %16251 = vmatpush3.msra.mxu0 %v14957_v38 }
0x101a   :  { %v19886_v44 = vpop.f32.mrf.mxu1 }
0x101c   :  { %v19888_v26 = vpop.f32.mrf.mxu0  ;;  %v16093_v63 = vpop.f32.mrf.mxu1 }
0x101e   :  { %v16088_v25 = vpop.f32.mrf.mxu0 }
0x1053   :  { %v19890_v9 = vpop.f32.mrf.mxu1 }
0x1055   :  { %v19892_v57 = vpop.f32.mrf.mxu0  ;;  %v16103_v19 = vpop.f32.mrf.mxu1 }
0x1057   :  { %v16098_v40 = vpop.f32.mrf.mxu0  ;;  %v19894_v58 = vpop.f32.mrf.mxu1 }
0x1059   :  { %v19896_v46 = vpop.f32.mrf.mxu0  ;;  %v16113_v33 = vpop.f32.mrf.mxu1 }
0x105b   :  { %v16108_v41 = vpop.f32.mrf.mxu0  ;;  %v19898_v59 = vpop.f32.mrf.mxu1 }
0x105d   :  { %v19900_v39 = vpop.f32.mrf.mxu0  ;;  %v16123_v52 = vpop.f32.mrf.mxu1 }
0x105f   :  { %v16118_v50 = vpop.f32.mrf.mxu0  ;;  %v10526_v5 = vpop.f32.mrf.mxu1 }
0x1060   :  { %12212 = vrot.lane.b32.xlu1 %v10526_v5, %s17264_s11 }
0x1061   :  { %v10450_v55 = vpop.f32.mrf.mxu0  ;;  %v16133_v29 = vpop.f32.mrf.mxu1 }
0x1062   :  { %12210 = vrot.lane.b32.xlu0 %v10450_v55, %s17264_s11 }
0x1063   :  { %v16128_v35 = vpop.f32.mrf.mxu0  ;;  %v10678_v54 = vpop.f32.mrf.mxu1 }
0x1064   :  { %12216 = vrot.lane.b32.xlu1 %v10678_v54, %s17264_s11 }
0x1065   :  { %v10602_v48 = vpop.f32.mrf.mxu0  ;;  %v16143_v62 = vpop.f32.mrf.mxu1 }
0x1066   :  { %12214 = vrot.lane.b32.xlu0 %v10602_v48, %s17264_s11 }
0x1067   :  { %v16138_v12 = vpop.f32.mrf.mxu0  ;;  %v10830_v20 = vpop.f32.mrf.mxu1 }
0x1068   :  { %12220 = vrot.lane.b32.xlu1 %v10830_v20, %s17264_s11 }
0x1069   :  { %v10754_v31 = vpop.f32.mrf.mxu0  ;;  %v16153_v21 = vpop.f32.mrf.mxu1 }
0x106a   :  { %12218 = vrot.lane.b32.xlu0 %v10754_v31, %s17264_s11 }
0x106b   :  { %v16148_v61 = vpop.f32.mrf.mxu0 }
0x1071   :  { %v10982_v32 = vpop.f32.mrf.mxu1 }
0x1072   :  { %12224 = vrot.lane.b32.xlu1 %v10982_v32, %s17264_s11 }
0x1073   :  { %v10906_v0 = vpop.f32.mrf.mxu0  ;;  %v16163_v47 = vpop.f32.mrf.mxu1 }
0x1074   :  { %12222 = vrot.lane.b32.xlu0 %v10906_v0, %s17264_s11 }
0x1075   :  { %v16158_v36 = vpop.f32.mrf.mxu0 }
0x1077   :  { %v11134_v3 = vpop.f32.mrf.mxu1 }
0x1078   :  { %12244 = vrot.lane.b32.xlu1 %v11134_v3, %s17241_s6 }
0x1079   :  { %v16173_v22 = vpop.f32.mrf.mxu1 }
0x107b   :  { %v11058_v10 = vpop.f32.mrf.mxu0 }
0x107c   :  { %12242 = vrot.lane.b32.xlu0 %v11058_v10, %s17241_s6 }
0x107d   :  { %v16168_v30 = vpop.f32.mrf.mxu0 }
0x107f   :  { %v11210_v23 = vpop.f32.mrf.mxu0 }
0x1080   :  { %v11286_v4 = vpop.f32.mrf.mxu1  ;;  %12246 = vrot.lane.b32.xlu0 %v11210_v23, %s17241_s6 }
0x1081   :  { %12248 = vrot.lane.b32.xlu1 %v11286_v4, %s17241_s6  ;;  %v16178_v15 = vpop.f32.mrf.mxu0 }
0x1082   :  { %v16183_v37 = vpop.f32.mrf.mxu1 }
0x1083   :  { %v11362_v49 = vpop.f32.mrf.mxu0 }
0x1084   :  { %v11438_v60 = vpop.f32.mrf.mxu1  ;;  %12250 = vrot.lane.b32.xlu0 %v11362_v49, %s17241_s6 }
0x1085   :  { %12252 = vrot.lane.b32.xlu1 %v11438_v60, %s17241_s6  ;;  %v16188_v6 = vpop.f32.mrf.mxu0 }
0x1086   :  { %v16193_v7 = vpop.f32.mrf.mxu1 }
0x1087   :  { %v11514_v42 = vpop.f32.mrf.mxu0 }
0x1088   :  { %v11590_v13 = vpop.f32.mrf.mxu1  ;;  %12254 = vrot.lane.b32.xlu0 %v11514_v42, %s17241_s6 }
0x1089   :  { %12256 = vrot.lane.b32.xlu1 %v11590_v13, %s17241_s6  ;;  %v16198_v51 = vpop.f32.mrf.mxu0 }
0x108a   :  { %v16203_v2 = vpop.f32.mrf.mxu1 }
0x108b   :  { %v11666_v11 = vpop.f32.mrf.mxu0 }
0x108c   :  { %v11742_v28 = vpop.f32.mrf.mxu1  ;;  %12274 = vrot.lane.b32.xlu0 %v11666_v11, %s17265_s12 }
0x108d   :  { %12276 = vrot.lane.b32.xlu1 %v11742_v28, %s17265_s12  ;;  %v16208_v34 = vpop.f32.mrf.mxu0 }
0x108e   :  { %v16213_v1 = vpop.f32.mrf.mxu1 }
0x108f   :  { %v11818_v24 = vpop.f32.mrf.mxu0  ;;  %v14961_v1 = vld [vmem:[#allocation5 + $0x1] ss:$0 sm:$0xff] }
0x1090   :  { %v11894_v14 = vpop.f32.mrf.mxu1  ;;  %12278 = vrot.lane.b32.xlu0 %v11818_v24, %s17265_s12 }
0x1091   :  { %12280 = vrot.lane.b32.xlu1 %v11894_v14, %s17265_s12  ;;  %v16218_v53 = vpop.f32.mrf.mxu0 }
0x1092   :  { %v16223_v16 = vpop.f32.mrf.mxu1  ;;  %v20740_v53 = vld [vmem:[#allocation46_spill] sm:$0xff] }
0x1093   :  { %v11970_v43 = vpop.f32.mrf.mxu0 }
0x1094   :  { %v12046_v45 = vpop.f32.mrf.mxu1  ;;  %12282 = vrot.lane.b32.xlu0 %v11970_v43, %s17265_s12 }
0x1095   :  { %12284 = vrot.lane.b32.xlu1 %v12046_v45, %s17265_s12  ;;  %v16228_v18 = vpop.f32.mrf.mxu0  ;;  %v20741_v45 = vld [vmem:[#allocation44_spill] sm:$0xff] }
0x1096   :  { %v16233_v63 = vpop.f32.mrf.mxu1 }
0x10bb   :  { %v12198_v25 = vpop.f32.mrf.mxu1 }
0x10bc   :  { %12288 = vrot.lane.b32.xlu1 %v12198_v25, %s17265_s12 }
0x10bd   :  { %v12122_v19 = vpop.f32.mrf.mxu0  ;;  %v16243_v40 = vpop.f32.mrf.mxu1 }
0x10be   :  { %12286 = vrot.lane.b32.xlu0 %v12122_v19, %s17265_s12  ;;  %s17267_s12 = smov 80  }
0x10bf   :  { %v16238_v33 = vpop.f32.mrf.mxu0 }
0x10d2   :  { %v12213_v41 = vpop.permute.xlu1 %12212 }
0x10d3   :  { %v12299_v0 = vsel %vm733_vm12, %v19886_v44, %v12213_v41 }
0x10d4   :  { %v12211_v52 = vpop.permute.xlu0 %12210 }
0x10d5   :  { %v12298_v47 = vsel %vm733_vm12, %v19888_v26, %v12211_v52  ;;  %v20742_v52 = vld [vmem:[#allocation45_spill] sm:$0xff] }
0x10d6   :  { %v12217_v50 = vpop.permute.xlu1 %12216 }
0x10d7   :  { %v12301_v27 = vsel %vm733_vm12, %v19890_v9, %v12217_v50 }
0x10d8   :  { %v12215_v5 = vpop.permute.xlu0 %12214 }
0x10d9   :  { %v12300_v44 = vsel %vm733_vm12, %v19892_v57, %v12215_v5 }
0x10da   :  { %v12221_v55 = vpop.permute.xlu1 %12220 }
0x10db   :  { %v12303_v9 = vsel %vm733_vm12, %v19894_v58, %v12221_v55  ;;  %v20743_v55 = vld [vmem:[#allocation50_spill] sm:$0xff] }
0x10dc   :  { %v12219_v29 = vpop.permute.xlu0 %12218 }
0x10dd   :  { %v12302_v57 = vsel %vm733_vm12, %v19896_v46, %v12219_v29 }
0x10e4   :  { %v12225_v35 = vpop.permute.xlu1 %12224 }
0x10e5   :  { %v12305_v13 = vsel %vm733_vm12, %v19898_v59, %v12225_v35 }
0x10e6   :  { %v12223_v54 = vpop.permute.xlu0 %12222 }
0x10e7   :  { %v12304_v58 = vsel %vm733_vm12, %v19900_v39, %v12223_v54 }
0x10ea   :  { %v12245_v48 = vpop.permute.xlu1 %12244 }
0x10eb   :  { %v12307_v36 = vsel %vm6052_vm13, %v12299_v0, %v12245_v48 }
0x10ee   :  { %v12243_v62 = vpop.permute.xlu0 %12242 }
0x10ef   :  { %v12306_v3 = vsel %vm6052_vm13, %v12298_v47, %v12243_v62  ;;  %v20744_v62 = vld [vmem:[#allocation47_spill] sm:$0xff] }
0x10f2   :  { %v12247_v20 = vpop.permute.xlu0 %12246 }
0x10f3   :  { %v12249_v12 = vpop.permute.xlu1 %12248  ;;  %v12308_v30 = vsel %vm6052_vm13, %v12300_v44, %v12247_v20  ;;  %v20745_v20 = vld [vmem:[#allocation54_spill] sm:$0xff] }
0x10f4   :  { %v12309_v26 = vsel %vm6052_vm13, %v12301_v27, %v12249_v12 }
0x10f6   :  { %v12251_v21 = vpop.permute.xlu0 %12250 }
0x10f7   :  { %v12253_v31 = vpop.permute.xlu1 %12252  ;;  %v12310_v49 = vsel %vm6052_vm13, %v12302_v57, %v12251_v21 }
0x10f8   :  { %v12311_v37 = vsel %vm6052_vm13, %v12303_v9, %v12253_v31 }
0x10fa   :  { %v12255_v32 = vpop.permute.xlu0 %12254 }
0x10fb   :  { %v12257_v61 = vpop.permute.xlu1 %12256  ;;  %v12312_v51 = vsel %vm6052_vm13, %v12304_v58, %v12255_v32 }
0x10fc   :  { %v12313_v11 = vsel %vm6052_vm13, %v12305_v13, %v12257_v61 }
0x10fe   :  { %v12275_v22 = vpop.permute.xlu0 %12274 }
0x10ff   :  { %v12277_v8 = vpop.permute.xlu1 %12276  ;;  %v12314_v56 = vsel %vm6061_vm14, %v12306_v3, %v12275_v22  ;;  %v20746_v3 = vld [vmem:[#allocation49_spill] sm:$0xff] }
0x1100   :  { %v12315_v10 = vsel %vm6061_vm14, %v12307_v36, %v12277_v8  ;;  %16252 = vmatprep.mubr.msk.f32.mxu0 %vm545_vm10, %v12314_v56 }
0x1101   :  { %16253 = vmatmul.mubr.msk.f32.vlgmr.msra.gmra.mxu0 %vm545_vm10, %v12315_v10  ;;  %v20747_v10 = vld [vmem:[#allocation48_spill] sm:$0xff] }
0x1102   :  { %v12279_v4 = vpop.permute.xlu0 %12278 }
0x1103   :  { %v12281_v23 = vpop.permute.xlu1 %12280  ;;  %v12316_v15 = vsel %vm6061_vm14, %v12308_v30, %v12279_v4 }
0x1104   :  { %v12317_v38 = vsel %vm6061_vm14, %v12309_v26, %v12281_v23  ;;  %16255 = vmatprep.mubr.msk.f32.mxu0 %vm545_vm10, %v12316_v15 }
0x1105   :  { %16256 = vmatmul.mubr.msk.f32.gmra.mxu0 %vm545_vm10, %v12317_v38 }
0x1106   :  { %v12283_v6 = vpop.permute.xlu0 %12282 }
0x1107   :  { %v12285_v60 = vpop.permute.xlu1 %12284  ;;  %v12318_v42 = vsel %vm6061_vm14, %v12310_v49, %v12283_v6 }
0x1108   :  { %v12319_v7 = vsel %vm6061_vm14, %v12311_v37, %v12285_v60  ;;  %16258 = vmatprep.mubr.msk.f32.mxu0 %vm545_vm10, %v12318_v42 }
0x1109   :  { %16259 = vmatmul.mubr.msk.f32.gmra.mxu0 %vm545_vm10, %v12319_v7 }
0x112e   :  { %v12289_v46 = vpop.permute.xlu1 %12288 }
0x112f   :  { %v12321_v34 = vsel %vm6061_vm14, %v12313_v11, %v12289_v46 }
0x1130   :  { %v12287_v2 = vpop.permute.xlu0 %12286 }
0x1131   :  { %v12320_v28 = vsel %vm6061_vm14, %v12312_v51, %v12287_v2 }
0x1132   :  { %16261 = vmatprep.mubr.msk.f32.mxu0 %vm545_vm10, %v12320_v28 }
0x1133   :  { %16262 = vmatmul.mubr.msk.f32.gmra.mxu0 %vm545_vm10, %v12321_v34 }
0x11c1   :  { %v16254_v24 = vpop.f32.mrf.mxu0 }
0x11c2   :  { %v12431_v39 = vadd.f32 %v16254_v24, %v14961_v1 }
0x11c3   :  { %v12425_v14 = vpop.f32.mrf.mxu0 }
0x11c4   :  { %v12465_v16 = vadd.f32 %v12431_v39, %v20740_v53  ;;  %v12426_v59 = vadd.f32 %v14961_v1, %v12425_v14 }
0x11c5   :  { %v16257_v43 = vpop.f32.mrf.mxu0 }
0x11c6   :  { %v12464_v18 = vadd.f32 %v12426_v59, %v20741_v45  ;;  %v12479_v63 = vsel %vm545_vm10, %v12465_v16, 0.0  ;;  %v12441_v19 = vadd.f32 %v16257_v43, %v14961_v1  ;;  %v14975_v45 = vld [vmem:[%s20702_s18 + $0x38] sm:$0xff] }
0x11c7   :  { %12480 = vadd.xlane.f32.xlu1 %v12479_v63  ;;  %v12435_v25 = vpop.f32.mrf.mxu0  ;;  %16264 = vmatprep.subr.mxu1 %v14975_v45  ;;  %v14973_v63 = vld [vmem:[%s20702_s18 + $0x28] sm:$0xff] }
0x11c8   :  { %v12436_v40 = vadd.f32 %v14961_v1, %v12435_v25  ;;  %v12476_v33 = vsel %vm545_vm10, %v12464_v18, 0.0  ;;  %v12467_v29 = vadd.f32 %v12441_v19, %v20743_v55  ;;  %16265 = vmatpush3.msra.mxu1 %v14975_v45  ;;  %v14972_v25 = vld [vmem:[%s20702_s18 + $0x20] sm:$0xff] }
0x11c9   :  { %12477 = vadd.xlane.f32.xlu0 %v12476_v33  ;;  %v16260_v41 = vpop.f32.mrf.mxu0 }
0x11ca   :  { %v12466_v50 = vadd.f32 %v12436_v40, %v20742_v52  ;;  %v12451_v35 = vadd.f32 %v16260_v41, %v14961_v1  ;;  %v12485_v21 = vsel %vm545_vm10, %v12467_v29, 0.0 }
0x11cb   :  { %v12445_v5 = vpop.f32.mrf.mxu0 }
0x11cc   :  { %v12446_v54 = vadd.f32 %v14961_v1, %v12445_v5  ;;  %v12482_v48 = vsel %vm545_vm10, %v12466_v50, 0.0  ;;  %v12469_v31 = vadd.f32 %v12451_v35, %v20745_v20 }
0x11cd   :  { %12483 = vadd.xlane.f32.xlu0 %v12482_v48  ;;  %v14991_v48 = vld [vmem:[%s20703_s26 + $0x70] sm:$0xff] }
0x11ce   :  { %v12468_v12 = vadd.f32 %v12446_v54, %v20744_v62  ;;  %v12491_v32 = vsel %vm545_vm10, %v12469_v31, 0.0  ;;  %v14992_v54 = vld [vmem:[%s20703_s26 + $0x78] sm:$0xff]  ;;  %v14990_v62 = vld [vmem:[%s20703_s26 + $0x68] sm:$0xff] }
0x11cf   :  { %16284 = vmatprep.subr.mxu0 %v14992_v54 }
0x11d0   :  { %v12488_v61 = vsel %vm545_vm10, %v12468_v12, 0.0  ;;  %16285 = vmatpush3.msra.mxu0 %v14992_v54 }
0x11d1   :  { %12486 = vadd.xlane.f32.xlu0 %v12485_v21  ;;  %12489 = vadd.xlane.f32.xlu1 %v12488_v61 }
0x11d2   :  { %16286 = vmatprep.subr.mxu0 %v14991_v48 }
0x11d3   :  { %16287 = vmatpush3.msra.mxu0 %v14991_v48  ;;  %v14986_v48 = vld [vmem:[%s20703_s26 + $0x48] sm:$0xff] }
0x11d4   :  { %16288 = vmatprep.subr.mxu0 %v14990_v62 }
0x11d5   :  { %12492 = vadd.xlane.f32.xlu0 %v12491_v32  ;;  %16289 = vmatpush3.msra.mxu0 %v14990_v62  ;;  %v14985_v62 = vld [vmem:[%s20703_s26 + $0x40] sm:$0xff] }
0x11f3   :  { %v16263_v0 = vpop.f32.mrf.mxu0 }
0x11f4   :  { %v12461_v47 = vadd.f32 %v16263_v0, %v14961_v1 }
0x11f5   :  { %v12455_v36 = vpop.f32.mrf.mxu0 }
0x11f6   :  { %v12471_v8 = vadd.f32 %v12461_v47, %v20746_v3  ;;  %v12456_v22 = vadd.f32 %v14961_v1, %v12455_v36 }
0x11f8   :  { %v12470_v56 = vadd.f32 %v12456_v22, %v20747_v10  ;;  %v12497_v27 = vsel %vm545_vm10, %v12471_v8, 0.0 }
0x11f9   :  { %12498 = vadd.xlane.f32.xlu0 %v12497_v27 }
0x11fa   :  { %v12494_v44 = vsel %vm545_vm10, %v12470_v56, 0.0 }
0x11fb   :  { %12495 = vadd.xlane.f32.xlu1 %v12494_v44 }
0x1250   :  { %v12481_v26 = vpop.xlane.xlu1 %12480 }
0x1251   :  { %v12501_v30 = vmul.f32 0.03125, %v12481_v26 }
0x1252   :  { %v12478_v23 = vpop.xlane.xlu0 %12477 }
0x1253   :  { %v19994_v4 = vsub.f32 %v12465_v16, %v12501_v30  ;;  %v12500_v38 = vmul.f32 0.03125, %v12478_v23 }
0x1255   :  { %v19996_v15 = vsub.f32 %v12464_v18, %v12500_v38  ;;  %v12517_v9 = vmul.f32 %v19994_v4, %v19994_v4  ;;  %v14974_v18 = vld [vmem:[%s20702_s18 + $0x30] sm:$0xff] }
0x1256   :  { %v12484_v57 = vpop.xlane.xlu0 %12483  ;;  %16266 = vmatprep.subr.mxu1 %v14974_v18 }
0x1257   :  { %v12502_v37 = vmul.f32 0.03125, %v12484_v57  ;;  %v12527_v49 = vsel %vm545_vm10, %v12517_v9, 0.0  ;;  %v12516_v60 = vmul.f32 %v19996_v15, %v19996_v15  ;;  %16267 = vmatpush3.msra.mxu1 %v14974_v18  ;;  %v14970_v9 = vld [vmem:[#allocation7 + $0x1] ss:$0 sm:$0xff] }
0x1258   :  { %12528 = vadd.xlane.f32.xlu0 %v12527_v49  ;;  %16268 = vmatprep.subr.mxu1 %v14973_v63 }
0x1259   :  { %v20003_v6 = vsub.f32 %v12466_v50, %v12502_v37  ;;  %v12524_v7 = vsel %vm545_vm10, %v12516_v60, 0.0  ;;  %16269 = vmatpush3.msra.mxu1 %v14973_v63 }
0x125a   :  { %v12490_v42 = vpop.xlane.xlu1 %12489  ;;  %12525 = vadd.xlane.f32.xlu1 %v12524_v7  ;;  %v12487_v58 = vpop.xlane.xlu0 %12486  ;;  %16270 = vmatprep.subr.mxu1 %v14972_v25  ;;  %v14971_v7 = vld [vmem:[#allocation8 + $0x1] ss:$0 sm:$0xff] }
0x125b   :  { %v12504_v46 = vmul.f32 0.03125, %v12490_v42  ;;  %v12503_v13 = vmul.f32 0.03125, %v12487_v58  ;;  %v12518_v51 = vmul.f32 %v20003_v6, %v20003_v6  ;;  %16271 = vmatpush3.msra.mxu1 %v14972_v25 }
0x125c   :  { %16312 = vmatprep.subr.mxu1 %v20681_v17 }
0x125d   :  { %v20008_v2 = vsub.f32 %v12468_v12, %v12504_v46  ;;  %v20010_v11 = vsub.f32 %v12467_v29, %v12503_v13  ;;  %v12530_v28 = vsel %vm545_vm10, %v12518_v51, 0.0  ;;  %v14989_v12 = vld [vmem:[%s20703_s26 + $0x60] sm:$0xff] }
0x125e   :  { %12531 = vadd.xlane.f32.xlu1 %v12530_v28  ;;  %v12493_v34 = vpop.xlane.xlu0 %12492  ;;  %16290 = vmatprep.subr.mxu0 %v14989_v12 }
0x125f   :  { %v12505_v1 = vmul.f32 0.03125, %v12493_v34  ;;  %v12520_v24 = vmul.f32 %v20008_v2, %v20008_v2  ;;  %v12519_v39 = vmul.f32 %v20010_v11, %v20010_v11  ;;  %16291 = vmatpush3.msra.mxu0 %v14989_v12  ;;  %v14976_v12 = vld [vmem:[#allocation10 + $0x1] ss:$0 sm:$0xff] }
0x1261   :  { %v20017_v14 = vsub.f32 %v12469_v31, %v12505_v1  ;;  %v12536_v53 = vsel %vm545_vm10, %v12520_v24, 0.0  ;;  %v12533_v16 = vsel %vm545_vm10, %v12519_v39, 0.0 }
0x1262   :  { %12537 = vadd.xlane.f32.xlu1 %v12536_v53  ;;  %12534 = vadd.xlane.f32.xlu0 %v12533_v16 }
0x1263   :  { %v12521_v59 = vmul.f32 %v20017_v14, %v20017_v14 }
0x1265   :  { %v12539_v43 = vsel %vm545_vm10, %v12521_v59, 0.0 }
0x1266   :  { %12540 = vadd.xlane.f32.xlu0 %v12539_v43 }
0x1282   :  { %v12499_v19 = vpop.xlane.xlu0 %12498 }
0x1283   :  { %v12507_v40 = vmul.f32 0.03125, %v12499_v19 }
0x1284   :  { %v12496_v33 = vpop.xlane.xlu1 %12495 }
0x1285   :  { %v20037_v41 = vsub.f32 %v12471_v8, %v12507_v40  ;;  %v12506_v52 = vmul.f32 0.03125, %v12496_v33 }
0x1287   :  { %v20039_v50 = vsub.f32 %v12470_v56, %v12506_v52  ;;  %v12523_v5 = vmul.f32 %v20037_v41, %v20037_v41 }
0x1289   :  { %v12545_v55 = vsel %vm545_vm10, %v12523_v5, 0.0  ;;  %v12522_v29 = vmul.f32 %v20039_v50, %v20039_v50 }
0x128a   :  { %12546 = vadd.xlane.f32.xlu0 %v12545_v55 }
0x128b   :  { %v12542_v35 = vsel %vm545_vm10, %v12522_v29, 0.0 }
0x128c   :  { %12543 = vadd.xlane.f32.xlu1 %v12542_v35 }
0x12e1   :  { %v12529_v20 = vpop.xlane.xlu0 %12528 }
0x12e2   :  { %v12549_v31 = vmul.f32 0.03125, %v12529_v20 }
0x12e3   :  { %v12526_v21 = vpop.xlane.xlu1 %12525 }
0x12e4   :  { %v12557_v61 = vadd.f32 1e-05, %v12549_v31  ;;  %v12548_v32 = vmul.f32 0.03125, %v12526_v21 }
0x12e6   :  { %16767 = vrsqrt.f32 %v12557_v61  ;;  %v12556_v0 = vadd.f32 1e-05, %v12548_v32 }
0x12e7   :  { %v12532_v47 = vpop.xlane.xlu1 %12531 }
0x12e8   :  { %16769 = vrsqrt.f32 %v12556_v0  ;;  %v12550_v36 = vmul.f32 0.03125, %v12532_v47 }
0x12ea   :  { %v12558_v3 = vadd.f32 1e-05, %v12550_v36 }
0x12eb   :  { %v12538_v8 = vpop.xlane.xlu1 %12537  ;;  %v12535_v22 = vpop.xlane.xlu0 %12534 }
0x12ec   :  { %16771 = vrsqrt.f32 %v12558_v3  ;;  %v12552_v10 = vmul.f32 0.03125, %v12538_v8  ;;  %v12551_v56 = vmul.f32 0.03125, %v12535_v22 }
0x12ee   :  { %v12560_v27 = vadd.f32 1e-05, %v12552_v10  ;;  %v12559_v44 = vadd.f32 1e-05, %v12551_v56 }
0x12ef   :  { %v12541_v26 = vpop.xlane.xlu0 %12540 }
0x12f0   :  { %16773 = vrsqrt.f32 %v12560_v27  ;;  %v12553_v30 = vmul.f32 0.03125, %v12541_v26 }
0x12f1   :  { %16775 = vrsqrt.f32 %v12559_v44 }
0x12f2   :  { %v12561_v23 = vadd.f32 1e-05, %v12553_v30 }
0x12f3   :  { %v16768_v38 = vpop.eup %16767 }
0x12f4   :  { %v12573_v57 = vmul.f32 %v16768_v38, %v19994_v4  ;;  %16777 = vrsqrt.f32 %v12561_v23 }
0x12f5   :  { %v16770_v37 = vpop.eup %16769 }
0x12f6   :  { %v12572_v49 = vmul.f32 %v16770_v37, %v19996_v15  ;;  %v12587_v60 = vmul.f32 %v14970_v9, %v12573_v57 }
0x12f8   :  { %v12586_v42 = vmul.f32 %v14970_v9, %v12572_v49  ;;  %v20064_v51 = vadd.f32 %v14971_v7, %v12587_v60 }
0x12f9   :  { %v16772_v58 = vpop.eup %16771 }
0x12fa   :  { %v20061_v46 = vadd.f32 %v14971_v7, %v12586_v42  ;;  %v12574_v13 = vmul.f32 %v16772_v58, %v20003_v6 }
0x12fc   :  { %16272 = vmatprep.mubr.msk.f32.mxu1 %vm545_vm10, %v20061_v46  ;;  %v12588_v28 = vmul.f32 %v14970_v9, %v12574_v13 }
0x12fd   :  { %v16774_v34 = vpop.eup %16773  ;;  %16273 = vmatmul.mubr.msk.f32.vlgmr.msra.gmra.mxu1 %vm545_vm10, %v20064_v51 }
0x12fe   :  { %v16776_v4 = vpop.eup %16775  ;;  %v20070_v15 = vadd.f32 %v14971_v7, %v12588_v28  ;;  %v12576_v1 = vmul.f32 %v16774_v34, %v20008_v2 }
0x12ff   :  { %v12575_v24 = vmul.f32 %v16776_v4, %v20010_v11 }
0x1300   :  { %16275 = vmatprep.mubr.msk.f32.mxu1 %vm545_vm10, %v20070_v15  ;;  %v12590_v6 = vmul.f32 %v14970_v9, %v12576_v1 }
0x1301   :  { %v16778_v39 = vpop.eup %16777  ;;  %v12589_v53 = vmul.f32 %v14970_v9, %v12575_v24 }
0x1302   :  { %v20076_v16 = vadd.f32 %v14971_v7, %v12590_v6  ;;  %v12577_v59 = vmul.f32 %v16778_v39, %v20017_v14 }
0x1303   :  { %v20079_v43 = vadd.f32 %v14971_v7, %v12589_v53 }
0x1304   :  { %v12591_v45 = vmul.f32 %v14970_v9, %v12577_v59 }
0x1305   :  { %16276 = vmatmul.mubr.msk.f32.gmra.mxu1 %vm545_vm10, %v20079_v43 }
0x1306   :  { %16278 = vmatprep.mubr.msk.f32.mxu1 %vm545_vm10, %v20076_v16  ;;  %v20085_v2 = vadd.f32 %v14971_v7, %v12591_v45 }
0x1309   :  { %16279 = vmatmul.mubr.msk.f32.gmra.mxu1 %vm545_vm10, %v20085_v2 }
0x1313   :  { %v12547_v11 = vpop.xlane.xlu0 %12546 }
0x1314   :  { %v12555_v18 = vmul.f32 0.03125, %v12547_v11 }
0x1315   :  { %v12544_v63 = vpop.xlane.xlu1 %12543 }
0x1316   :  { %v12563_v25 = vadd.f32 1e-05, %v12555_v18  ;;  %v12554_v19 = vmul.f32 0.03125, %v12544_v63 }
0x1318   :  { %16779 = vrsqrt.f32 %v12563_v25  ;;  %v12562_v14 = vadd.f32 1e-05, %v12554_v19 }
0x131a   :  { %16781 = vrsqrt.f32 %v12562_v14 }
0x1325   :  { %v16780_v40 = vpop.eup %16779 }
0x1326   :  { %v12579_v33 = vmul.f32 %v16780_v40, %v20037_v41  ;;  %v14988_v41 = vld [vmem:[%s20703_s26 + $0x58] sm:$0xff] }
0x1327   :  { %v16782_v52 = vpop.eup %16781  ;;  %16292 = vmatprep.subr.mxu0 %v14988_v41 }
0x1328   :  { %v12578_v5 = vmul.f32 %v16782_v52, %v20039_v50  ;;  %v12593_v55 = vmul.f32 %v14970_v9, %v12579_v33  ;;  %16293 = vmatpush3.msra.mxu0 %v14988_v41  ;;  %v14987_v50 = vld [vmem:[%s20703_s26 + $0x50] sm:$0xff] }
0x1329   :  { %16294 = vmatprep.subr.mxu0 %v14987_v50 }
0x132a   :  { %v12592_v29 = vmul.f32 %v14970_v9, %v12578_v5  ;;  %v20093_v54 = vadd.f32 %v14971_v7, %v12593_v55  ;;  %16295 = vmatpush3.msra.mxu0 %v14987_v50 }
0x132b   :  { %16296 = vmatprep.subr.mxu0 %v14986_v48 }
0x132c   :  { %v20091_v35 = vadd.f32 %v14971_v7, %v12592_v29  ;;  %16297 = vmatpush3.msra.mxu0 %v14986_v48  ;;  %v14993_v7 = vld [vmem:[#allocation11 + $0x1] ss:$0 sm:$0xff] }
0x132d   :  { %16298 = vmatprep.subr.mxu0 %v14985_v62 }
0x132e   :  { %16281 = vmatprep.mubr.msk.f32.mxu1 %vm545_vm10, %v20091_v35  ;;  %16299 = vmatpush3.msra.mxu0 %v14985_v62 }
0x132f   :  { %16282 = vmatmul.mubr.msk.f32.gmra.mxu1 %vm545_vm10, %v20093_v54  ;;  %16341 = vmatprep.subr.mxu0 %v20681_v17 }
0x1330   :  { %16320 = vmatprep.mubr.msk.f32.mxu1 %vm17261_vm11, %v20681_v17 }
0x13bd   :  { %v16274_v20 = vpop.f32.mrf.mxu1 }
0x13be   :  { %v12717_v31 = vadd.f32 %v16274_v20, %v14976_v12 }
0x13bf   :  { %v12711_v21 = vpop.f32.mrf.mxu1 }
0x13c0   :  { %v12712_v61 = vadd.f32 %v14976_v12, %v12711_v21  ;;  %v12751_v0 = vmax.f32 %v12717_v31, 0.0 }
0x13c2   :  { %v12750_v32 = vmax.f32 %v12712_v61, 0.0 }
0x13c4   :  { %16300 = vmatprep.mubr.msk.f32.mxu0 %vm6516_vm15, %v12750_v32 }
0x13c5   :  { %v16277_v47 = vpop.f32.mrf.mxu1  ;;  %16301 = vmatmul.mubr.msk.f32.vlgmr.msra.gmra.mxu0 %vm6516_vm15, %v12751_v0 }
0x13c6   :  { %v12727_v36 = vadd.f32 %v16277_v47, %v14976_v12 }
0x13c7   :  { %v12721_v3 = vpop.f32.mrf.mxu1 }
0x13c8   :  { %v12722_v8 = vadd.f32 %v14976_v12, %v12721_v3  ;;  %v12753_v56 = vmax.f32 %v12727_v36, 0.0 }
0x13c9   :  { %v16280_v22 = vpop.f32.mrf.mxu1 }
0x13ca   :  { %v12752_v10 = vmax.f32 %v12722_v8, 0.0  ;;  %v12737_v27 = vadd.f32 %v16280_v22, %v14976_v12 }
0x13cb   :  { %v12731_v44 = vpop.f32.mrf.mxu1 }
0x13cc   :  { %v12732_v26 = vadd.f32 %v14976_v12, %v12731_v44  ;;  %16303 = vmatprep.mubr.msk.f32.mxu0 %vm6516_vm15, %v12752_v10  ;;  %v12755_v23 = vmax.f32 %v12737_v27, 0.0 }
0x13cd   :  { %16304 = vmatmul.mubr.msk.f32.gmra.mxu0 %vm6516_vm15, %v12753_v56 }
0x13ce   :  { %v12754_v30 = vmax.f32 %v12732_v26, 0.0 }
0x13d0   :  { %16306 = vmatprep.mubr.msk.f32.mxu0 %vm6516_vm15, %v12754_v30 }
0x13d1   :  { %16307 = vmatmul.mubr.msk.f32.gmra.mxu0 %vm6516_vm15, %v12755_v23 }
0x13ef   :  { %v16283_v38 = vpop.f32.mrf.mxu1 }
0x13f0   :  { %v12747_v9 = vadd.f32 %v16283_v38, %v14976_v12 }
0x13f1   :  { %v12741_v57 = vpop.f32.mrf.mxu1 }
0x13f2   :  { %v12742_v37 = vadd.f32 %v14976_v12, %v12741_v57  ;;  %v12757_v60 = vmax.f32 %v12747_v9, 0.0 }
0x13f4   :  { %v12756_v49 = vmax.f32 %v12742_v37, 0.0 }
0x13f6   :  { %16309 = vmatprep.mubr.msk.f32.mxu0 %vm6516_vm15, %v12756_v49 }
0x13f7   :  { %16310 = vmatmul.mubr.msk.f32.gmra.mxu0 %vm6516_vm15, %v12757_v60 }
0x13f8   :  { %16349 = vmatprep.mubr.msk.f32.mxu0 %vm17261_vm11, %v20681_v17 }
0x1485   :  { %v16302_v42 = vpop.f32.mrf.mxu0 }
0x1486   :  { %v12871_v58 = vadd.f32 %v16302_v42, %v14993_v7 }
0x1487   :  { %v12865_v13 = vpop.f32.mrf.mxu0 }
0x1488   :  { %v12905_v28 = vadd.f32 %v12871_v58, %v20064_v51  ;;  %v12866_v34 = vadd.f32 %v14993_v7, %v12865_v13 }
0x148a   :  { %v12904_v4 = vadd.f32 %v12866_v34, %v20061_v46  ;;  %v12919_v1 = vsel %vm545_vm10, %v12905_v28, 0.0 }
0x148b   :  { %12920 = vadd.xlane.f32.xlu0 %v12919_v1 }
0x148c   :  { %v12916_v24 = vsel %vm545_vm10, %v12904_v4, 0.0 }
0x148d   :  { %v16305_v6 = vpop.f32.mrf.mxu0  ;;  %12917 = vadd.xlane.f32.xlu1 %v12916_v24 }
0x148e   :  { %v12881_v39 = vadd.f32 %v16305_v6, %v14993_v7 }
0x148f   :  { %v12875_v53 = vpop.f32.mrf.mxu0 }
0x1490   :  { %v12907_v59 = vadd.f32 %v12881_v39, %v20079_v43  ;;  %v12876_v45 = vadd.f32 %v14993_v7, %v12875_v53  ;;  %v13068_v39 = vld [vmem:[%s20600_s15 + $0x18] sm:$0xff]  ;;  %v13067_v53 = vld [vmem:[%s20600_s15 + $0x10] sm:$0xff] }
0x1491   :  { %v16308_v11 = vpop.f32.mrf.mxu0  ;;  %16313 = vmatpush3.msra.mxu1 %v13068_v39 }
0x1492   :  { %v12906_v18 = vadd.f32 %v12876_v45, %v20070_v15  ;;  %v12891_v63 = vadd.f32 %v16308_v11, %v14993_v7  ;;  %v12925_v51 = vsel %vm545_vm10, %v12907_v59, 0.0  ;;  %16314 = vmatprep.subr.mxu1 %v20681_v17  ;;  %v13065_v45 = vld [vmem:[%s20600_s15] sm:$0xff] }
0x1493   :  { %12926 = vadd.xlane.f32.xlu0 %v12925_v51  ;;  %v12885_v46 = vpop.f32.mrf.mxu0  ;;  %16315 = vmatpush3.msra.mxu1 %v13067_v53 }
0x1494   :  { %v12909_v25 = vadd.f32 %v12891_v63, %v20085_v2  ;;  %v12886_v19 = vadd.f32 %v14993_v7, %v12885_v46  ;;  %v12922_v14 = vsel %vm545_vm10, %v12906_v18, 0.0  ;;  %16316 = vmatprep.subr.mxu1 %v20681_v17 }
0x1495   :  { %12923 = vadd.xlane.f32.xlu1 %v12922_v14 }
0x1496   :  { %v12908_v40 = vadd.f32 %v12886_v19, %v20076_v16  ;;  %v12931_v33 = vsel %vm545_vm10, %v12909_v25, 0.0 }
0x1497   :  { %12932 = vadd.xlane.f32.xlu0 %v12931_v33 }
0x1498   :  { %v12928_v43 = vsel %vm545_vm10, %v12908_v40, 0.0 }
0x1499   :  { %12929 = vadd.xlane.f32.xlu1 %v12928_v43 }
0x14b7   :  { %v16311_v15 = vpop.f32.mrf.mxu0 }
0x14b8   :  { %v12901_v52 = vadd.f32 %v16311_v15, %v14993_v7 }
0x14b9   :  { %v12895_v5 = vpop.f32.mrf.mxu0 }
0x14ba   :  { %v12911_v55 = vadd.f32 %v12901_v52, %v20093_v54  ;;  %v12896_v29 = vadd.f32 %v14993_v7, %v12895_v5 }
0x14bc   :  { %v12910_v2 = vadd.f32 %v12896_v29, %v20091_v35  ;;  %v12937_v41 = vsel %vm545_vm10, %v12911_v55, 0.0 }
0x14bd   :  { %12938 = vadd.xlane.f32.xlu0 %v12937_v41 }
0x14be   :  { %v12934_v50 = vsel %vm545_vm10, %v12910_v2, 0.0 }
0x14bf   :  { %12935 = vadd.xlane.f32.xlu1 %v12934_v50 }
0x1514   :  { %v12921_v16 = vpop.xlane.xlu0 %12920 }
0x1515   :  { %v12941_v48 = vmul.f32 0.03125, %v12921_v16 }
0x1516   :  { %v12918_v62 = vpop.xlane.xlu1 %12917 }
0x1517   :  { %v20140_v12 = vsub.f32 %v12905_v28, %v12941_v48  ;;  %v12940_v20 = vmul.f32 0.03125, %v12918_v62 }
0x1519   :  { %v20142_v31 = vsub.f32 %v12904_v4, %v12940_v20  ;;  %v12957_v54 = vmul.f32 %v20140_v12, %v20140_v12 }
0x151b   :  { %v12967_v21 = vsel %vm545_vm10, %v12957_v54, 0.0  ;;  %v12956_v35 = vmul.f32 %v20142_v31, %v20142_v31 }
0x151c   :  { %v12927_v61 = vpop.xlane.xlu0 %12926  ;;  %12968 = vadd.xlane.f32.xlu0 %v12967_v21  ;;  %v15002_v21 = vld [vmem:[#allocation13 + $0x1] ss:$0 sm:$0xff] }
0x151d   :  { %v12943_v32 = vmul.f32 0.03125, %v12927_v61  ;;  %v12964_v0 = vsel %vm545_vm10, %v12956_v35, 0.0 }
0x151e   :  { %v12924_v47 = vpop.xlane.xlu1 %12923  ;;  %12965 = vadd.xlane.f32.xlu1 %v12964_v0 }
0x151f   :  { %v20150_v36 = vsub.f32 %v12907_v59, %v12943_v32  ;;  %v12942_v3 = vmul.f32 0.03125, %v12924_v47  ;;  %v13066_v59 = vld [vmem:[%s20600_s15 + $0x8] sm:$0xff] }
0x1520   :  { %v12933_v8 = vpop.xlane.xlu0 %12932  ;;  %16317 = vmatpush3.msra.mxu1 %v13066_v59 }
0x1521   :  { %v20152_v22 = vsub.f32 %v12906_v18, %v12942_v3  ;;  %v12945_v10 = vmul.f32 0.03125, %v12933_v8  ;;  %v12959_v56 = vmul.f32 %v20150_v36, %v20150_v36  ;;  %16318 = vmatprep.subr.mxu1 %v20681_v17 }
0x1522   :  { %v12930_v27 = vpop.xlane.xlu1 %12929  ;;  %16319 = vmatpush3.msra.mxu1 %v13065_v45 }
0x1523   :  { %v20156_v44 = vsub.f32 %v12909_v25, %v12945_v10  ;;  %v12944_v26 = vmul.f32 0.03125, %v12930_v27  ;;  %v12973_v30 = vsel %vm545_vm10, %v12959_v56, 0.0  ;;  %v12958_v23 = vmul.f32 %v20152_v22, %v20152_v22  ;;  %16323 = vmatprep.subr.mxu1 %v20681_v17 }
0x1524   :  { %12974 = vadd.xlane.f32.xlu0 %v12973_v30 }
0x1525   :  { %v20161_v38 = vsub.f32 %v12908_v40, %v12944_v26  ;;  %v12970_v9 = vsel %vm545_vm10, %v12958_v23, 0.0  ;;  %v12961_v57 = vmul.f32 %v20156_v44, %v20156_v44  ;;  %v15003_v26 = vld [vmem:[#allocation14 + $0x1] ss:$0 sm:$0xff] }
0x1526   :  { %12971 = vadd.xlane.f32.xlu1 %v12970_v9 }
0x1527   :  { %v12979_v37 = vsel %vm545_vm10, %v12961_v57, 0.0  ;;  %v12960_v49 = vmul.f32 %v20161_v38, %v20161_v38 }
0x1528   :  { %12980 = vadd.xlane.f32.xlu0 %v12979_v37 }
0x1529   :  { %v12976_v60 = vsel %vm545_vm10, %v12960_v49, 0.0 }
0x152a   :  { %12977 = vadd.xlane.f32.xlu1 %v12976_v60 }
0x1546   :  { %v12939_v7 = vpop.xlane.xlu0 %12938 }
0x1547   :  { %v12947_v42 = vmul.f32 0.03125, %v12939_v7 }
0x1548   :  { %v12936_v58 = vpop.xlane.xlu1 %12935 }
0x1549   :  { %v20170_v13 = vsub.f32 %v12911_v55, %v12947_v42  ;;  %v12946_v28 = vmul.f32 0.03125, %v12936_v58 }
0x154b   :  { %v20172_v34 = vsub.f32 %v12910_v2, %v12946_v28  ;;  %v12963_v4 = vmul.f32 %v20170_v13, %v20170_v13 }
0x154d   :  { %v12985_v1 = vsel %vm545_vm10, %v12963_v4, 0.0  ;;  %v12962_v24 = vmul.f32 %v20172_v34, %v20172_v34 }
0x154e   :  { %12986 = vadd.xlane.f32.xlu0 %v12985_v1 }
0x154f   :  { %v12982_v6 = vsel %vm545_vm10, %v12962_v24, 0.0 }
0x1550   :  { %12983 = vadd.xlane.f32.xlu1 %v12982_v6 }
0x15a5   :  { %v12969_v18 = vpop.xlane.xlu0 %12968 }
0x15a6   :  { %v12989_v46 = vmul.f32 0.03125, %v12969_v18 }
0x15a7   :  { %v12966_v11 = vpop.xlane.xlu1 %12965 }
0x15a8   :  { %v12988_v51 = vmul.f32 0.03125, %v12966_v11  ;;  %v12997_v14 = vadd.f32 1e-05, %v12989_v46 }
0x15aa   :  { %v12996_v19 = vadd.f32 1e-05, %v12988_v51 }
0x15ac   :  { %16783 = vrsqrt.f32 %v12996_v19 }
0x15ad   :  { %v12975_v40 = vpop.xlane.xlu0 %12974  ;;  %16785 = vrsqrt.f32 %v12997_v14 }
0x15ae   :  { %v12991_v15 = vmul.f32 0.03125, %v12975_v40 }
0x15af   :  { %v12972_v63 = vpop.xlane.xlu1 %12971 }
0x15b0   :  { %v12990_v25 = vmul.f32 0.03125, %v12972_v63  ;;  %v12999_v5 = vadd.f32 1e-05, %v12991_v15 }
0x15b1   :  { %v12981_v55 = vpop.xlane.xlu0 %12980 }
0x15b2   :  { %v12998_v33 = vadd.f32 1e-05, %v12990_v25  ;;  %v12993_v2 = vmul.f32 0.03125, %v12981_v55  ;;  %v20232_v55 = vld [vmem:[%s20604_s19 + $0x10] sm:$0xff] }
0x15b3   :  { %v12978_v43 = vpop.xlane.xlu1 %12977 }
0x15b4   :  { %16787 = vrsqrt.f32 %v12998_v33  ;;  %v12992_v52 = vmul.f32 0.03125, %v12978_v43  ;;  %v13001_v41 = vadd.f32 1e-05, %v12993_v2  ;;  %v20246_v2 = vld [vmem:[%s20604_s19] sm:$0xff] }
0x15b5   :  { %16789 = vrsqrt.f32 %v12999_v5  ;;  %v20226_v5 = vld [vmem:[%s20604_s19 + $0x18] sm:$0xff] }
0x15b6   :  { %v13000_v29 = vadd.f32 1e-05, %v12992_v52  ;;  %16342 = vmatpush3.msra.mxu0 %v20226_v5 }
0x15b7   :  { %16343 = vmatprep.subr.mxu0 %v20681_v17 }
0x15b8   :  { %16791 = vrsqrt.f32 %v13000_v29  ;;  %16344 = vmatpush3.msra.mxu0 %v20232_v55  ;;  %v20239_v29 = vld [vmem:[%s20604_s19 + $0x8] sm:$0xff]  ;;  %s17266_s19 = smov 32  }
0x15b9   :  { %v16784_v50 = vpop.eup %16783  ;;  %16793 = vrsqrt.f32 %v13001_v41  ;;  %16345 = vmatprep.subr.mxu0 %v20681_v17  ;;  %v15004_v41 = vld [vmem:[#allocation16] ss:$0 sm:$0xff] }
0x15ba   :  { %v16786_v16 = vpop.eup %16785  ;;  %v13012_v62 = vmul.f32 %v16784_v50, %v20142_v31  ;;  %16346 = vmatpush3.msra.mxu0 %v20239_v29 }
0x15bb   :  { %v13013_v20 = vmul.f32 %v16786_v16, %v20140_v12  ;;  %16347 = vmatprep.subr.mxu0 %v20681_v17 }
0x15bc   :  { %v13026_v61 = vmul.f32 %v15002_v21, %v13012_v62  ;;  %16348 = vmatpush3.msra.mxu0 %v20246_v2 }
0x15bd   :  { %v13027_v3 = vmul.f32 %v15002_v21, %v13013_v20  ;;  %16363 = vmatprep.subr.mxu0 %v20681_v17 }
0x15be   :  { %v13040_v30 = vadd.f32 %v15003_v26, %v13026_v61 }
0x15bf   :  { %v13041_v12 = vadd.f32 %v15003_v26, %v13027_v3 }
0x15c0   :  { %v13048_v57 = vsel %vm545_vm10, %v13040_v30, 0.0 }
0x15c1   :  { %v16788_v48 = vpop.eup %16787  ;;  %v13049_v60 = vsel %vm545_vm10, %v13041_v12, 0.0 }
0x15c2   :  { %v13014_v54 = vmul.f32 %v16788_v48, %v20152_v22  ;;  %v16790_v0 = vpop.eup %16789  ;;  %v13050_v58 = vadd.f32 %v13049_v60, %v13048_v57 }
0x15c3   :  { %v13015_v31 = vmul.f32 %v16790_v0, %v20150_v36  ;;  %v15006_v0 = vld [vmem:[#allocation17] ss:$0 sm:$0xff] }
0x15c4   :  { %v13028_v8 = vmul.f32 %v15002_v21, %v13014_v54  ;;  %v20273_v54 = vld [vmem:[#allocation19] ss:$0 sm:$0xff] }
0x15c5   :  { %v16792_v27 = vpop.eup %16791  ;;  %v13029_v37 = vmul.f32 %v15002_v21, %v13015_v31 }
0x15c6   :  { %v13042_v9 = vadd.f32 %v15003_v26, %v13028_v8  ;;  %v13016_v22 = vmul.f32 %v16792_v27, %v20161_v38  ;;  %v16794_v49 = vpop.eup %16793 }
0x15c7   :  { %v13043_v28 = vadd.f32 %v15003_v26, %v13029_v37  ;;  %v13017_v36 = vmul.f32 %v16794_v49, %v20156_v44 }
0x15c8   :  { %v13051_v7 = vsel %vm545_vm10, %v13042_v9, 0.0  ;;  %v13030_v42 = vmul.f32 %v15002_v21, %v13016_v22 }
0x15c9   :  { %v13052_v4 = vadd.f32 %v13051_v7, %v13050_v58  ;;  %v13053_v24 = vsel %vm545_vm10, %v13043_v28, 0.0  ;;  %v13031_v6 = vmul.f32 %v15002_v21, %v13017_v36 }
0x15ca   :  { %v13044_v1 = vadd.f32 %v15003_v26, %v13030_v42 }
0x15cb   :  { %v13054_v39 = vadd.f32 %v13053_v24, %v13052_v4  ;;  %v13045_v11 = vadd.f32 %v15003_v26, %v13031_v6 }
0x15cc   :  { %v13055_v53 = vsel %vm545_vm10, %v13044_v1, 0.0 }
0x15cd   :  { %v13056_v51 = vadd.f32 %v13055_v53, %v13054_v39  ;;  %v13057_v44 = vsel %vm545_vm10, %v13045_v11, 0.0 }
0x15cf   :  { %v13058_v14 = vadd.f32 %v13057_v44, %v13056_v51 }
0x15d7   :  { %v12987_v35 = vpop.xlane.xlu0 %12986 }
0x15d8   :  { %v12995_v32 = vmul.f32 0.03125, %v12987_v35 }
0x15d9   :  { %v12984_v47 = vpop.xlane.xlu1 %12983 }
0x15da   :  { %v13003_v10 = vadd.f32 1e-05, %v12995_v32  ;;  %v12994_v56 = vmul.f32 0.03125, %v12984_v47 }
0x15dc   :  { %16795 = vrsqrt.f32 %v13003_v10  ;;  %v13002_v23 = vadd.f32 1e-05, %v12994_v56 }
0x15de   :  { %16797 = vrsqrt.f32 %v13002_v23 }
0x15e9   :  { %v16796_v38 = vpop.eup %16795 }
0x15ea   :  { %v13019_v59 = vmul.f32 %v16796_v38, %v20170_v13  ;;  %v13150_v13 = vld [vmem:[%s20602_s17 + $0x8] sm:$0xff] }
0x15eb   :  { %v16798_v45 = vpop.eup %16797 }
0x15ec   :  { %v13033_v18 = vmul.f32 %v15002_v21, %v13019_v59  ;;  %v13018_v63 = vmul.f32 %v16798_v45, %v20172_v34  ;;  %v13149_v34 = vld [vmem:[%s20602_s17] sm:$0xff] }
0x15ee   :  { %v13032_v46 = vmul.f32 %v15002_v21, %v13018_v63  ;;  %v13047_v25 = vadd.f32 %v15003_v26, %v13033_v18 }
0x15f0   :  { %v13046_v19 = vadd.f32 %v15003_v26, %v13032_v46  ;;  %v13061_v43 = vsel %vm545_vm10, %v13047_v25, 0.0 }
0x15f2   :  { %v13059_v40 = vsel %vm545_vm10, %v13046_v19, 0.0 }
0x15f3   :  { %v13060_v33 = vadd.f32 %v13059_v40, %v13058_v14 }
0x15f5   :  { %v13062_v15 = vadd.f32 %v13061_v43, %v13060_v33 }
0x15f7   :  { %v13064_v52 = vmul.f32 0.125, %v13062_v15 }
0x15f9   :  { %16321 = vmatmul.mubr.msk.f32.vlgmr.msra.gmra.mxu1 %vm545_vm10, %v13064_v52 }
0x15fa   :  { %16324 = vmatpush3.msra.mxu1 %v13150_v13  ;;  %16327 = vmatprep.mubr.msk.f32.mxu1 %vm17261_vm11, %v20681_v17 }
0x15fb   :  { %16325 = vmatprep.subr.mxu1 %v20681_v17 }
0x15fc   :  { %16326 = vmatpush3.msra.mxu1 %v13149_v34 }
0x15fd   :  { %16330 = vmatprep.subr.mxu1 %v20681_v17 }
0x16b9   :  { %v13145_v50 = vpop.f32.mrf.mxu1 }
0x16ba   :  { %v13146_v16 = vadd.f32 %v15004_v41, %v13145_v50 }
0x16bb   :  { %v16322_v48 = vpop.f32.mrf.mxu1 }
0x16bc   :  { %16328 = vmatmul.mubr.msk.f32.vlgmr.msra.gmra.mxu1 %vm6052_vm13, %v13146_v16 }
0x16bd   :  { %16331 = vmatpush3.msra.mxu1 %v20226_v5  ;;  %16338 = vmatprep.mubr.msk.f32.mxu1 %vm17261_vm11, %v20681_v17 }
0x16be   :  { %16332 = vmatprep.subr.mxu1 %v20681_v17 }
0x16bf   :  { %16333 = vmatpush3.msra.mxu1 %v20232_v55 }
0x16c0   :  { %16334 = vmatprep.subr.mxu1 %v20681_v17 }
0x16c1   :  { %16335 = vmatpush3.msra.mxu1 %v20239_v29 }
0x16c2   :  { %16336 = vmatprep.subr.mxu1 %v20681_v17 }
0x16c3   :  { %16337 = vmatpush3.msra.mxu1 %v20246_v2 }
0x16c4   :  { %16339 = vmatmul.mubr.f32.vlgmr.msra.gmra.mxu1 %v20681_v17  ;;  %16352 = vmatprep.subr.mxu1 %v20681_v17 }
0x16c5   :  { %16353 = vmatpush3.msra.mxu1 %v20226_v5  ;;  %16360 = vmatprep.mubr.msk.f32.mxu1 %vm17261_vm11, %v20681_v17 }
0x16c6   :  { %16354 = vmatprep.subr.mxu1 %v20681_v17 }
0x16c7   :  { %16355 = vmatpush3.msra.mxu1 %v20232_v55 }
0x16c8   :  { %16356 = vmatprep.subr.mxu1 %v20681_v17 }
0x16c9   :  { %16357 = vmatpush3.msra.mxu1 %v20239_v29 }
0x16ca   :  { %16358 = vmatprep.subr.mxu1 %v20681_v17 }
0x16cb   :  { %16359 = vmatpush3.msra.mxu1 %v20246_v2 }
0x16cc   :  { %16374 = vmatprep.subr.mxu1 %v20681_v17 }
0x177c   :  { %v13227_v62 = vpop.f32.mrf.mxu1 }
0x177d   :  { %v20278_v47 = vadd.f32 %v15006_v0, %v13227_v62 }
0x177e   :  { %v16329_v20 = vpop.f32.mrf.mxu1 }
0x1784   :  { %v13311_v21 = vpop.f32.mrf.mxu1 }
0x1785   :  { %v13312_v35 = vadd.f32 %v20273_v54, %v13311_v21 }
0x1786   :  { %v16340_v61 = vpop.f32.mrf.mxu1 }
0x1787   :  { %v13341_v32 = vrot.slane %v13312_v35, 2  ;;  %13323 = vrot.lane.b32.xlu0 %v13312_v35, %s17262_s22  ;;  %v13315_v8 = vadd.f32 %v13312_v35, %v20278_v47 }
0x1789   :  { %13350 = vrot.lane.b32.xlu1 %v13341_v32, %s17262_s22  ;;  %v13343_v3 = vadd.f32 %v13341_v32, %v20278_v47  ;;  %v15009_v56 = vmul.f32 -1.442695, %v13315_v8 }
0x178b   :  { %v15010_v10 = vmul.f32 -1.442695, %v13343_v3 }
0x178d   :  { %16799 = vpow2.f32 %v15010_v10 }
0x178e   :  { %16801 = vpow2.f32 %v15009_v56 }
0x179a   :  { %v16800_v27 = vpop.eup %16799 }
0x179b   :  { %v13347_v26 = vadd.f32 1.0, %v16800_v27  ;;  %v16802_v30 = vpop.eup %16801 }
0x179c   :  { %v13319_v31 = vadd.f32 1.0, %v16802_v30 }
0x179d   :  { %16803 = vrcp.f32 %v13347_v26 }
0x179e   :  { %16805 = vrcp.f32 %v13319_v31 }
0x17aa   :  { %v16804_v23 = vpop.eup %16803 }
0x17ab   :  { %v16806_v57 = vpop.eup %16805  ;;  %v13360_v36 = vsub.f32 1.0, %v16804_v23  ;;  %v13366_v1 = vmul.f32 0.0, %v16804_v23 }
0x17ac   :  { %v13333_v38 = vsub.f32 1.0, %v16806_v57  ;;  %v13339_v59 = vmul.f32 0.0, %v16806_v57 }
0x17f9   :  { %v13324_v22 = vpop.permute.xlu0 %13323 }
0x17fa   :  { %v13326_v37 = vmul.f32 %v16806_v57, %v13324_v22 }
0x17fb   :  { %v13351_v12 = vpop.permute.xlu1 %13350 }
0x17fc   :  { %v13353_v9 = vmul.f32 %v16804_v23, %v13351_v12 }
0x17fe   :  { %13355 = vrot.lane.b32.xlu1 %v13353_v9, %s17266_s19 }
0x1802   :  { %13328 = vrot.lane.b32.xlu1 %v13326_v37, %s17266_s19 }
0x1870   :  { %v13356_v49 = vpop.permute.xlu1 %13355 }
0x1871   :  { %v13358_v60 = vadd.f32 %v13356_v49, %v20278_v47 }
0x1873   :  { %16807 = vtanh.f32 %v13358_v60 }
0x1874   :  { %v13329_v7 = vpop.permute.xlu1 %13328 }
0x1875   :  { %v13331_v42 = vadd.f32 %v13329_v7, %v20278_v47 }
0x1877   :  { %16809 = vtanh.f32 %v13331_v42 }
0x1880   :  { %v16808_v58 = vpop.eup %16807 }
0x1881   :  { %13362 = vrot.lane.b32.xlu0 %v16808_v58, %s17259_s16 }
0x1884   :  { %v16810_v28 = vpop.eup %16809 }
0x1885   :  { %13335 = vrot.lane.b32.xlu1 %v16810_v28, %s17259_s16 }
0x18f3   :  { %v13363_v4 = vpop.permute.xlu0 %13362 }
0x18f4   :  { %v13365_v24 = vmul.f32 %v13363_v4, %v13360_v36 }
0x18f6   :  { %v20288_v6 = vadd.f32 %v13366_v1, %v13365_v24 }
0x18f7   :  { %v13336_v39 = vpop.permute.xlu1 %13335 }
0x18f8   :  { %v13373_v53 = vrot.slane %v20288_v6, 6  ;;  %v13338_v45 = vmul.f32 %v13336_v39, %v13333_v38 }
0x18fa   :  { %v13340_v11 = vadd.f32 %v13339_v59, %v13338_v45  ;;  %13374 = vrot.lane.b32.xlu1 %v13373_v53, %s17267_s12 }
0x18fc   :  { %13369 = vrot.lane.b32.xlu0 %v13340_v11, %s17259_s16 }
0x196c   :  { %v13375_v18 = vpop.permute.xlu1 %13374 }
0x196e   :  { %v20293_v63 = vpop.permute.xlu0 %13369 }
0x196f   :  { %v13377_v51 = vsel %vm6052_vm13, %v20293_v63, %v13375_v18 }
0x1970   :  { %16350 = vmatmul.mubr.msk.f32.vlgmr.msra.gmra.mxu0 %vm545_vm10, %v13377_v51  ;;  %v13508_v48 = vrot.slane %v13377_v51, 4  ;;  %v13477_v62 = vrot.slane %v13377_v51, 6 }
0x1971   :  { %16364 = vmatpush3.msra.mxu0 %v20226_v5  ;;  %16371 = vmatprep.mubr.msk.f32.mxu0 %vm17261_vm11, %v20681_v17 }
0x1972   :  { %16365 = vmatprep.subr.mxu0 %v20681_v17 }
0x1973   :  { %16366 = vmatpush3.msra.mxu0 %v20232_v55 }
0x1974   :  { %16367 = vmatprep.subr.mxu0 %v20681_v17 }
0x1975   :  { %16368 = vmatpush3.msra.mxu0 %v20239_v29 }
0x1976   :  { %16369 = vmatprep.subr.mxu0 %v20681_v17 }
0x1977   :  { %16370 = vmatpush3.msra.mxu0 %v20246_v2 }
0x1978   :  { %16385 = vmatprep.subr.mxu0 %v20681_v17 }
0x1a30   :  { %v13447_v46 = vpop.f32.mrf.mxu0 }
0x1a31   :  { %v13448_v44 = vadd.f32 %v20273_v54, %v13447_v46 }
0x1a32   :  { %v16351_v25 = vpop.f32.mrf.mxu0 }
0x1a33   :  { %v13452_v19 = vrot.slane %v13448_v44, 6  ;;  %v13483_v14 = vrot.slane %v13448_v44, 4 }
0x1a35   :  { %13492 = vrot.lane.b32.xlu0 %v13483_v14, %s17262_s22  ;;  %13461 = vrot.lane.b32.xlu1 %v13452_v19, %s17262_s22  ;;  %v13454_v40 = vadd.f32 %v13452_v19, %v20278_v47  ;;  %v13485_v33 = vadd.f32 %v13483_v14, %v20278_v47 }
0x1a37   :  { %v15012_v43 = vmul.f32 -1.442695, %v13454_v40  ;;  %v15013_v15 = vmul.f32 -1.442695, %v13485_v33 }
0x1a39   :  { %16811 = vpow2.f32 %v15012_v43 }
0x1a3a   :  { %16813 = vpow2.f32 %v15013_v15 }
0x1a46   :  { %v16812_v52 = vpop.eup %16811 }
0x1a47   :  { %v16814_v13 = vpop.eup %16813  ;;  %v13458_v34 = vadd.f32 1.0, %v16812_v52 }
0x1a48   :  { %v13489_v5 = vadd.f32 1.0, %v16814_v13 }
0x1a49   :  { %16815 = vrcp.f32 %v13458_v34 }
0x1a4a   :  { %16817 = vrcp.f32 %v13489_v5 }
0x1a56   :  { %v16816_v55 = vpop.eup %16815 }
0x1a57   :  { %v16818_v29 = vpop.eup %16817  ;;  %v13471_v31 = vsub.f32 1.0, %v16816_v55 }
0x1a58   :  { %v13502_v8 = vsub.f32 1.0, %v16818_v29 }
0x1aa7   :  { %v13493_v2 = vpop.permute.xlu0 %13492  ;;  %v13462_v41 = vpop.permute.xlu1 %13461 }
0x1aa8   :  { %v13495_v50 = vmul.f32 %v16818_v29, %v13493_v2  ;;  %v13464_v16 = vmul.f32 %v16816_v55, %v13462_v41 }
0x1aaa   :  { %13497 = vrot.lane.b32.xlu0 %v13495_v50, %s17266_s19  ;;  %13466 = vrot.lane.b32.xlu1 %v13464_v16, %s17266_s19 }
0x1aae   :  { %13509 = vrot.lane.b32.xlu1 %v13508_v48, %s17268_s7 }
0x1ab2   :  { %13478 = vrot.lane.b32.xlu1 %v13477_v62, %s17241_s6 }
0x1b1c   :  { %v13498_v20 = vpop.permute.xlu0 %13497  ;;  %v13467_v21 = vpop.permute.xlu1 %13466 }
0x1b1d   :  { %v13500_v35 = vadd.f32 %v13498_v20, %v20278_v47  ;;  %v13469_v61 = vadd.f32 %v13467_v21, %v20278_v47 }
0x1b1f   :  { %16819 = vtanh.f32 %v13500_v35 }
0x1b20   :  { %16821 = vtanh.f32 %v13469_v61  ;;  %v13510_v3 = vpop.permute.xlu1 %13509 }
0x1b21   :  { %v13512_v56 = vmul.f32 %v16818_v29, %v13510_v3 }
0x1b24   :  { %v13479_v26 = vpop.permute.xlu1 %13478 }
0x1b25   :  { %v13481_v12 = vmul.f32 %v16816_v55, %v13479_v26 }
0x1b2c   :  { %v16820_v32 = vpop.eup %16819 }
0x1b2d   :  { %13504 = vrot.lane.b32.xlu0 %v16820_v32, %s17259_s16  ;;  %v16822_v0 = vpop.eup %16821 }
0x1b31   :  { %13473 = vrot.lane.b32.xlu0 %v16822_v0, %s17259_s16 }
0x1b9f   :  { %v13505_v10 = vpop.permute.xlu0 %13504 }
0x1ba0   :  { %v13507_v27 = vmul.f32 %v13505_v10, %v13502_v8 }
0x1ba2   :  { %v20321_v30 = vadd.f32 %v13512_v56, %v13507_v27 }
0x1ba3   :  { %v13474_v23 = vpop.permute.xlu0 %13473 }
0x1ba4   :  { %v13519_v9 = vrot.slane %v20321_v30, 2  ;;  %v13476_v22 = vmul.f32 %v13474_v23, %v13471_v31 }
0x1ba6   :  { %v13482_v57 = vadd.f32 %v13481_v12, %v13476_v22  ;;  %13520 = vrot.lane.b32.xlu1 %v13519_v9, %s17267_s12 }
0x1ba8   :  { %13515 = vrot.lane.b32.xlu0 %v13482_v57, %s17259_s16 }
0x1c18   :  { %v13521_v37 = vpop.permute.xlu1 %13520 }
0x1c1a   :  { %v20326_v49 = vpop.permute.xlu0 %13515 }
0x1c1b   :  { %v13523_v60 = vsel %vm6052_vm13, %v20326_v49, %v13521_v37 }
0x1c1c   :  { %v13525_v7 = vrot.slane %v13523_v60, 2  ;;  %v13624_v14 = vrot.slane %v13523_v60, 6 }
0x1c1e   :  { %16361 = vmatmul.mubr.msk.f32.vlgmr.msra.gmra.mxu1 %vm545_vm10, %v13525_v7 }
0x1c1f   :  { %16382 = vmatprep.mubr.msk.f32.mxu1 %vm17261_vm11, %v20681_v17 }
0x1cde   :  { %v13594_v42 = vpop.f32.mrf.mxu1 }
0x1cdf   :  { %v13595_v58 = vadd.f32 %v20273_v54, %v13594_v42 }
0x1ce0   :  { %v16362_v28 = vpop.f32.mrf.mxu1 }
0x1ce1   :  { %v13599_v36 = vrot.slane %v13595_v58, 4  ;;  %v13630_v4 = vrot.slane %v13595_v58, 6 }
0x1ce3   :  { %13639 = vrot.lane.b32.xlu0 %v13630_v4, %s17262_s22  ;;  %13608 = vrot.lane.b32.xlu1 %v13599_v36, %s17262_s22  ;;  %v13601_v1 = vadd.f32 %v13599_v36, %v20278_v47  ;;  %v13632_v24 = vadd.f32 %v13630_v4, %v20278_v47 }
0x1ce5   :  { %v15015_v38 = vmul.f32 -1.442695, %v13601_v1  ;;  %v15016_v39 = vmul.f32 -1.442695, %v13632_v24 }
0x1ce7   :  { %16823 = vpow2.f32 %v15015_v38 }
0x1ce8   :  { %16825 = vpow2.f32 %v15016_v39  ;;  %v20373_v39 = vld [vmem:[%s20608_s23 + $0x18] sm:$0xff] }
0x1cf4   :  { %v16824_v53 = vpop.eup %16823 }
0x1cf5   :  { %v16826_v59 = vpop.eup %16825  ;;  %v13605_v45 = vadd.f32 1.0, %v16824_v53  ;;  %v20378_v53 = vld [vmem:[%s20608_s23 + $0x10] sm:$0xff] }
0x1cf6   :  { %v13636_v11 = vadd.f32 1.0, %v16826_v59  ;;  %v13833_v59 = vld [vmem:[%s20606_s21 + $0x18] sm:$0xff] }
0x1cf7   :  { %16827 = vrcp.f32 %v13605_v45  ;;  %16375 = vmatpush3.msra.mxu1 %v13833_v59 }
0x1cf8   :  { %16829 = vrcp.f32 %v13636_v11  ;;  %16376 = vmatprep.subr.mxu1 %v20681_v17  ;;  %v20396_v11 = vld [vmem:[%s20608_s23] sm:$0xff] }
0x1d04   :  { %v16828_v18 = vpop.eup %16827 }
0x1d05   :  { %v16830_v51 = vpop.eup %16829  ;;  %v13618_v16 = vsub.f32 1.0, %v16828_v18 }
0x1d06   :  { %v13649_v5 = vsub.f32 1.0, %v16830_v51 }
0x1d55   :  { %v13640_v46 = vpop.permute.xlu0 %13639  ;;  %v13609_v44 = vpop.permute.xlu1 %13608 }
0x1d56   :  { %v13642_v25 = vmul.f32 %v16830_v51, %v13640_v46  ;;  %v13611_v19 = vmul.f32 %v16828_v18, %v13609_v44  ;;  %v13831_v46 = vld [vmem:[%s20606_s21 + $0x8] sm:$0xff]  ;;  %v13830_v44 = vld [vmem:[%s20606_s21] sm:$0xff] }
0x1d58   :  { %13644 = vrot.lane.b32.xlu0 %v13642_v25, %s17266_s19  ;;  %13613 = vrot.lane.b32.xlu1 %v13611_v19, %s17266_s19 }
0x1d5c   :  { %13655 = vrot.lane.b32.xlu1 %v13523_v60, %s17268_s7 }
0x1d60   :  { %13625 = vrot.lane.b32.xlu1 %v13624_v14, %s17241_s6 }
0x1dca   :  { %v13645_v40 = vpop.permute.xlu0 %13644  ;;  %v13614_v33 = vpop.permute.xlu1 %13613 }
0x1dcb   :  { %v13647_v43 = vadd.f32 %v13645_v40, %v20278_v47  ;;  %v13616_v15 = vadd.f32 %v13614_v33, %v20278_v47 }
0x1dcd   :  { %16831 = vtanh.f32 %v13647_v43 }
0x1dce   :  { %16833 = vtanh.f32 %v13616_v15  ;;  %v13656_v34 = vpop.permute.xlu1 %13655 }
0x1dcf   :  { %v13658_v29 = vmul.f32 %v16830_v51, %v13656_v34  ;;  %v13832_v51 = vld [vmem:[%s20606_s21 + $0x10] sm:$0xff] }
0x1dd0   :  { %16377 = vmatpush3.msra.mxu1 %v13832_v51 }
0x1dd1   :  { %16378 = vmatprep.subr.mxu1 %v20681_v17 }
0x1dd2   :  { %v13626_v41 = vpop.permute.xlu1 %13625  ;;  %16379 = vmatpush3.msra.mxu1 %v13831_v46 }
0x1dd3   :  { %v13628_v62 = vmul.f32 %v16828_v18, %v13626_v41  ;;  %16380 = vmatprep.subr.mxu1 %v20681_v17 }
0x1dd4   :  { %16381 = vmatpush3.msra.mxu1 %v13830_v44 }
0x1dd5   :  { %16396 = vmatprep.subr.mxu1 %v20681_v17 }
0x1dda   :  { %v16832_v52 = vpop.eup %16831 }
0x1ddb   :  { %13651 = vrot.lane.b32.xlu0 %v16832_v52, %s17259_s16  ;;  %v16834_v13 = vpop.eup %16833 }
0x1ddf   :  { %13620 = vrot.lane.b32.xlu0 %v16834_v13, %s17259_s16 }
0x1e4d   :  { %v13652_v55 = vpop.permute.xlu0 %13651 }
0x1e4e   :  { %v13654_v2 = vmul.f32 %v13652_v55, %v13649_v5  ;;  %v20435_v55 = vld [vmem:[#allocation22] ss:$0 sm:$0xff] }
0x1e50   :  { %v13659_v50 = vadd.f32 %v13658_v29, %v13654_v2 }
0x1e51   :  { %v13621_v48 = vpop.permute.xlu0 %13620 }
0x1e52   :  { %v13665_v20 = vrot.slane %v13659_v50, 6  ;;  %v13623_v21 = vmul.f32 %v13621_v48, %v13618_v16 }
0x1e54   :  { %v13629_v35 = vadd.f32 %v13628_v62, %v13623_v21  ;;  %13666 = vrot.lane.b32.xlu1 %v13665_v20, %s17267_s12 }
0x1e56   :  { %13661 = vrot.lane.b32.xlu0 %v13629_v35, %s17259_s16 }
0x1ec6   :  { %v13667_v61 = vpop.permute.xlu1 %13666 }
0x1ec8   :  { %v20348_v32 = vpop.permute.xlu0 %13661 }
0x1ec9   :  { %v13669_v0 = vsel %vm6052_vm13, %v20348_v32, %v13667_v61 }
0x1eca   :  { %v13671_v3 = vrot.slane %v13669_v0, 4  ;;  %v13770_v36 = vrot.slane %v13669_v0, 6 }
0x1ecc   :  { %16372 = vmatmul.mubr.msk.f32.vlgmr.msra.gmra.mxu0 %vm545_vm10, %v13671_v3 }
0x1ecd   :  { %16393 = vmatprep.mubr.msk.f32.mxu0 %vm17261_vm11, %v20681_v17  ;;  %16386 = vmatpush3.msra.mxu0 %v20373_v39 }
0x1ece   :  { %16387 = vmatprep.subr.mxu0 %v20681_v17 }
0x1ecf   :  { %16388 = vmatpush3.msra.mxu0 %v20378_v53 }
0x1ed0   :  { %16389 = vmatprep.subr.mxu0 %v20681_v17 }
0x1f8c   :  { %v13740_v8 = vpop.f32.mrf.mxu0 }
0x1f8d   :  { %v13741_v10 = vadd.f32 %v20273_v54, %v13740_v8 }
0x1f8e   :  { %v16373_v56 = vpop.f32.mrf.mxu0 }
0x1f8f   :  { %v13745_v27 = vrot.slane %v13741_v10, 2  ;;  %13783 = vrot.lane.b32.xlu0 %v13741_v10, %s17262_s22  ;;  %v13776_v26 = vadd.f32 %v13741_v10, %v20278_v47 }
0x1f91   :  { %13754 = vrot.lane.b32.xlu1 %v13745_v27, %s17262_s22  ;;  %v13747_v31 = vadd.f32 %v13745_v27, %v20278_v47  ;;  %v15019_v23 = vmul.f32 -1.442695, %v13776_v26 }
0x1f93   :  { %v15018_v12 = vmul.f32 -1.442695, %v13747_v31  ;;  %16835 = vpow2.f32 %v15019_v23 }
0x1f95   :  { %16837 = vpow2.f32 %v15018_v12 }
0x1fa0   :  { %v16836_v9 = vpop.eup %16835 }
0x1fa1   :  { %v13780_v57 = vadd.f32 1.0, %v16836_v9 }
0x1fa2   :  { %v16838_v22 = vpop.eup %16837 }
0x1fa3   :  { %v13751_v37 = vadd.f32 1.0, %v16838_v22  ;;  %16839 = vrcp.f32 %v13780_v57 }
0x1fa5   :  { %16841 = vrcp.f32 %v13751_v37 }
0x1fb0   :  { %v16840_v54 = vpop.eup %16839 }
0x1fb1   :  { %v13793_v25 = vsub.f32 1.0, %v16840_v54 }
0x1fb2   :  { %v20360_v42 = vpop.eup %16841 }
0x1fb3   :  { %v13764_v15 = vsub.f32 1.0, %v20360_v42 }
0x2001   :  { %v13784_v60 = vpop.permute.xlu0 %13783 }
0x2002   :  { %v13786_v7 = vmul.f32 %v16840_v54, %v13784_v60 }
0x2003   :  { %v13755_v58 = vpop.permute.xlu1 %13754 }
0x2004   :  { %v13757_v28 = vmul.f32 %v20360_v42, %v13755_v58  ;;  %13788 = vrot.lane.b32.xlu0 %v13786_v7, %s17266_s19 }
0x2006   :  { %13759 = vrot.lane.b32.xlu1 %v13757_v28, %s17266_s19 }
0x200a   :  { %13799 = vrot.lane.b32.xlu1 %v13671_v3, %s17268_s7 }
0x200e   :  { %13771 = vrot.lane.b32.xlu1 %v13770_v36, %s17241_s6 }
0x2012   :  { %13809 = vrot.lane.b32.xlu1 %v13659_v50, %s17267_s12 }
0x2076   :  { %v13789_v4 = vpop.permute.xlu0 %13788 }
0x2077   :  { %v13791_v1 = vadd.f32 %v13789_v4, %v20278_v47 }
0x2078   :  { %v13760_v24 = vpop.permute.xlu1 %13759 }
0x2079   :  { %16843 = vtanh.f32 %v13791_v1  ;;  %v13762_v38 = vadd.f32 %v13760_v24, %v20278_v47  ;;  %v20388_v47 = vld [vmem:[%s20608_s23 + $0x8] sm:$0xff] }
0x207a   :  { %16390 = vmatpush3.msra.mxu0 %v20388_v47 }
0x207b   :  { %16845 = vtanh.f32 %v13762_v38  ;;  %16391 = vmatprep.subr.mxu0 %v20681_v17 }
0x207c   :  { %16392 = vmatpush3.msra.mxu0 %v20396_v11 }
0x207d   :  { %16394 = vmatmul.mubr.f32.vlgmr.msra.gmra.mxu0 %v20681_v17  ;;  %16407 = vmatprep.subr.mxu0 %v20681_v17 }
0x207e   :  { %16408 = vmatpush3.msra.mxu0 %v20373_v39  ;;  %16415 = vmatprep.mubr.msk.f32.mxu0 %vm17261_vm11, %v20681_v17 }
0x207f   :  { %16409 = vmatprep.subr.mxu0 %v20681_v17 }
0x2080   :  { %16410 = vmatpush3.msra.mxu0 %v20378_v53 }
0x2081   :  { %16411 = vmatprep.subr.mxu0 %v20681_v17 }
0x2082   :  { %16412 = vmatpush3.msra.mxu0 %v20388_v47 }
0x2083   :  { %16413 = vmatprep.subr.mxu0 %v20681_v17 }
0x2084   :  { %16414 = vmatpush3.msra.mxu0 %v20396_v11 }
0x2085   :  { %16429 = vmatprep.subr.mxu0 %v20681_v17 }
0x2086   :  { %v16844_v45 = vpop.eup %16843 }
0x2087   :  { %13795 = vrot.lane.b32.xlu0 %v16844_v45, %s17259_s16 }
0x2088   :  { %v16846_v18 = vpop.eup %16845 }
0x208b   :  { %13766 = vrot.lane.b32.xlu0 %v16846_v18, %s17259_s16 }
0x208f   :  { %13813 = vrot.lane.b32.xlu0 %v20321_v30, %s17267_s12  ;;  %v13800_v30 = vpop.permute.xlu1 %13799 }
0x2090   :  { %v13802_v14 = vmul.f32 %v16840_v54, %v13800_v30 }
0x2093   :  { %v13772_v33 = vpop.permute.xlu1 %13771 }
0x2094   :  { %v13774_v13 = vmul.f32 %v20360_v42, %v13772_v33 }
0x2097   :  { %v13810_v48 = vpop.permute.xlu1 %13809 }
0x2098   :  { %v13812_v20 = vsel %vm6052_vm13, %v20326_v49, %v13810_v48 }
0x20f9   :  { %v13796_v19 = vpop.permute.xlu0 %13795 }
0x20fa   :  { %v13798_v40 = vmul.f32 %v13796_v19, %v13793_v25 }
0x20fc   :  { %v13803_v43 = vadd.f32 %v13802_v14, %v13798_v40 }
0x20fd   :  { %v13767_v52 = vpop.permute.xlu0 %13766 }
0x20fe   :  { %v13769_v34 = vmul.f32 %v13767_v52, %v13764_v15  ;;  %13805 = vrot.lane.b32.xlu0 %v13803_v43, %s17267_s12 }
0x2100   :  { %v13775_v5 = vadd.f32 %v13774_v13, %v13769_v34 }
0x2101   :  { %v13814_v16 = vpop.permute.xlu0 %13813 }
0x2102   :  { %13821 = vrot.lane.b32.xlu0 %v20288_v6, %s17267_s12  ;;  %13818 = vrot.lane.b32.xlu1 %v13775_v5, %s17259_s16  ;;  %v13816_v35 = vsel %vm6052_vm13, %v20348_v32, %v13814_v16 }
0x213d   :  { %v13991_v29 = vpop.f32.mrf.mxu0 }
0x213e   :  { %v13992_v2 = vadd.f32 %v20435_v55, %v13991_v29 }
0x213f   :  { %v16395_v41 = vpop.f32.mrf.mxu0 }
0x2140   :  { %v14021_v50 = vrot.slane %v13992_v2, 2  ;;  %14003 = vrot.lane.b32.xlu0 %v13992_v2, %s17262_s22 }
0x2142   :  { %14030 = vrot.lane.b32.xlu1 %v14021_v50, %s17262_s22 }
0x2170   :  { %v13806_v62 = vpop.permute.xlu0 %13805 }
0x2171   :  { %v13808_v6 = vsel %vm6052_vm13, %v20293_v63, %v13806_v62  ;;  %v15020_v63 = vld [vmem:[#allocation20] ss:$0 sm:$0xff] }
0x2172   :  { %v13825_v21 = vsel %vm425_vm0, %v13808_v6, %v13812_v20 }
0x2173   :  { %v13827_v3 = vsel %vm13826_vm1, %v13825_v21, %v13816_v35 }
0x2174   :  { %v13822_v61 = vpop.permute.xlu0 %13821  ;;  %v13819_v0 = vpop.permute.xlu1 %13818 }
0x2175   :  { %v13824_v8 = vsel %vm6052_vm13, %v13819_v0, %v13822_v61 }
0x2176   :  { %v13829_v10 = vsel %vm13828_vm2, %v13827_v3, %v13824_v8 }
0x2177   :  { %16383 = vmatmul.mubr.msk.f32.vlgmr.msra.gmra.mxu1 %vm545_vm10, %v13829_v10 }
0x2178   :  { %16397 = vmatpush3.msra.mxu1 %v20373_v39  ;;  %16404 = vmatprep.mubr.msk.f32.mxu1 %vm17261_vm11, %v20681_v17 }
0x2179   :  { %16398 = vmatprep.subr.mxu1 %v20681_v17 }
0x217a   :  { %16399 = vmatpush3.msra.mxu1 %v20378_v53 }
0x217b   :  { %16400 = vmatprep.subr.mxu1 %v20681_v17 }
0x217c   :  { %16401 = vmatpush3.msra.mxu1 %v20388_v47 }
0x217d   :  { %16402 = vmatprep.subr.mxu1 %v20681_v17 }
0x217e   :  { %16403 = vmatpush3.msra.mxu1 %v20396_v11 }
0x217f   :  { %16418 = vmatprep.subr.mxu1 %v20681_v17 }
0x21b2   :  { %v14004_v60 = vpop.permute.xlu0 %14003 }
0x21b4   :  { %v14031_v37 = vpop.permute.xlu1 %14030 }
0x2237   :  { %v13910_v49 = vpop.f32.mrf.mxu1 }
0x2238   :  { %v20461_v32 = vadd.f32 %v15020_v63, %v13910_v49 }
0x2239   :  { %v16384_v56 = vpop.f32.mrf.mxu1 }
0x223a   :  { %v13995_v27 = vadd.f32 %v13992_v2, %v20461_v32  ;;  %v14023_v26 = vadd.f32 %v14021_v50, %v20461_v32 }
0x223c   :  { %v15023_v31 = vmul.f32 -1.442695, %v13995_v27  ;;  %v15024_v23 = vmul.f32 -1.442695, %v14023_v26 }
0x223e   :  { %16847 = vpow2.f32 %v15023_v31 }
0x223f   :  { %16849 = vpow2.f32 %v15024_v23 }
0x224b   :  { %v16848_v12 = vpop.eup %16847 }
0x224c   :  { %v16850_v9 = vpop.eup %16849  ;;  %v13999_v22 = vadd.f32 1.0, %v16848_v12 }
0x224d   :  { %v14027_v57 = vadd.f32 1.0, %v16850_v9 }
0x224e   :  { %16851 = vrcp.f32 %v13999_v22 }
0x224f   :  { %16853 = vrcp.f32 %v14027_v57 }
0x225b   :  { %v16852_v54 = vpop.eup %16851 }
0x225c   :  { %v16854_v7 = vpop.eup %16853  ;;  %v14006_v42 = vmul.f32 %v16852_v54, %v14004_v60  ;;  %v14013_v59 = vsub.f32 1.0, %v16852_v54  ;;  %v14019_v46 = vmul.f32 0.0, %v16852_v54 }
0x225d   :  { %v14033_v58 = vmul.f32 %v16854_v7, %v14031_v37  ;;  %v14040_v45 = vsub.f32 1.0, %v16854_v7  ;;  %v14046_v44 = vmul.f32 0.0, %v16854_v7 }
0x225e   :  { %14008 = vrot.lane.b32.xlu0 %v14006_v42, %s17266_s19 }
0x225f   :  { %14035 = vrot.lane.b32.xlu1 %v14033_v58, %s17266_s19 }
0x22d0   :  { %v14009_v28 = vpop.permute.xlu0 %14008 }
0x22d1   :  { %v14036_v36 = vpop.permute.xlu1 %14035  ;;  %v14011_v4 = vadd.f32 %v14009_v28, %v20461_v32 }
0x22d2   :  { %v14038_v1 = vadd.f32 %v14036_v36, %v20461_v32 }
0x22d3   :  { %16855 = vtanh.f32 %v14011_v4 }
0x22d4   :  { %16857 = vtanh.f32 %v14038_v1 }
0x22e0   :  { %v16856_v24 = vpop.eup %16855 }
0x22e1   :  { %v16858_v38 = vpop.eup %16857  ;;  %14015 = vrot.lane.b32.xlu0 %v16856_v24, %s17259_s16 }
0x22e2   :  { %14042 = vrot.lane.b32.xlu1 %v16858_v38, %s17259_s16 }
0x2353   :  { %v14016_v18 = vpop.permute.xlu0 %14015 }
0x2354   :  { %v14043_v51 = vpop.permute.xlu1 %14042  ;;  %v14018_v30 = vmul.f32 %v14016_v18, %v14013_v59 }
0x2355   :  { %v14045_v25 = vmul.f32 %v14043_v51, %v14040_v45 }
0x2356   :  { %v14020_v19 = vadd.f32 %v14019_v46, %v14018_v30 }
0x2357   :  { %v20471_v14 = vadd.f32 %v14046_v44, %v14045_v25 }
0x2358   :  { %14049 = vrot.lane.b32.xlu1 %v14020_v19, %s17259_s16 }
0x2359   :  { %v14053_v40 = vrot.slane %v20471_v14, 6 }
0x235b   :  { %14054 = vrot.lane.b32.xlu0 %v14053_v40, %s17267_s12 }
0x23ca   :  { %v20476_v33 = vpop.permute.xlu1 %14049 }
0x23cd   :  { %v14055_v43 = vpop.permute.xlu0 %14054 }
0x23ce   :  { %v14057_v15 = vsel %vm6052_vm13, %v20476_v33, %v14055_v43 }
0x23cf   :  { %16405 = vmatmul.mubr.msk.f32.vlgmr.msra.gmra.mxu1 %vm545_vm10, %v14057_v15  ;;  %v14188_v61 = vrot.slane %v14057_v15, 4  ;;  %v14157_v0 = vrot.slane %v14057_v15, 6 }
0x23d0   :  { %16419 = vmatpush3.msra.mxu1 %v20373_v39  ;;  %16426 = vmatprep.mubr.msk.f32.mxu1 %vm17261_vm11, %v20681_v17 }
0x23d1   :  { %16420 = vmatprep.subr.mxu1 %v20681_v17 }
0x23d2   :  { %16421 = vmatpush3.msra.mxu1 %v20378_v53 }
0x23d3   :  { %16422 = vmatprep.subr.mxu1 %v20681_v17 }
0x23d4   :  { %16423 = vmatpush3.msra.mxu1 %v20388_v47 }
0x23d5   :  { %16424 = vmatprep.subr.mxu1 %v20681_v17 }
0x23d6   :  { %16425 = vmatpush3.msra.mxu1 %v20396_v11 }
0x248f   :  { %v14127_v52 = vpop.f32.mrf.mxu1 }
0x2490   :  { %v14128_v13 = vadd.f32 %v20435_v55, %v14127_v52 }
0x2491   :  { %v16406_v34 = vpop.f32.mrf.mxu1 }
0x2492   :  { %v14132_v39 = vrot.slane %v14128_v13, 6  ;;  %v14163_v5 = vrot.slane %v14128_v13, 4 }
0x2494   :  { %14172 = vrot.lane.b32.xlu1 %v14163_v5, %s17262_s22  ;;  %14141 = vrot.lane.b32.xlu0 %v14132_v39, %s17262_s22  ;;  %v14134_v53 = vadd.f32 %v14132_v39, %v20461_v32  ;;  %v14165_v29 = vadd.f32 %v14163_v5, %v20461_v32 }
0x2496   :  { %v15026_v2 = vmul.f32 -1.442695, %v14134_v53  ;;  %v15027_v47 = vmul.f32 -1.442695, %v14165_v29 }
0x2498   :  { %16859 = vpow2.f32 %v15026_v2 }
0x2499   :  { %16861 = vpow2.f32 %v15027_v47 }
0x24a5   :  { %v16860_v41 = vpop.eup %16859 }
0x24a6   :  { %v16862_v11 = vpop.eup %16861  ;;  %v14138_v50 = vadd.f32 1.0, %v16860_v41 }
0x24a7   :  { %v14169_v16 = vadd.f32 1.0, %v16862_v11 }
0x24a8   :  { %16863 = vrcp.f32 %v14138_v50 }
0x24a9   :  { %16865 = vrcp.f32 %v14169_v16 }
0x24b5   :  { %v16864_v48 = vpop.eup %16863 }
0x24b6   :  { %v16866_v62 = vpop.eup %16865  ;;  %v14151_v57 = vsub.f32 1.0, %v16864_v48 }
0x24b7   :  { %v14182_v26 = vsub.f32 1.0, %v16866_v62 }
0x2506   :  { %v14173_v20 = vpop.permute.xlu1 %14172  ;;  %v14142_v6 = vpop.permute.xlu0 %14141 }
0x2507   :  { %v14175_v21 = vmul.f32 %v16866_v62, %v14173_v20  ;;  %v14144_v35 = vmul.f32 %v16864_v48, %v14142_v6 }
0x2509   :  { %14177 = vrot.lane.b32.xlu1 %v14175_v21, %s17266_s19  ;;  %14146 = vrot.lane.b32.xlu0 %v14144_v35, %s17266_s19 }
0x250d   :  { %14189 = vrot.lane.b32.xlu0 %v14188_v61, %s17268_s7 }
0x2511   :  { %14158 = vrot.lane.b32.xlu0 %v14157_v0, %s17241_s6 }
0x257b   :  { %v14178_v3 = vpop.permute.xlu1 %14177  ;;  %v14147_v8 = vpop.permute.xlu0 %14146 }
0x257c   :  { %v14180_v10 = vadd.f32 %v14178_v3, %v20461_v32  ;;  %v14149_v63 = vadd.f32 %v14147_v8, %v20461_v32 }
0x257e   :  { %16867 = vtanh.f32 %v14180_v10 }
0x257f   :  { %16869 = vtanh.f32 %v14149_v63  ;;  %v14190_v27 = vpop.permute.xlu0 %14189 }
0x2580   :  { %v14192_v23 = vmul.f32 %v16866_v62, %v14190_v27 }
0x2583   :  { %v14159_v9 = vpop.permute.xlu0 %14158 }
0x2584   :  { %v14161_v54 = vmul.f32 %v16864_v48, %v14159_v9 }
0x258b   :  { %v16868_v49 = vpop.eup %16867 }
0x258c   :  { %14184 = vrot.lane.b32.xlu1 %v16868_v49, %s17259_s16  ;;  %v16870_v56 = vpop.eup %16869 }
0x2590   :  { %14153 = vrot.lane.b32.xlu1 %v16870_v56, %s17259_s16 }
0x25fe   :  { %v14185_v31 = vpop.permute.xlu1 %14184 }
0x25ff   :  { %v14187_v12 = vmul.f32 %v14185_v31, %v14182_v26 }
0x2601   :  { %v20503_v22 = vadd.f32 %v14192_v23, %v14187_v12 }
0x2602   :  { %v14154_v37 = vpop.permute.xlu1 %14153 }
0x2603   :  { %v14199_v60 = vrot.slane %v20503_v22, 2  ;;  %v14156_v7 = vmul.f32 %v14154_v37, %v14151_v57 }
0x2605   :  { %v14162_v42 = vadd.f32 %v14161_v54, %v14156_v7  ;;  %14200 = vrot.lane.b32.xlu0 %v14199_v60, %s17267_s12 }
0x2607   :  { %14195 = vrot.lane.b32.xlu1 %v14162_v42, %s17259_s16 }
0x2677   :  { %v14201_v58 = vpop.permute.xlu0 %14200 }
0x2679   :  { %v20508_v28 = vpop.permute.xlu1 %14195 }
0x267a   :  { %v14203_v36 = vsel %vm6052_vm13, %v20508_v28, %v14201_v58 }
0x267b   :  { %v14205_v4 = vrot.slane %v14203_v36, 2  ;;  %v14304_v5 = vrot.slane %v14203_v36, 6 }
0x267d   :  { %16416 = vmatmul.mubr.msk.f32.vlgmr.msra.gmra.mxu0 %vm545_vm10, %v14205_v4 }
0x267e   :  { %16437 = vmatprep.mubr.msk.f32.mxu0 %vm17261_vm11, %v20681_v17 }
0x273d   :  { %v14274_v1 = vpop.f32.mrf.mxu0 }
0x273e   :  { %v14275_v24 = vadd.f32 %v20435_v55, %v14274_v1 }
0x273f   :  { %v16417_v38 = vpop.f32.mrf.mxu0 }
0x2740   :  { %v14279_v59 = vrot.slane %v14275_v24, 4  ;;  %v14310_v45 = vrot.slane %v14275_v24, 6 }
0x2742   :  { %14319 = vrot.lane.b32.xlu1 %v14310_v45, %s17262_s22  ;;  %14288 = vrot.lane.b32.xlu0 %v14279_v59, %s17262_s22  ;;  %v14281_v18 = vadd.f32 %v14279_v59, %v20461_v32  ;;  %v14312_v51 = vadd.f32 %v14310_v45, %v20461_v32 }
0x2744   :  { %v15029_v46 = vmul.f32 -1.442695, %v14281_v18  ;;  %v15030_v30 = vmul.f32 -1.442695, %v14312_v51 }
0x2746   :  { %16871 = vpow2.f32 %v15029_v46 }
0x2747   :  { %16873 = vpow2.f32 %v15030_v30  ;;  %v14511_v30 = vld [vmem:[%s20610_s25 + $0x18] sm:$0xff] }
0x2748   :  { %16430 = vmatpush3.msra.mxu0 %v14511_v30 }
0x2749   :  { %16431 = vmatprep.subr.mxu0 %v20681_v17 }
0x2753   :  { %v16872_v44 = vpop.eup %16871 }
0x2754   :  { %v16874_v25 = vpop.eup %16873  ;;  %v14285_v19 = vadd.f32 1.0, %v16872_v44 }
0x2755   :  { %v14316_v40 = vadd.f32 1.0, %v16874_v25 }
0x2756   :  { %16875 = vrcp.f32 %v14285_v19  ;;  %v14509_v19 = vld [vmem:[%s20610_s25 + $0x8] sm:$0xff] }
0x2757   :  { %16877 = vrcp.f32 %v14316_v40 }
0x2763   :  { %v16876_v43 = vpop.eup %16875 }
0x2764   :  { %v16878_v15 = vpop.eup %16877  ;;  %v14298_v35 = vsub.f32 1.0, %v16876_v43 }
0x2765   :  { %v14329_v16 = vsub.f32 1.0, %v16878_v15 }
0x27b4   :  { %v14320_v52 = vpop.permute.xlu1 %14319  ;;  %v14289_v13 = vpop.permute.xlu0 %14288 }
0x27b5   :  { %v14322_v34 = vmul.f32 %v16878_v15, %v14320_v52  ;;  %v14291_v39 = vmul.f32 %v16876_v43, %v14289_v13 }
0x27b7   :  { %14324 = vrot.lane.b32.xlu1 %v14322_v34, %s17266_s19  ;;  %14293 = vrot.lane.b32.xlu0 %v14291_v39, %s17266_s19 }
0x27bb   :  { %14335 = vrot.lane.b32.xlu0 %v14203_v36, %s17268_s7 }
0x27bf   :  { %14305 = vrot.lane.b32.xlu0 %v14304_v5, %s17241_s6 }
0x2829   :  { %v14325_v53 = vpop.permute.xlu1 %14324  ;;  %v14294_v29 = vpop.permute.xlu0 %14293 }
0x282a   :  { %v14327_v2 = vadd.f32 %v14325_v53, %v20461_v32  ;;  %v14296_v47 = vadd.f32 %v14294_v29, %v20461_v32 }
0x282c   :  { %16879 = vtanh.f32 %v14327_v2 }
0x282d   :  { %16881 = vtanh.f32 %v14296_v47  ;;  %v14336_v50 = vpop.permute.xlu0 %14335 }
0x282e   :  { %v14338_v62 = vmul.f32 %v16878_v15, %v14336_v50 }
0x2831   :  { %v14306_v6 = vpop.permute.xlu0 %14305 }
0x2832   :  { %v14308_v0 = vmul.f32 %v16876_v43, %v14306_v6  ;;  %v14508_v43 = vld [vmem:[%s20610_s25] sm:$0xff] }
0x2839   :  { %v16880_v41 = vpop.eup %16879 }
0x283a   :  { %14331 = vrot.lane.b32.xlu1 %v16880_v41, %s17259_s16  ;;  %v16882_v11 = vpop.eup %16881 }
0x283e   :  { %14300 = vrot.lane.b32.xlu1 %v16882_v11, %s17259_s16 }
0x28ac   :  { %v14332_v48 = vpop.permute.xlu1 %14331 }
0x28ad   :  { %v14334_v20 = vmul.f32 %v14332_v48, %v14329_v16 }
0x28af   :  { %v14339_v21 = vadd.f32 %v14338_v62, %v14334_v20 }
0x28b0   :  { %v14301_v61 = vpop.permute.xlu1 %14300 }
0x28b1   :  { %v14345_v3 = vrot.slane %v14339_v21, 6  ;;  %v14303_v8 = vmul.f32 %v14301_v61, %v14298_v35  ;;  %v15034_v61 = vld [vmem:[#allocation23] ss:$0 sm:$0xff] }
0x28b3   :  { %v14309_v10 = vadd.f32 %v14308_v0, %v14303_v8  ;;  %14346 = vrot.lane.b32.xlu0 %v14345_v3, %s17267_s12 }
0x28b5   :  { %14341 = vrot.lane.b32.xlu1 %v14309_v10, %s17259_s16 }
0x2925   :  { %v14347_v63 = vpop.permute.xlu0 %14346 }
0x2927   :  { %v20530_v49 = vpop.permute.xlu1 %14341 }
0x2928   :  { %v14349_v56 = vsel %vm6052_vm13, %v20530_v49, %v14347_v63 }
0x2929   :  { %v14351_v27 = vrot.slane %v14349_v56, 4  ;;  %v14450_v59 = vrot.slane %v14349_v56, 6 }
0x292b   :  { %16427 = vmatmul.mubr.msk.f32.vlgmr.msra.gmra.mxu1 %vm545_vm10, %v14351_v27 }
0x29eb   :  { %v14420_v26 = vpop.f32.mrf.mxu1 }
0x29ec   :  { %v14421_v31 = vadd.f32 %v20435_v55, %v14420_v26 }
0x29ed   :  { %v16428_v23 = vpop.f32.mrf.mxu1 }
0x29ee   :  { %v14425_v12 = vrot.slane %v14421_v31, 2  ;;  %14463 = vrot.lane.b32.xlu1 %v14421_v31, %s17262_s22  ;;  %v14456_v9 = vadd.f32 %v14421_v31, %v20461_v32 }
0x29f0   :  { %14434 = vrot.lane.b32.xlu0 %v14425_v12, %s17262_s22  ;;  %v14427_v57 = vadd.f32 %v14425_v12, %v20461_v32  ;;  %v15033_v37 = vmul.f32 -1.442695, %v14456_v9 }
0x29f2   :  { %v15032_v54 = vmul.f32 -1.442695, %v14427_v57  ;;  %16883 = vpow2.f32 %v15033_v37 }
0x29f4   :  { %16885 = vpow2.f32 %v15032_v54 }
0x29ff   :  { %v16884_v60 = vpop.eup %16883 }
0x2a00   :  { %v14460_v42 = vadd.f32 1.0, %v16884_v60 }
0x2a01   :  { %v16886_v7 = vpop.eup %16885 }
0x2a02   :  { %v14431_v58 = vadd.f32 1.0, %v16886_v7  ;;  %16887 = vrcp.f32 %v14460_v42  ;;  %v17269_v42 = vmov 1  }
0x2a03   :  { %16476 = vset.pattern.permute.xlu1 %v17269_v42 }
0x2a04   :  { %16889 = vrcp.f32 %v14431_v58 }
0x2a0f   :  { %v16888_v55 = vpop.eup %16887 }
0x2a11   :  { %v16890_v1 = vpop.eup %16889 }
0x2a12   :  { %v14444_v5 = vsub.f32 1.0, %v16890_v1 }
0x2a60   :  { %v14464_v36 = vpop.permute.xlu1 %14463 }
0x2a61   :  { %v14466_v4 = vmul.f32 %v16888_v55, %v14464_v36 }
0x2a62   :  { %v14435_v24 = vpop.permute.xlu0 %14434 }
0x2a63   :  { %v14437_v38 = vmul.f32 %v16890_v1, %v14435_v24  ;;  %14468 = vrot.lane.b32.xlu1 %v14466_v4, %s17266_s19  ;;  %v17270_v4 = vmov 2  }
0x2a65   :  { %14439 = vrot.lane.b32.xlu0 %v14437_v38, %s17266_s19 }
0x2a69   :  { %14479 = vrot.lane.b32.xlu0 %v14351_v27, %s17268_s7 }
0x2a6d   :  { %14451 = vrot.lane.b32.xlu0 %v14450_v59, %s17241_s6 }
0x2a71   :  { %14489 = vrot.lane.b32.xlu0 %v14339_v21, %s17267_s12 }
0x2ad5   :  { %v14469_v45 = vpop.permute.xlu1 %14468 }
0x2ad6   :  { %v14471_v18 = vadd.f32 %v14469_v45, %v20461_v32 }
0x2ad7   :  { %v14440_v51 = vpop.permute.xlu0 %14439 }
0x2ad8   :  { %16891 = vtanh.f32 %v14471_v18  ;;  %v14442_v46 = vadd.f32 %v14440_v51, %v20461_v32  ;;  %v14510_v32 = vld [vmem:[%s20610_s25 + $0x10] sm:$0xff]  ;;  %s17272_s25 = smov [#allocation26]  }
0x2ad9   :  { %16432 = vmatpush3.msra.mxu0 %v14510_v32 }
0x2ada   :  { %16893 = vtanh.f32 %v14442_v46  ;;  %16433 = vmatprep.subr.mxu0 %v20681_v17 }
0x2adb   :  { %v14480_v40 = vpop.permute.xlu0 %14479  ;;  %16434 = vmatpush3.msra.mxu0 %v14509_v19 }
0x2adc   :  { %16435 = vmatprep.subr.mxu0 %v20681_v17  ;;  %v14482_v52 = vmul.f32 %v16888_v55, %v14480_v40 }
0x2add   :  { %16436 = vmatpush3.msra.mxu0 %v14508_v43 }
0x2adf   :  { %v14452_v34 = vpop.permute.xlu0 %14451 }
0x2ae0   :  { %v14454_v29 = vmul.f32 %v16890_v1, %v14452_v34  ;;  %v17271_v1 = vmov 3  }
0x2ae3   :  { %v14490_v41 = vpop.permute.xlu0 %14489 }
0x2ae4   :  { %v14492_v50 = vsel %vm6052_vm13, %v20508_v28, %v14490_v41 }
0x2ae5   :  { %v16892_v44 = vpop.eup %16891  ;;  %v14641_v24 = vrot.slane %v14492_v50, 2 }
0x2ae6   :  { %14475 = vrot.lane.b32.xlu1 %v16892_v44, %s17259_s16 }
0x2ae7   :  { %v16894_v25 = vpop.eup %16893 }
0x2aea   :  { %14446 = vrot.lane.b32.xlu1 %v16894_v25, %s17259_s16 }
0x2aee   :  { %14493 = vrot.lane.b32.xlu1 %v20503_v22, %s17267_s12  ;;  %v14473_v22 = vsub.f32 1.0, %v16888_v55 }
0x2b58   :  { %v14476_v15 = vpop.permute.xlu1 %14475 }
0x2b59   :  { %v14478_v13 = vmul.f32 %v14476_v15, %v14473_v22 }
0x2b5b   :  { %v14483_v39 = vadd.f32 %v14482_v52, %v14478_v13 }
0x2b5c   :  { %v14447_v53 = vpop.permute.xlu1 %14446 }
0x2b5d   :  { %v14449_v2 = vmul.f32 %v14447_v53, %v14444_v5  ;;  %14485 = vrot.lane.b32.xlu1 %v14483_v39, %s17267_s12 }
0x2b5f   :  { %v14455_v47 = vadd.f32 %v14454_v29, %v14449_v2 }
0x2b60   :  { %v14494_v17 = vpop.permute.xlu1 %14493 }
0x2b61   :  { %14501 = vrot.lane.b32.xlu1 %v20471_v14, %s17267_s12  ;;  %14498 = vrot.lane.b32.xlu0 %v14455_v47, %s17259_s16  ;;  %v14496_v62 = vsel %vm6052_vm13, %v20530_v49, %v14494_v17  ;;  %s14671_s16 = sshll.u32 %s17272_s25, 4  ;;  %s14672_s16 = int_to_ptr.vmem [resolvable:$true] %s14671_s16 }
0x2b62   :  { %v14650_v51 = vrot.slane %v14496_v62, 4  ;;  %s17201_s20 = scalar_lea.vmem %s14672_s16, 32  ;;  %p17206_p6 = scmp.lt.s32.totalorder %s14672_s16, %s14672_s16 }
0x2b63   :  { %p17202_p5 = scmp.ne.s32.totalorder %s14672_s16, %s17201_s20  ;;  %p17207_p7 = scmp.lt.s32.totalorder %s17201_s20, %s17201_s20 }
0x2b65   :  { %p17208_p8 = por %p17207_p7, %p17206_p6 }
0x2b67   :  { %p17209_p9 = pnand %p17208_p8, %p17202_p5 }
0x2bcf   :  { %v14486_v11 = vpop.permute.xlu1 %14485 }
0x2bd0   :  { %v14488_v16 = vsel %vm6052_vm13, %v20476_v33, %v14486_v11  ;;  %v15036_v33 = vld [vmem:[#allocation25] ss:$0 sm:$0xff] }
0x2bd1   :  { %v14505_v48 = vsel %vm425_vm0, %v14488_v16, %v14492_v50  ;;  %vm14611_vm0 = vcmask 7168  }
0x2bd2   :  { %v14506_v14 = vsel %vm13826_vm1, %v14505_v48, %v14496_v62 }
0x2bd3   :  { %v14502_v20 = vpop.permute.xlu1 %14501  ;;  %v14499_v6 = vpop.permute.xlu0 %14498 }
0x2bd4   :  { %v14504_v21 = vsel %vm6052_vm13, %v14499_v6, %v14502_v20 }
0x2bd5   :  { %v14507_v35 = vsel %vm13828_vm2, %v14506_v14, %v14504_v21  ;;  %v14659_v32 = vrot.slane %v14504_v21, 6 }
0x2bd6   :  { %16438 = vmatmul.mubr.msk.f32.vlgmr.msra.gmra.mxu0 %vm545_vm10, %v14507_v35 }
0x2c96   :  { %v14588_v28 = vpop.f32.mrf.mxu0 }
0x2c97   :  { %v14589_v0 = vadd.f32 %v15034_v61, %v14588_v28 }
0x2c98   :  { %v16439_v3 = vpop.f32.mrf.mxu0 }
0x2c99   :  { %16895 = vtanh.f32 %v14589_v0 }
0x2ca6   :  { %v16896_v8 = vpop.eup %16895 }
0x2ca7   :  { %v14600_v10 = vmul.f32 %v16896_v8, %v15036_v33 }
0x2ca9   :  { %v14601_v63 = vsel %vm545_vm10, %v14600_v10, 0.0 }
0x2caa   :  { %14602 = vadd.xlane.f32.xlu0 %v14601_v63 }
0x2d33   :  { %v14603_v49 = vpop.xlane.xlu0 %14602 }
0x2d34   :  { %v14605_v56 = vrot.slane %v14603_v49, 2  ;;  %v14607_v27 = vrot.slane %v14603_v49, 4  ;;  %v14609_v26 = vrot.slane %v14603_v49, 6 }
0x2d36   :  { %v14612_v31 = vsel %vm14611_vm0, %v14603_v49, %v14605_v56 }
0x2d37   :  { %v14614_v23 = vsel %vm14613_vm3, %v14612_v31, %v14607_v27 }
0x2d38   :  { %v14616_v12 = vsel %vm14615_vm4, %v14614_v23, %v14609_v26 }
0x2d39   :  { %v14618_v9 = vsel %vm14617_vm5, %v14616_v12, -inf }
0x2d3a   :  { %14619 = vmax.xlane.f32.xlu1 %v14618_v9 }
0x2dc3   :  { %v14620_v57 = vpop.xlane.xlu1 %14619 }
0x2dc4   :  { %v14621_v37 = vsub.f32 %v14616_v12, %v14620_v57 }
0x2dc6   :  { %v14622_v54 = vmul.f32 1.442695, %v14621_v37 }
0x2dc8   :  { %16897 = vpow2.f32 %v14622_v54 }
0x2dd5   :  { %v16898_v60 = vpop.eup %16897 }
0x2dd6   :  { %v14624_v7 = vsel %vm14617_vm5, %v16898_v60, 0.0 }
0x2dd7   :  { %14625 = vadd.xlane.f32.xlu0 %v14624_v7 }
0x2e60   :  { %v14626_v58 = vpop.xlane.xlu0 %14625 }
0x2e61   :  { %16899 = vrcp.f32 %v14626_v58 }
0x2e6e   :  { %v16900_v55 = vpop.eup %16899 }
0x2e6f   :  { %v14628_v36 = vmul.f32 %v16900_v55, %v16898_v60 }
0x2e71   :  { %14637 = vperm.xlu1 %16476, %v14628_v36   ;;  %14631 = vperm.xlu0 %16474, %v14628_v36  }
0x2e75   :  { %16477 = vset.pattern.permute.xlu1 %v17270_v4  ;;  %16478 = vset.pattern.permute.xlu0 %v17271_v1 }
0x2e76   :  { %14646 = vperm.xlu1 %16477, %v14628_v36   ;;  %14655 = vperm.xlu0 %16478, %v14628_v36  }
0x2eec   :  { %v14638_v38 = vpop.permute.xlu1 %14637  ;;  %v14632_v59 = vpop.permute.xlu0 %14631 }
0x2eed   :  { %v14643_v45 = vmul.f32 %v14641_v24, %v14638_v38  ;;  %v14634_v18 = vmul.f32 %v14632_v59, %v14488_v16 }
0x2eef   :  { %v14644_v44 = vadd.f32 %v14643_v45, %v14634_v18 }
0x2ef1   :  { %v14647_v46 = vpop.permute.xlu1 %14646  ;;  %v14656_v30 = vpop.permute.xlu0 %14655 }
0x2ef2   :  { %v14652_v25 = vmul.f32 %v14650_v51, %v14647_v46  ;;  %v14661_v40 = vmul.f32 %v14659_v32, %v14656_v30 }
0x2ef4   :  { %v14653_v19 = vadd.f32 %v14652_v25, %v14644_v44 }
0x2ef6   :  { %v14662_v43 = vadd.f32 %v14661_v40, %v14653_v19 }
0x2ef8   :  { %14664 = vst.msk [vmem:[#allocation26] sm:$0x3] %vm14663_vm6, %v14662_v43 }
0x2ef9   :  { %17212 = shalt.err (!%p17209_p9)
}
0x2efa   :  { %14674 = dma.vmem_to_hbm [thread:$0]  %s14672_s16, 32, %s20613_s28, [#allocation4]  }
0x2efb   :  { %17237 = dma.done.wait [#allocation4], 32  }
0x2efc   :  { %17238 = vsyncadd [#allocation4], 4294967264 }
0x2efd   :  { %14678 = vsyncpa [#allocation3], 1 }
0x2efe   :  { %14679 = vsyncpa [#allocation6], 1 }
0x2eff   :  { %14680 = vsyncpa [#allocation9], 1 }
0x2f00   :  { %14681 = vsyncpa [#allocation12], 1 }
0x2f01   :  { %14682 = vsyncpa [#allocation15], 1 }
0x2f02   :  { %14683 = vsyncpa [#allocation18], 1 }
0x2f03   :  { %14684 = vsyncpa [#allocation21], 1 }
0x2f04   :  { %14685 = vsyncpa [#allocation24], 1 }
0x2f05   :  { %14686 = vsyncpa [#allocation4], 1 }

</bundles_post_ra>
